<compile_context>
chip_gen: v5e
topology: v5e:2x2
jax: 0.10.0
libtpu: 0.0.40
codegen_flags: <defaults>
</compile_context>

<pallas_src>
import math
from functools import partial

import jax
import jax.numpy as jnp
from jax import lax
from jax.experimental import pallas as pl
from jax.experimental.pallas import tpu as pltpu


_VMEM = pl.BlockSpec(memory_space=pltpu.MemorySpace.VMEM)
_EPS = 1e-5

_ENC_KEYS = ("wq", "bq", "wk", "bk", "wv", "bv", "wo", "bo", "ln1g", "ln1b",
             "w1", "b1", "w2", "b2", "ln2g", "ln2b")
_DEC_KEYS = ("wq1", "bq1", "wk1", "bk1", "wv1", "bv1", "wo1", "bo1", "ln1g", "ln1b",
             "wq2", "bq2", "wk2", "bk2", "wv2", "bv2", "wo2", "bo2", "ln2g", "ln2b",
             "w1", "b1", "w2", "b2", "ln3g", "ln3b")


# --------------------------------------------------------------------------------------
# The fused kernel: encoder stack + final LN + decoder stack + final LN
# --------------------------------------------------------------------------------------
def _fused_transformer_kernel(*refs, S, T, N, E, H, n_enc, n_dec):
    it = iter(refs)
    src_ref = next(it)
    tgt_ref = next(it)
    enc = {k: next(it) for k in _ENC_KEYS}          # each stacked over n_enc layers
    dec = {k: next(it) for k in _DEC_KEYS}          # each stacked over n_dec layers
    enc_ng, enc_nb, dec_ng, dec_nb = next(it), next(it), next(it), next(it)
    out_ref = next(it)

    hd = E // H
    f32 = jnp.float32
    bf16 = jnp.bfloat16

    def mm(x, w):
        # bf16 operands -> native MXU throughput on v5e/v6e/v7x; f32 accumulation.
        return jnp.dot(x.astype(bf16), w.astype(bf16), preferred_element_type=f32)

    def layer_norm(x, g, b):
        # One-pass stats: sum(x) and sum(x*x) are independent reductions issued
        # together; var = E[x^2] - mu^2 removes the center->re-reduce dependency.
        mu = jnp.mean(x, axis=-1, keepdims=True)
        ms = jnp.mean(x * x, axis=-1, keepdims=True)
        inv = lax.rsqrt(ms - mu * mu + _EPS)
        return (x - mu) * inv * g + b

    def add_ln(x, y, g, b):
        return layer_norm(x + y, g, b)

    def softmax(s):
        s = s - jnp.max(s, axis=-1, keepdims=True)
        p = jnp.exp(s)
        return p * pl.reciprocal(jnp.sum(p, axis=-1, keepdims=True), approx=True)

    def mha(x_q, x_kv, Lq, Lkv, wq, bq, wk, bk, wv, bv, wo, bo):
        # Rows are batch-major: batch b owns rows [b*L, (b+1)*L).  1/sqrt(hd) is
        # pre-folded into (wq, bq) at init, so no per-score scaling here.
        q = mm(x_q, wq) + bq
        k = mm(x_kv, wk) + bk
        v = mm(x_kv, wv) + bv
        ctx_rows = []
        for b in range(N):                          # block-diagonal attention:
            qb = q[b * Lq:(b + 1) * Lq, :]          # no mask, no cross-batch columns
            kb = k[b * Lkv:(b + 1) * Lkv, :]
            vb = v[b * Lkv:(b + 1) * Lkv, :].astype(bf16)
            heads = []
            for h in range(H):
                # TODO(synk): hd=8 lane slices force per-head relayouts; at realistic
                # dims pad hd to 128 or lay heads out head-major instead.
                sl = slice(h * hd, (h + 1) * hd)
                s = lax.dot_general(qb[:, sl].astype(bf16), kb[:, sl].astype(bf16),
                                    (((1,), (1,)), ((), ())),   # q @ k^T over hd
                                    preferred_element_type=f32)
                p = softmax(s)
                heads.append(jnp.dot(p.astype(bf16), vb[:, sl],
                                     preferred_element_type=f32))
            ctx_rows.append(jnp.concatenate(heads, axis=1))     # (Lq, E)
        ctx = jnp.concatenate(ctx_rows, axis=0)                 # (N*Lq, E)
        # Merged head output projection: one (M, E) x (E, E) matmul (K=E) instead of
        # H K=hd matmuls plus a serial accumulator chain.
        return mm(ctx, wo) + bo

    def ffn(x, w1, b1, w2, b2):
        h1 = jnp.maximum(mm(x, w1) + b1, 0.0)       # ReLU (nn.Transformer default)
        return mm(h1, w2) + b2

    # ------------------------------- encoder -------------------------------
    x = src_ref[...].astype(f32)
    for i in range(n_enc):
        sa = mha(x, x, S, S,
                 enc["wq"][i], enc["bq"][i], enc["wk"][i], enc["bk"][i],
                 enc["wv"][i], enc["bv"][i], enc["wo"][i], enc["bo"][i])
        x = add_ln(x, sa, enc["ln1g"][i], enc["ln1b"][i])
        ff = ffn(x, enc["w1"][i], enc["b1"][i], enc["w2"][i], enc["b2"][i])
        x = add_ln(x, ff, enc["ln2g"][i], enc["ln2b"][i])
    mem = layer_norm(x, enc_ng[...], enc_nb[...])               # encoder final norm

    # ------------------------------- decoder -------------------------------
    y = tgt_ref[...].astype(f32)
    for i in range(n_dec):
        sa = mha(y, y, T, T,
                 dec["wq1"][i], dec["bq1"][i], dec["wk1"][i], dec["bk1"][i],
                 dec["wv1"][i], dec["bv1"][i], dec["wo1"][i], dec["bo1"][i])
        y = add_ln(y, sa, dec["ln1g"][i], dec["ln1b"][i])
        ca = mha(y, mem, T, S,
                 dec["wq2"][i], dec["bq2"][i], dec["wk2"][i], dec["bk2"][i],
                 dec["wv2"][i], dec["bv2"][i], dec["wo2"][i], dec["bo2"][i])
        y = add_ln(y, ca, dec["ln2g"][i], dec["ln2b"][i])
        ff = ffn(y, dec["w1"][i], dec["b1"][i], dec["w2"][i], dec["b2"][i])
        y = add_ln(y, ff, dec["ln3g"][i], dec["ln3b"][i])

    # TODO(synk): at realistic E (>=128) present a lane-dense output slab; at E=32 the
    # whole output is half a vreg, so masked partial stores are noise.
    out_ref[...] = layer_norm(y, dec_ng[...], dec_nb[...]).astype(out_ref.dtype)


# --------------------------------------------------------------------------------------
# Wrapper: one pallas_call for the whole forward
# --------------------------------------------------------------------------------------
def transformer_forward(src, tgt, params, n_head):
    S, N, E = src.shape
    T = tgt.shape[0]
    n_enc = params["enc"]["wq"].shape[0]
    n_dec = params["dec"]["wq1"].shape[0]

    # Batch-major row ordering: batch blocks are contiguous so attention inside the
    # kernel is block-diagonal and never touches cross-batch score columns.
    src_bm = src.transpose(1, 0, 2).reshape(N * S, E)
    tgt_bm = tgt.transpose(1, 0, 2).reshape(N * T, E)

    inputs = [src_bm, tgt_bm]
    inputs += [params["enc"][k] for k in _ENC_KEYS]
    inputs += [params["dec"][k] for k in _DEC_KEYS]
    inputs += [params["enc_norm_g"], params["enc_norm_b"],
               params["dec_norm_g"], params["dec_norm_b"]]

    kernel = partial(_fused_transformer_kernel,
                     S=S, T=T, N=N, E=E, H=n_head, n_enc=n_enc, n_dec=n_dec)

    out_bm = pl.pallas_call(
        kernel,
        out_shape=jax.ShapeDtypeStruct((N * T, E), src.dtype),
        in_specs=[_VMEM] * len(inputs),
        out_specs=_VMEM,
        # TODO(synk): at realistic sizes (E~1024, F~4096, S~1-2K) this fully-resident
        # design exceeds VMEM (64 MiB v7x, 16/32 MiB scoped default v5e/v6e): add a grid
        # over batch / query-row tiles with dimension_semantics=("parallel", ...) so both
        # v7x TensorCores are used, stream per-layer weights via a BlockSpec over the
        # layer axis, stream K/V flash-style, and raise vmem_limit_bytes explicitly.
    )(*inputs)
    return out_bm.reshape(N, T, E).transpose(1, 0, 2)


# --------------------------------------------------------------------------------------
# Deterministic parameter init: xavier-uniform weights pre-transposed to (in, out) and
# stored as bf16 MXU operands; 1/sqrt(head_dim) folded into the Q projections; zero
# biases; LayerNorm gamma=1 / beta=0 (all f32).
# --------------------------------------------------------------------------------------
def xavier_uniform(key, fan_out, fan_in):
    limit = math.sqrt(6.0 / (fan_in + fan_out))
    return jax.random.uniform(key, (fan_out, fan_in), jnp.float32, -limit, limit)


def _init_enc_layer(key, E, F, H):
    ks = jax.random.split(key, 6)
    wq, wk, wv, wo = (xavier_uniform(ks[i], E, E) for i in range(4))
    w1 = xavier_uniform(ks[4], F, E)
    w2 = xavier_uniform(ks[5], E, F)
    scale = 1.0 / math.sqrt(E // H)
    t16 = lambda w: w.T.astype(jnp.bfloat16)                   # (in, out), bf16
    zE = jnp.zeros((1, E), jnp.float32)
    oE = jnp.ones((1, E), jnp.float32)
    zF = jnp.zeros((1, F), jnp.float32)
    return dict(
        wq=(wq.T * scale).astype(jnp.bfloat16), bq=zE * scale,  # scale folded into Q proj
        wk=t16(wk), bk=zE,
        wv=t16(wv), bv=zE,
        wo=t16(wo), bo=zE,
        ln1g=oE, ln1b=zE,
        w1=t16(w1), b1=zF,
        w2=t16(w2), b2=zE,
        ln2g=oE, ln2b=zE,
    )


def _init_dec_layer(key, E, F, H):
    ks = jax.random.split(key, 10)
    wq1, wk1, wv1, wo1 = (xavier_uniform(ks[i], E, E) for i in range(4))
    wq2, wk2, wv2, wo2 = (xavier_uniform(ks[4 + i], E, E) for i in range(4))
    w1 = xavier_uniform(ks[8], F, E)
    w2 = xavier_uniform(ks[9], E, F)
    scale = 1.0 / math.sqrt(E // H)
    t16 = lambda w: w.T.astype(jnp.bfloat16)
    zE = jnp.zeros((1, E), jnp.float32)
    oE = jnp.ones((1, E), jnp.float32)
    zF = jnp.zeros((1, F), jnp.float32)
    return dict(
        wq1=(wq1.T * scale).astype(jnp.bfloat16), bq1=zE * scale,
        wk1=t16(wk1), bk1=zE, wv1=t16(wv1), bv1=zE,
        wo1=t16(wo1), bo1=zE, ln1g=oE, ln1b=zE,
        wq2=(wq2.T * scale).astype(jnp.bfloat16), bq2=zE * scale,
        wk2=t16(wk2), bk2=zE, wv2=t16(wv2), bv2=zE,
        wo2=t16(wo2), bo2=zE, ln2g=oE, ln2b=zE,
        w1=t16(w1), b1=zF, w2=t16(w2), b2=zE, ln3g=oE, ln3b=zE,
    )


def init_transformer_params(key, E, n_head, num_enc, num_dec, F):
    keys = jax.random.split(key, num_enc + num_dec)
    enc_layers = [_init_enc_layer(keys[i], E, F, n_head) for i in range(num_enc)]
    dec_layers = [_init_dec_layer(keys[num_enc + i], E, F, n_head) for i in range(num_dec)]
    enc = {k: jnp.stack([lp[k] for lp in enc_layers]) for k in _ENC_KEYS}
    dec = {k: jnp.stack([lp[k] for lp in dec_layers]) for k in _DEC_KEYS}
    oE = jnp.ones((1, E), jnp.float32)
    zE = jnp.zeros((1, E), jnp.float32)
    return dict(enc=enc, dec=dec,
                enc_norm_g=oE, enc_norm_b=zE,
                dec_norm_g=oE, dec_norm_b=zE)


# --------------------------------------------------------------------------------------
if __name__ == "__main__":
    # singleTransformerBlock(features=32, n_head=4, num_enc=2, num_dec=2, ff_dim=64)
    features, n_head, num_enc, num_dec, ff_dim = 32, 4, 2, 2, 64
    S, T, N = 8, 8, 2  # src_len, tgt_len, batch

    key = jax.random.PRNGKey(0)
    k_src, k_tgt, k_par = jax.random.split(key, 3)
    src = jax.random.normal(k_src, (S, N, features), jnp.float32)
    tgt = jax.random.normal(k_tgt, (T, N, features), jnp.float32)

    params = init_transformer_params(k_par, features, n_head, num_enc, num_dec, ff_dim)

    fwd = jax.jit(partial(transformer_forward, n_head=n_head))
    out = jax.block_until_ready(fwd(src, tgt, params))

    assert out.shape == (T, N, features)
    assert bool(jnp.all(jnp.isfinite(out)))
    print("KERNEL_OK")
</pallas_src>

<mosaic_0001>
module attributes {stable_mosaic.version = 11 : i64} {
  func.func @_fused_transformer_kernel(%arg0: memref<16x32xf32, #tpu.memory_space<vmem>>, %arg1: memref<16x32xf32, #tpu.memory_space<vmem>>, %arg2: memref<2x32x32xbf16, #tpu.memory_space<vmem>>, %arg3: memref<2x1x32xf32, #tpu.memory_space<vmem>>, %arg4: memref<2x32x32xbf16, #tpu.memory_space<vmem>>, %arg5: memref<2x1x32xf32, #tpu.memory_space<vmem>>, %arg6: memref<2x32x32xbf16, #tpu.memory_space<vmem>>, %arg7: memref<2x1x32xf32, #tpu.memory_space<vmem>>, %arg8: memref<2x32x32xbf16, #tpu.memory_space<vmem>>, %arg9: memref<2x1x32xf32, #tpu.memory_space<vmem>>, %arg10: memref<2x1x32xf32, #tpu.memory_space<vmem>>, %arg11: memref<2x1x32xf32, #tpu.memory_space<vmem>>, %arg12: memref<2x32x64xbf16, #tpu.memory_space<vmem>>, %arg13: memref<2x1x64xf32, #tpu.memory_space<vmem>>, %arg14: memref<2x64x32xbf16, #tpu.memory_space<vmem>>, %arg15: memref<2x1x32xf32, #tpu.memory_space<vmem>>, %arg16: memref<2x1x32xf32, #tpu.memory_space<vmem>>, %arg17: memref<2x1x32xf32, #tpu.memory_space<vmem>>, %arg18: memref<2x32x32xbf16, #tpu.memory_space<vmem>>, %arg19: memref<2x1x32xf32, #tpu.memory_space<vmem>>, %arg20: memref<2x32x32xbf16, #tpu.memory_space<vmem>>, %arg21: memref<2x1x32xf32, #tpu.memory_space<vmem>>, %arg22: memref<2x32x32xbf16, #tpu.memory_space<vmem>>, %arg23: memref<2x1x32xf32, #tpu.memory_space<vmem>>, %arg24: memref<2x32x32xbf16, #tpu.memory_space<vmem>>, %arg25: memref<2x1x32xf32, #tpu.memory_space<vmem>>, %arg26: memref<2x1x32xf32, #tpu.memory_space<vmem>>, %arg27: memref<2x1x32xf32, #tpu.memory_space<vmem>>, %arg28: memref<2x32x32xbf16, #tpu.memory_space<vmem>>, %arg29: memref<2x1x32xf32, #tpu.memory_space<vmem>>, %arg30: memref<2x32x32xbf16, #tpu.memory_space<vmem>>, %arg31: memref<2x1x32xf32, #tpu.memory_space<vmem>>, %arg32: memref<2x32x32xbf16, #tpu.memory_space<vmem>>, %arg33: memref<2x1x32xf32, #tpu.memory_space<vmem>>, %arg34: memref<2x32x32xbf16, #tpu.memory_space<vmem>>, %arg35: memref<2x1x32xf32, #tpu.memory_space<vmem>>, %arg36: memref<2x1x32xf32, #tpu.memory_space<vmem>>, %arg37: memref<2x1x32xf32, #tpu.memory_space<vmem>>, %arg38: memref<2x32x64xbf16, #tpu.memory_space<vmem>>, %arg39: memref<2x1x64xf32, #tpu.memory_space<vmem>>, %arg40: memref<2x64x32xbf16, #tpu.memory_space<vmem>>, %arg41: memref<2x1x32xf32, #tpu.memory_space<vmem>>, %arg42: memref<2x1x32xf32, #tpu.memory_space<vmem>>, %arg43: memref<2x1x32xf32, #tpu.memory_space<vmem>>, %arg44: memref<1x32xf32, #tpu.memory_space<vmem>>, %arg45: memref<1x32xf32, #tpu.memory_space<vmem>>, %arg46: memref<1x32xf32, #tpu.memory_space<vmem>>, %arg47: memref<1x32xf32, #tpu.memory_space<vmem>>, %arg48: memref<16x32xf32, #tpu.memory_space<vmem>>) attributes {dimension_semantics = [], scalar_prefetch = 0 : i64, scratch_operands = 0 : i64, tpu.core_type = #tpu.core_type<tc>} {
    %c0 = arith.constant 0 : index
    %c0_0 = arith.constant 0 : index
    %0 = vector.load %arg0[%c0, %c0_0] : memref<16x32xf32, #tpu.memory_space<vmem>>, vector<16x32xf32>
    %c0_1 = arith.constant 0 : index
    %c0_2 = arith.constant 0 : index
    %c0_3 = arith.constant 0 : index
    %1 = vector.load %arg2[%c0_1, %c0_2, %c0_3] : memref<2x32x32xbf16, #tpu.memory_space<vmem>>, vector<1x32x32xbf16>
    %2 = vector.shape_cast %1 : vector<1x32x32xbf16> to vector<32x32xbf16>
    %c0_4 = arith.constant 0 : index
    %c0_5 = arith.constant 0 : index
    %c0_6 = arith.constant 0 : index
    %3 = vector.load %arg3[%c0_4, %c0_5, %c0_6] : memref<2x1x32xf32, #tpu.memory_space<vmem>>, vector<1x1x32xf32>
    %4 = vector.shape_cast %3 : vector<1x1x32xf32> to vector<1x32xf32>
    %c0_7 = arith.constant 0 : index
    %c0_8 = arith.constant 0 : index
    %c0_9 = arith.constant 0 : index
    %5 = vector.load %arg4[%c0_7, %c0_8, %c0_9] : memref<2x32x32xbf16, #tpu.memory_space<vmem>>, vector<1x32x32xbf16>
    %6 = vector.shape_cast %5 : vector<1x32x32xbf16> to vector<32x32xbf16>
    %c0_10 = arith.constant 0 : index
    %c0_11 = arith.constant 0 : index
    %c0_12 = arith.constant 0 : index
    %7 = vector.load %arg5[%c0_10, %c0_11, %c0_12] : memref<2x1x32xf32, #tpu.memory_space<vmem>>, vector<1x1x32xf32>
    %8 = vector.shape_cast %7 : vector<1x1x32xf32> to vector<1x32xf32>
    %c0_13 = arith.constant 0 : index
    %c0_14 = arith.constant 0 : index
    %c0_15 = arith.constant 0 : index
    %9 = vector.load %arg6[%c0_13, %c0_14, %c0_15] : memref<2x32x32xbf16, #tpu.memory_space<vmem>>, vector<1x32x32xbf16>
    %10 = vector.shape_cast %9 : vector<1x32x32xbf16> to vector<32x32xbf16>
    %c0_16 = arith.constant 0 : index
    %c0_17 = arith.constant 0 : index
    %c0_18 = arith.constant 0 : index
    %11 = vector.load %arg7[%c0_16, %c0_17, %c0_18] : memref<2x1x32xf32, #tpu.memory_space<vmem>>, vector<1x1x32xf32>
    %12 = vector.shape_cast %11 : vector<1x1x32xf32> to vector<1x32xf32>
    %c0_19 = arith.constant 0 : index
    %c0_20 = arith.constant 0 : index
    %c0_21 = arith.constant 0 : index
    %13 = vector.load %arg8[%c0_19, %c0_20, %c0_21] : memref<2x32x32xbf16, #tpu.memory_space<vmem>>, vector<1x32x32xbf16>
    %14 = vector.shape_cast %13 : vector<1x32x32xbf16> to vector<32x32xbf16>
    %c0_22 = arith.constant 0 : index
    %c0_23 = arith.constant 0 : index
    %c0_24 = arith.constant 0 : index
    %15 = vector.load %arg9[%c0_22, %c0_23, %c0_24] : memref<2x1x32xf32, #tpu.memory_space<vmem>>, vector<1x1x32xf32>
    %16 = vector.shape_cast %15 : vector<1x1x32xf32> to vector<1x32xf32>
    %17 = arith.truncf %0 : vector<16x32xf32> to vector<16x32xbf16>
    %cst = arith.constant dense<0.000000e+00> : vector<16x32xf32>
    %18 = tpu.matmul %17, %2, %cst {dimension_numbers = #tpu.dot_dimension_numbers<[1], [0], [0], [1], [0, 0, 1, 1], [], []>} : vector<16x32xbf16>, vector<32x32xbf16>, vector<16x32xf32> -> vector<16x32xf32>
    %19 = vector.broadcast %4 : vector<1x32xf32> to vector<16x32xf32>
    %20 = arith.addf %18, %19 : vector<16x32xf32>
    %21 = arith.truncf %0 : vector<16x32xf32> to vector<16x32xbf16>
    %cst_25 = arith.constant dense<0.000000e+00> : vector<16x32xf32>
    %22 = tpu.matmul %21, %6, %cst_25 {dimension_numbers = #tpu.dot_dimension_numbers<[1], [0], [0], [1], [0, 0, 1, 1], [], []>} : vector<16x32xbf16>, vector<32x32xbf16>, vector<16x32xf32> -> vector<16x32xf32>
    %23 = vector.broadcast %8 : vector<1x32xf32> to vector<16x32xf32>
    %24 = arith.addf %22, %23 : vector<16x32xf32>
    %25 = arith.truncf %0 : vector<16x32xf32> to vector<16x32xbf16>
    %cst_26 = arith.constant dense<0.000000e+00> : vector<16x32xf32>
    %26 = tpu.matmul %25, %10, %cst_26 {dimension_numbers = #tpu.dot_dimension_numbers<[1], [0], [0], [1], [0, 0, 1, 1], [], []>} : vector<16x32xbf16>, vector<32x32xbf16>, vector<16x32xf32> -> vector<16x32xf32>
    %27 = vector.broadcast %12 : vector<1x32xf32> to vector<16x32xf32>
    %28 = arith.addf %26, %27 : vector<16x32xf32>
    %29 = vector.extract_strided_slice %20 {offsets = [0, 0], sizes = [8, 32], strides = [1, 1]} : vector<16x32xf32> to vector<8x32xf32>
    %30 = vector.extract_strided_slice %24 {offsets = [0, 0], sizes = [8, 32], strides = [1, 1]} : vector<16x32xf32> to vector<8x32xf32>
    %31 = vector.extract_strided_slice %28 {offsets = [0, 0], sizes = [8, 32], strides = [1, 1]} : vector<16x32xf32> to vector<8x32xf32>
    %32 = arith.truncf %31 : vector<8x32xf32> to vector<8x32xbf16>
    %33 = vector.extract_strided_slice %29 {offsets = [0, 0], sizes = [8, 8], strides = [1, 1]} : vector<8x32xf32> to vector<8x8xf32>
    %34 = arith.truncf %33 : vector<8x8xf32> to vector<8x8xbf16>
    %35 = vector.extract_strided_slice %30 {offsets = [0, 0], sizes = [8, 8], strides = [1, 1]} : vector<8x32xf32> to vector<8x8xf32>
    %36 = arith.truncf %35 : vector<8x8xf32> to vector<8x8xbf16>
    %cst_27 = arith.constant dense<0.000000e+00> : vector<8x8xf32>
    %37 = tpu.matmul %34, %36, %cst_27 {dimension_numbers = #tpu.dot_dimension_numbers<[1], [1], [0], [0], [0, 0, 1, 0], [], []>} : vector<8x8xbf16>, vector<8x8xbf16>, vector<8x8xf32> -> vector<8x8xf32>
    %cst_28 = arith.constant dense<0xFF800000> : vector<8xf32>
    %38 = vector.multi_reduction <maximumf>, %37, %cst_28 [1] : vector<8x8xf32> to vector<8xf32>
    %39 = vector.shape_cast %38 : vector<8xf32> to vector<8x1xf32>
    %40 = vector.broadcast %39 : vector<8x1xf32> to vector<8x8xf32>
    %41 = arith.subf %37, %40 : vector<8x8xf32>
    %42 = math.exp %41 : vector<8x8xf32>
    %cst_29 = arith.constant dense<0.000000e+00> : vector<8xf32>
    %43 = vector.multi_reduction <add>, %42, %cst_29 [1] : vector<8x8xf32> to vector<8xf32>
    %44 = vector.shape_cast %43 : vector<8xf32> to vector<8x1xf32>
    %45 = tpu.reciprocal %44 {approx = true} : vector<8x1xf32> -> vector<8x1xf32>
    %46 = vector.broadcast %45 : vector<8x1xf32> to vector<8x8xf32>
    %47 = arith.mulf %42, %46 : vector<8x8xf32>
    %48 = arith.truncf %47 : vector<8x8xf32> to vector<8x8xbf16>
    %49 = vector.extract_strided_slice %32 {offsets = [0, 0], sizes = [8, 8], strides = [1, 1]} : vector<8x32xbf16> to vector<8x8xbf16>
    %cst_30 = arith.constant dense<0.000000e+00> : vector<8x8xf32>
    %50 = tpu.matmul %48, %49, %cst_30 {dimension_numbers = #tpu.dot_dimension_numbers<[1], [0], [0], [1], [0, 0, 1, 1], [], []>} : vector<8x8xbf16>, vector<8x8xbf16>, vector<8x8xf32> -> vector<8x8xf32>
    %51 = vector.extract_strided_slice %29 {offsets = [0, 8], sizes = [8, 8], strides = [1, 1]} : vector<8x32xf32> to vector<8x8xf32>
    %52 = arith.truncf %51 : vector<8x8xf32> to vector<8x8xbf16>
    %53 = vector.extract_strided_slice %30 {offsets = [0, 8], sizes = [8, 8], strides = [1, 1]} : vector<8x32xf32> to vector<8x8xf32>
    %54 = arith.truncf %53 : vector<8x8xf32> to vector<8x8xbf16>
    %cst_31 = arith.constant dense<0.000000e+00> : vector<8x8xf32>
    %55 = tpu.matmul %52, %54, %cst_31 {dimension_numbers = #tpu.dot_dimension_numbers<[1], [1], [0], [0], [0, 0, 1, 0], [], []>} : vector<8x8xbf16>, vector<8x8xbf16>, vector<8x8xf32> -> vector<8x8xf32>
    %cst_32 = arith.constant dense<0xFF800000> : vector<8xf32>
    %56 = vector.multi_reduction <maximumf>, %55, %cst_32 [1] : vector<8x8xf32> to vector<8xf32>
    %57 = vector.shape_cast %56 : vector<8xf32> to vector<8x1xf32>
    %58 = vector.broadcast %57 : vector<8x1xf32> to vector<8x8xf32>
    %59 = arith.subf %55, %58 : vector<8x8xf32>
    %60 = math.exp %59 : vector<8x8xf32>
    %cst_33 = arith.constant dense<0.000000e+00> : vector<8xf32>
    %61 = vector.multi_reduction <add>, %60, %cst_33 [1] : vector<8x8xf32> to vector<8xf32>
    %62 = vector.shape_cast %61 : vector<8xf32> to vector<8x1xf32>
    %63 = tpu.reciprocal %62 {approx = true} : vector<8x1xf32> -> vector<8x1xf32>
    %64 = vector.broadcast %63 : vector<8x1xf32> to vector<8x8xf32>
    %65 = arith.mulf %60, %64 : vector<8x8xf32>
    %66 = arith.truncf %65 : vector<8x8xf32> to vector<8x8xbf16>
    %67 = vector.extract_strided_slice %32 {offsets = [0, 8], sizes = [8, 8], strides = [1, 1]} : vector<8x32xbf16> to vector<8x8xbf16>
    %cst_34 = arith.constant dense<0.000000e+00> : vector<8x8xf32>
    %68 = tpu.matmul %66, %67, %cst_34 {dimension_numbers = #tpu.dot_dimension_numbers<[1], [0], [0], [1], [0, 0, 1, 1], [], []>} : vector<8x8xbf16>, vector<8x8xbf16>, vector<8x8xf32> -> vector<8x8xf32>
    %69 = vector.extract_strided_slice %29 {offsets = [0, 16], sizes = [8, 8], strides = [1, 1]} : vector<8x32xf32> to vector<8x8xf32>
    %70 = arith.truncf %69 : vector<8x8xf32> to vector<8x8xbf16>
    %71 = vector.extract_strided_slice %30 {offsets = [0, 16], sizes = [8, 8], strides = [1, 1]} : vector<8x32xf32> to vector<8x8xf32>
    %72 = arith.truncf %71 : vector<8x8xf32> to vector<8x8xbf16>
    %cst_35 = arith.constant dense<0.000000e+00> : vector<8x8xf32>
    %73 = tpu.matmul %70, %72, %cst_35 {dimension_numbers = #tpu.dot_dimension_numbers<[1], [1], [0], [0], [0, 0, 1, 0], [], []>} : vector<8x8xbf16>, vector<8x8xbf16>, vector<8x8xf32> -> vector<8x8xf32>
    %cst_36 = arith.constant dense<0xFF800000> : vector<8xf32>
    %74 = vector.multi_reduction <maximumf>, %73, %cst_36 [1] : vector<8x8xf32> to vector<8xf32>
    %75 = vector.shape_cast %74 : vector<8xf32> to vector<8x1xf32>
    %76 = vector.broadcast %75 : vector<8x1xf32> to vector<8x8xf32>
    %77 = arith.subf %73, %76 : vector<8x8xf32>
    %78 = math.exp %77 : vector<8x8xf32>
    %cst_37 = arith.constant dense<0.000000e+00> : vector<8xf32>
    %79 = vector.multi_reduction <add>, %78, %cst_37 [1] : vector<8x8xf32> to vector<8xf32>
    %80 = vector.shape_cast %79 : vector<8xf32> to vector<8x1xf32>
    %81 = tpu.reciprocal %80 {approx = true} : vector<8x1xf32> -> vector<8x1xf32>
    %82 = vector.broadcast %81 : vector<8x1xf32> to vector<8x8xf32>
    %83 = arith.mulf %78, %82 : vector<8x8xf32>
    %84 = arith.truncf %83 : vector<8x8xf32> to vector<8x8xbf16>
    %85 = vector.extract_strided_slice %32 {offsets = [0, 16], sizes = [8, 8], strides = [1, 1]} : vector<8x32xbf16> to vector<8x8xbf16>
    %cst_38 = arith.constant dense<0.000000e+00> : vector<8x8xf32>
    %86 = tpu.matmul %84, %85, %cst_38 {dimension_numbers = #tpu.dot_dimension_numbers<[1], [0], [0], [1], [0, 0, 1, 1], [], []>} : vector<8x8xbf16>, vector<8x8xbf16>, vector<8x8xf32> -> vector<8x8xf32>
    %87 = vector.extract_strided_slice %29 {offsets = [0, 24], sizes = [8, 8], strides = [1, 1]} : vector<8x32xf32> to vector<8x8xf32>
    %88 = arith.truncf %87 : vector<8x8xf32> to vector<8x8xbf16>
    %89 = vector.extract_strided_slice %30 {offsets = [0, 24], sizes = [8, 8], strides = [1, 1]} : vector<8x32xf32> to vector<8x8xf32>
    %90 = arith.truncf %89 : vector<8x8xf32> to vector<8x8xbf16>
    %cst_39 = arith.constant dense<0.000000e+00> : vector<8x8xf32>
    %91 = tpu.matmul %88, %90, %cst_39 {dimension_numbers = #tpu.dot_dimension_numbers<[1], [1], [0], [0], [0, 0, 1, 0], [], []>} : vector<8x8xbf16>, vector<8x8xbf16>, vector<8x8xf32> -> vector<8x8xf32>
    %cst_40 = arith.constant dense<0xFF800000> : vector<8xf32>
    %92 = vector.multi_reduction <maximumf>, %91, %cst_40 [1] : vector<8x8xf32> to vector<8xf32>
    %93 = vector.shape_cast %92 : vector<8xf32> to vector<8x1xf32>
    %94 = vector.broadcast %93 : vector<8x1xf32> to vector<8x8xf32>
    %95 = arith.subf %91, %94 : vector<8x8xf32>
    %96 = math.exp %95 : vector<8x8xf32>
    %cst_41 = arith.constant dense<0.000000e+00> : vector<8xf32>
    %97 = vector.multi_reduction <add>, %96, %cst_41 [1] : vector<8x8xf32> to vector<8xf32>
    %98 = vector.shape_cast %97 : vector<8xf32> to vector<8x1xf32>
    %99 = tpu.reciprocal %98 {approx = true} : vector<8x1xf32> -> vector<8x1xf32>
    %100 = vector.broadcast %99 : vector<8x1xf32> to vector<8x8xf32>
    %101 = arith.mulf %96, %100 : vector<8x8xf32>
    %102 = arith.truncf %101 : vector<8x8xf32> to vector<8x8xbf16>
    %103 = vector.extract_strided_slice %32 {offsets = [0, 24], sizes = [8, 8], strides = [1, 1]} : vector<8x32xbf16> to vector<8x8xbf16>
    %cst_42 = arith.constant dense<0.000000e+00> : vector<8x8xf32>
    %104 = tpu.matmul %102, %103, %cst_42 {dimension_numbers = #tpu.dot_dimension_numbers<[1], [0], [0], [1], [0, 0, 1, 1], [], []>} : vector<8x8xbf16>, vector<8x8xbf16>, vector<8x8xf32> -> vector<8x8xf32>
    %105 = tpu.concatenate %50, %68, %86, %104 in 1 : vector<8x8xf32>, vector<8x8xf32>, vector<8x8xf32>, vector<8x8xf32> -> vector<8x32xf32>
    %106 = vector.extract_strided_slice %20 {offsets = [8, 0], sizes = [8, 32], strides = [1, 1]} : vector<16x32xf32> to vector<8x32xf32>
    %107 = vector.extract_strided_slice %24 {offsets = [8, 0], sizes = [8, 32], strides = [1, 1]} : vector<16x32xf32> to vector<8x32xf32>
    %108 = vector.extract_strided_slice %28 {offsets = [8, 0], sizes = [8, 32], strides = [1, 1]} : vector<16x32xf32> to vector<8x32xf32>
    %109 = arith.truncf %108 : vector<8x32xf32> to vector<8x32xbf16>
    %110 = vector.extract_strided_slice %106 {offsets = [0, 0], sizes = [8, 8], strides = [1, 1]} : vector<8x32xf32> to vector<8x8xf32>
    %111 = arith.truncf %110 : vector<8x8xf32> to vector<8x8xbf16>
    %112 = vector.extract_strided_slice %107 {offsets = [0, 0], sizes = [8, 8], strides = [1, 1]} : vector<8x32xf32> to vector<8x8xf32>
    %113 = arith.truncf %112 : vector<8x8xf32> to vector<8x8xbf16>
    %cst_43 = arith.constant dense<0.000000e+00> : vector<8x8xf32>
    %114 = tpu.matmul %111, %113, %cst_43 {dimension_numbers = #tpu.dot_dimension_numbers<[1], [1], [0], [0], [0, 0, 1, 0], [], []>} : vector<8x8xbf16>, vector<8x8xbf16>, vector<8x8xf32> -> vector<8x8xf32>
    %cst_44 = arith.constant dense<0xFF800000> : vector<8xf32>
    %115 = vector.multi_reduction <maximumf>, %114, %cst_44 [1] : vector<8x8xf32> to vector<8xf32>
    %116 = vector.shape_cast %115 : vector<8xf32> to vector<8x1xf32>
    %117 = vector.broadcast %116 : vector<8x1xf32> to vector<8x8xf32>
    %118 = arith.subf %114, %117 : vector<8x8xf32>
    %119 = math.exp %118 : vector<8x8xf32>
    %cst_45 = arith.constant dense<0.000000e+00> : vector<8xf32>
    %120 = vector.multi_reduction <add>, %119, %cst_45 [1] : vector<8x8xf32> to vector<8xf32>
    %121 = vector.shape_cast %120 : vector<8xf32> to vector<8x1xf32>
    %122 = tpu.reciprocal %121 {approx = true} : vector<8x1xf32> -> vector<8x1xf32>
    %123 = vector.broadcast %122 : vector<8x1xf32> to vector<8x8xf32>
    %124 = arith.mulf %119, %123 : vector<8x8xf32>
    %125 = arith.truncf %124 : vector<8x8xf32> to vector<8x8xbf16>
    %126 = vector.extract_strided_slice %109 {offsets = [0, 0], sizes = [8, 8], strides = [1, 1]} : vector<8x32xbf16> to vector<8x8xbf16>
    %cst_46 = arith.constant dense<0.000000e+00> : vector<8x8xf32>
    %127 = tpu.matmul %125, %126, %cst_46 {dimension_numbers = #tpu.dot_dimension_numbers<[1], [0], [0], [1], [0, 0, 1, 1], [], []>} : vector<8x8xbf16>, vector<8x8xbf16>, vector<8x8xf32> -> vector<8x8xf32>
    %128 = vector.extract_strided_slice %106 {offsets = [0, 8], sizes = [8, 8], strides = [1, 1]} : vector<8x32xf32> to vector<8x8xf32>
    %129 = arith.truncf %128 : vector<8x8xf32> to vector<8x8xbf16>
    %130 = vector.extract_strided_slice %107 {offsets = [0, 8], sizes = [8, 8], strides = [1, 1]} : vector<8x32xf32> to vector<8x8xf32>
    %131 = arith.truncf %130 : vector<8x8xf32> to vector<8x8xbf16>
    %cst_47 = arith.constant dense<0.000000e+00> : vector<8x8xf32>
    %132 = tpu.matmul %129, %131, %cst_47 {dimension_numbers = #tpu.dot_dimension_numbers<[1], [1], [0], [0], [0, 0, 1, 0], [], []>} : vector<8x8xbf16>, vector<8x8xbf16>, vector<8x8xf32> -> vector<8x8xf32>
    %cst_48 = arith.constant dense<0xFF800000> : vector<8xf32>
    %133 = vector.multi_reduction <maximumf>, %132, %cst_48 [1] : vector<8x8xf32> to vector<8xf32>
    %134 = vector.shape_cast %133 : vector<8xf32> to vector<8x1xf32>
    %135 = vector.broadcast %134 : vector<8x1xf32> to vector<8x8xf32>
    %136 = arith.subf %132, %135 : vector<8x8xf32>
    %137 = math.exp %136 : vector<8x8xf32>
    %cst_49 = arith.constant dense<0.000000e+00> : vector<8xf32>
    %138 = vector.multi_reduction <add>, %137, %cst_49 [1] : vector<8x8xf32> to vector<8xf32>
    %139 = vector.shape_cast %138 : vector<8xf32> to vector<8x1xf32>
    %140 = tpu.reciprocal %139 {approx = true} : vector<8x1xf32> -> vector<8x1xf32>
    %141 = vector.broadcast %140 : vector<8x1xf32> to vector<8x8xf32>
    %142 = arith.mulf %137, %141 : vector<8x8xf32>
    %143 = arith.truncf %142 : vector<8x8xf32> to vector<8x8xbf16>
    %144 = vector.extract_strided_slice %109 {offsets = [0, 8], sizes = [8, 8], strides = [1, 1]} : vector<8x32xbf16> to vector<8x8xbf16>
    %cst_50 = arith.constant dense<0.000000e+00> : vector<8x8xf32>
    %145 = tpu.matmul %143, %144, %cst_50 {dimension_numbers = #tpu.dot_dimension_numbers<[1], [0], [0], [1], [0, 0, 1, 1], [], []>} : vector<8x8xbf16>, vector<8x8xbf16>, vector<8x8xf32> -> vector<8x8xf32>
    %146 = vector.extract_strided_slice %106 {offsets = [0, 16], sizes = [8, 8], strides = [1, 1]} : vector<8x32xf32> to vector<8x8xf32>
    %147 = arith.truncf %146 : vector<8x8xf32> to vector<8x8xbf16>
    %148 = vector.extract_strided_slice %107 {offsets = [0, 16], sizes = [8, 8], strides = [1, 1]} : vector<8x32xf32> to vector<8x8xf32>
    %149 = arith.truncf %148 : vector<8x8xf32> to vector<8x8xbf16>
    %cst_51 = arith.constant dense<0.000000e+00> : vector<8x8xf32>
    %150 = tpu.matmul %147, %149, %cst_51 {dimension_numbers = #tpu.dot_dimension_numbers<[1], [1], [0], [0], [0, 0, 1, 0], [], []>} : vector<8x8xbf16>, vector<8x8xbf16>, vector<8x8xf32> -> vector<8x8xf32>
    %cst_52 = arith.constant dense<0xFF800000> : vector<8xf32>
    %151 = vector.multi_reduction <maximumf>, %150, %cst_52 [1] : vector<8x8xf32> to vector<8xf32>
    %152 = vector.shape_cast %151 : vector<8xf32> to vector<8x1xf32>
    %153 = vector.broadcast %152 : vector<8x1xf32> to vector<8x8xf32>
    %154 = arith.subf %150, %153 : vector<8x8xf32>
    %155 = math.exp %154 : vector<8x8xf32>
    %cst_53 = arith.constant dense<0.000000e+00> : vector<8xf32>
    %156 = vector.multi_reduction <add>, %155, %cst_53 [1] : vector<8x8xf32> to vector<8xf32>
    %157 = vector.shape_cast %156 : vector<8xf32> to vector<8x1xf32>
    %158 = tpu.reciprocal %157 {approx = true} : vector<8x1xf32> -> vector<8x1xf32>
    %159 = vector.broadcast %158 : vector<8x1xf32> to vector<8x8xf32>
    %160 = arith.mulf %155, %159 : vector<8x8xf32>
    %161 = arith.truncf %160 : vector<8x8xf32> to vector<8x8xbf16>
    %162 = vector.extract_strided_slice %109 {offsets = [0, 16], sizes = [8, 8], strides = [1, 1]} : vector<8x32xbf16> to vector<8x8xbf16>
    %cst_54 = arith.constant dense<0.000000e+00> : vector<8x8xf32>
    %163 = tpu.matmul %161, %162, %cst_54 {dimension_numbers = #tpu.dot_dimension_numbers<[1], [0], [0], [1], [0, 0, 1, 1], [], []>} : vector<8x8xbf16>, vector<8x8xbf16>, vector<8x8xf32> -> vector<8x8xf32>
    %164 = vector.extract_strided_slice %106 {offsets = [0, 24], sizes = [8, 8], strides = [1, 1]} : vector<8x32xf32> to vector<8x8xf32>
    %165 = arith.truncf %164 : vector<8x8xf32> to vector<8x8xbf16>
    %166 = vector.extract_strided_slice %107 {offsets = [0, 24], sizes = [8, 8], strides = [1, 1]} : vector<8x32xf32> to vector<8x8xf32>
    %167 = arith.truncf %166 : vector<8x8xf32> to vector<8x8xbf16>
    %cst_55 = arith.constant dense<0.000000e+00> : vector<8x8xf32>
    %168 = tpu.matmul %165, %167, %cst_55 {dimension_numbers = #tpu.dot_dimension_numbers<[1], [1], [0], [0], [0, 0, 1, 0], [], []>} : vector<8x8xbf16>, vector<8x8xbf16>, vector<8x8xf32> -> vector<8x8xf32>
    %cst_56 = arith.constant dense<0xFF800000> : vector<8xf32>
    %169 = vector.multi_reduction <maximumf>, %168, %cst_56 [1] : vector<8x8xf32> to vector<8xf32>
    %170 = vector.shape_cast %169 : vector<8xf32> to vector<8x1xf32>
    %171 = vector.broadcast %170 : vector<8x1xf32> to vector<8x8xf32>
    %172 = arith.subf %168, %171 : vector<8x8xf32>
    %173 = math.exp %172 : vector<8x8xf32>
    %cst_57 = arith.constant dense<0.000000e+00> : vector<8xf32>
    %174 = vector.multi_reduction <add>, %173, %cst_57 [1] : vector<8x8xf32> to vector<8xf32>
    %175 = vector.shape_cast %174 : vector<8xf32> to vector<8x1xf32>
    %176 = tpu.reciprocal %175 {approx = true} : vector<8x1xf32> -> vector<8x1xf32>
    %177 = vector.broadcast %176 : vector<8x1xf32> to vector<8x8xf32>
    %178 = arith.mulf %173, %177 : vector<8x8xf32>
    %179 = arith.truncf %178 : vector<8x8xf32> to vector<8x8xbf16>
    %180 = vector.extract_strided_slice %109 {offsets = [0, 24], sizes = [8, 8], strides = [1, 1]} : vector<8x32xbf16> to vector<8x8xbf16>
    %cst_58 = arith.constant dense<0.000000e+00> : vector<8x8xf32>
    %181 = tpu.matmul %179, %180, %cst_58 {dimension_numbers = #tpu.dot_dimension_numbers<[1], [0], [0], [1], [0, 0, 1, 1], [], []>} : vector<8x8xbf16>, vector<8x8xbf16>, vector<8x8xf32> -> vector<8x8xf32>
    %182 = tpu.concatenate %127, %145, %163, %181 in 1 : vector<8x8xf32>, vector<8x8xf32>, vector<8x8xf32>, vector<8x8xf32> -> vector<8x32xf32>
    %183 = tpu.concatenate %105, %182 in 0 : vector<8x32xf32>, vector<8x32xf32> -> vector<16x32xf32>
    %184 = arith.truncf %183 : vector<16x32xf32> to vector<16x32xbf16>
    %cst_59 = arith.constant dense<0.000000e+00> : vector<16x32xf32>
    %185 = tpu.matmul %184, %14, %cst_59 {dimension_numbers = #tpu.dot_dimension_numbers<[1], [0], [0], [1], [0, 0, 1, 1], [], []>} : vector<16x32xbf16>, vector<32x32xbf16>, vector<16x32xf32> -> vector<16x32xf32>
    %186 = vector.broadcast %16 : vector<1x32xf32> to vector<16x32xf32>
    %187 = arith.addf %185, %186 : vector<16x32xf32>
    %c0_60 = arith.constant 0 : index
    %c0_61 = arith.constant 0 : index
    %c0_62 = arith.constant 0 : index
    %188 = vector.load %arg10[%c0_60, %c0_61, %c0_62] : memref<2x1x32xf32, #tpu.memory_space<vmem>>, vector<1x1x32xf32>
    %189 = vector.shape_cast %188 : vector<1x1x32xf32> to vector<1x32xf32>
    %c0_63 = arith.constant 0 : index
    %c0_64 = arith.constant 0 : index
    %c0_65 = arith.constant 0 : index
    %190 = vector.load %arg11[%c0_63, %c0_64, %c0_65] : memref<2x1x32xf32, #tpu.memory_space<vmem>>, vector<1x1x32xf32>
    %191 = vector.shape_cast %190 : vector<1x1x32xf32> to vector<1x32xf32>
    %192 = arith.addf %0, %187 : vector<16x32xf32>
    %cst_66 = arith.constant dense<0.000000e+00> : vector<16xf32>
    %193 = vector.multi_reduction <add>, %192, %cst_66 [1] : vector<16x32xf32> to vector<16xf32>
    %194 = vector.shape_cast %193 : vector<16xf32> to vector<16x1xf32>
    %cst_67 = arith.constant 3.200000e+01 : f32
    %195 = vector.broadcast %cst_67 : f32 to vector<16x1xf32>
    %196 = arith.divf %194, %195 : vector<16x1xf32>
    %197 = arith.mulf %192, %192 : vector<16x32xf32>
    %cst_68 = arith.constant dense<0.000000e+00> : vector<16xf32>
    %198 = vector.multi_reduction <add>, %197, %cst_68 [1] : vector<16x32xf32> to vector<16xf32>
    %199 = vector.shape_cast %198 : vector<16xf32> to vector<16x1xf32>
    %cst_69 = arith.constant 3.200000e+01 : f32
    %200 = vector.broadcast %cst_69 : f32 to vector<16x1xf32>
    %201 = arith.divf %199, %200 : vector<16x1xf32>
    %202 = arith.mulf %196, %196 : vector<16x1xf32>
    %203 = arith.subf %201, %202 : vector<16x1xf32>
    %cst_70 = arith.constant 9.99999974E-6 : f32
    %204 = vector.broadcast %cst_70 : f32 to vector<16x1xf32>
    %205 = arith.addf %203, %204 : vector<16x1xf32>
    %206 = math.rsqrt %205 : vector<16x1xf32>
    %207 = vector.broadcast %196 : vector<16x1xf32> to vector<16x32xf32>
    %208 = arith.subf %192, %207 : vector<16x32xf32>
    %209 = vector.broadcast %206 : vector<16x1xf32> to vector<16x32xf32>
    %210 = arith.mulf %208, %209 : vector<16x32xf32>
    %211 = vector.broadcast %189 : vector<1x32xf32> to vector<16x32xf32>
    %212 = arith.mulf %210, %211 : vector<16x32xf32>
    %213 = vector.broadcast %191 : vector<1x32xf32> to vector<16x32xf32>
    %214 = arith.addf %212, %213 : vector<16x32xf32>
    %c0_71 = arith.constant 0 : index
    %c0_72 = arith.constant 0 : index
    %c0_73 = arith.constant 0 : index
    %215 = vector.load %arg12[%c0_71, %c0_72, %c0_73] : memref<2x32x64xbf16, #tpu.memory_space<vmem>>, vector<1x32x64xbf16>
    %216 = vector.shape_cast %215 : vector<1x32x64xbf16> to vector<32x64xbf16>
    %c0_74 = arith.constant 0 : index
    %c0_75 = arith.constant 0 : index
    %c0_76 = arith.constant 0 : index
    %217 = vector.load %arg13[%c0_74, %c0_75, %c0_76] : memref<2x1x64xf32, #tpu.memory_space<vmem>>, vector<1x1x64xf32>
    %218 = vector.shape_cast %217 : vector<1x1x64xf32> to vector<1x64xf32>
    %c0_77 = arith.constant 0 : index
    %c0_78 = arith.constant 0 : index
    %c0_79 = arith.constant 0 : index
    %219 = vector.load %arg14[%c0_77, %c0_78, %c0_79] : memref<2x64x32xbf16, #tpu.memory_space<vmem>>, vector<1x64x32xbf16>
    %220 = vector.shape_cast %219 : vector<1x64x32xbf16> to vector<64x32xbf16>
    %c0_80 = arith.constant 0 : index
    %c0_81 = arith.constant 0 : index
    %c0_82 = arith.constant 0 : index
    %221 = vector.load %arg15[%c0_80, %c0_81, %c0_82] : memref<2x1x32xf32, #tpu.memory_space<vmem>>, vector<1x1x32xf32>
    %222 = vector.shape_cast %221 : vector<1x1x32xf32> to vector<1x32xf32>
    %223 = arith.truncf %214 : vector<16x32xf32> to vector<16x32xbf16>
    %cst_83 = arith.constant dense<0.000000e+00> : vector<16x64xf32>
    %224 = tpu.matmul %223, %216, %cst_83 {dimension_numbers = #tpu.dot_dimension_numbers<[1], [0], [0], [1], [0, 0, 1, 1], [], []>} : vector<16x32xbf16>, vector<32x64xbf16>, vector<16x64xf32> -> vector<16x64xf32>
    %225 = vector.broadcast %218 : vector<1x64xf32> to vector<16x64xf32>
    %226 = arith.addf %224, %225 : vector<16x64xf32>
    %cst_84 = arith.constant 0.000000e+00 : f32
    %227 = vector.broadcast %cst_84 : f32 to vector<16x64xf32>
    %228 = arith.maximumf %226, %227 : vector<16x64xf32>
    %229 = arith.truncf %228 : vector<16x64xf32> to vector<16x64xbf16>
    %cst_85 = arith.constant dense<0.000000e+00> : vector<16x32xf32>
    %230 = tpu.matmul %229, %220, %cst_85 {dimension_numbers = #tpu.dot_dimension_numbers<[1], [0], [0], [1], [0, 0, 1, 1], [], []>} : vector<16x64xbf16>, vector<64x32xbf16>, vector<16x32xf32> -> vector<16x32xf32>
    %231 = vector.broadcast %222 : vector<1x32xf32> to vector<16x32xf32>
    %232 = arith.addf %230, %231 : vector<16x32xf32>
    %c0_86 = arith.constant 0 : index
    %c0_87 = arith.constant 0 : index
    %c0_88 = arith.constant 0 : index
    %233 = vector.load %arg16[%c0_86, %c0_87, %c0_88] : memref<2x1x32xf32, #tpu.memory_space<vmem>>, vector<1x1x32xf32>
    %234 = vector.shape_cast %233 : vector<1x1x32xf32> to vector<1x32xf32>
    %c0_89 = arith.constant 0 : index
    %c0_90 = arith.constant 0 : index
    %c0_91 = arith.constant 0 : index
    %235 = vector.load %arg17[%c0_89, %c0_90, %c0_91] : memref<2x1x32xf32, #tpu.memory_space<vmem>>, vector<1x1x32xf32>
    %236 = vector.shape_cast %235 : vector<1x1x32xf32> to vector<1x32xf32>
    %237 = arith.addf %214, %232 : vector<16x32xf32>
    %cst_92 = arith.constant dense<0.000000e+00> : vector<16xf32>
    %238 = vector.multi_reduction <add>, %237, %cst_92 [1] : vector<16x32xf32> to vector<16xf32>
    %239 = vector.shape_cast %238 : vector<16xf32> to vector<16x1xf32>
    %cst_93 = arith.constant 3.200000e+01 : f32
    %240 = vector.broadcast %cst_93 : f32 to vector<16x1xf32>
    %241 = arith.divf %239, %240 : vector<16x1xf32>
    %242 = arith.mulf %237, %237 : vector<16x32xf32>
    %cst_94 = arith.constant dense<0.000000e+00> : vector<16xf32>
    %243 = vector.multi_reduction <add>, %242, %cst_94 [1] : vector<16x32xf32> to vector<16xf32>
    %244 = vector.shape_cast %243 : vector<16xf32> to vector<16x1xf32>
    %cst_95 = arith.constant 3.200000e+01 : f32
    %245 = vector.broadcast %cst_95 : f32 to vector<16x1xf32>
    %246 = arith.divf %244, %245 : vector<16x1xf32>
    %247 = arith.mulf %241, %241 : vector<16x1xf32>
    %248 = arith.subf %246, %247 : vector<16x1xf32>
    %cst_96 = arith.constant 9.99999974E-6 : f32
    %249 = vector.broadcast %cst_96 : f32 to vector<16x1xf32>
    %250 = arith.addf %248, %249 : vector<16x1xf32>
    %251 = math.rsqrt %250 : vector<16x1xf32>
    %252 = vector.broadcast %241 : vector<16x1xf32> to vector<16x32xf32>
    %253 = arith.subf %237, %252 : vector<16x32xf32>
    %254 = vector.broadcast %251 : vector<16x1xf32> to vector<16x32xf32>
    %255 = arith.mulf %253, %254 : vector<16x32xf32>
    %256 = vector.broadcast %234 : vector<1x32xf32> to vector<16x32xf32>
    %257 = arith.mulf %255, %256 : vector<16x32xf32>
    %258 = vector.broadcast %236 : vector<1x32xf32> to vector<16x32xf32>
    %259 = arith.addf %257, %258 : vector<16x32xf32>
    %c1 = arith.constant 1 : index
    %c0_97 = arith.constant 0 : index
    %c0_98 = arith.constant 0 : index
    %260 = vector.load %arg2[%c1, %c0_97, %c0_98] : memref<2x32x32xbf16, #tpu.memory_space<vmem>>, vector<1x32x32xbf16>
    %261 = vector.shape_cast %260 : vector<1x32x32xbf16> to vector<32x32xbf16>
    %c1_99 = arith.constant 1 : index
    %c0_100 = arith.constant 0 : index
    %c0_101 = arith.constant 0 : index
    %262 = vector.load %arg3[%c1_99, %c0_100, %c0_101] : memref<2x1x32xf32, #tpu.memory_space<vmem>>, vector<1x1x32xf32>
    %263 = vector.shape_cast %262 : vector<1x1x32xf32> to vector<1x32xf32>
    %c1_102 = arith.constant 1 : index
    %c0_103 = arith.constant 0 : index
    %c0_104 = arith.constant 0 : index
    %264 = vector.load %arg4[%c1_102, %c0_103, %c0_104] : memref<2x32x32xbf16, #tpu.memory_space<vmem>>, vector<1x32x32xbf16>
    %265 = vector.shape_cast %264 : vector<1x32x32xbf16> to vector<32x32xbf16>
    %c1_105 = arith.constant 1 : index
    %c0_106 = arith.constant 0 : index
    %c0_107 = arith.constant 0 : index
    %266 = vector.load %arg5[%c1_105, %c0_106, %c0_107] : memref<2x1x32xf32, #tpu.memory_space<vmem>>, vector<1x1x32xf32>
    %267 = vector.shape_cast %266 : vector<1x1x32xf32> to vector<1x32xf32>
    %c1_108 = arith.constant 1 : index
    %c0_109 = arith.constant 0 : index
    %c0_110 = arith.constant 0 : index
    %268 = vector.load %arg6[%c1_108, %c0_109, %c0_110] : memref<2x32x32xbf16, #tpu.memory_space<vmem>>, vector<1x32x32xbf16>
    %269 = vector.shape_cast %268 : vector<1x32x32xbf16> to vector<32x32xbf16>
    %c1_111 = arith.constant 1 : index
    %c0_112 = arith.constant 0 : index
    %c0_113 = arith.constant 0 : index
    %270 = vector.load %arg7[%c1_111, %c0_112, %c0_113] : memref<2x1x32xf32, #tpu.memory_space<vmem>>, vector<1x1x32xf32>
    %271 = vector.shape_cast %270 : vector<1x1x32xf32> to vector<1x32xf32>
    %c1_114 = arith.constant 1 : index
    %c0_115 = arith.constant 0 : index
    %c0_116 = arith.constant 0 : index
    %272 = vector.load %arg8[%c1_114, %c0_115, %c0_116] : memref<2x32x32xbf16, #tpu.memory_space<vmem>>, vector<1x32x32xbf16>
    %273 = vector.shape_cast %272 : vector<1x32x32xbf16> to vector<32x32xbf16>
    %c1_117 = arith.constant 1 : index
    %c0_118 = arith.constant 0 : index
    %c0_119 = arith.constant 0 : index
    %274 = vector.load %arg9[%c1_117, %c0_118, %c0_119] : memref<2x1x32xf32, #tpu.memory_space<vmem>>, vector<1x1x32xf32>
    %275 = vector.shape_cast %274 : vector<1x1x32xf32> to vector<1x32xf32>
    %276 = arith.truncf %259 : vector<16x32xf32> to vector<16x32xbf16>
    %cst_120 = arith.constant dense<0.000000e+00> : vector<16x32xf32>
    %277 = tpu.matmul %276, %261, %cst_120 {dimension_numbers = #tpu.dot_dimension_numbers<[1], [0], [0], [1], [0, 0, 1, 1], [], []>} : vector<16x32xbf16>, vector<32x32xbf16>, vector<16x32xf32> -> vector<16x32xf32>
    %278 = vector.broadcast %263 : vector<1x32xf32> to vector<16x32xf32>
    %279 = arith.addf %277, %278 : vector<16x32xf32>
    %280 = arith.truncf %259 : vector<16x32xf32> to vector<16x32xbf16>
    %cst_121 = arith.constant dense<0.000000e+00> : vector<16x32xf32>
    %281 = tpu.matmul %280, %265, %cst_121 {dimension_numbers = #tpu.dot_dimension_numbers<[1], [0], [0], [1], [0, 0, 1, 1], [], []>} : vector<16x32xbf16>, vector<32x32xbf16>, vector<16x32xf32> -> vector<16x32xf32>
    %282 = vector.broadcast %267 : vector<1x32xf32> to vector<16x32xf32>
    %283 = arith.addf %281, %282 : vector<16x32xf32>
    %284 = arith.truncf %259 : vector<16x32xf32> to vector<16x32xbf16>
    %cst_122 = arith.constant dense<0.000000e+00> : vector<16x32xf32>
    %285 = tpu.matmul %284, %269, %cst_122 {dimension_numbers = #tpu.dot_dimension_numbers<[1], [0], [0], [1], [0, 0, 1, 1], [], []>} : vector<16x32xbf16>, vector<32x32xbf16>, vector<16x32xf32> -> vector<16x32xf32>
    %286 = vector.broadcast %271 : vector<1x32xf32> to vector<16x32xf32>
    %287 = arith.addf %285, %286 : vector<16x32xf32>
    %288 = vector.extract_strided_slice %279 {offsets = [0, 0], sizes = [8, 32], strides = [1, 1]} : vector<16x32xf32> to vector<8x32xf32>
    %289 = vector.extract_strided_slice %283 {offsets = [0, 0], sizes = [8, 32], strides = [1, 1]} : vector<16x32xf32> to vector<8x32xf32>
    %290 = vector.extract_strided_slice %287 {offsets = [0, 0], sizes = [8, 32], strides = [1, 1]} : vector<16x32xf32> to vector<8x32xf32>
    %291 = arith.truncf %290 : vector<8x32xf32> to vector<8x32xbf16>
    %292 = vector.extract_strided_slice %288 {offsets = [0, 0], sizes = [8, 8], strides = [1, 1]} : vector<8x32xf32> to vector<8x8xf32>
    %293 = arith.truncf %292 : vector<8x8xf32> to vector<8x8xbf16>
    %294 = vector.extract_strided_slice %289 {offsets = [0, 0], sizes = [8, 8], strides = [1, 1]} : vector<8x32xf32> to vector<8x8xf32>
    %295 = arith.truncf %294 : vector<8x8xf32> to vector<8x8xbf16>
    %cst_123 = arith.constant dense<0.000000e+00> : vector<8x8xf32>
    %296 = tpu.matmul %293, %295, %cst_123 {dimension_numbers = #tpu.dot_dimension_numbers<[1], [1], [0], [0], [0, 0, 1, 0], [], []>} : vector<8x8xbf16>, vector<8x8xbf16>, vector<8x8xf32> -> vector<8x8xf32>
    %cst_124 = arith.constant dense<0xFF800000> : vector<8xf32>
    %297 = vector.multi_reduction <maximumf>, %296, %cst_124 [1] : vector<8x8xf32> to vector<8xf32>
    %298 = vector.shape_cast %297 : vector<8xf32> to vector<8x1xf32>
    %299 = vector.broadcast %298 : vector<8x1xf32> to vector<8x8xf32>
    %300 = arith.subf %296, %299 : vector<8x8xf32>
    %301 = math.exp %300 : vector<8x8xf32>
    %cst_125 = arith.constant dense<0.000000e+00> : vector<8xf32>
    %302 = vector.multi_reduction <add>, %301, %cst_125 [1] : vector<8x8xf32> to vector<8xf32>
    %303 = vector.shape_cast %302 : vector<8xf32> to vector<8x1xf32>
    %304 = tpu.reciprocal %303 {approx = true} : vector<8x1xf32> -> vector<8x1xf32>
    %305 = vector.broadcast %304 : vector<8x1xf32> to vector<8x8xf32>
    %306 = arith.mulf %301, %305 : vector<8x8xf32>
    %307 = arith.truncf %306 : vector<8x8xf32> to vector<8x8xbf16>
    %308 = vector.extract_strided_slice %291 {offsets = [0, 0], sizes = [8, 8], strides = [1, 1]} : vector<8x32xbf16> to vector<8x8xbf16>
    %cst_126 = arith.constant dense<0.000000e+00> : vector<8x8xf32>
    %309 = tpu.matmul %307, %308, %cst_126 {dimension_numbers = #tpu.dot_dimension_numbers<[1], [0], [0], [1], [0, 0, 1, 1], [], []>} : vector<8x8xbf16>, vector<8x8xbf16>, vector<8x8xf32> -> vector<8x8xf32>
    %310 = vector.extract_strided_slice %288 {offsets = [0, 8], sizes = [8, 8], strides = [1, 1]} : vector<8x32xf32> to vector<8x8xf32>
    %311 = arith.truncf %310 : vector<8x8xf32> to vector<8x8xbf16>
    %312 = vector.extract_strided_slice %289 {offsets = [0, 8], sizes = [8, 8], strides = [1, 1]} : vector<8x32xf32> to vector<8x8xf32>
    %313 = arith.truncf %312 : vector<8x8xf32> to vector<8x8xbf16>
    %cst_127 = arith.constant dense<0.000000e+00> : vector<8x8xf32>
    %314 = tpu.matmul %311, %313, %cst_127 {dimension_numbers = #tpu.dot_dimension_numbers<[1], [1], [0], [0], [0, 0, 1, 0], [], []>} : vector<8x8xbf16>, vector<8x8xbf16>, vector<8x8xf32> -> vector<8x8xf32>
    %cst_128 = arith.constant dense<0xFF800000> : vector<8xf32>
    %315 = vector.multi_reduction <maximumf>, %314, %cst_128 [1] : vector<8x8xf32> to vector<8xf32>
    %316 = vector.shape_cast %315 : vector<8xf32> to vector<8x1xf32>
    %317 = vector.broadcast %316 : vector<8x1xf32> to vector<8x8xf32>
    %318 = arith.subf %314, %317 : vector<8x8xf32>
    %319 = math.exp %318 : vector<8x8xf32>
    %cst_129 = arith.constant dense<0.000000e+00> : vector<8xf32>
    %320 = vector.multi_reduction <add>, %319, %cst_129 [1] : vector<8x8xf32> to vector<8xf32>
    %321 = vector.shape_cast %320 : vector<8xf32> to vector<8x1xf32>
    %322 = tpu.reciprocal %321 {approx = true} : vector<8x1xf32> -> vector<8x1xf32>
    %323 = vector.broadcast %322 : vector<8x1xf32> to vector<8x8xf32>
    %324 = arith.mulf %319, %323 : vector<8x8xf32>
    %325 = arith.truncf %324 : vector<8x8xf32> to vector<8x8xbf16>
    %326 = vector.extract_strided_slice %291 {offsets = [0, 8], sizes = [8, 8], strides = [1, 1]} : vector<8x32xbf16> to vector<8x8xbf16>
    %cst_130 = arith.constant dense<0.000000e+00> : vector<8x8xf32>
    %327 = tpu.matmul %325, %326, %cst_130 {dimension_numbers = #tpu.dot_dimension_numbers<[1], [0], [0], [1], [0, 0, 1, 1], [], []>} : vector<8x8xbf16>, vector<8x8xbf16>, vector<8x8xf32> -> vector<8x8xf32>
    %328 = vector.extract_strided_slice %288 {offsets = [0, 16], sizes = [8, 8], strides = [1, 1]} : vector<8x32xf32> to vector<8x8xf32>
    %329 = arith.truncf %328 : vector<8x8xf32> to vector<8x8xbf16>
    %330 = vector.extract_strided_slice %289 {offsets = [0, 16], sizes = [8, 8], strides = [1, 1]} : vector<8x32xf32> to vector<8x8xf32>
    %331 = arith.truncf %330 : vector<8x8xf32> to vector<8x8xbf16>
    %cst_131 = arith.constant dense<0.000000e+00> : vector<8x8xf32>
    %332 = tpu.matmul %329, %331, %cst_131 {dimension_numbers = #tpu.dot_dimension_numbers<[1], [1], [0], [0], [0, 0, 1, 0], [], []>} : vector<8x8xbf16>, vector<8x8xbf16>, vector<8x8xf32> -> vector<8x8xf32>
    %cst_132 = arith.constant dense<0xFF800000> : vector<8xf32>
    %333 = vector.multi_reduction <maximumf>, %332, %cst_132 [1] : vector<8x8xf32> to vector<8xf32>
    %334 = vector.shape_cast %333 : vector<8xf32> to vector<8x1xf32>
    %335 = vector.broadcast %334 : vector<8x1xf32> to vector<8x8xf32>
    %336 = arith.subf %332, %335 : vector<8x8xf32>
    %337 = math.exp %336 : vector<8x8xf32>
    %cst_133 = arith.constant dense<0.000000e+00> : vector<8xf32>
    %338 = vector.multi_reduction <add>, %337, %cst_133 [1] : vector<8x8xf32> to vector<8xf32>
    %339 = vector.shape_cast %338 : vector<8xf32> to vector<8x1xf32>
    %340 = tpu.reciprocal %339 {approx = true} : vector<8x1xf32> -> vector<8x1xf32>
    %341 = vector.broadcast %340 : vector<8x1xf32> to vector<8x8xf32>
    %342 = arith.mulf %337, %341 : vector<8x8xf32>
    %343 = arith.truncf %342 : vector<8x8xf32> to vector<8x8xbf16>
    %344 = vector.extract_strided_slice %291 {offsets = [0, 16], sizes = [8, 8], strides = [1, 1]} : vector<8x32xbf16> to vector<8x8xbf16>
    %cst_134 = arith.constant dense<0.000000e+00> : vector<8x8xf32>
    %345 = tpu.matmul %343, %344, %cst_134 {dimension_numbers = #tpu.dot_dimension_numbers<[1], [0], [0], [1], [0, 0, 1, 1], [], []>} : vector<8x8xbf16>, vector<8x8xbf16>, vector<8x8xf32> -> vector<8x8xf32>
    %346 = vector.extract_strided_slice %288 {offsets = [0, 24], sizes = [8, 8], strides = [1, 1]} : vector<8x32xf32> to vector<8x8xf32>
    %347 = arith.truncf %346 : vector<8x8xf32> to vector<8x8xbf16>
    %348 = vector.extract_strided_slice %289 {offsets = [0, 24], sizes = [8, 8], strides = [1, 1]} : vector<8x32xf32> to vector<8x8xf32>
    %349 = arith.truncf %348 : vector<8x8xf32> to vector<8x8xbf16>
    %cst_135 = arith.constant dense<0.000000e+00> : vector<8x8xf32>
    %350 = tpu.matmul %347, %349, %cst_135 {dimension_numbers = #tpu.dot_dimension_numbers<[1], [1], [0], [0], [0, 0, 1, 0], [], []>} : vector<8x8xbf16>, vector<8x8xbf16>, vector<8x8xf32> -> vector<8x8xf32>
    %cst_136 = arith.constant dense<0xFF800000> : vector<8xf32>
    %351 = vector.multi_reduction <maximumf>, %350, %cst_136 [1] : vector<8x8xf32> to vector<8xf32>
    %352 = vector.shape_cast %351 : vector<8xf32> to vector<8x1xf32>
    %353 = vector.broadcast %352 : vector<8x1xf32> to vector<8x8xf32>
    %354 = arith.subf %350, %353 : vector<8x8xf32>
    %355 = math.exp %354 : vector<8x8xf32>
    %cst_137 = arith.constant dense<0.000000e+00> : vector<8xf32>
    %356 = vector.multi_reduction <add>, %355, %cst_137 [1] : vector<8x8xf32> to vector<8xf32>
    %357 = vector.shape_cast %356 : vector<8xf32> to vector<8x1xf32>
    %358 = tpu.reciprocal %357 {approx = true} : vector<8x1xf32> -> vector<8x1xf32>
    %359 = vector.broadcast %358 : vector<8x1xf32> to vector<8x8xf32>
    %360 = arith.mulf %355, %359 : vector<8x8xf32>
    %361 = arith.truncf %360 : vector<8x8xf32> to vector<8x8xbf16>
    %362 = vector.extract_strided_slice %291 {offsets = [0, 24], sizes = [8, 8], strides = [1, 1]} : vector<8x32xbf16> to vector<8x8xbf16>
    %cst_138 = arith.constant dense<0.000000e+00> : vector<8x8xf32>
    %363 = tpu.matmul %361, %362, %cst_138 {dimension_numbers = #tpu.dot_dimension_numbers<[1], [0], [0], [1], [0, 0, 1, 1], [], []>} : vector<8x8xbf16>, vector<8x8xbf16>, vector<8x8xf32> -> vector<8x8xf32>
    %364 = tpu.concatenate %309, %327, %345, %363 in 1 : vector<8x8xf32>, vector<8x8xf32>, vector<8x8xf32>, vector<8x8xf32> -> vector<8x32xf32>
    %365 = vector.extract_strided_slice %279 {offsets = [8, 0], sizes = [8, 32], strides = [1, 1]} : vector<16x32xf32> to vector<8x32xf32>
    %366 = vector.extract_strided_slice %283 {offsets = [8, 0], sizes = [8, 32], strides = [1, 1]} : vector<16x32xf32> to vector<8x32xf32>
    %367 = vector.extract_strided_slice %287 {offsets = [8, 0], sizes = [8, 32], strides = [1, 1]} : vector<16x32xf32> to vector<8x32xf32>
    %368 = arith.truncf %367 : vector<8x32xf32> to vector<8x32xbf16>
    %369 = vector.extract_strided_slice %365 {offsets = [0, 0], sizes = [8, 8], strides = [1, 1]} : vector<8x32xf32> to vector<8x8xf32>
    %370 = arith.truncf %369 : vector<8x8xf32> to vector<8x8xbf16>
    %371 = vector.extract_strided_slice %366 {offsets = [0, 0], sizes = [8, 8], strides = [1, 1]} : vector<8x32xf32> to vector<8x8xf32>
    %372 = arith.truncf %371 : vector<8x8xf32> to vector<8x8xbf16>
    %cst_139 = arith.constant dense<0.000000e+00> : vector<8x8xf32>
    %373 = tpu.matmul %370, %372, %cst_139 {dimension_numbers = #tpu.dot_dimension_numbers<[1], [1], [0], [0], [0, 0, 1, 0], [], []>} : vector<8x8xbf16>, vector<8x8xbf16>, vector<8x8xf32> -> vector<8x8xf32>
    %cst_140 = arith.constant dense<0xFF800000> : vector<8xf32>
    %374 = vector.multi_reduction <maximumf>, %373, %cst_140 [1] : vector<8x8xf32> to vector<8xf32>
    %375 = vector.shape_cast %374 : vector<8xf32> to vector<8x1xf32>
    %376 = vector.broadcast %375 : vector<8x1xf32> to vector<8x8xf32>
    %377 = arith.subf %373, %376 : vector<8x8xf32>
    %378 = math.exp %377 : vector<8x8xf32>
    %cst_141 = arith.constant dense<0.000000e+00> : vector<8xf32>
    %379 = vector.multi_reduction <add>, %378, %cst_141 [1] : vector<8x8xf32> to vector<8xf32>
    %380 = vector.shape_cast %379 : vector<8xf32> to vector<8x1xf32>
    %381 = tpu.reciprocal %380 {approx = true} : vector<8x1xf32> -> vector<8x1xf32>
    %382 = vector.broadcast %381 : vector<8x1xf32> to vector<8x8xf32>
    %383 = arith.mulf %378, %382 : vector<8x8xf32>
    %384 = arith.truncf %383 : vector<8x8xf32> to vector<8x8xbf16>
    %385 = vector.extract_strided_slice %368 {offsets = [0, 0], sizes = [8, 8], strides = [1, 1]} : vector<8x32xbf16> to vector<8x8xbf16>
    %cst_142 = arith.constant dense<0.000000e+00> : vector<8x8xf32>
    %386 = tpu.matmul %384, %385, %cst_142 {dimension_numbers = #tpu.dot_dimension_numbers<[1], [0], [0], [1], [0, 0, 1, 1], [], []>} : vector<8x8xbf16>, vector<8x8xbf16>, vector<8x8xf32> -> vector<8x8xf32>
    %387 = vector.extract_strided_slice %365 {offsets = [0, 8], sizes = [8, 8], strides = [1, 1]} : vector<8x32xf32> to vector<8x8xf32>
    %388 = arith.truncf %387 : vector<8x8xf32> to vector<8x8xbf16>
    %389 = vector.extract_strided_slice %366 {offsets = [0, 8], sizes = [8, 8], strides = [1, 1]} : vector<8x32xf32> to vector<8x8xf32>
    %390 = arith.truncf %389 : vector<8x8xf32> to vector<8x8xbf16>
    %cst_143 = arith.constant dense<0.000000e+00> : vector<8x8xf32>
    %391 = tpu.matmul %388, %390, %cst_143 {dimension_numbers = #tpu.dot_dimension_numbers<[1], [1], [0], [0], [0, 0, 1, 0], [], []>} : vector<8x8xbf16>, vector<8x8xbf16>, vector<8x8xf32> -> vector<8x8xf32>
    %cst_144 = arith.constant dense<0xFF800000> : vector<8xf32>
    %392 = vector.multi_reduction <maximumf>, %391, %cst_144 [1] : vector<8x8xf32> to vector<8xf32>
    %393 = vector.shape_cast %392 : vector<8xf32> to vector<8x1xf32>
    %394 = vector.broadcast %393 : vector<8x1xf32> to vector<8x8xf32>
    %395 = arith.subf %391, %394 : vector<8x8xf32>
    %396 = math.exp %395 : vector<8x8xf32>
    %cst_145 = arith.constant dense<0.000000e+00> : vector<8xf32>
    %397 = vector.multi_reduction <add>, %396, %cst_145 [1] : vector<8x8xf32> to vector<8xf32>
    %398 = vector.shape_cast %397 : vector<8xf32> to vector<8x1xf32>
    %399 = tpu.reciprocal %398 {approx = true} : vector<8x1xf32> -> vector<8x1xf32>
    %400 = vector.broadcast %399 : vector<8x1xf32> to vector<8x8xf32>
    %401 = arith.mulf %396, %400 : vector<8x8xf32>
    %402 = arith.truncf %401 : vector<8x8xf32> to vector<8x8xbf16>
    %403 = vector.extract_strided_slice %368 {offsets = [0, 8], sizes = [8, 8], strides = [1, 1]} : vector<8x32xbf16> to vector<8x8xbf16>
    %cst_146 = arith.constant dense<0.000000e+00> : vector<8x8xf32>
    %404 = tpu.matmul %402, %403, %cst_146 {dimension_numbers = #tpu.dot_dimension_numbers<[1], [0], [0], [1], [0, 0, 1, 1], [], []>} : vector<8x8xbf16>, vector<8x8xbf16>, vector<8x8xf32> -> vector<8x8xf32>
    %405 = vector.extract_strided_slice %365 {offsets = [0, 16], sizes = [8, 8], strides = [1, 1]} : vector<8x32xf32> to vector<8x8xf32>
    %406 = arith.truncf %405 : vector<8x8xf32> to vector<8x8xbf16>
    %407 = vector.extract_strided_slice %366 {offsets = [0, 16], sizes = [8, 8], strides = [1, 1]} : vector<8x32xf32> to vector<8x8xf32>
    %408 = arith.truncf %407 : vector<8x8xf32> to vector<8x8xbf16>
    %cst_147 = arith.constant dense<0.000000e+00> : vector<8x8xf32>
    %409 = tpu.matmul %406, %408, %cst_147 {dimension_numbers = #tpu.dot_dimension_numbers<[1], [1], [0], [0], [0, 0, 1, 0], [], []>} : vector<8x8xbf16>, vector<8x8xbf16>, vector<8x8xf32> -> vector<8x8xf32>
    %cst_148 = arith.constant dense<0xFF800000> : vector<8xf32>
    %410 = vector.multi_reduction <maximumf>, %409, %cst_148 [1] : vector<8x8xf32> to vector<8xf32>
    %411 = vector.shape_cast %410 : vector<8xf32> to vector<8x1xf32>
    %412 = vector.broadcast %411 : vector<8x1xf32> to vector<8x8xf32>
    %413 = arith.subf %409, %412 : vector<8x8xf32>
    %414 = math.exp %413 : vector<8x8xf32>
    %cst_149 = arith.constant dense<0.000000e+00> : vector<8xf32>
    %415 = vector.multi_reduction <add>, %414, %cst_149 [1] : vector<8x8xf32> to vector<8xf32>
    %416 = vector.shape_cast %415 : vector<8xf32> to vector<8x1xf32>
    %417 = tpu.reciprocal %416 {approx = true} : vector<8x1xf32> -> vector<8x1xf32>
    %418 = vector.broadcast %417 : vector<8x1xf32> to vector<8x8xf32>
    %419 = arith.mulf %414, %418 : vector<8x8xf32>
    %420 = arith.truncf %419 : vector<8x8xf32> to vector<8x8xbf16>
    %421 = vector.extract_strided_slice %368 {offsets = [0, 16], sizes = [8, 8], strides = [1, 1]} : vector<8x32xbf16> to vector<8x8xbf16>
    %cst_150 = arith.constant dense<0.000000e+00> : vector<8x8xf32>
    %422 = tpu.matmul %420, %421, %cst_150 {dimension_numbers = #tpu.dot_dimension_numbers<[1], [0], [0], [1], [0, 0, 1, 1], [], []>} : vector<8x8xbf16>, vector<8x8xbf16>, vector<8x8xf32> -> vector<8x8xf32>
    %423 = vector.extract_strided_slice %365 {offsets = [0, 24], sizes = [8, 8], strides = [1, 1]} : vector<8x32xf32> to vector<8x8xf32>
    %424 = arith.truncf %423 : vector<8x8xf32> to vector<8x8xbf16>
    %425 = vector.extract_strided_slice %366 {offsets = [0, 24], sizes = [8, 8], strides = [1, 1]} : vector<8x32xf32> to vector<8x8xf32>
    %426 = arith.truncf %425 : vector<8x8xf32> to vector<8x8xbf16>
    %cst_151 = arith.constant dense<0.000000e+00> : vector<8x8xf32>
    %427 = tpu.matmul %424, %426, %cst_151 {dimension_numbers = #tpu.dot_dimension_numbers<[1], [1], [0], [0], [0, 0, 1, 0], [], []>} : vector<8x8xbf16>, vector<8x8xbf16>, vector<8x8xf32> -> vector<8x8xf32>
    %cst_152 = arith.constant dense<0xFF800000> : vector<8xf32>
    %428 = vector.multi_reduction <maximumf>, %427, %cst_152 [1] : vector<8x8xf32> to vector<8xf32>
    %429 = vector.shape_cast %428 : vector<8xf32> to vector<8x1xf32>
    %430 = vector.broadcast %429 : vector<8x1xf32> to vector<8x8xf32>
    %431 = arith.subf %427, %430 : vector<8x8xf32>
    %432 = math.exp %431 : vector<8x8xf32>
    %cst_153 = arith.constant dense<0.000000e+00> : vector<8xf32>
    %433 = vector.multi_reduction <add>, %432, %cst_153 [1] : vector<8x8xf32> to vector<8xf32>
    %434 = vector.shape_cast %433 : vector<8xf32> to vector<8x1xf32>
    %435 = tpu.reciprocal %434 {approx = true} : vector<8x1xf32> -> vector<8x1xf32>
    %436 = vector.broadcast %435 : vector<8x1xf32> to vector<8x8xf32>
    %437 = arith.mulf %432, %436 : vector<8x8xf32>
    %438 = arith.truncf %437 : vector<8x8xf32> to vector<8x8xbf16>
    %439 = vector.extract_strided_slice %368 {offsets = [0, 24], sizes = [8, 8], strides = [1, 1]} : vector<8x32xbf16> to vector<8x8xbf16>
    %cst_154 = arith.constant dense<0.000000e+00> : vector<8x8xf32>
    %440 = tpu.matmul %438, %439, %cst_154 {dimension_numbers = #tpu.dot_dimension_numbers<[1], [0], [0], [1], [0, 0, 1, 1], [], []>} : vector<8x8xbf16>, vector<8x8xbf16>, vector<8x8xf32> -> vector<8x8xf32>
    %441 = tpu.concatenate %386, %404, %422, %440 in 1 : vector<8x8xf32>, vector<8x8xf32>, vector<8x8xf32>, vector<8x8xf32> -> vector<8x32xf32>
    %442 = tpu.concatenate %364, %441 in 0 : vector<8x32xf32>, vector<8x32xf32> -> vector<16x32xf32>
    %443 = arith.truncf %442 : vector<16x32xf32> to vector<16x32xbf16>
    %cst_155 = arith.constant dense<0.000000e+00> : vector<16x32xf32>
    %444 = tpu.matmul %443, %273, %cst_155 {dimension_numbers = #tpu.dot_dimension_numbers<[1], [0], [0], [1], [0, 0, 1, 1], [], []>} : vector<16x32xbf16>, vector<32x32xbf16>, vector<16x32xf32> -> vector<16x32xf32>
    %445 = vector.broadcast %275 : vector<1x32xf32> to vector<16x32xf32>
    %446 = arith.addf %444, %445 : vector<16x32xf32>
    %c1_156 = arith.constant 1 : index
    %c0_157 = arith.constant 0 : index
    %c0_158 = arith.constant 0 : index
    %447 = vector.load %arg10[%c1_156, %c0_157, %c0_158] : memref<2x1x32xf32, #tpu.memory_space<vmem>>, vector<1x1x32xf32>
    %448 = vector.shape_cast %447 : vector<1x1x32xf32> to vector<1x32xf32>
    %c1_159 = arith.constant 1 : index
    %c0_160 = arith.constant 0 : index
    %c0_161 = arith.constant 0 : index
    %449 = vector.load %arg11[%c1_159, %c0_160, %c0_161] : memref<2x1x32xf32, #tpu.memory_space<vmem>>, vector<1x1x32xf32>
    %450 = vector.shape_cast %449 : vector<1x1x32xf32> to vector<1x32xf32>
    %451 = arith.addf %259, %446 : vector<16x32xf32>
    %cst_162 = arith.constant dense<0.000000e+00> : vector<16xf32>
    %452 = vector.multi_reduction <add>, %451, %cst_162 [1] : vector<16x32xf32> to vector<16xf32>
    %453 = vector.shape_cast %452 : vector<16xf32> to vector<16x1xf32>
    %cst_163 = arith.constant 3.200000e+01 : f32
    %454 = vector.broadcast %cst_163 : f32 to vector<16x1xf32>
    %455 = arith.divf %453, %454 : vector<16x1xf32>
    %456 = arith.mulf %451, %451 : vector<16x32xf32>
    %cst_164 = arith.constant dense<0.000000e+00> : vector<16xf32>
    %457 = vector.multi_reduction <add>, %456, %cst_164 [1] : vector<16x32xf32> to vector<16xf32>
    %458 = vector.shape_cast %457 : vector<16xf32> to vector<16x1xf32>
    %cst_165 = arith.constant 3.200000e+01 : f32
    %459 = vector.broadcast %cst_165 : f32 to vector<16x1xf32>
    %460 = arith.divf %458, %459 : vector<16x1xf32>
    %461 = arith.mulf %455, %455 : vector<16x1xf32>
    %462 = arith.subf %460, %461 : vector<16x1xf32>
    %cst_166 = arith.constant 9.99999974E-6 : f32
    %463 = vector.broadcast %cst_166 : f32 to vector<16x1xf32>
    %464 = arith.addf %462, %463 : vector<16x1xf32>
    %465 = math.rsqrt %464 : vector<16x1xf32>
    %466 = vector.broadcast %455 : vector<16x1xf32> to vector<16x32xf32>
    %467 = arith.subf %451, %466 : vector<16x32xf32>
    %468 = vector.broadcast %465 : vector<16x1xf32> to vector<16x32xf32>
    %469 = arith.mulf %467, %468 : vector<16x32xf32>
    %470 = vector.broadcast %448 : vector<1x32xf32> to vector<16x32xf32>
    %471 = arith.mulf %469, %470 : vector<16x32xf32>
    %472 = vector.broadcast %450 : vector<1x32xf32> to vector<16x32xf32>
    %473 = arith.addf %471, %472 : vector<16x32xf32>
    %c1_167 = arith.constant 1 : index
    %c0_168 = arith.constant 0 : index
    %c0_169 = arith.constant 0 : index
    %474 = vector.load %arg12[%c1_167, %c0_168, %c0_169] : memref<2x32x64xbf16, #tpu.memory_space<vmem>>, vector<1x32x64xbf16>
    %475 = vector.shape_cast %474 : vector<1x32x64xbf16> to vector<32x64xbf16>
    %c1_170 = arith.constant 1 : index
    %c0_171 = arith.constant 0 : index
    %c0_172 = arith.constant 0 : index
    %476 = vector.load %arg13[%c1_170, %c0_171, %c0_172] : memref<2x1x64xf32, #tpu.memory_space<vmem>>, vector<1x1x64xf32>
    %477 = vector.shape_cast %476 : vector<1x1x64xf32> to vector<1x64xf32>
    %c1_173 = arith.constant 1 : index
    %c0_174 = arith.constant 0 : index
    %c0_175 = arith.constant 0 : index
    %478 = vector.load %arg14[%c1_173, %c0_174, %c0_175] : memref<2x64x32xbf16, #tpu.memory_space<vmem>>, vector<1x64x32xbf16>
    %479 = vector.shape_cast %478 : vector<1x64x32xbf16> to vector<64x32xbf16>
    %c1_176 = arith.constant 1 : index
    %c0_177 = arith.constant 0 : index
    %c0_178 = arith.constant 0 : index
    %480 = vector.load %arg15[%c1_176, %c0_177, %c0_178] : memref<2x1x32xf32, #tpu.memory_space<vmem>>, vector<1x1x32xf32>
    %481 = vector.shape_cast %480 : vector<1x1x32xf32> to vector<1x32xf32>
    %482 = arith.truncf %473 : vector<16x32xf32> to vector<16x32xbf16>
    %cst_179 = arith.constant dense<0.000000e+00> : vector<16x64xf32>
    %483 = tpu.matmul %482, %475, %cst_179 {dimension_numbers = #tpu.dot_dimension_numbers<[1], [0], [0], [1], [0, 0, 1, 1], [], []>} : vector<16x32xbf16>, vector<32x64xbf16>, vector<16x64xf32> -> vector<16x64xf32>
    %484 = vector.broadcast %477 : vector<1x64xf32> to vector<16x64xf32>
    %485 = arith.addf %483, %484 : vector<16x64xf32>
    %cst_180 = arith.constant 0.000000e+00 : f32
    %486 = vector.broadcast %cst_180 : f32 to vector<16x64xf32>
    %487 = arith.maximumf %485, %486 : vector<16x64xf32>
    %488 = arith.truncf %487 : vector<16x64xf32> to vector<16x64xbf16>
    %cst_181 = arith.constant dense<0.000000e+00> : vector<16x32xf32>
    %489 = tpu.matmul %488, %479, %cst_181 {dimension_numbers = #tpu.dot_dimension_numbers<[1], [0], [0], [1], [0, 0, 1, 1], [], []>} : vector<16x64xbf16>, vector<64x32xbf16>, vector<16x32xf32> -> vector<16x32xf32>
    %490 = vector.broadcast %481 : vector<1x32xf32> to vector<16x32xf32>
    %491 = arith.addf %489, %490 : vector<16x32xf32>
    %c1_182 = arith.constant 1 : index
    %c0_183 = arith.constant 0 : index
    %c0_184 = arith.constant 0 : index
    %492 = vector.load %arg16[%c1_182, %c0_183, %c0_184] : memref<2x1x32xf32, #tpu.memory_space<vmem>>, vector<1x1x32xf32>
    %493 = vector.shape_cast %492 : vector<1x1x32xf32> to vector<1x32xf32>
    %c1_185 = arith.constant 1 : index
    %c0_186 = arith.constant 0 : index
    %c0_187 = arith.constant 0 : index
    %494 = vector.load %arg17[%c1_185, %c0_186, %c0_187] : memref<2x1x32xf32, #tpu.memory_space<vmem>>, vector<1x1x32xf32>
    %495 = vector.shape_cast %494 : vector<1x1x32xf32> to vector<1x32xf32>
    %496 = arith.addf %473, %491 : vector<16x32xf32>
    %cst_188 = arith.constant dense<0.000000e+00> : vector<16xf32>
    %497 = vector.multi_reduction <add>, %496, %cst_188 [1] : vector<16x32xf32> to vector<16xf32>
    %498 = vector.shape_cast %497 : vector<16xf32> to vector<16x1xf32>
    %cst_189 = arith.constant 3.200000e+01 : f32
    %499 = vector.broadcast %cst_189 : f32 to vector<16x1xf32>
    %500 = arith.divf %498, %499 : vector<16x1xf32>
    %501 = arith.mulf %496, %496 : vector<16x32xf32>
    %cst_190 = arith.constant dense<0.000000e+00> : vector<16xf32>
    %502 = vector.multi_reduction <add>, %501, %cst_190 [1] : vector<16x32xf32> to vector<16xf32>
    %503 = vector.shape_cast %502 : vector<16xf32> to vector<16x1xf32>
    %cst_191 = arith.constant 3.200000e+01 : f32
    %504 = vector.broadcast %cst_191 : f32 to vector<16x1xf32>
    %505 = arith.divf %503, %504 : vector<16x1xf32>
    %506 = arith.mulf %500, %500 : vector<16x1xf32>
    %507 = arith.subf %505, %506 : vector<16x1xf32>
    %cst_192 = arith.constant 9.99999974E-6 : f32
    %508 = vector.broadcast %cst_192 : f32 to vector<16x1xf32>
    %509 = arith.addf %507, %508 : vector<16x1xf32>
    %510 = math.rsqrt %509 : vector<16x1xf32>
    %511 = vector.broadcast %500 : vector<16x1xf32> to vector<16x32xf32>
    %512 = arith.subf %496, %511 : vector<16x32xf32>
    %513 = vector.broadcast %510 : vector<16x1xf32> to vector<16x32xf32>
    %514 = arith.mulf %512, %513 : vector<16x32xf32>
    %515 = vector.broadcast %493 : vector<1x32xf32> to vector<16x32xf32>
    %516 = arith.mulf %514, %515 : vector<16x32xf32>
    %517 = vector.broadcast %495 : vector<1x32xf32> to vector<16x32xf32>
    %518 = arith.addf %516, %517 : vector<16x32xf32>
    %c0_193 = arith.constant 0 : index
    %c0_194 = arith.constant 0 : index
    %519 = vector.load %arg44[%c0_193, %c0_194] : memref<1x32xf32, #tpu.memory_space<vmem>>, vector<1x32xf32>
    %c0_195 = arith.constant 0 : index
    %c0_196 = arith.constant 0 : index
    %520 = vector.load %arg45[%c0_195, %c0_196] : memref<1x32xf32, #tpu.memory_space<vmem>>, vector<1x32xf32>
    %cst_197 = arith.constant dense<0.000000e+00> : vector<16xf32>
    %521 = vector.multi_reduction <add>, %518, %cst_197 [1] : vector<16x32xf32> to vector<16xf32>
    %522 = vector.shape_cast %521 : vector<16xf32> to vector<16x1xf32>
    %cst_198 = arith.constant 3.200000e+01 : f32
    %523 = vector.broadcast %cst_198 : f32 to vector<16x1xf32>
    %524 = arith.divf %522, %523 : vector<16x1xf32>
    %525 = arith.mulf %518, %518 : vector<16x32xf32>
    %cst_199 = arith.constant dense<0.000000e+00> : vector<16xf32>
    %526 = vector.multi_reduction <add>, %525, %cst_199 [1] : vector<16x32xf32> to vector<16xf32>
    %527 = vector.shape_cast %526 : vector<16xf32> to vector<16x1xf32>
    %cst_200 = arith.constant 3.200000e+01 : f32
    %528 = vector.broadcast %cst_200 : f32 to vector<16x1xf32>
    %529 = arith.divf %527, %528 : vector<16x1xf32>
    %530 = arith.mulf %524, %524 : vector<16x1xf32>
    %531 = arith.subf %529, %530 : vector<16x1xf32>
    %cst_201 = arith.constant 9.99999974E-6 : f32
    %532 = vector.broadcast %cst_201 : f32 to vector<16x1xf32>
    %533 = arith.addf %531, %532 : vector<16x1xf32>
    %534 = math.rsqrt %533 : vector<16x1xf32>
    %535 = vector.broadcast %524 : vector<16x1xf32> to vector<16x32xf32>
    %536 = arith.subf %518, %535 : vector<16x32xf32>
    %537 = vector.broadcast %534 : vector<16x1xf32> to vector<16x32xf32>
    %538 = arith.mulf %536, %537 : vector<16x32xf32>
    %539 = vector.broadcast %519 : vector<1x32xf32> to vector<16x32xf32>
    %540 = arith.mulf %538, %539 : vector<16x32xf32>
    %541 = vector.broadcast %520 : vector<1x32xf32> to vector<16x32xf32>
    %542 = arith.addf %540, %541 : vector<16x32xf32>
    %c0_202 = arith.constant 0 : index
    %c0_203 = arith.constant 0 : index
    %543 = vector.load %arg1[%c0_202, %c0_203] : memref<16x32xf32, #tpu.memory_space<vmem>>, vector<16x32xf32>
    %c0_204 = arith.constant 0 : index
    %c0_205 = arith.constant 0 : index
    %c0_206 = arith.constant 0 : index
    %544 = vector.load %arg18[%c0_204, %c0_205, %c0_206] : memref<2x32x32xbf16, #tpu.memory_space<vmem>>, vector<1x32x32xbf16>
    %545 = vector.shape_cast %544 : vector<1x32x32xbf16> to vector<32x32xbf16>
    %c0_207 = arith.constant 0 : index
    %c0_208 = arith.constant 0 : index
    %c0_209 = arith.constant 0 : index
    %546 = vector.load %arg19[%c0_207, %c0_208, %c0_209] : memref<2x1x32xf32, #tpu.memory_space<vmem>>, vector<1x1x32xf32>
    %547 = vector.shape_cast %546 : vector<1x1x32xf32> to vector<1x32xf32>
    %c0_210 = arith.constant 0 : index
    %c0_211 = arith.constant 0 : index
    %c0_212 = arith.constant 0 : index
    %548 = vector.load %arg20[%c0_210, %c0_211, %c0_212] : memref<2x32x32xbf16, #tpu.memory_space<vmem>>, vector<1x32x32xbf16>
    %549 = vector.shape_cast %548 : vector<1x32x32xbf16> to vector<32x32xbf16>
    %c0_213 = arith.constant 0 : index
    %c0_214 = arith.constant 0 : index
    %c0_215 = arith.constant 0 : index
    %550 = vector.load %arg21[%c0_213, %c0_214, %c0_215] : memref<2x1x32xf32, #tpu.memory_space<vmem>>, vector<1x1x32xf32>
    %551 = vector.shape_cast %550 : vector<1x1x32xf32> to vector<1x32xf32>
    %c0_216 = arith.constant 0 : index
    %c0_217 = arith.constant 0 : index
    %c0_218 = arith.constant 0 : index
    %552 = vector.load %arg22[%c0_216, %c0_217, %c0_218] : memref<2x32x32xbf16, #tpu.memory_space<vmem>>, vector<1x32x32xbf16>
    %553 = vector.shape_cast %552 : vector<1x32x32xbf16> to vector<32x32xbf16>
    %c0_219 = arith.constant 0 : index
    %c0_220 = arith.constant 0 : index
    %c0_221 = arith.constant 0 : index
    %554 = vector.load %arg23[%c0_219, %c0_220, %c0_221] : memref<2x1x32xf32, #tpu.memory_space<vmem>>, vector<1x1x32xf32>
    %555 = vector.shape_cast %554 : vector<1x1x32xf32> to vector<1x32xf32>
    %c0_222 = arith.constant 0 : index
    %c0_223 = arith.constant 0 : index
    %c0_224 = arith.constant 0 : index
    %556 = vector.load %arg24[%c0_222, %c0_223, %c0_224] : memref<2x32x32xbf16, #tpu.memory_space<vmem>>, vector<1x32x32xbf16>
    %557 = vector.shape_cast %556 : vector<1x32x32xbf16> to vector<32x32xbf16>
    %c0_225 = arith.constant 0 : index
    %c0_226 = arith.constant 0 : index
    %c0_227 = arith.constant 0 : index
    %558 = vector.load %arg25[%c0_225, %c0_226, %c0_227] : memref<2x1x32xf32, #tpu.memory_space<vmem>>, vector<1x1x32xf32>
    %559 = vector.shape_cast %558 : vector<1x1x32xf32> to vector<1x32xf32>
    %560 = arith.truncf %543 : vector<16x32xf32> to vector<16x32xbf16>
    %cst_228 = arith.constant dense<0.000000e+00> : vector<16x32xf32>
    %561 = tpu.matmul %560, %545, %cst_228 {dimension_numbers = #tpu.dot_dimension_numbers<[1], [0], [0], [1], [0, 0, 1, 1], [], []>} : vector<16x32xbf16>, vector<32x32xbf16>, vector<16x32xf32> -> vector<16x32xf32>
    %562 = vector.broadcast %547 : vector<1x32xf32> to vector<16x32xf32>
    %563 = arith.addf %561, %562 : vector<16x32xf32>
    %564 = arith.truncf %543 : vector<16x32xf32> to vector<16x32xbf16>
    %cst_229 = arith.constant dense<0.000000e+00> : vector<16x32xf32>
    %565 = tpu.matmul %564, %549, %cst_229 {dimension_numbers = #tpu.dot_dimension_numbers<[1], [0], [0], [1], [0, 0, 1, 1], [], []>} : vector<16x32xbf16>, vector<32x32xbf16>, vector<16x32xf32> -> vector<16x32xf32>
    %566 = vector.broadcast %551 : vector<1x32xf32> to vector<16x32xf32>
    %567 = arith.addf %565, %566 : vector<16x32xf32>
    %568 = arith.truncf %543 : vector<16x32xf32> to vector<16x32xbf16>
    %cst_230 = arith.constant dense<0.000000e+00> : vector<16x32xf32>
    %569 = tpu.matmul %568, %553, %cst_230 {dimension_numbers = #tpu.dot_dimension_numbers<[1], [0], [0], [1], [0, 0, 1, 1], [], []>} : vector<16x32xbf16>, vector<32x32xbf16>, vector<16x32xf32> -> vector<16x32xf32>
    %570 = vector.broadcast %555 : vector<1x32xf32> to vector<16x32xf32>
    %571 = arith.addf %569, %570 : vector<16x32xf32>
    %572 = vector.extract_strided_slice %563 {offsets = [0, 0], sizes = [8, 32], strides = [1, 1]} : vector<16x32xf32> to vector<8x32xf32>
    %573 = vector.extract_strided_slice %567 {offsets = [0, 0], sizes = [8, 32], strides = [1, 1]} : vector<16x32xf32> to vector<8x32xf32>
    %574 = vector.extract_strided_slice %571 {offsets = [0, 0], sizes = [8, 32], strides = [1, 1]} : vector<16x32xf32> to vector<8x32xf32>
    %575 = arith.truncf %574 : vector<8x32xf32> to vector<8x32xbf16>
    %576 = vector.extract_strided_slice %572 {offsets = [0, 0], sizes = [8, 8], strides = [1, 1]} : vector<8x32xf32> to vector<8x8xf32>
    %577 = arith.truncf %576 : vector<8x8xf32> to vector<8x8xbf16>
    %578 = vector.extract_strided_slice %573 {offsets = [0, 0], sizes = [8, 8], strides = [1, 1]} : vector<8x32xf32> to vector<8x8xf32>
    %579 = arith.truncf %578 : vector<8x8xf32> to vector<8x8xbf16>
    %cst_231 = arith.constant dense<0.000000e+00> : vector<8x8xf32>
    %580 = tpu.matmul %577, %579, %cst_231 {dimension_numbers = #tpu.dot_dimension_numbers<[1], [1], [0], [0], [0, 0, 1, 0], [], []>} : vector<8x8xbf16>, vector<8x8xbf16>, vector<8x8xf32> -> vector<8x8xf32>
    %cst_232 = arith.constant dense<0xFF800000> : vector<8xf32>
    %581 = vector.multi_reduction <maximumf>, %580, %cst_232 [1] : vector<8x8xf32> to vector<8xf32>
    %582 = vector.shape_cast %581 : vector<8xf32> to vector<8x1xf32>
    %583 = vector.broadcast %582 : vector<8x1xf32> to vector<8x8xf32>
    %584 = arith.subf %580, %583 : vector<8x8xf32>
    %585 = math.exp %584 : vector<8x8xf32>
    %cst_233 = arith.constant dense<0.000000e+00> : vector<8xf32>
    %586 = vector.multi_reduction <add>, %585, %cst_233 [1] : vector<8x8xf32> to vector<8xf32>
    %587 = vector.shape_cast %586 : vector<8xf32> to vector<8x1xf32>
    %588 = tpu.reciprocal %587 {approx = true} : vector<8x1xf32> -> vector<8x1xf32>
    %589 = vector.broadcast %588 : vector<8x1xf32> to vector<8x8xf32>
    %590 = arith.mulf %585, %589 : vector<8x8xf32>
    %591 = arith.truncf %590 : vector<8x8xf32> to vector<8x8xbf16>
    %592 = vector.extract_strided_slice %575 {offsets = [0, 0], sizes = [8, 8], strides = [1, 1]} : vector<8x32xbf16> to vector<8x8xbf16>
    %cst_234 = arith.constant dense<0.000000e+00> : vector<8x8xf32>
    %593 = tpu.matmul %591, %592, %cst_234 {dimension_numbers = #tpu.dot_dimension_numbers<[1], [0], [0], [1], [0, 0, 1, 1], [], []>} : vector<8x8xbf16>, vector<8x8xbf16>, vector<8x8xf32> -> vector<8x8xf32>
    %594 = vector.extract_strided_slice %572 {offsets = [0, 8], sizes = [8, 8], strides = [1, 1]} : vector<8x32xf32> to vector<8x8xf32>
    %595 = arith.truncf %594 : vector<8x8xf32> to vector<8x8xbf16>
    %596 = vector.extract_strided_slice %573 {offsets = [0, 8], sizes = [8, 8], strides = [1, 1]} : vector<8x32xf32> to vector<8x8xf32>
    %597 = arith.truncf %596 : vector<8x8xf32> to vector<8x8xbf16>
    %cst_235 = arith.constant dense<0.000000e+00> : vector<8x8xf32>
    %598 = tpu.matmul %595, %597, %cst_235 {dimension_numbers = #tpu.dot_dimension_numbers<[1], [1], [0], [0], [0, 0, 1, 0], [], []>} : vector<8x8xbf16>, vector<8x8xbf16>, vector<8x8xf32> -> vector<8x8xf32>
    %cst_236 = arith.constant dense<0xFF800000> : vector<8xf32>
    %599 = vector.multi_reduction <maximumf>, %598, %cst_236 [1] : vector<8x8xf32> to vector<8xf32>
    %600 = vector.shape_cast %599 : vector<8xf32> to vector<8x1xf32>
    %601 = vector.broadcast %600 : vector<8x1xf32> to vector<8x8xf32>
    %602 = arith.subf %598, %601 : vector<8x8xf32>
    %603 = math.exp %602 : vector<8x8xf32>
    %cst_237 = arith.constant dense<0.000000e+00> : vector<8xf32>
    %604 = vector.multi_reduction <add>, %603, %cst_237 [1] : vector<8x8xf32> to vector<8xf32>
    %605 = vector.shape_cast %604 : vector<8xf32> to vector<8x1xf32>
    %606 = tpu.reciprocal %605 {approx = true} : vector<8x1xf32> -> vector<8x1xf32>
    %607 = vector.broadcast %606 : vector<8x1xf32> to vector<8x8xf32>
    %608 = arith.mulf %603, %607 : vector<8x8xf32>
    %609 = arith.truncf %608 : vector<8x8xf32> to vector<8x8xbf16>
    %610 = vector.extract_strided_slice %575 {offsets = [0, 8], sizes = [8, 8], strides = [1, 1]} : vector<8x32xbf16> to vector<8x8xbf16>
    %cst_238 = arith.constant dense<0.000000e+00> : vector<8x8xf32>
    %611 = tpu.matmul %609, %610, %cst_238 {dimension_numbers = #tpu.dot_dimension_numbers<[1], [0], [0], [1], [0, 0, 1, 1], [], []>} : vector<8x8xbf16>, vector<8x8xbf16>, vector<8x8xf32> -> vector<8x8xf32>
    %612 = vector.extract_strided_slice %572 {offsets = [0, 16], sizes = [8, 8], strides = [1, 1]} : vector<8x32xf32> to vector<8x8xf32>
    %613 = arith.truncf %612 : vector<8x8xf32> to vector<8x8xbf16>
    %614 = vector.extract_strided_slice %573 {offsets = [0, 16], sizes = [8, 8], strides = [1, 1]} : vector<8x32xf32> to vector<8x8xf32>
    %615 = arith.truncf %614 : vector<8x8xf32> to vector<8x8xbf16>
    %cst_239 = arith.constant dense<0.000000e+00> : vector<8x8xf32>
    %616 = tpu.matmul %613, %615, %cst_239 {dimension_numbers = #tpu.dot_dimension_numbers<[1], [1], [0], [0], [0, 0, 1, 0], [], []>} : vector<8x8xbf16>, vector<8x8xbf16>, vector<8x8xf32> -> vector<8x8xf32>
    %cst_240 = arith.constant dense<0xFF800000> : vector<8xf32>
    %617 = vector.multi_reduction <maximumf>, %616, %cst_240 [1] : vector<8x8xf32> to vector<8xf32>
    %618 = vector.shape_cast %617 : vector<8xf32> to vector<8x1xf32>
    %619 = vector.broadcast %618 : vector<8x1xf32> to vector<8x8xf32>
    %620 = arith.subf %616, %619 : vector<8x8xf32>
    %621 = math.exp %620 : vector<8x8xf32>
    %cst_241 = arith.constant dense<0.000000e+00> : vector<8xf32>
    %622 = vector.multi_reduction <add>, %621, %cst_241 [1] : vector<8x8xf32> to vector<8xf32>
    %623 = vector.shape_cast %622 : vector<8xf32> to vector<8x1xf32>
    %624 = tpu.reciprocal %623 {approx = true} : vector<8x1xf32> -> vector<8x1xf32>
    %625 = vector.broadcast %624 : vector<8x1xf32> to vector<8x8xf32>
    %626 = arith.mulf %621, %625 : vector<8x8xf32>
    %627 = arith.truncf %626 : vector<8x8xf32> to vector<8x8xbf16>
    %628 = vector.extract_strided_slice %575 {offsets = [0, 16], sizes = [8, 8], strides = [1, 1]} : vector<8x32xbf16> to vector<8x8xbf16>
    %cst_242 = arith.constant dense<0.000000e+00> : vector<8x8xf32>
    %629 = tpu.matmul %627, %628, %cst_242 {dimension_numbers = #tpu.dot_dimension_numbers<[1], [0], [0], [1], [0, 0, 1, 1], [], []>} : vector<8x8xbf16>, vector<8x8xbf16>, vector<8x8xf32> -> vector<8x8xf32>
    %630 = vector.extract_strided_slice %572 {offsets = [0, 24], sizes = [8, 8], strides = [1, 1]} : vector<8x32xf32> to vector<8x8xf32>
    %631 = arith.truncf %630 : vector<8x8xf32> to vector<8x8xbf16>
    %632 = vector.extract_strided_slice %573 {offsets = [0, 24], sizes = [8, 8], strides = [1, 1]} : vector<8x32xf32> to vector<8x8xf32>
    %633 = arith.truncf %632 : vector<8x8xf32> to vector<8x8xbf16>
    %cst_243 = arith.constant dense<0.000000e+00> : vector<8x8xf32>
    %634 = tpu.matmul %631, %633, %cst_243 {dimension_numbers = #tpu.dot_dimension_numbers<[1], [1], [0], [0], [0, 0, 1, 0], [], []>} : vector<8x8xbf16>, vector<8x8xbf16>, vector<8x8xf32> -> vector<8x8xf32>
    %cst_244 = arith.constant dense<0xFF800000> : vector<8xf32>
    %635 = vector.multi_reduction <maximumf>, %634, %cst_244 [1] : vector<8x8xf32> to vector<8xf32>
    %636 = vector.shape_cast %635 : vector<8xf32> to vector<8x1xf32>
    %637 = vector.broadcast %636 : vector<8x1xf32> to vector<8x8xf32>
    %638 = arith.subf %634, %637 : vector<8x8xf32>
    %639 = math.exp %638 : vector<8x8xf32>
    %cst_245 = arith.constant dense<0.000000e+00> : vector<8xf32>
    %640 = vector.multi_reduction <add>, %639, %cst_245 [1] : vector<8x8xf32> to vector<8xf32>
    %641 = vector.shape_cast %640 : vector<8xf32> to vector<8x1xf32>
    %642 = tpu.reciprocal %641 {approx = true} : vector<8x1xf32> -> vector<8x1xf32>
    %643 = vector.broadcast %642 : vector<8x1xf32> to vector<8x8xf32>
    %644 = arith.mulf %639, %643 : vector<8x8xf32>
    %645 = arith.truncf %644 : vector<8x8xf32> to vector<8x8xbf16>
    %646 = vector.extract_strided_slice %575 {offsets = [0, 24], sizes = [8, 8], strides = [1, 1]} : vector<8x32xbf16> to vector<8x8xbf16>
    %cst_246 = arith.constant dense<0.000000e+00> : vector<8x8xf32>
    %647 = tpu.matmul %645, %646, %cst_246 {dimension_numbers = #tpu.dot_dimension_numbers<[1], [0], [0], [1], [0, 0, 1, 1], [], []>} : vector<8x8xbf16>, vector<8x8xbf16>, vector<8x8xf32> -> vector<8x8xf32>
    %648 = tpu.concatenate %593, %611, %629, %647 in 1 : vector<8x8xf32>, vector<8x8xf32>, vector<8x8xf32>, vector<8x8xf32> -> vector<8x32xf32>
    %649 = vector.extract_strided_slice %563 {offsets = [8, 0], sizes = [8, 32], strides = [1, 1]} : vector<16x32xf32> to vector<8x32xf32>
    %650 = vector.extract_strided_slice %567 {offsets = [8, 0], sizes = [8, 32], strides = [1, 1]} : vector<16x32xf32> to vector<8x32xf32>
    %651 = vector.extract_strided_slice %571 {offsets = [8, 0], sizes = [8, 32], strides = [1, 1]} : vector<16x32xf32> to vector<8x32xf32>
    %652 = arith.truncf %651 : vector<8x32xf32> to vector<8x32xbf16>
    %653 = vector.extract_strided_slice %649 {offsets = [0, 0], sizes = [8, 8], strides = [1, 1]} : vector<8x32xf32> to vector<8x8xf32>
    %654 = arith.truncf %653 : vector<8x8xf32> to vector<8x8xbf16>
    %655 = vector.extract_strided_slice %650 {offsets = [0, 0], sizes = [8, 8], strides = [1, 1]} : vector<8x32xf32> to vector<8x8xf32>
    %656 = arith.truncf %655 : vector<8x8xf32> to vector<8x8xbf16>
    %cst_247 = arith.constant dense<0.000000e+00> : vector<8x8xf32>
    %657 = tpu.matmul %654, %656, %cst_247 {dimension_numbers = #tpu.dot_dimension_numbers<[1], [1], [0], [0], [0, 0, 1, 0], [], []>} : vector<8x8xbf16>, vector<8x8xbf16>, vector<8x8xf32> -> vector<8x8xf32>
    %cst_248 = arith.constant dense<0xFF800000> : vector<8xf32>
    %658 = vector.multi_reduction <maximumf>, %657, %cst_248 [1] : vector<8x8xf32> to vector<8xf32>
    %659 = vector.shape_cast %658 : vector<8xf32> to vector<8x1xf32>
    %660 = vector.broadcast %659 : vector<8x1xf32> to vector<8x8xf32>
    %661 = arith.subf %657, %660 : vector<8x8xf32>
    %662 = math.exp %661 : vector<8x8xf32>
    %cst_249 = arith.constant dense<0.000000e+00> : vector<8xf32>
    %663 = vector.multi_reduction <add>, %662, %cst_249 [1] : vector<8x8xf32> to vector<8xf32>
    %664 = vector.shape_cast %663 : vector<8xf32> to vector<8x1xf32>
    %665 = tpu.reciprocal %664 {approx = true} : vector<8x1xf32> -> vector<8x1xf32>
    %666 = vector.broadcast %665 : vector<8x1xf32> to vector<8x8xf32>
    %667 = arith.mulf %662, %666 : vector<8x8xf32>
    %668 = arith.truncf %667 : vector<8x8xf32> to vector<8x8xbf16>
    %669 = vector.extract_strided_slice %652 {offsets = [0, 0], sizes = [8, 8], strides = [1, 1]} : vector<8x32xbf16> to vector<8x8xbf16>
    %cst_250 = arith.constant dense<0.000000e+00> : vector<8x8xf32>
    %670 = tpu.matmul %668, %669, %cst_250 {dimension_numbers = #tpu.dot_dimension_numbers<[1], [0], [0], [1], [0, 0, 1, 1], [], []>} : vector<8x8xbf16>, vector<8x8xbf16>, vector<8x8xf32> -> vector<8x8xf32>
    %671 = vector.extract_strided_slice %649 {offsets = [0, 8], sizes = [8, 8], strides = [1, 1]} : vector<8x32xf32> to vector<8x8xf32>
    %672 = arith.truncf %671 : vector<8x8xf32> to vector<8x8xbf16>
    %673 = vector.extract_strided_slice %650 {offsets = [0, 8], sizes = [8, 8], strides = [1, 1]} : vector<8x32xf32> to vector<8x8xf32>
    %674 = arith.truncf %673 : vector<8x8xf32> to vector<8x8xbf16>
    %cst_251 = arith.constant dense<0.000000e+00> : vector<8x8xf32>
    %675 = tpu.matmul %672, %674, %cst_251 {dimension_numbers = #tpu.dot_dimension_numbers<[1], [1], [0], [0], [0, 0, 1, 0], [], []>} : vector<8x8xbf16>, vector<8x8xbf16>, vector<8x8xf32> -> vector<8x8xf32>
    %cst_252 = arith.constant dense<0xFF800000> : vector<8xf32>
    %676 = vector.multi_reduction <maximumf>, %675, %cst_252 [1] : vector<8x8xf32> to vector<8xf32>
    %677 = vector.shape_cast %676 : vector<8xf32> to vector<8x1xf32>
    %678 = vector.broadcast %677 : vector<8x1xf32> to vector<8x8xf32>
    %679 = arith.subf %675, %678 : vector<8x8xf32>
    %680 = math.exp %679 : vector<8x8xf32>
    %cst_253 = arith.constant dense<0.000000e+00> : vector<8xf32>
    %681 = vector.multi_reduction <add>, %680, %cst_253 [1] : vector<8x8xf32> to vector<8xf32>
    %682 = vector.shape_cast %681 : vector<8xf32> to vector<8x1xf32>
    %683 = tpu.reciprocal %682 {approx = true} : vector<8x1xf32> -> vector<8x1xf32>
    %684 = vector.broadcast %683 : vector<8x1xf32> to vector<8x8xf32>
    %685 = arith.mulf %680, %684 : vector<8x8xf32>
    %686 = arith.truncf %685 : vector<8x8xf32> to vector<8x8xbf16>
    %687 = vector.extract_strided_slice %652 {offsets = [0, 8], sizes = [8, 8], strides = [1, 1]} : vector<8x32xbf16> to vector<8x8xbf16>
    %cst_254 = arith.constant dense<0.000000e+00> : vector<8x8xf32>
    %688 = tpu.matmul %686, %687, %cst_254 {dimension_numbers = #tpu.dot_dimension_numbers<[1], [0], [0], [1], [0, 0, 1, 1], [], []>} : vector<8x8xbf16>, vector<8x8xbf16>, vector<8x8xf32> -> vector<8x8xf32>
    %689 = vector.extract_strided_slice %649 {offsets = [0, 16], sizes = [8, 8], strides = [1, 1]} : vector<8x32xf32> to vector<8x8xf32>
    %690 = arith.truncf %689 : vector<8x8xf32> to vector<8x8xbf16>
    %691 = vector.extract_strided_slice %650 {offsets = [0, 16], sizes = [8, 8], strides = [1, 1]} : vector<8x32xf32> to vector<8x8xf32>
    %692 = arith.truncf %691 : vector<8x8xf32> to vector<8x8xbf16>
    %cst_255 = arith.constant dense<0.000000e+00> : vector<8x8xf32>
    %693 = tpu.matmul %690, %692, %cst_255 {dimension_numbers = #tpu.dot_dimension_numbers<[1], [1], [0], [0], [0, 0, 1, 0], [], []>} : vector<8x8xbf16>, vector<8x8xbf16>, vector<8x8xf32> -> vector<8x8xf32>
    %cst_256 = arith.constant dense<0xFF800000> : vector<8xf32>
    %694 = vector.multi_reduction <maximumf>, %693, %cst_256 [1] : vector<8x8xf32> to vector<8xf32>
    %695 = vector.shape_cast %694 : vector<8xf32> to vector<8x1xf32>
    %696 = vector.broadcast %695 : vector<8x1xf32> to vector<8x8xf32>
    %697 = arith.subf %693, %696 : vector<8x8xf32>
    %698 = math.exp %697 : vector<8x8xf32>
    %cst_257 = arith.constant dense<0.000000e+00> : vector<8xf32>
    %699 = vector.multi_reduction <add>, %698, %cst_257 [1] : vector<8x8xf32> to vector<8xf32>
    %700 = vector.shape_cast %699 : vector<8xf32> to vector<8x1xf32>
    %701 = tpu.reciprocal %700 {approx = true} : vector<8x1xf32> -> vector<8x1xf32>
    %702 = vector.broadcast %701 : vector<8x1xf32> to vector<8x8xf32>
    %703 = arith.mulf %698, %702 : vector<8x8xf32>
    %704 = arith.truncf %703 : vector<8x8xf32> to vector<8x8xbf16>
    %705 = vector.extract_strided_slice %652 {offsets = [0, 16], sizes = [8, 8], strides = [1, 1]} : vector<8x32xbf16> to vector<8x8xbf16>
    %cst_258 = arith.constant dense<0.000000e+00> : vector<8x8xf32>
    %706 = tpu.matmul %704, %705, %cst_258 {dimension_numbers = #tpu.dot_dimension_numbers<[1], [0], [0], [1], [0, 0, 1, 1], [], []>} : vector<8x8xbf16>, vector<8x8xbf16>, vector<8x8xf32> -> vector<8x8xf32>
    %707 = vector.extract_strided_slice %649 {offsets = [0, 24], sizes = [8, 8], strides = [1, 1]} : vector<8x32xf32> to vector<8x8xf32>
    %708 = arith.truncf %707 : vector<8x8xf32> to vector<8x8xbf16>
    %709 = vector.extract_strided_slice %650 {offsets = [0, 24], sizes = [8, 8], strides = [1, 1]} : vector<8x32xf32> to vector<8x8xf32>
    %710 = arith.truncf %709 : vector<8x8xf32> to vector<8x8xbf16>
    %cst_259 = arith.constant dense<0.000000e+00> : vector<8x8xf32>
    %711 = tpu.matmul %708, %710, %cst_259 {dimension_numbers = #tpu.dot_dimension_numbers<[1], [1], [0], [0], [0, 0, 1, 0], [], []>} : vector<8x8xbf16>, vector<8x8xbf16>, vector<8x8xf32> -> vector<8x8xf32>
    %cst_260 = arith.constant dense<0xFF800000> : vector<8xf32>
    %712 = vector.multi_reduction <maximumf>, %711, %cst_260 [1] : vector<8x8xf32> to vector<8xf32>
    %713 = vector.shape_cast %712 : vector<8xf32> to vector<8x1xf32>
    %714 = vector.broadcast %713 : vector<8x1xf32> to vector<8x8xf32>
    %715 = arith.subf %711, %714 : vector<8x8xf32>
    %716 = math.exp %715 : vector<8x8xf32>
    %cst_261 = arith.constant dense<0.000000e+00> : vector<8xf32>
    %717 = vector.multi_reduction <add>, %716, %cst_261 [1] : vector<8x8xf32> to vector<8xf32>
    %718 = vector.shape_cast %717 : vector<8xf32> to vector<8x1xf32>
    %719 = tpu.reciprocal %718 {approx = true} : vector<8x1xf32> -> vector<8x1xf32>
    %720 = vector.broadcast %719 : vector<8x1xf32> to vector<8x8xf32>
    %721 = arith.mulf %716, %720 : vector<8x8xf32>
    %722 = arith.truncf %721 : vector<8x8xf32> to vector<8x8xbf16>
    %723 = vector.extract_strided_slice %652 {offsets = [0, 24], sizes = [8, 8], strides = [1, 1]} : vector<8x32xbf16> to vector<8x8xbf16>
    %cst_262 = arith.constant dense<0.000000e+00> : vector<8x8xf32>
    %724 = tpu.matmul %722, %723, %cst_262 {dimension_numbers = #tpu.dot_dimension_numbers<[1], [0], [0], [1], [0, 0, 1, 1], [], []>} : vector<8x8xbf16>, vector<8x8xbf16>, vector<8x8xf32> -> vector<8x8xf32>
    %725 = tpu.concatenate %670, %688, %706, %724 in 1 : vector<8x8xf32>, vector<8x8xf32>, vector<8x8xf32>, vector<8x8xf32> -> vector<8x32xf32>
    %726 = tpu.concatenate %648, %725 in 0 : vector<8x32xf32>, vector<8x32xf32> -> vector<16x32xf32>
    %727 = arith.truncf %726 : vector<16x32xf32> to vector<16x32xbf16>
    %cst_263 = arith.constant dense<0.000000e+00> : vector<16x32xf32>
    %728 = tpu.matmul %727, %557, %cst_263 {dimension_numbers = #tpu.dot_dimension_numbers<[1], [0], [0], [1], [0, 0, 1, 1], [], []>} : vector<16x32xbf16>, vector<32x32xbf16>, vector<16x32xf32> -> vector<16x32xf32>
    %729 = vector.broadcast %559 : vector<1x32xf32> to vector<16x32xf32>
    %730 = arith.addf %728, %729 : vector<16x32xf32>
    %c0_264 = arith.constant 0 : index
    %c0_265 = arith.constant 0 : index
    %c0_266 = arith.constant 0 : index
    %731 = vector.load %arg26[%c0_264, %c0_265, %c0_266] : memref<2x1x32xf32, #tpu.memory_space<vmem>>, vector<1x1x32xf32>
    %732 = vector.shape_cast %731 : vector<1x1x32xf32> to vector<1x32xf32>
    %c0_267 = arith.constant 0 : index
    %c0_268 = arith.constant 0 : index
    %c0_269 = arith.constant 0 : index
    %733 = vector.load %arg27[%c0_267, %c0_268, %c0_269] : memref<2x1x32xf32, #tpu.memory_space<vmem>>, vector<1x1x32xf32>
    %734 = vector.shape_cast %733 : vector<1x1x32xf32> to vector<1x32xf32>
    %735 = arith.addf %543, %730 : vector<16x32xf32>
    %cst_270 = arith.constant dense<0.000000e+00> : vector<16xf32>
    %736 = vector.multi_reduction <add>, %735, %cst_270 [1] : vector<16x32xf32> to vector<16xf32>
    %737 = vector.shape_cast %736 : vector<16xf32> to vector<16x1xf32>
    %cst_271 = arith.constant 3.200000e+01 : f32
    %738 = vector.broadcast %cst_271 : f32 to vector<16x1xf32>
    %739 = arith.divf %737, %738 : vector<16x1xf32>
    %740 = arith.mulf %735, %735 : vector<16x32xf32>
    %cst_272 = arith.constant dense<0.000000e+00> : vector<16xf32>
    %741 = vector.multi_reduction <add>, %740, %cst_272 [1] : vector<16x32xf32> to vector<16xf32>
    %742 = vector.shape_cast %741 : vector<16xf32> to vector<16x1xf32>
    %cst_273 = arith.constant 3.200000e+01 : f32
    %743 = vector.broadcast %cst_273 : f32 to vector<16x1xf32>
    %744 = arith.divf %742, %743 : vector<16x1xf32>
    %745 = arith.mulf %739, %739 : vector<16x1xf32>
    %746 = arith.subf %744, %745 : vector<16x1xf32>
    %cst_274 = arith.constant 9.99999974E-6 : f32
    %747 = vector.broadcast %cst_274 : f32 to vector<16x1xf32>
    %748 = arith.addf %746, %747 : vector<16x1xf32>
    %749 = math.rsqrt %748 : vector<16x1xf32>
    %750 = vector.broadcast %739 : vector<16x1xf32> to vector<16x32xf32>
    %751 = arith.subf %735, %750 : vector<16x32xf32>
    %752 = vector.broadcast %749 : vector<16x1xf32> to vector<16x32xf32>
    %753 = arith.mulf %751, %752 : vector<16x32xf32>
    %754 = vector.broadcast %732 : vector<1x32xf32> to vector<16x32xf32>
    %755 = arith.mulf %753, %754 : vector<16x32xf32>
    %756 = vector.broadcast %734 : vector<1x32xf32> to vector<16x32xf32>
    %757 = arith.addf %755, %756 : vector<16x32xf32>
    %c0_275 = arith.constant 0 : index
    %c0_276 = arith.constant 0 : index
    %c0_277 = arith.constant 0 : index
    %758 = vector.load %arg28[%c0_275, %c0_276, %c0_277] : memref<2x32x32xbf16, #tpu.memory_space<vmem>>, vector<1x32x32xbf16>
    %759 = vector.shape_cast %758 : vector<1x32x32xbf16> to vector<32x32xbf16>
    %c0_278 = arith.constant 0 : index
    %c0_279 = arith.constant 0 : index
    %c0_280 = arith.constant 0 : index
    %760 = vector.load %arg29[%c0_278, %c0_279, %c0_280] : memref<2x1x32xf32, #tpu.memory_space<vmem>>, vector<1x1x32xf32>
    %761 = vector.shape_cast %760 : vector<1x1x32xf32> to vector<1x32xf32>
    %c0_281 = arith.constant 0 : index
    %c0_282 = arith.constant 0 : index
    %c0_283 = arith.constant 0 : index
    %762 = vector.load %arg30[%c0_281, %c0_282, %c0_283] : memref<2x32x32xbf16, #tpu.memory_space<vmem>>, vector<1x32x32xbf16>
    %763 = vector.shape_cast %762 : vector<1x32x32xbf16> to vector<32x32xbf16>
    %c0_284 = arith.constant 0 : index
    %c0_285 = arith.constant 0 : index
    %c0_286 = arith.constant 0 : index
    %764 = vector.load %arg31[%c0_284, %c0_285, %c0_286] : memref<2x1x32xf32, #tpu.memory_space<vmem>>, vector<1x1x32xf32>
    %765 = vector.shape_cast %764 : vector<1x1x32xf32> to vector<1x32xf32>
    %c0_287 = arith.constant 0 : index
    %c0_288 = arith.constant 0 : index
    %c0_289 = arith.constant 0 : index
    %766 = vector.load %arg32[%c0_287, %c0_288, %c0_289] : memref<2x32x32xbf16, #tpu.memory_space<vmem>>, vector<1x32x32xbf16>
    %767 = vector.shape_cast %766 : vector<1x32x32xbf16> to vector<32x32xbf16>
    %c0_290 = arith.constant 0 : index
    %c0_291 = arith.constant 0 : index
    %c0_292 = arith.constant 0 : index
    %768 = vector.load %arg33[%c0_290, %c0_291, %c0_292] : memref<2x1x32xf32, #tpu.memory_space<vmem>>, vector<1x1x32xf32>
    %769 = vector.shape_cast %768 : vector<1x1x32xf32> to vector<1x32xf32>
    %c0_293 = arith.constant 0 : index
    %c0_294 = arith.constant 0 : index
    %c0_295 = arith.constant 0 : index
    %770 = vector.load %arg34[%c0_293, %c0_294, %c0_295] : memref<2x32x32xbf16, #tpu.memory_space<vmem>>, vector<1x32x32xbf16>
    %771 = vector.shape_cast %770 : vector<1x32x32xbf16> to vector<32x32xbf16>
    %c0_296 = arith.constant 0 : index
    %c0_297 = arith.constant 0 : index
    %c0_298 = arith.constant 0 : index
    %772 = vector.load %arg35[%c0_296, %c0_297, %c0_298] : memref<2x1x32xf32, #tpu.memory_space<vmem>>, vector<1x1x32xf32>
    %773 = vector.shape_cast %772 : vector<1x1x32xf32> to vector<1x32xf32>
    %774 = arith.truncf %757 : vector<16x32xf32> to vector<16x32xbf16>
    %cst_299 = arith.constant dense<0.000000e+00> : vector<16x32xf32>
    %775 = tpu.matmul %774, %759, %cst_299 {dimension_numbers = #tpu.dot_dimension_numbers<[1], [0], [0], [1], [0, 0, 1, 1], [], []>} : vector<16x32xbf16>, vector<32x32xbf16>, vector<16x32xf32> -> vector<16x32xf32>
    %776 = vector.broadcast %761 : vector<1x32xf32> to vector<16x32xf32>
    %777 = arith.addf %775, %776 : vector<16x32xf32>
    %778 = arith.truncf %542 : vector<16x32xf32> to vector<16x32xbf16>
    %cst_300 = arith.constant dense<0.000000e+00> : vector<16x32xf32>
    %779 = tpu.matmul %778, %763, %cst_300 {dimension_numbers = #tpu.dot_dimension_numbers<[1], [0], [0], [1], [0, 0, 1, 1], [], []>} : vector<16x32xbf16>, vector<32x32xbf16>, vector<16x32xf32> -> vector<16x32xf32>
    %780 = vector.broadcast %765 : vector<1x32xf32> to vector<16x32xf32>
    %781 = arith.addf %779, %780 : vector<16x32xf32>
    %782 = arith.truncf %542 : vector<16x32xf32> to vector<16x32xbf16>
    %cst_301 = arith.constant dense<0.000000e+00> : vector<16x32xf32>
    %783 = tpu.matmul %782, %767, %cst_301 {dimension_numbers = #tpu.dot_dimension_numbers<[1], [0], [0], [1], [0, 0, 1, 1], [], []>} : vector<16x32xbf16>, vector<32x32xbf16>, vector<16x32xf32> -> vector<16x32xf32>
    %784 = vector.broadcast %769 : vector<1x32xf32> to vector<16x32xf32>
    %785 = arith.addf %783, %784 : vector<16x32xf32>
    %786 = vector.extract_strided_slice %777 {offsets = [0, 0], sizes = [8, 32], strides = [1, 1]} : vector<16x32xf32> to vector<8x32xf32>
    %787 = vector.extract_strided_slice %781 {offsets = [0, 0], sizes = [8, 32], strides = [1, 1]} : vector<16x32xf32> to vector<8x32xf32>
    %788 = vector.extract_strided_slice %785 {offsets = [0, 0], sizes = [8, 32], strides = [1, 1]} : vector<16x32xf32> to vector<8x32xf32>
    %789 = arith.truncf %788 : vector<8x32xf32> to vector<8x32xbf16>
    %790 = vector.extract_strided_slice %786 {offsets = [0, 0], sizes = [8, 8], strides = [1, 1]} : vector<8x32xf32> to vector<8x8xf32>
    %791 = arith.truncf %790 : vector<8x8xf32> to vector<8x8xbf16>
    %792 = vector.extract_strided_slice %787 {offsets = [0, 0], sizes = [8, 8], strides = [1, 1]} : vector<8x32xf32> to vector<8x8xf32>
    %793 = arith.truncf %792 : vector<8x8xf32> to vector<8x8xbf16>
    %cst_302 = arith.constant dense<0.000000e+00> : vector<8x8xf32>
    %794 = tpu.matmul %791, %793, %cst_302 {dimension_numbers = #tpu.dot_dimension_numbers<[1], [1], [0], [0], [0, 0, 1, 0], [], []>} : vector<8x8xbf16>, vector<8x8xbf16>, vector<8x8xf32> -> vector<8x8xf32>
    %cst_303 = arith.constant dense<0xFF800000> : vector<8xf32>
    %795 = vector.multi_reduction <maximumf>, %794, %cst_303 [1] : vector<8x8xf32> to vector<8xf32>
    %796 = vector.shape_cast %795 : vector<8xf32> to vector<8x1xf32>
    %797 = vector.broadcast %796 : vector<8x1xf32> to vector<8x8xf32>
    %798 = arith.subf %794, %797 : vector<8x8xf32>
    %799 = math.exp %798 : vector<8x8xf32>
    %cst_304 = arith.constant dense<0.000000e+00> : vector<8xf32>
    %800 = vector.multi_reduction <add>, %799, %cst_304 [1] : vector<8x8xf32> to vector<8xf32>
    %801 = vector.shape_cast %800 : vector<8xf32> to vector<8x1xf32>
    %802 = tpu.reciprocal %801 {approx = true} : vector<8x1xf32> -> vector<8x1xf32>
    %803 = vector.broadcast %802 : vector<8x1xf32> to vector<8x8xf32>
    %804 = arith.mulf %799, %803 : vector<8x8xf32>
    %805 = arith.truncf %804 : vector<8x8xf32> to vector<8x8xbf16>
    %806 = vector.extract_strided_slice %789 {offsets = [0, 0], sizes = [8, 8], strides = [1, 1]} : vector<8x32xbf16> to vector<8x8xbf16>
    %cst_305 = arith.constant dense<0.000000e+00> : vector<8x8xf32>
    %807 = tpu.matmul %805, %806, %cst_305 {dimension_numbers = #tpu.dot_dimension_numbers<[1], [0], [0], [1], [0, 0, 1, 1], [], []>} : vector<8x8xbf16>, vector<8x8xbf16>, vector<8x8xf32> -> vector<8x8xf32>
    %808 = vector.extract_strided_slice %786 {offsets = [0, 8], sizes = [8, 8], strides = [1, 1]} : vector<8x32xf32> to vector<8x8xf32>
    %809 = arith.truncf %808 : vector<8x8xf32> to vector<8x8xbf16>
    %810 = vector.extract_strided_slice %787 {offsets = [0, 8], sizes = [8, 8], strides = [1, 1]} : vector<8x32xf32> to vector<8x8xf32>
    %811 = arith.truncf %810 : vector<8x8xf32> to vector<8x8xbf16>
    %cst_306 = arith.constant dense<0.000000e+00> : vector<8x8xf32>
    %812 = tpu.matmul %809, %811, %cst_306 {dimension_numbers = #tpu.dot_dimension_numbers<[1], [1], [0], [0], [0, 0, 1, 0], [], []>} : vector<8x8xbf16>, vector<8x8xbf16>, vector<8x8xf32> -> vector<8x8xf32>
    %cst_307 = arith.constant dense<0xFF800000> : vector<8xf32>
    %813 = vector.multi_reduction <maximumf>, %812, %cst_307 [1] : vector<8x8xf32> to vector<8xf32>
    %814 = vector.shape_cast %813 : vector<8xf32> to vector<8x1xf32>
    %815 = vector.broadcast %814 : vector<8x1xf32> to vector<8x8xf32>
    %816 = arith.subf %812, %815 : vector<8x8xf32>
    %817 = math.exp %816 : vector<8x8xf32>
    %cst_308 = arith.constant dense<0.000000e+00> : vector<8xf32>
    %818 = vector.multi_reduction <add>, %817, %cst_308 [1] : vector<8x8xf32> to vector<8xf32>
    %819 = vector.shape_cast %818 : vector<8xf32> to vector<8x1xf32>
    %820 = tpu.reciprocal %819 {approx = true} : vector<8x1xf32> -> vector<8x1xf32>
    %821 = vector.broadcast %820 : vector<8x1xf32> to vector<8x8xf32>
    %822 = arith.mulf %817, %821 : vector<8x8xf32>
    %823 = arith.truncf %822 : vector<8x8xf32> to vector<8x8xbf16>
    %824 = vector.extract_strided_slice %789 {offsets = [0, 8], sizes = [8, 8], strides = [1, 1]} : vector<8x32xbf16> to vector<8x8xbf16>
    %cst_309 = arith.constant dense<0.000000e+00> : vector<8x8xf32>
    %825 = tpu.matmul %823, %824, %cst_309 {dimension_numbers = #tpu.dot_dimension_numbers<[1], [0], [0], [1], [0, 0, 1, 1], [], []>} : vector<8x8xbf16>, vector<8x8xbf16>, vector<8x8xf32> -> vector<8x8xf32>
    %826 = vector.extract_strided_slice %786 {offsets = [0, 16], sizes = [8, 8], strides = [1, 1]} : vector<8x32xf32> to vector<8x8xf32>
    %827 = arith.truncf %826 : vector<8x8xf32> to vector<8x8xbf16>
    %828 = vector.extract_strided_slice %787 {offsets = [0, 16], sizes = [8, 8], strides = [1, 1]} : vector<8x32xf32> to vector<8x8xf32>
    %829 = arith.truncf %828 : vector<8x8xf32> to vector<8x8xbf16>
    %cst_310 = arith.constant dense<0.000000e+00> : vector<8x8xf32>
    %830 = tpu.matmul %827, %829, %cst_310 {dimension_numbers = #tpu.dot_dimension_numbers<[1], [1], [0], [0], [0, 0, 1, 0], [], []>} : vector<8x8xbf16>, vector<8x8xbf16>, vector<8x8xf32> -> vector<8x8xf32>
    %cst_311 = arith.constant dense<0xFF800000> : vector<8xf32>
    %831 = vector.multi_reduction <maximumf>, %830, %cst_311 [1] : vector<8x8xf32> to vector<8xf32>
    %832 = vector.shape_cast %831 : vector<8xf32> to vector<8x1xf32>
    %833 = vector.broadcast %832 : vector<8x1xf32> to vector<8x8xf32>
    %834 = arith.subf %830, %833 : vector<8x8xf32>
    %835 = math.exp %834 : vector<8x8xf32>
    %cst_312 = arith.constant dense<0.000000e+00> : vector<8xf32>
    %836 = vector.multi_reduction <add>, %835, %cst_312 [1] : vector<8x8xf32> to vector<8xf32>
    %837 = vector.shape_cast %836 : vector<8xf32> to vector<8x1xf32>
    %838 = tpu.reciprocal %837 {approx = true} : vector<8x1xf32> -> vector<8x1xf32>
    %839 = vector.broadcast %838 : vector<8x1xf32> to vector<8x8xf32>
    %840 = arith.mulf %835, %839 : vector<8x8xf32>
    %841 = arith.truncf %840 : vector<8x8xf32> to vector<8x8xbf16>
    %842 = vector.extract_strided_slice %789 {offsets = [0, 16], sizes = [8, 8], strides = [1, 1]} : vector<8x32xbf16> to vector<8x8xbf16>
    %cst_313 = arith.constant dense<0.000000e+00> : vector<8x8xf32>
    %843 = tpu.matmul %841, %842, %cst_313 {dimension_numbers = #tpu.dot_dimension_numbers<[1], [0], [0], [1], [0, 0, 1, 1], [], []>} : vector<8x8xbf16>, vector<8x8xbf16>, vector<8x8xf32> -> vector<8x8xf32>
    %844 = vector.extract_strided_slice %786 {offsets = [0, 24], sizes = [8, 8], strides = [1, 1]} : vector<8x32xf32> to vector<8x8xf32>
    %845 = arith.truncf %844 : vector<8x8xf32> to vector<8x8xbf16>
    %846 = vector.extract_strided_slice %787 {offsets = [0, 24], sizes = [8, 8], strides = [1, 1]} : vector<8x32xf32> to vector<8x8xf32>
    %847 = arith.truncf %846 : vector<8x8xf32> to vector<8x8xbf16>
    %cst_314 = arith.constant dense<0.000000e+00> : vector<8x8xf32>
    %848 = tpu.matmul %845, %847, %cst_314 {dimension_numbers = #tpu.dot_dimension_numbers<[1], [1], [0], [0], [0, 0, 1, 0], [], []>} : vector<8x8xbf16>, vector<8x8xbf16>, vector<8x8xf32> -> vector<8x8xf32>
    %cst_315 = arith.constant dense<0xFF800000> : vector<8xf32>
    %849 = vector.multi_reduction <maximumf>, %848, %cst_315 [1] : vector<8x8xf32> to vector<8xf32>
    %850 = vector.shape_cast %849 : vector<8xf32> to vector<8x1xf32>
    %851 = vector.broadcast %850 : vector<8x1xf32> to vector<8x8xf32>
    %852 = arith.subf %848, %851 : vector<8x8xf32>
    %853 = math.exp %852 : vector<8x8xf32>
    %cst_316 = arith.constant dense<0.000000e+00> : vector<8xf32>
    %854 = vector.multi_reduction <add>, %853, %cst_316 [1] : vector<8x8xf32> to vector<8xf32>
    %855 = vector.shape_cast %854 : vector<8xf32> to vector<8x1xf32>
    %856 = tpu.reciprocal %855 {approx = true} : vector<8x1xf32> -> vector<8x1xf32>
    %857 = vector.broadcast %856 : vector<8x1xf32> to vector<8x8xf32>
    %858 = arith.mulf %853, %857 : vector<8x8xf32>
    %859 = arith.truncf %858 : vector<8x8xf32> to vector<8x8xbf16>
    %860 = vector.extract_strided_slice %789 {offsets = [0, 24], sizes = [8, 8], strides = [1, 1]} : vector<8x32xbf16> to vector<8x8xbf16>
    %cst_317 = arith.constant dense<0.000000e+00> : vector<8x8xf32>
    %861 = tpu.matmul %859, %860, %cst_317 {dimension_numbers = #tpu.dot_dimension_numbers<[1], [0], [0], [1], [0, 0, 1, 1], [], []>} : vector<8x8xbf16>, vector<8x8xbf16>, vector<8x8xf32> -> vector<8x8xf32>
    %862 = tpu.concatenate %807, %825, %843, %861 in 1 : vector<8x8xf32>, vector<8x8xf32>, vector<8x8xf32>, vector<8x8xf32> -> vector<8x32xf32>
    %863 = vector.extract_strided_slice %777 {offsets = [8, 0], sizes = [8, 32], strides = [1, 1]} : vector<16x32xf32> to vector<8x32xf32>
    %864 = vector.extract_strided_slice %781 {offsets = [8, 0], sizes = [8, 32], strides = [1, 1]} : vector<16x32xf32> to vector<8x32xf32>
    %865 = vector.extract_strided_slice %785 {offsets = [8, 0], sizes = [8, 32], strides = [1, 1]} : vector<16x32xf32> to vector<8x32xf32>
    %866 = arith.truncf %865 : vector<8x32xf32> to vector<8x32xbf16>
    %867 = vector.extract_strided_slice %863 {offsets = [0, 0], sizes = [8, 8], strides = [1, 1]} : vector<8x32xf32> to vector<8x8xf32>
    %868 = arith.truncf %867 : vector<8x8xf32> to vector<8x8xbf16>
    %869 = vector.extract_strided_slice %864 {offsets = [0, 0], sizes = [8, 8], strides = [1, 1]} : vector<8x32xf32> to vector<8x8xf32>
    %870 = arith.truncf %869 : vector<8x8xf32> to vector<8x8xbf16>
    %cst_318 = arith.constant dense<0.000000e+00> : vector<8x8xf32>
    %871 = tpu.matmul %868, %870, %cst_318 {dimension_numbers = #tpu.dot_dimension_numbers<[1], [1], [0], [0], [0, 0, 1, 0], [], []>} : vector<8x8xbf16>, vector<8x8xbf16>, vector<8x8xf32> -> vector<8x8xf32>
    %cst_319 = arith.constant dense<0xFF800000> : vector<8xf32>
    %872 = vector.multi_reduction <maximumf>, %871, %cst_319 [1] : vector<8x8xf32> to vector<8xf32>
    %873 = vector.shape_cast %872 : vector<8xf32> to vector<8x1xf32>
    %874 = vector.broadcast %873 : vector<8x1xf32> to vector<8x8xf32>
    %875 = arith.subf %871, %874 : vector<8x8xf32>
    %876 = math.exp %875 : vector<8x8xf32>
    %cst_320 = arith.constant dense<0.000000e+00> : vector<8xf32>
    %877 = vector.multi_reduction <add>, %876, %cst_320 [1] : vector<8x8xf32> to vector<8xf32>
    %878 = vector.shape_cast %877 : vector<8xf32> to vector<8x1xf32>
    %879 = tpu.reciprocal %878 {approx = true} : vector<8x1xf32> -> vector<8x1xf32>
    %880 = vector.broadcast %879 : vector<8x1xf32> to vector<8x8xf32>
    %881 = arith.mulf %876, %880 : vector<8x8xf32>
    %882 = arith.truncf %881 : vector<8x8xf32> to vector<8x8xbf16>
    %883 = vector.extract_strided_slice %866 {offsets = [0, 0], sizes = [8, 8], strides = [1, 1]} : vector<8x32xbf16> to vector<8x8xbf16>
    %cst_321 = arith.constant dense<0.000000e+00> : vector<8x8xf32>
    %884 = tpu.matmul %882, %883, %cst_321 {dimension_numbers = #tpu.dot_dimension_numbers<[1], [0], [0], [1], [0, 0, 1, 1], [], []>} : vector<8x8xbf16>, vector<8x8xbf16>, vector<8x8xf32> -> vector<8x8xf32>
    %885 = vector.extract_strided_slice %863 {offsets = [0, 8], sizes = [8, 8], strides = [1, 1]} : vector<8x32xf32> to vector<8x8xf32>
    %886 = arith.truncf %885 : vector<8x8xf32> to vector<8x8xbf16>
    %887 = vector.extract_strided_slice %864 {offsets = [0, 8], sizes = [8, 8], strides = [1, 1]} : vector<8x32xf32> to vector<8x8xf32>
    %888 = arith.truncf %887 : vector<8x8xf32> to vector<8x8xbf16>
    %cst_322 = arith.constant dense<0.000000e+00> : vector<8x8xf32>
    %889 = tpu.matmul %886, %888, %cst_322 {dimension_numbers = #tpu.dot_dimension_numbers<[1], [1], [0], [0], [0, 0, 1, 0], [], []>} : vector<8x8xbf16>, vector<8x8xbf16>, vector<8x8xf32> -> vector<8x8xf32>
    %cst_323 = arith.constant dense<0xFF800000> : vector<8xf32>
    %890 = vector.multi_reduction <maximumf>, %889, %cst_323 [1] : vector<8x8xf32> to vector<8xf32>
    %891 = vector.shape_cast %890 : vector<8xf32> to vector<8x1xf32>
    %892 = vector.broadcast %891 : vector<8x1xf32> to vector<8x8xf32>
    %893 = arith.subf %889, %892 : vector<8x8xf32>
    %894 = math.exp %893 : vector<8x8xf32>
    %cst_324 = arith.constant dense<0.000000e+00> : vector<8xf32>
    %895 = vector.multi_reduction <add>, %894, %cst_324 [1] : vector<8x8xf32> to vector<8xf32>
    %896 = vector.shape_cast %895 : vector<8xf32> to vector<8x1xf32>
    %897 = tpu.reciprocal %896 {approx = true} : vector<8x1xf32> -> vector<8x1xf32>
    %898 = vector.broadcast %897 : vector<8x1xf32> to vector<8x8xf32>
    %899 = arith.mulf %894, %898 : vector<8x8xf32>
    %900 = arith.truncf %899 : vector<8x8xf32> to vector<8x8xbf16>
    %901 = vector.extract_strided_slice %866 {offsets = [0, 8], sizes = [8, 8], strides = [1, 1]} : vector<8x32xbf16> to vector<8x8xbf16>
    %cst_325 = arith.constant dense<0.000000e+00> : vector<8x8xf32>
    %902 = tpu.matmul %900, %901, %cst_325 {dimension_numbers = #tpu.dot_dimension_numbers<[1], [0], [0], [1], [0, 0, 1, 1], [], []>} : vector<8x8xbf16>, vector<8x8xbf16>, vector<8x8xf32> -> vector<8x8xf32>
    %903 = vector.extract_strided_slice %863 {offsets = [0, 16], sizes = [8, 8], strides = [1, 1]} : vector<8x32xf32> to vector<8x8xf32>
    %904 = arith.truncf %903 : vector<8x8xf32> to vector<8x8xbf16>
    %905 = vector.extract_strided_slice %864 {offsets = [0, 16], sizes = [8, 8], strides = [1, 1]} : vector<8x32xf32> to vector<8x8xf32>
    %906 = arith.truncf %905 : vector<8x8xf32> to vector<8x8xbf16>
    %cst_326 = arith.constant dense<0.000000e+00> : vector<8x8xf32>
    %907 = tpu.matmul %904, %906, %cst_326 {dimension_numbers = #tpu.dot_dimension_numbers<[1], [1], [0], [0], [0, 0, 1, 0], [], []>} : vector<8x8xbf16>, vector<8x8xbf16>, vector<8x8xf32> -> vector<8x8xf32>
    %cst_327 = arith.constant dense<0xFF800000> : vector<8xf32>
    %908 = vector.multi_reduction <maximumf>, %907, %cst_327 [1] : vector<8x8xf32> to vector<8xf32>
    %909 = vector.shape_cast %908 : vector<8xf32> to vector<8x1xf32>
    %910 = vector.broadcast %909 : vector<8x1xf32> to vector<8x8xf32>
    %911 = arith.subf %907, %910 : vector<8x8xf32>
    %912 = math.exp %911 : vector<8x8xf32>
    %cst_328 = arith.constant dense<0.000000e+00> : vector<8xf32>
    %913 = vector.multi_reduction <add>, %912, %cst_328 [1] : vector<8x8xf32> to vector<8xf32>
    %914 = vector.shape_cast %913 : vector<8xf32> to vector<8x1xf32>
    %915 = tpu.reciprocal %914 {approx = true} : vector<8x1xf32> -> vector<8x1xf32>
    %916 = vector.broadcast %915 : vector<8x1xf32> to vector<8x8xf32>
    %917 = arith.mulf %912, %916 : vector<8x8xf32>
    %918 = arith.truncf %917 : vector<8x8xf32> to vector<8x8xbf16>
    %919 = vector.extract_strided_slice %866 {offsets = [0, 16], sizes = [8, 8], strides = [1, 1]} : vector<8x32xbf16> to vector<8x8xbf16>
    %cst_329 = arith.constant dense<0.000000e+00> : vector<8x8xf32>
    %920 = tpu.matmul %918, %919, %cst_329 {dimension_numbers = #tpu.dot_dimension_numbers<[1], [0], [0], [1], [0, 0, 1, 1], [], []>} : vector<8x8xbf16>, vector<8x8xbf16>, vector<8x8xf32> -> vector<8x8xf32>
    %921 = vector.extract_strided_slice %863 {offsets = [0, 24], sizes = [8, 8], strides = [1, 1]} : vector<8x32xf32> to vector<8x8xf32>
    %922 = arith.truncf %921 : vector<8x8xf32> to vector<8x8xbf16>
    %923 = vector.extract_strided_slice %864 {offsets = [0, 24], sizes = [8, 8], strides = [1, 1]} : vector<8x32xf32> to vector<8x8xf32>
    %924 = arith.truncf %923 : vector<8x8xf32> to vector<8x8xbf16>
    %cst_330 = arith.constant dense<0.000000e+00> : vector<8x8xf32>
    %925 = tpu.matmul %922, %924, %cst_330 {dimension_numbers = #tpu.dot_dimension_numbers<[1], [1], [0], [0], [0, 0, 1, 0], [], []>} : vector<8x8xbf16>, vector<8x8xbf16>, vector<8x8xf32> -> vector<8x8xf32>
    %cst_331 = arith.constant dense<0xFF800000> : vector<8xf32>
    %926 = vector.multi_reduction <maximumf>, %925, %cst_331 [1] : vector<8x8xf32> to vector<8xf32>
    %927 = vector.shape_cast %926 : vector<8xf32> to vector<8x1xf32>
    %928 = vector.broadcast %927 : vector<8x1xf32> to vector<8x8xf32>
    %929 = arith.subf %925, %928 : vector<8x8xf32>
    %930 = math.exp %929 : vector<8x8xf32>
    %cst_332 = arith.constant dense<0.000000e+00> : vector<8xf32>
    %931 = vector.multi_reduction <add>, %930, %cst_332 [1] : vector<8x8xf32> to vector<8xf32>
    %932 = vector.shape_cast %931 : vector<8xf32> to vector<8x1xf32>
    %933 = tpu.reciprocal %932 {approx = true} : vector<8x1xf32> -> vector<8x1xf32>
    %934 = vector.broadcast %933 : vector<8x1xf32> to vector<8x8xf32>
    %935 = arith.mulf %930, %934 : vector<8x8xf32>
    %936 = arith.truncf %935 : vector<8x8xf32> to vector<8x8xbf16>
    %937 = vector.extract_strided_slice %866 {offsets = [0, 24], sizes = [8, 8], strides = [1, 1]} : vector<8x32xbf16> to vector<8x8xbf16>
    %cst_333 = arith.constant dense<0.000000e+00> : vector<8x8xf32>
    %938 = tpu.matmul %936, %937, %cst_333 {dimension_numbers = #tpu.dot_dimension_numbers<[1], [0], [0], [1], [0, 0, 1, 1], [], []>} : vector<8x8xbf16>, vector<8x8xbf16>, vector<8x8xf32> -> vector<8x8xf32>
    %939 = tpu.concatenate %884, %902, %920, %938 in 1 : vector<8x8xf32>, vector<8x8xf32>, vector<8x8xf32>, vector<8x8xf32> -> vector<8x32xf32>
    %940 = tpu.concatenate %862, %939 in 0 : vector<8x32xf32>, vector<8x32xf32> -> vector<16x32xf32>
    %941 = arith.truncf %940 : vector<16x32xf32> to vector<16x32xbf16>
    %cst_334 = arith.constant dense<0.000000e+00> : vector<16x32xf32>
    %942 = tpu.matmul %941, %771, %cst_334 {dimension_numbers = #tpu.dot_dimension_numbers<[1], [0], [0], [1], [0, 0, 1, 1], [], []>} : vector<16x32xbf16>, vector<32x32xbf16>, vector<16x32xf32> -> vector<16x32xf32>
    %943 = vector.broadcast %773 : vector<1x32xf32> to vector<16x32xf32>
    %944 = arith.addf %942, %943 : vector<16x32xf32>
    %c0_335 = arith.constant 0 : index
    %c0_336 = arith.constant 0 : index
    %c0_337 = arith.constant 0 : index
    %945 = vector.load %arg36[%c0_335, %c0_336, %c0_337] : memref<2x1x32xf32, #tpu.memory_space<vmem>>, vector<1x1x32xf32>
    %946 = vector.shape_cast %945 : vector<1x1x32xf32> to vector<1x32xf32>
    %c0_338 = arith.constant 0 : index
    %c0_339 = arith.constant 0 : index
    %c0_340 = arith.constant 0 : index
    %947 = vector.load %arg37[%c0_338, %c0_339, %c0_340] : memref<2x1x32xf32, #tpu.memory_space<vmem>>, vector<1x1x32xf32>
    %948 = vector.shape_cast %947 : vector<1x1x32xf32> to vector<1x32xf32>
    %949 = arith.addf %757, %944 : vector<16x32xf32>
    %cst_341 = arith.constant dense<0.000000e+00> : vector<16xf32>
    %950 = vector.multi_reduction <add>, %949, %cst_341 [1] : vector<16x32xf32> to vector<16xf32>
    %951 = vector.shape_cast %950 : vector<16xf32> to vector<16x1xf32>
    %cst_342 = arith.constant 3.200000e+01 : f32
    %952 = vector.broadcast %cst_342 : f32 to vector<16x1xf32>
    %953 = arith.divf %951, %952 : vector<16x1xf32>
    %954 = arith.mulf %949, %949 : vector<16x32xf32>
    %cst_343 = arith.constant dense<0.000000e+00> : vector<16xf32>
    %955 = vector.multi_reduction <add>, %954, %cst_343 [1] : vector<16x32xf32> to vector<16xf32>
    %956 = vector.shape_cast %955 : vector<16xf32> to vector<16x1xf32>
    %cst_344 = arith.constant 3.200000e+01 : f32
    %957 = vector.broadcast %cst_344 : f32 to vector<16x1xf32>
    %958 = arith.divf %956, %957 : vector<16x1xf32>
    %959 = arith.mulf %953, %953 : vector<16x1xf32>
    %960 = arith.subf %958, %959 : vector<16x1xf32>
    %cst_345 = arith.constant 9.99999974E-6 : f32
    %961 = vector.broadcast %cst_345 : f32 to vector<16x1xf32>
    %962 = arith.addf %960, %961 : vector<16x1xf32>
    %963 = math.rsqrt %962 : vector<16x1xf32>
    %964 = vector.broadcast %953 : vector<16x1xf32> to vector<16x32xf32>
    %965 = arith.subf %949, %964 : vector<16x32xf32>
    %966 = vector.broadcast %963 : vector<16x1xf32> to vector<16x32xf32>
    %967 = arith.mulf %965, %966 : vector<16x32xf32>
    %968 = vector.broadcast %946 : vector<1x32xf32> to vector<16x32xf32>
    %969 = arith.mulf %967, %968 : vector<16x32xf32>
    %970 = vector.broadcast %948 : vector<1x32xf32> to vector<16x32xf32>
    %971 = arith.addf %969, %970 : vector<16x32xf32>
    %c0_346 = arith.constant 0 : index
    %c0_347 = arith.constant 0 : index
    %c0_348 = arith.constant 0 : index
    %972 = vector.load %arg38[%c0_346, %c0_347, %c0_348] : memref<2x32x64xbf16, #tpu.memory_space<vmem>>, vector<1x32x64xbf16>
    %973 = vector.shape_cast %972 : vector<1x32x64xbf16> to vector<32x64xbf16>
    %c0_349 = arith.constant 0 : index
    %c0_350 = arith.constant 0 : index
    %c0_351 = arith.constant 0 : index
    %974 = vector.load %arg39[%c0_349, %c0_350, %c0_351] : memref<2x1x64xf32, #tpu.memory_space<vmem>>, vector<1x1x64xf32>
    %975 = vector.shape_cast %974 : vector<1x1x64xf32> to vector<1x64xf32>
    %c0_352 = arith.constant 0 : index
    %c0_353 = arith.constant 0 : index
    %c0_354 = arith.constant 0 : index
    %976 = vector.load %arg40[%c0_352, %c0_353, %c0_354] : memref<2x64x32xbf16, #tpu.memory_space<vmem>>, vector<1x64x32xbf16>
    %977 = vector.shape_cast %976 : vector<1x64x32xbf16> to vector<64x32xbf16>
    %c0_355 = arith.constant 0 : index
    %c0_356 = arith.constant 0 : index
    %c0_357 = arith.constant 0 : index
    %978 = vector.load %arg41[%c0_355, %c0_356, %c0_357] : memref<2x1x32xf32, #tpu.memory_space<vmem>>, vector<1x1x32xf32>
    %979 = vector.shape_cast %978 : vector<1x1x32xf32> to vector<1x32xf32>
    %980 = arith.truncf %971 : vector<16x32xf32> to vector<16x32xbf16>
    %cst_358 = arith.constant dense<0.000000e+00> : vector<16x64xf32>
    %981 = tpu.matmul %980, %973, %cst_358 {dimension_numbers = #tpu.dot_dimension_numbers<[1], [0], [0], [1], [0, 0, 1, 1], [], []>} : vector<16x32xbf16>, vector<32x64xbf16>, vector<16x64xf32> -> vector<16x64xf32>
    %982 = vector.broadcast %975 : vector<1x64xf32> to vector<16x64xf32>
    %983 = arith.addf %981, %982 : vector<16x64xf32>
    %cst_359 = arith.constant 0.000000e+00 : f32
    %984 = vector.broadcast %cst_359 : f32 to vector<16x64xf32>
    %985 = arith.maximumf %983, %984 : vector<16x64xf32>
    %986 = arith.truncf %985 : vector<16x64xf32> to vector<16x64xbf16>
    %cst_360 = arith.constant dense<0.000000e+00> : vector<16x32xf32>
    %987 = tpu.matmul %986, %977, %cst_360 {dimension_numbers = #tpu.dot_dimension_numbers<[1], [0], [0], [1], [0, 0, 1, 1], [], []>} : vector<16x64xbf16>, vector<64x32xbf16>, vector<16x32xf32> -> vector<16x32xf32>
    %988 = vector.broadcast %979 : vector<1x32xf32> to vector<16x32xf32>
    %989 = arith.addf %987, %988 : vector<16x32xf32>
    %c0_361 = arith.constant 0 : index
    %c0_362 = arith.constant 0 : index
    %c0_363 = arith.constant 0 : index
    %990 = vector.load %arg42[%c0_361, %c0_362, %c0_363] : memref<2x1x32xf32, #tpu.memory_space<vmem>>, vector<1x1x32xf32>
    %991 = vector.shape_cast %990 : vector<1x1x32xf32> to vector<1x32xf32>
    %c0_364 = arith.constant 0 : index
    %c0_365 = arith.constant 0 : index
    %c0_366 = arith.constant 0 : index
    %992 = vector.load %arg43[%c0_364, %c0_365, %c0_366] : memref<2x1x32xf32, #tpu.memory_space<vmem>>, vector<1x1x32xf32>
    %993 = vector.shape_cast %992 : vector<1x1x32xf32> to vector<1x32xf32>
    %994 = arith.addf %971, %989 : vector<16x32xf32>
    %cst_367 = arith.constant dense<0.000000e+00> : vector<16xf32>
    %995 = vector.multi_reduction <add>, %994, %cst_367 [1] : vector<16x32xf32> to vector<16xf32>
    %996 = vector.shape_cast %995 : vector<16xf32> to vector<16x1xf32>
    %cst_368 = arith.constant 3.200000e+01 : f32
    %997 = vector.broadcast %cst_368 : f32 to vector<16x1xf32>
    %998 = arith.divf %996, %997 : vector<16x1xf32>
    %999 = arith.mulf %994, %994 : vector<16x32xf32>
    %cst_369 = arith.constant dense<0.000000e+00> : vector<16xf32>
    %1000 = vector.multi_reduction <add>, %999, %cst_369 [1] : vector<16x32xf32> to vector<16xf32>
    %1001 = vector.shape_cast %1000 : vector<16xf32> to vector<16x1xf32>
    %cst_370 = arith.constant 3.200000e+01 : f32
    %1002 = vector.broadcast %cst_370 : f32 to vector<16x1xf32>
    %1003 = arith.divf %1001, %1002 : vector<16x1xf32>
    %1004 = arith.mulf %998, %998 : vector<16x1xf32>
    %1005 = arith.subf %1003, %1004 : vector<16x1xf32>
    %cst_371 = arith.constant 9.99999974E-6 : f32
    %1006 = vector.broadcast %cst_371 : f32 to vector<16x1xf32>
    %1007 = arith.addf %1005, %1006 : vector<16x1xf32>
    %1008 = math.rsqrt %1007 : vector<16x1xf32>
    %1009 = vector.broadcast %998 : vector<16x1xf32> to vector<16x32xf32>
    %1010 = arith.subf %994, %1009 : vector<16x32xf32>
    %1011 = vector.broadcast %1008 : vector<16x1xf32> to vector<16x32xf32>
    %1012 = arith.mulf %1010, %1011 : vector<16x32xf32>
    %1013 = vector.broadcast %991 : vector<1x32xf32> to vector<16x32xf32>
    %1014 = arith.mulf %1012, %1013 : vector<16x32xf32>
    %1015 = vector.broadcast %993 : vector<1x32xf32> to vector<16x32xf32>
    %1016 = arith.addf %1014, %1015 : vector<16x32xf32>
    %c1_372 = arith.constant 1 : index
    %c0_373 = arith.constant 0 : index
    %c0_374 = arith.constant 0 : index
    %1017 = vector.load %arg18[%c1_372, %c0_373, %c0_374] : memref<2x32x32xbf16, #tpu.memory_space<vmem>>, vector<1x32x32xbf16>
    %1018 = vector.shape_cast %1017 : vector<1x32x32xbf16> to vector<32x32xbf16>
    %c1_375 = arith.constant 1 : index
    %c0_376 = arith.constant 0 : index
    %c0_377 = arith.constant 0 : index
    %1019 = vector.load %arg19[%c1_375, %c0_376, %c0_377] : memref<2x1x32xf32, #tpu.memory_space<vmem>>, vector<1x1x32xf32>
    %1020 = vector.shape_cast %1019 : vector<1x1x32xf32> to vector<1x32xf32>
    %c1_378 = arith.constant 1 : index
    %c0_379 = arith.constant 0 : index
    %c0_380 = arith.constant 0 : index
    %1021 = vector.load %arg20[%c1_378, %c0_379, %c0_380] : memref<2x32x32xbf16, #tpu.memory_space<vmem>>, vector<1x32x32xbf16>
    %1022 = vector.shape_cast %1021 : vector<1x32x32xbf16> to vector<32x32xbf16>
    %c1_381 = arith.constant 1 : index
    %c0_382 = arith.constant 0 : index
    %c0_383 = arith.constant 0 : index
    %1023 = vector.load %arg21[%c1_381, %c0_382, %c0_383] : memref<2x1x32xf32, #tpu.memory_space<vmem>>, vector<1x1x32xf32>
    %1024 = vector.shape_cast %1023 : vector<1x1x32xf32> to vector<1x32xf32>
    %c1_384 = arith.constant 1 : index
    %c0_385 = arith.constant 0 : index
    %c0_386 = arith.constant 0 : index
    %1025 = vector.load %arg22[%c1_384, %c0_385, %c0_386] : memref<2x32x32xbf16, #tpu.memory_space<vmem>>, vector<1x32x32xbf16>
    %1026 = vector.shape_cast %1025 : vector<1x32x32xbf16> to vector<32x32xbf16>
    %c1_387 = arith.constant 1 : index
    %c0_388 = arith.constant 0 : index
    %c0_389 = arith.constant 0 : index
    %1027 = vector.load %arg23[%c1_387, %c0_388, %c0_389] : memref<2x1x32xf32, #tpu.memory_space<vmem>>, vector<1x1x32xf32>
    %1028 = vector.shape_cast %1027 : vector<1x1x32xf32> to vector<1x32xf32>
    %c1_390 = arith.constant 1 : index
    %c0_391 = arith.constant 0 : index
    %c0_392 = arith.constant 0 : index
    %1029 = vector.load %arg24[%c1_390, %c0_391, %c0_392] : memref<2x32x32xbf16, #tpu.memory_space<vmem>>, vector<1x32x32xbf16>
    %1030 = vector.shape_cast %1029 : vector<1x32x32xbf16> to vector<32x32xbf16>
    %c1_393 = arith.constant 1 : index
    %c0_394 = arith.constant 0 : index
    %c0_395 = arith.constant 0 : index
    %1031 = vector.load %arg25[%c1_393, %c0_394, %c0_395] : memref<2x1x32xf32, #tpu.memory_space<vmem>>, vector<1x1x32xf32>
    %1032 = vector.shape_cast %1031 : vector<1x1x32xf32> to vector<1x32xf32>
    %1033 = arith.truncf %1016 : vector<16x32xf32> to vector<16x32xbf16>
    %cst_396 = arith.constant dense<0.000000e+00> : vector<16x32xf32>
    %1034 = tpu.matmul %1033, %1018, %cst_396 {dimension_numbers = #tpu.dot_dimension_numbers<[1], [0], [0], [1], [0, 0, 1, 1], [], []>} : vector<16x32xbf16>, vector<32x32xbf16>, vector<16x32xf32> -> vector<16x32xf32>
    %1035 = vector.broadcast %1020 : vector<1x32xf32> to vector<16x32xf32>
    %1036 = arith.addf %1034, %1035 : vector<16x32xf32>
    %1037 = arith.truncf %1016 : vector<16x32xf32> to vector<16x32xbf16>
    %cst_397 = arith.constant dense<0.000000e+00> : vector<16x32xf32>
    %1038 = tpu.matmul %1037, %1022, %cst_397 {dimension_numbers = #tpu.dot_dimension_numbers<[1], [0], [0], [1], [0, 0, 1, 1], [], []>} : vector<16x32xbf16>, vector<32x32xbf16>, vector<16x32xf32> -> vector<16x32xf32>
    %1039 = vector.broadcast %1024 : vector<1x32xf32> to vector<16x32xf32>
    %1040 = arith.addf %1038, %1039 : vector<16x32xf32>
    %1041 = arith.truncf %1016 : vector<16x32xf32> to vector<16x32xbf16>
    %cst_398 = arith.constant dense<0.000000e+00> : vector<16x32xf32>
    %1042 = tpu.matmul %1041, %1026, %cst_398 {dimension_numbers = #tpu.dot_dimension_numbers<[1], [0], [0], [1], [0, 0, 1, 1], [], []>} : vector<16x32xbf16>, vector<32x32xbf16>, vector<16x32xf32> -> vector<16x32xf32>
    %1043 = vector.broadcast %1028 : vector<1x32xf32> to vector<16x32xf32>
    %1044 = arith.addf %1042, %1043 : vector<16x32xf32>
    %1045 = vector.extract_strided_slice %1036 {offsets = [0, 0], sizes = [8, 32], strides = [1, 1]} : vector<16x32xf32> to vector<8x32xf32>
    %1046 = vector.extract_strided_slice %1040 {offsets = [0, 0], sizes = [8, 32], strides = [1, 1]} : vector<16x32xf32> to vector<8x32xf32>
    %1047 = vector.extract_strided_slice %1044 {offsets = [0, 0], sizes = [8, 32], strides = [1, 1]} : vector<16x32xf32> to vector<8x32xf32>
    %1048 = arith.truncf %1047 : vector<8x32xf32> to vector<8x32xbf16>
    %1049 = vector.extract_strided_slice %1045 {offsets = [0, 0], sizes = [8, 8], strides = [1, 1]} : vector<8x32xf32> to vector<8x8xf32>
    %1050 = arith.truncf %1049 : vector<8x8xf32> to vector<8x8xbf16>
    %1051 = vector.extract_strided_slice %1046 {offsets = [0, 0], sizes = [8, 8], strides = [1, 1]} : vector<8x32xf32> to vector<8x8xf32>
    %1052 = arith.truncf %1051 : vector<8x8xf32> to vector<8x8xbf16>
    %cst_399 = arith.constant dense<0.000000e+00> : vector<8x8xf32>
    %1053 = tpu.matmul %1050, %1052, %cst_399 {dimension_numbers = #tpu.dot_dimension_numbers<[1], [1], [0], [0], [0, 0, 1, 0], [], []>} : vector<8x8xbf16>, vector<8x8xbf16>, vector<8x8xf32> -> vector<8x8xf32>
    %cst_400 = arith.constant dense<0xFF800000> : vector<8xf32>
    %1054 = vector.multi_reduction <maximumf>, %1053, %cst_400 [1] : vector<8x8xf32> to vector<8xf32>
    %1055 = vector.shape_cast %1054 : vector<8xf32> to vector<8x1xf32>
    %1056 = vector.broadcast %1055 : vector<8x1xf32> to vector<8x8xf32>
    %1057 = arith.subf %1053, %1056 : vector<8x8xf32>
    %1058 = math.exp %1057 : vector<8x8xf32>
    %cst_401 = arith.constant dense<0.000000e+00> : vector<8xf32>
    %1059 = vector.multi_reduction <add>, %1058, %cst_401 [1] : vector<8x8xf32> to vector<8xf32>
    %1060 = vector.shape_cast %1059 : vector<8xf32> to vector<8x1xf32>
    %1061 = tpu.reciprocal %1060 {approx = true} : vector<8x1xf32> -> vector<8x1xf32>
    %1062 = vector.broadcast %1061 : vector<8x1xf32> to vector<8x8xf32>
    %1063 = arith.mulf %1058, %1062 : vector<8x8xf32>
    %1064 = arith.truncf %1063 : vector<8x8xf32> to vector<8x8xbf16>
    %1065 = vector.extract_strided_slice %1048 {offsets = [0, 0], sizes = [8, 8], strides = [1, 1]} : vector<8x32xbf16> to vector<8x8xbf16>
    %cst_402 = arith.constant dense<0.000000e+00> : vector<8x8xf32>
    %1066 = tpu.matmul %1064, %1065, %cst_402 {dimension_numbers = #tpu.dot_dimension_numbers<[1], [0], [0], [1], [0, 0, 1, 1], [], []>} : vector<8x8xbf16>, vector<8x8xbf16>, vector<8x8xf32> -> vector<8x8xf32>
    %1067 = vector.extract_strided_slice %1045 {offsets = [0, 8], sizes = [8, 8], strides = [1, 1]} : vector<8x32xf32> to vector<8x8xf32>
    %1068 = arith.truncf %1067 : vector<8x8xf32> to vector<8x8xbf16>
    %1069 = vector.extract_strided_slice %1046 {offsets = [0, 8], sizes = [8, 8], strides = [1, 1]} : vector<8x32xf32> to vector<8x8xf32>
    %1070 = arith.truncf %1069 : vector<8x8xf32> to vector<8x8xbf16>
    %cst_403 = arith.constant dense<0.000000e+00> : vector<8x8xf32>
    %1071 = tpu.matmul %1068, %1070, %cst_403 {dimension_numbers = #tpu.dot_dimension_numbers<[1], [1], [0], [0], [0, 0, 1, 0], [], []>} : vector<8x8xbf16>, vector<8x8xbf16>, vector<8x8xf32> -> vector<8x8xf32>
    %cst_404 = arith.constant dense<0xFF800000> : vector<8xf32>
    %1072 = vector.multi_reduction <maximumf>, %1071, %cst_404 [1] : vector<8x8xf32> to vector<8xf32>
    %1073 = vector.shape_cast %1072 : vector<8xf32> to vector<8x1xf32>
    %1074 = vector.broadcast %1073 : vector<8x1xf32> to vector<8x8xf32>
    %1075 = arith.subf %1071, %1074 : vector<8x8xf32>
    %1076 = math.exp %1075 : vector<8x8xf32>
    %cst_405 = arith.constant dense<0.000000e+00> : vector<8xf32>
    %1077 = vector.multi_reduction <add>, %1076, %cst_405 [1] : vector<8x8xf32> to vector<8xf32>
    %1078 = vector.shape_cast %1077 : vector<8xf32> to vector<8x1xf32>
    %1079 = tpu.reciprocal %1078 {approx = true} : vector<8x1xf32> -> vector<8x1xf32>
    %1080 = vector.broadcast %1079 : vector<8x1xf32> to vector<8x8xf32>
    %1081 = arith.mulf %1076, %1080 : vector<8x8xf32>
    %1082 = arith.truncf %1081 : vector<8x8xf32> to vector<8x8xbf16>
    %1083 = vector.extract_strided_slice %1048 {offsets = [0, 8], sizes = [8, 8], strides = [1, 1]} : vector<8x32xbf16> to vector<8x8xbf16>
    %cst_406 = arith.constant dense<0.000000e+00> : vector<8x8xf32>
    %1084 = tpu.matmul %1082, %1083, %cst_406 {dimension_numbers = #tpu.dot_dimension_numbers<[1], [0], [0], [1], [0, 0, 1, 1], [], []>} : vector<8x8xbf16>, vector<8x8xbf16>, vector<8x8xf32> -> vector<8x8xf32>
    %1085 = vector.extract_strided_slice %1045 {offsets = [0, 16], sizes = [8, 8], strides = [1, 1]} : vector<8x32xf32> to vector<8x8xf32>
    %1086 = arith.truncf %1085 : vector<8x8xf32> to vector<8x8xbf16>
    %1087 = vector.extract_strided_slice %1046 {offsets = [0, 16], sizes = [8, 8], strides = [1, 1]} : vector<8x32xf32> to vector<8x8xf32>
    %1088 = arith.truncf %1087 : vector<8x8xf32> to vector<8x8xbf16>
    %cst_407 = arith.constant dense<0.000000e+00> : vector<8x8xf32>
    %1089 = tpu.matmul %1086, %1088, %cst_407 {dimension_numbers = #tpu.dot_dimension_numbers<[1], [1], [0], [0], [0, 0, 1, 0], [], []>} : vector<8x8xbf16>, vector<8x8xbf16>, vector<8x8xf32> -> vector<8x8xf32>
    %cst_408 = arith.constant dense<0xFF800000> : vector<8xf32>
    %1090 = vector.multi_reduction <maximumf>, %1089, %cst_408 [1] : vector<8x8xf32> to vector<8xf32>
    %1091 = vector.shape_cast %1090 : vector<8xf32> to vector<8x1xf32>
    %1092 = vector.broadcast %1091 : vector<8x1xf32> to vector<8x8xf32>
    %1093 = arith.subf %1089, %1092 : vector<8x8xf32>
    %1094 = math.exp %1093 : vector<8x8xf32>
    %cst_409 = arith.constant dense<0.000000e+00> : vector<8xf32>
    %1095 = vector.multi_reduction <add>, %1094, %cst_409 [1] : vector<8x8xf32> to vector<8xf32>
    %1096 = vector.shape_cast %1095 : vector<8xf32> to vector<8x1xf32>
    %1097 = tpu.reciprocal %1096 {approx = true} : vector<8x1xf32> -> vector<8x1xf32>
    %1098 = vector.broadcast %1097 : vector<8x1xf32> to vector<8x8xf32>
    %1099 = arith.mulf %1094, %1098 : vector<8x8xf32>
    %1100 = arith.truncf %1099 : vector<8x8xf32> to vector<8x8xbf16>
    %1101 = vector.extract_strided_slice %1048 {offsets = [0, 16], sizes = [8, 8], strides = [1, 1]} : vector<8x32xbf16> to vector<8x8xbf16>
    %cst_410 = arith.constant dense<0.000000e+00> : vector<8x8xf32>
    %1102 = tpu.matmul %1100, %1101, %cst_410 {dimension_numbers = #tpu.dot_dimension_numbers<[1], [0], [0], [1], [0, 0, 1, 1], [], []>} : vector<8x8xbf16>, vector<8x8xbf16>, vector<8x8xf32> -> vector<8x8xf32>
    %1103 = vector.extract_strided_slice %1045 {offsets = [0, 24], sizes = [8, 8], strides = [1, 1]} : vector<8x32xf32> to vector<8x8xf32>
    %1104 = arith.truncf %1103 : vector<8x8xf32> to vector<8x8xbf16>
    %1105 = vector.extract_strided_slice %1046 {offsets = [0, 24], sizes = [8, 8], strides = [1, 1]} : vector<8x32xf32> to vector<8x8xf32>
    %1106 = arith.truncf %1105 : vector<8x8xf32> to vector<8x8xbf16>
    %cst_411 = arith.constant dense<0.000000e+00> : vector<8x8xf32>
    %1107 = tpu.matmul %1104, %1106, %cst_411 {dimension_numbers = #tpu.dot_dimension_numbers<[1], [1], [0], [0], [0, 0, 1, 0], [], []>} : vector<8x8xbf16>, vector<8x8xbf16>, vector<8x8xf32> -> vector<8x8xf32>
    %cst_412 = arith.constant dense<0xFF800000> : vector<8xf32>
    %1108 = vector.multi_reduction <maximumf>, %1107, %cst_412 [1] : vector<8x8xf32> to vector<8xf32>
    %1109 = vector.shape_cast %1108 : vector<8xf32> to vector<8x1xf32>
    %1110 = vector.broadcast %1109 : vector<8x1xf32> to vector<8x8xf32>
    %1111 = arith.subf %1107, %1110 : vector<8x8xf32>
    %1112 = math.exp %1111 : vector<8x8xf32>
    %cst_413 = arith.constant dense<0.000000e+00> : vector<8xf32>
    %1113 = vector.multi_reduction <add>, %1112, %cst_413 [1] : vector<8x8xf32> to vector<8xf32>
    %1114 = vector.shape_cast %1113 : vector<8xf32> to vector<8x1xf32>
    %1115 = tpu.reciprocal %1114 {approx = true} : vector<8x1xf32> -> vector<8x1xf32>
    %1116 = vector.broadcast %1115 : vector<8x1xf32> to vector<8x8xf32>
    %1117 = arith.mulf %1112, %1116 : vector<8x8xf32>
    %1118 = arith.truncf %1117 : vector<8x8xf32> to vector<8x8xbf16>
    %1119 = vector.extract_strided_slice %1048 {offsets = [0, 24], sizes = [8, 8], strides = [1, 1]} : vector<8x32xbf16> to vector<8x8xbf16>
    %cst_414 = arith.constant dense<0.000000e+00> : vector<8x8xf32>
    %1120 = tpu.matmul %1118, %1119, %cst_414 {dimension_numbers = #tpu.dot_dimension_numbers<[1], [0], [0], [1], [0, 0, 1, 1], [], []>} : vector<8x8xbf16>, vector<8x8xbf16>, vector<8x8xf32> -> vector<8x8xf32>
    %1121 = tpu.concatenate %1066, %1084, %1102, %1120 in 1 : vector<8x8xf32>, vector<8x8xf32>, vector<8x8xf32>, vector<8x8xf32> -> vector<8x32xf32>
    %1122 = vector.extract_strided_slice %1036 {offsets = [8, 0], sizes = [8, 32], strides = [1, 1]} : vector<16x32xf32> to vector<8x32xf32>
    %1123 = vector.extract_strided_slice %1040 {offsets = [8, 0], sizes = [8, 32], strides = [1, 1]} : vector<16x32xf32> to vector<8x32xf32>
    %1124 = vector.extract_strided_slice %1044 {offsets = [8, 0], sizes = [8, 32], strides = [1, 1]} : vector<16x32xf32> to vector<8x32xf32>
    %1125 = arith.truncf %1124 : vector<8x32xf32> to vector<8x32xbf16>
    %1126 = vector.extract_strided_slice %1122 {offsets = [0, 0], sizes = [8, 8], strides = [1, 1]} : vector<8x32xf32> to vector<8x8xf32>
    %1127 = arith.truncf %1126 : vector<8x8xf32> to vector<8x8xbf16>
    %1128 = vector.extract_strided_slice %1123 {offsets = [0, 0], sizes = [8, 8], strides = [1, 1]} : vector<8x32xf32> to vector<8x8xf32>
    %1129 = arith.truncf %1128 : vector<8x8xf32> to vector<8x8xbf16>
    %cst_415 = arith.constant dense<0.000000e+00> : vector<8x8xf32>
    %1130 = tpu.matmul %1127, %1129, %cst_415 {dimension_numbers = #tpu.dot_dimension_numbers<[1], [1], [0], [0], [0, 0, 1, 0], [], []>} : vector<8x8xbf16>, vector<8x8xbf16>, vector<8x8xf32> -> vector<8x8xf32>
    %cst_416 = arith.constant dense<0xFF800000> : vector<8xf32>
    %1131 = vector.multi_reduction <maximumf>, %1130, %cst_416 [1] : vector<8x8xf32> to vector<8xf32>
    %1132 = vector.shape_cast %1131 : vector<8xf32> to vector<8x1xf32>
    %1133 = vector.broadcast %1132 : vector<8x1xf32> to vector<8x8xf32>
    %1134 = arith.subf %1130, %1133 : vector<8x8xf32>
    %1135 = math.exp %1134 : vector<8x8xf32>
    %cst_417 = arith.constant dense<0.000000e+00> : vector<8xf32>
    %1136 = vector.multi_reduction <add>, %1135, %cst_417 [1] : vector<8x8xf32> to vector<8xf32>
    %1137 = vector.shape_cast %1136 : vector<8xf32> to vector<8x1xf32>
    %1138 = tpu.reciprocal %1137 {approx = true} : vector<8x1xf32> -> vector<8x1xf32>
    %1139 = vector.broadcast %1138 : vector<8x1xf32> to vector<8x8xf32>
    %1140 = arith.mulf %1135, %1139 : vector<8x8xf32>
    %1141 = arith.truncf %1140 : vector<8x8xf32> to vector<8x8xbf16>
    %1142 = vector.extract_strided_slice %1125 {offsets = [0, 0], sizes = [8, 8], strides = [1, 1]} : vector<8x32xbf16> to vector<8x8xbf16>
    %cst_418 = arith.constant dense<0.000000e+00> : vector<8x8xf32>
    %1143 = tpu.matmul %1141, %1142, %cst_418 {dimension_numbers = #tpu.dot_dimension_numbers<[1], [0], [0], [1], [0, 0, 1, 1], [], []>} : vector<8x8xbf16>, vector<8x8xbf16>, vector<8x8xf32> -> vector<8x8xf32>
    %1144 = vector.extract_strided_slice %1122 {offsets = [0, 8], sizes = [8, 8], strides = [1, 1]} : vector<8x32xf32> to vector<8x8xf32>
    %1145 = arith.truncf %1144 : vector<8x8xf32> to vector<8x8xbf16>
    %1146 = vector.extract_strided_slice %1123 {offsets = [0, 8], sizes = [8, 8], strides = [1, 1]} : vector<8x32xf32> to vector<8x8xf32>
    %1147 = arith.truncf %1146 : vector<8x8xf32> to vector<8x8xbf16>
    %cst_419 = arith.constant dense<0.000000e+00> : vector<8x8xf32>
    %1148 = tpu.matmul %1145, %1147, %cst_419 {dimension_numbers = #tpu.dot_dimension_numbers<[1], [1], [0], [0], [0, 0, 1, 0], [], []>} : vector<8x8xbf16>, vector<8x8xbf16>, vector<8x8xf32> -> vector<8x8xf32>
    %cst_420 = arith.constant dense<0xFF800000> : vector<8xf32>
    %1149 = vector.multi_reduction <maximumf>, %1148, %cst_420 [1] : vector<8x8xf32> to vector<8xf32>
    %1150 = vector.shape_cast %1149 : vector<8xf32> to vector<8x1xf32>
    %1151 = vector.broadcast %1150 : vector<8x1xf32> to vector<8x8xf32>
    %1152 = arith.subf %1148, %1151 : vector<8x8xf32>
    %1153 = math.exp %1152 : vector<8x8xf32>
    %cst_421 = arith.constant dense<0.000000e+00> : vector<8xf32>
    %1154 = vector.multi_reduction <add>, %1153, %cst_421 [1] : vector<8x8xf32> to vector<8xf32>
    %1155 = vector.shape_cast %1154 : vector<8xf32> to vector<8x1xf32>
    %1156 = tpu.reciprocal %1155 {approx = true} : vector<8x1xf32> -> vector<8x1xf32>
    %1157 = vector.broadcast %1156 : vector<8x1xf32> to vector<8x8xf32>
    %1158 = arith.mulf %1153, %1157 : vector<8x8xf32>
    %1159 = arith.truncf %1158 : vector<8x8xf32> to vector<8x8xbf16>
    %1160 = vector.extract_strided_slice %1125 {offsets = [0, 8], sizes = [8, 8], strides = [1, 1]} : vector<8x32xbf16> to vector<8x8xbf16>
    %cst_422 = arith.constant dense<0.000000e+00> : vector<8x8xf32>
    %1161 = tpu.matmul %1159, %1160, %cst_422 {dimension_numbers = #tpu.dot_dimension_numbers<[1], [0], [0], [1], [0, 0, 1, 1], [], []>} : vector<8x8xbf16>, vector<8x8xbf16>, vector<8x8xf32> -> vector<8x8xf32>
    %1162 = vector.extract_strided_slice %1122 {offsets = [0, 16], sizes = [8, 8], strides = [1, 1]} : vector<8x32xf32> to vector<8x8xf32>
    %1163 = arith.truncf %1162 : vector<8x8xf32> to vector<8x8xbf16>
    %1164 = vector.extract_strided_slice %1123 {offsets = [0, 16], sizes = [8, 8], strides = [1, 1]} : vector<8x32xf32> to vector<8x8xf32>
    %1165 = arith.truncf %1164 : vector<8x8xf32> to vector<8x8xbf16>
    %cst_423 = arith.constant dense<0.000000e+00> : vector<8x8xf32>
    %1166 = tpu.matmul %1163, %1165, %cst_423 {dimension_numbers = #tpu.dot_dimension_numbers<[1], [1], [0], [0], [0, 0, 1, 0], [], []>} : vector<8x8xbf16>, vector<8x8xbf16>, vector<8x8xf32> -> vector<8x8xf32>
    %cst_424 = arith.constant dense<0xFF800000> : vector<8xf32>
    %1167 = vector.multi_reduction <maximumf>, %1166, %cst_424 [1] : vector<8x8xf32> to vector<8xf32>
    %1168 = vector.shape_cast %1167 : vector<8xf32> to vector<8x1xf32>
    %1169 = vector.broadcast %1168 : vector<8x1xf32> to vector<8x8xf32>
    %1170 = arith.subf %1166, %1169 : vector<8x8xf32>
    %1171 = math.exp %1170 : vector<8x8xf32>
    %cst_425 = arith.constant dense<0.000000e+00> : vector<8xf32>
    %1172 = vector.multi_reduction <add>, %1171, %cst_425 [1] : vector<8x8xf32> to vector<8xf32>
    %1173 = vector.shape_cast %1172 : vector<8xf32> to vector<8x1xf32>
    %1174 = tpu.reciprocal %1173 {approx = true} : vector<8x1xf32> -> vector<8x1xf32>
    %1175 = vector.broadcast %1174 : vector<8x1xf32> to vector<8x8xf32>
    %1176 = arith.mulf %1171, %1175 : vector<8x8xf32>
    %1177 = arith.truncf %1176 : vector<8x8xf32> to vector<8x8xbf16>
    %1178 = vector.extract_strided_slice %1125 {offsets = [0, 16], sizes = [8, 8], strides = [1, 1]} : vector<8x32xbf16> to vector<8x8xbf16>
    %cst_426 = arith.constant dense<0.000000e+00> : vector<8x8xf32>
    %1179 = tpu.matmul %1177, %1178, %cst_426 {dimension_numbers = #tpu.dot_dimension_numbers<[1], [0], [0], [1], [0, 0, 1, 1], [], []>} : vector<8x8xbf16>, vector<8x8xbf16>, vector<8x8xf32> -> vector<8x8xf32>
    %1180 = vector.extract_strided_slice %1122 {offsets = [0, 24], sizes = [8, 8], strides = [1, 1]} : vector<8x32xf32> to vector<8x8xf32>
    %1181 = arith.truncf %1180 : vector<8x8xf32> to vector<8x8xbf16>
    %1182 = vector.extract_strided_slice %1123 {offsets = [0, 24], sizes = [8, 8], strides = [1, 1]} : vector<8x32xf32> to vector<8x8xf32>
    %1183 = arith.truncf %1182 : vector<8x8xf32> to vector<8x8xbf16>
    %cst_427 = arith.constant dense<0.000000e+00> : vector<8x8xf32>
    %1184 = tpu.matmul %1181, %1183, %cst_427 {dimension_numbers = #tpu.dot_dimension_numbers<[1], [1], [0], [0], [0, 0, 1, 0], [], []>} : vector<8x8xbf16>, vector<8x8xbf16>, vector<8x8xf32> -> vector<8x8xf32>
    %cst_428 = arith.constant dense<0xFF800000> : vector<8xf32>
    %1185 = vector.multi_reduction <maximumf>, %1184, %cst_428 [1] : vector<8x8xf32> to vector<8xf32>
    %1186 = vector.shape_cast %1185 : vector<8xf32> to vector<8x1xf32>
    %1187 = vector.broadcast %1186 : vector<8x1xf32> to vector<8x8xf32>
    %1188 = arith.subf %1184, %1187 : vector<8x8xf32>
    %1189 = math.exp %1188 : vector<8x8xf32>
    %cst_429 = arith.constant dense<0.000000e+00> : vector<8xf32>
    %1190 = vector.multi_reduction <add>, %1189, %cst_429 [1] : vector<8x8xf32> to vector<8xf32>
    %1191 = vector.shape_cast %1190 : vector<8xf32> to vector<8x1xf32>
    %1192 = tpu.reciprocal %1191 {approx = true} : vector<8x1xf32> -> vector<8x1xf32>
    %1193 = vector.broadcast %1192 : vector<8x1xf32> to vector<8x8xf32>
    %1194 = arith.mulf %1189, %1193 : vector<8x8xf32>
    %1195 = arith.truncf %1194 : vector<8x8xf32> to vector<8x8xbf16>
    %1196 = vector.extract_strided_slice %1125 {offsets = [0, 24], sizes = [8, 8], strides = [1, 1]} : vector<8x32xbf16> to vector<8x8xbf16>
    %cst_430 = arith.constant dense<0.000000e+00> : vector<8x8xf32>
    %1197 = tpu.matmul %1195, %1196, %cst_430 {dimension_numbers = #tpu.dot_dimension_numbers<[1], [0], [0], [1], [0, 0, 1, 1], [], []>} : vector<8x8xbf16>, vector<8x8xbf16>, vector<8x8xf32> -> vector<8x8xf32>
    %1198 = tpu.concatenate %1143, %1161, %1179, %1197 in 1 : vector<8x8xf32>, vector<8x8xf32>, vector<8x8xf32>, vector<8x8xf32> -> vector<8x32xf32>
    %1199 = tpu.concatenate %1121, %1198 in 0 : vector<8x32xf32>, vector<8x32xf32> -> vector<16x32xf32>
    %1200 = arith.truncf %1199 : vector<16x32xf32> to vector<16x32xbf16>
    %cst_431 = arith.constant dense<0.000000e+00> : vector<16x32xf32>
    %1201 = tpu.matmul %1200, %1030, %cst_431 {dimension_numbers = #tpu.dot_dimension_numbers<[1], [0], [0], [1], [0, 0, 1, 1], [], []>} : vector<16x32xbf16>, vector<32x32xbf16>, vector<16x32xf32> -> vector<16x32xf32>
    %1202 = vector.broadcast %1032 : vector<1x32xf32> to vector<16x32xf32>
    %1203 = arith.addf %1201, %1202 : vector<16x32xf32>
    %c1_432 = arith.constant 1 : index
    %c0_433 = arith.constant 0 : index
    %c0_434 = arith.constant 0 : index
    %1204 = vector.load %arg26[%c1_432, %c0_433, %c0_434] : memref<2x1x32xf32, #tpu.memory_space<vmem>>, vector<1x1x32xf32>
    %1205 = vector.shape_cast %1204 : vector<1x1x32xf32> to vector<1x32xf32>
    %c1_435 = arith.constant 1 : index
    %c0_436 = arith.constant 0 : index
    %c0_437 = arith.constant 0 : index
    %1206 = vector.load %arg27[%c1_435, %c0_436, %c0_437] : memref<2x1x32xf32, #tpu.memory_space<vmem>>, vector<1x1x32xf32>
    %1207 = vector.shape_cast %1206 : vector<1x1x32xf32> to vector<1x32xf32>
    %1208 = arith.addf %1016, %1203 : vector<16x32xf32>
    %cst_438 = arith.constant dense<0.000000e+00> : vector<16xf32>
    %1209 = vector.multi_reduction <add>, %1208, %cst_438 [1] : vector<16x32xf32> to vector<16xf32>
    %1210 = vector.shape_cast %1209 : vector<16xf32> to vector<16x1xf32>
    %cst_439 = arith.constant 3.200000e+01 : f32
    %1211 = vector.broadcast %cst_439 : f32 to vector<16x1xf32>
    %1212 = arith.divf %1210, %1211 : vector<16x1xf32>
    %1213 = arith.mulf %1208, %1208 : vector<16x32xf32>
    %cst_440 = arith.constant dense<0.000000e+00> : vector<16xf32>
    %1214 = vector.multi_reduction <add>, %1213, %cst_440 [1] : vector<16x32xf32> to vector<16xf32>
    %1215 = vector.shape_cast %1214 : vector<16xf32> to vector<16x1xf32>
    %cst_441 = arith.constant 3.200000e+01 : f32
    %1216 = vector.broadcast %cst_441 : f32 to vector<16x1xf32>
    %1217 = arith.divf %1215, %1216 : vector<16x1xf32>
    %1218 = arith.mulf %1212, %1212 : vector<16x1xf32>
    %1219 = arith.subf %1217, %1218 : vector<16x1xf32>
    %cst_442 = arith.constant 9.99999974E-6 : f32
    %1220 = vector.broadcast %cst_442 : f32 to vector<16x1xf32>
    %1221 = arith.addf %1219, %1220 : vector<16x1xf32>
    %1222 = math.rsqrt %1221 : vector<16x1xf32>
    %1223 = vector.broadcast %1212 : vector<16x1xf32> to vector<16x32xf32>
    %1224 = arith.subf %1208, %1223 : vector<16x32xf32>
    %1225 = vector.broadcast %1222 : vector<16x1xf32> to vector<16x32xf32>
    %1226 = arith.mulf %1224, %1225 : vector<16x32xf32>
    %1227 = vector.broadcast %1205 : vector<1x32xf32> to vector<16x32xf32>
    %1228 = arith.mulf %1226, %1227 : vector<16x32xf32>
    %1229 = vector.broadcast %1207 : vector<1x32xf32> to vector<16x32xf32>
    %1230 = arith.addf %1228, %1229 : vector<16x32xf32>
    %c1_443 = arith.constant 1 : index
    %c0_444 = arith.constant 0 : index
    %c0_445 = arith.constant 0 : index
    %1231 = vector.load %arg28[%c1_443, %c0_444, %c0_445] : memref<2x32x32xbf16, #tpu.memory_space<vmem>>, vector<1x32x32xbf16>
    %1232 = vector.shape_cast %1231 : vector<1x32x32xbf16> to vector<32x32xbf16>
    %c1_446 = arith.constant 1 : index
    %c0_447 = arith.constant 0 : index
    %c0_448 = arith.constant 0 : index
    %1233 = vector.load %arg29[%c1_446, %c0_447, %c0_448] : memref<2x1x32xf32, #tpu.memory_space<vmem>>, vector<1x1x32xf32>
    %1234 = vector.shape_cast %1233 : vector<1x1x32xf32> to vector<1x32xf32>
    %c1_449 = arith.constant 1 : index
    %c0_450 = arith.constant 0 : index
    %c0_451 = arith.constant 0 : index
    %1235 = vector.load %arg30[%c1_449, %c0_450, %c0_451] : memref<2x32x32xbf16, #tpu.memory_space<vmem>>, vector<1x32x32xbf16>
    %1236 = vector.shape_cast %1235 : vector<1x32x32xbf16> to vector<32x32xbf16>
    %c1_452 = arith.constant 1 : index
    %c0_453 = arith.constant 0 : index
    %c0_454 = arith.constant 0 : index
    %1237 = vector.load %arg31[%c1_452, %c0_453, %c0_454] : memref<2x1x32xf32, #tpu.memory_space<vmem>>, vector<1x1x32xf32>
    %1238 = vector.shape_cast %1237 : vector<1x1x32xf32> to vector<1x32xf32>
    %c1_455 = arith.constant 1 : index
    %c0_456 = arith.constant 0 : index
    %c0_457 = arith.constant 0 : index
    %1239 = vector.load %arg32[%c1_455, %c0_456, %c0_457] : memref<2x32x32xbf16, #tpu.memory_space<vmem>>, vector<1x32x32xbf16>
    %1240 = vector.shape_cast %1239 : vector<1x32x32xbf16> to vector<32x32xbf16>
    %c1_458 = arith.constant 1 : index
    %c0_459 = arith.constant 0 : index
    %c0_460 = arith.constant 0 : index
    %1241 = vector.load %arg33[%c1_458, %c0_459, %c0_460] : memref<2x1x32xf32, #tpu.memory_space<vmem>>, vector<1x1x32xf32>
    %1242 = vector.shape_cast %1241 : vector<1x1x32xf32> to vector<1x32xf32>
    %c1_461 = arith.constant 1 : index
    %c0_462 = arith.constant 0 : index
    %c0_463 = arith.constant 0 : index
    %1243 = vector.load %arg34[%c1_461, %c0_462, %c0_463] : memref<2x32x32xbf16, #tpu.memory_space<vmem>>, vector<1x32x32xbf16>
    %1244 = vector.shape_cast %1243 : vector<1x32x32xbf16> to vector<32x32xbf16>
    %c1_464 = arith.constant 1 : index
    %c0_465 = arith.constant 0 : index
    %c0_466 = arith.constant 0 : index
    %1245 = vector.load %arg35[%c1_464, %c0_465, %c0_466] : memref<2x1x32xf32, #tpu.memory_space<vmem>>, vector<1x1x32xf32>
    %1246 = vector.shape_cast %1245 : vector<1x1x32xf32> to vector<1x32xf32>
    %1247 = arith.truncf %1230 : vector<16x32xf32> to vector<16x32xbf16>
    %cst_467 = arith.constant dense<0.000000e+00> : vector<16x32xf32>
    %1248 = tpu.matmul %1247, %1232, %cst_467 {dimension_numbers = #tpu.dot_dimension_numbers<[1], [0], [0], [1], [0, 0, 1, 1], [], []>} : vector<16x32xbf16>, vector<32x32xbf16>, vector<16x32xf32> -> vector<16x32xf32>
    %1249 = vector.broadcast %1234 : vector<1x32xf32> to vector<16x32xf32>
    %1250 = arith.addf %1248, %1249 : vector<16x32xf32>
    %1251 = arith.truncf %542 : vector<16x32xf32> to vector<16x32xbf16>
    %cst_468 = arith.constant dense<0.000000e+00> : vector<16x32xf32>
    %1252 = tpu.matmul %1251, %1236, %cst_468 {dimension_numbers = #tpu.dot_dimension_numbers<[1], [0], [0], [1], [0, 0, 1, 1], [], []>} : vector<16x32xbf16>, vector<32x32xbf16>, vector<16x32xf32> -> vector<16x32xf32>
    %1253 = vector.broadcast %1238 : vector<1x32xf32> to vector<16x32xf32>
    %1254 = arith.addf %1252, %1253 : vector<16x32xf32>
    %1255 = arith.truncf %542 : vector<16x32xf32> to vector<16x32xbf16>
    %cst_469 = arith.constant dense<0.000000e+00> : vector<16x32xf32>
    %1256 = tpu.matmul %1255, %1240, %cst_469 {dimension_numbers = #tpu.dot_dimension_numbers<[1], [0], [0], [1], [0, 0, 1, 1], [], []>} : vector<16x32xbf16>, vector<32x32xbf16>, vector<16x32xf32> -> vector<16x32xf32>
    %1257 = vector.broadcast %1242 : vector<1x32xf32> to vector<16x32xf32>
    %1258 = arith.addf %1256, %1257 : vector<16x32xf32>
    %1259 = vector.extract_strided_slice %1250 {offsets = [0, 0], sizes = [8, 32], strides = [1, 1]} : vector<16x32xf32> to vector<8x32xf32>
    %1260 = vector.extract_strided_slice %1254 {offsets = [0, 0], sizes = [8, 32], strides = [1, 1]} : vector<16x32xf32> to vector<8x32xf32>
    %1261 = vector.extract_strided_slice %1258 {offsets = [0, 0], sizes = [8, 32], strides = [1, 1]} : vector<16x32xf32> to vector<8x32xf32>
    %1262 = arith.truncf %1261 : vector<8x32xf32> to vector<8x32xbf16>
    %1263 = vector.extract_strided_slice %1259 {offsets = [0, 0], sizes = [8, 8], strides = [1, 1]} : vector<8x32xf32> to vector<8x8xf32>
    %1264 = arith.truncf %1263 : vector<8x8xf32> to vector<8x8xbf16>
    %1265 = vector.extract_strided_slice %1260 {offsets = [0, 0], sizes = [8, 8], strides = [1, 1]} : vector<8x32xf32> to vector<8x8xf32>
    %1266 = arith.truncf %1265 : vector<8x8xf32> to vector<8x8xbf16>
    %cst_470 = arith.constant dense<0.000000e+00> : vector<8x8xf32>
    %1267 = tpu.matmul %1264, %1266, %cst_470 {dimension_numbers = #tpu.dot_dimension_numbers<[1], [1], [0], [0], [0, 0, 1, 0], [], []>} : vector<8x8xbf16>, vector<8x8xbf16>, vector<8x8xf32> -> vector<8x8xf32>
    %cst_471 = arith.constant dense<0xFF800000> : vector<8xf32>
    %1268 = vector.multi_reduction <maximumf>, %1267, %cst_471 [1] : vector<8x8xf32> to vector<8xf32>
    %1269 = vector.shape_cast %1268 : vector<8xf32> to vector<8x1xf32>
    %1270 = vector.broadcast %1269 : vector<8x1xf32> to vector<8x8xf32>
    %1271 = arith.subf %1267, %1270 : vector<8x8xf32>
    %1272 = math.exp %1271 : vector<8x8xf32>
    %cst_472 = arith.constant dense<0.000000e+00> : vector<8xf32>
    %1273 = vector.multi_reduction <add>, %1272, %cst_472 [1] : vector<8x8xf32> to vector<8xf32>
    %1274 = vector.shape_cast %1273 : vector<8xf32> to vector<8x1xf32>
    %1275 = tpu.reciprocal %1274 {approx = true} : vector<8x1xf32> -> vector<8x1xf32>
    %1276 = vector.broadcast %1275 : vector<8x1xf32> to vector<8x8xf32>
    %1277 = arith.mulf %1272, %1276 : vector<8x8xf32>
    %1278 = arith.truncf %1277 : vector<8x8xf32> to vector<8x8xbf16>
    %1279 = vector.extract_strided_slice %1262 {offsets = [0, 0], sizes = [8, 8], strides = [1, 1]} : vector<8x32xbf16> to vector<8x8xbf16>
    %cst_473 = arith.constant dense<0.000000e+00> : vector<8x8xf32>
    %1280 = tpu.matmul %1278, %1279, %cst_473 {dimension_numbers = #tpu.dot_dimension_numbers<[1], [0], [0], [1], [0, 0, 1, 1], [], []>} : vector<8x8xbf16>, vector<8x8xbf16>, vector<8x8xf32> -> vector<8x8xf32>
    %1281 = vector.extract_strided_slice %1259 {offsets = [0, 8], sizes = [8, 8], strides = [1, 1]} : vector<8x32xf32> to vector<8x8xf32>
    %1282 = arith.truncf %1281 : vector<8x8xf32> to vector<8x8xbf16>
    %1283 = vector.extract_strided_slice %1260 {offsets = [0, 8], sizes = [8, 8], strides = [1, 1]} : vector<8x32xf32> to vector<8x8xf32>
    %1284 = arith.truncf %1283 : vector<8x8xf32> to vector<8x8xbf16>
    %cst_474 = arith.constant dense<0.000000e+00> : vector<8x8xf32>
    %1285 = tpu.matmul %1282, %1284, %cst_474 {dimension_numbers = #tpu.dot_dimension_numbers<[1], [1], [0], [0], [0, 0, 1, 0], [], []>} : vector<8x8xbf16>, vector<8x8xbf16>, vector<8x8xf32> -> vector<8x8xf32>
    %cst_475 = arith.constant dense<0xFF800000> : vector<8xf32>
    %1286 = vector.multi_reduction <maximumf>, %1285, %cst_475 [1] : vector<8x8xf32> to vector<8xf32>
    %1287 = vector.shape_cast %1286 : vector<8xf32> to vector<8x1xf32>
    %1288 = vector.broadcast %1287 : vector<8x1xf32> to vector<8x8xf32>
    %1289 = arith.subf %1285, %1288 : vector<8x8xf32>
    %1290 = math.exp %1289 : vector<8x8xf32>
    %cst_476 = arith.constant dense<0.000000e+00> : vector<8xf32>
    %1291 = vector.multi_reduction <add>, %1290, %cst_476 [1] : vector<8x8xf32> to vector<8xf32>
    %1292 = vector.shape_cast %1291 : vector<8xf32> to vector<8x1xf32>
    %1293 = tpu.reciprocal %1292 {approx = true} : vector<8x1xf32> -> vector<8x1xf32>
    %1294 = vector.broadcast %1293 : vector<8x1xf32> to vector<8x8xf32>
    %1295 = arith.mulf %1290, %1294 : vector<8x8xf32>
    %1296 = arith.truncf %1295 : vector<8x8xf32> to vector<8x8xbf16>
    %1297 = vector.extract_strided_slice %1262 {offsets = [0, 8], sizes = [8, 8], strides = [1, 1]} : vector<8x32xbf16> to vector<8x8xbf16>
    %cst_477 = arith.constant dense<0.000000e+00> : vector<8x8xf32>
    %1298 = tpu.matmul %1296, %1297, %cst_477 {dimension_numbers = #tpu.dot_dimension_numbers<[1], [0], [0], [1], [0, 0, 1, 1], [], []>} : vector<8x8xbf16>, vector<8x8xbf16>, vector<8x8xf32> -> vector<8x8xf32>
    %1299 = vector.extract_strided_slice %1259 {offsets = [0, 16], sizes = [8, 8], strides = [1, 1]} : vector<8x32xf32> to vector<8x8xf32>
    %1300 = arith.truncf %1299 : vector<8x8xf32> to vector<8x8xbf16>
    %1301 = vector.extract_strided_slice %1260 {offsets = [0, 16], sizes = [8, 8], strides = [1, 1]} : vector<8x32xf32> to vector<8x8xf32>
    %1302 = arith.truncf %1301 : vector<8x8xf32> to vector<8x8xbf16>
    %cst_478 = arith.constant dense<0.000000e+00> : vector<8x8xf32>
    %1303 = tpu.matmul %1300, %1302, %cst_478 {dimension_numbers = #tpu.dot_dimension_numbers<[1], [1], [0], [0], [0, 0, 1, 0], [], []>} : vector<8x8xbf16>, vector<8x8xbf16>, vector<8x8xf32> -> vector<8x8xf32>
    %cst_479 = arith.constant dense<0xFF800000> : vector<8xf32>
    %1304 = vector.multi_reduction <maximumf>, %1303, %cst_479 [1] : vector<8x8xf32> to vector<8xf32>
    %1305 = vector.shape_cast %1304 : vector<8xf32> to vector<8x1xf32>
    %1306 = vector.broadcast %1305 : vector<8x1xf32> to vector<8x8xf32>
    %1307 = arith.subf %1303, %1306 : vector<8x8xf32>
    %1308 = math.exp %1307 : vector<8x8xf32>
    %cst_480 = arith.constant dense<0.000000e+00> : vector<8xf32>
    %1309 = vector.multi_reduction <add>, %1308, %cst_480 [1] : vector<8x8xf32> to vector<8xf32>
    %1310 = vector.shape_cast %1309 : vector<8xf32> to vector<8x1xf32>
    %1311 = tpu.reciprocal %1310 {approx = true} : vector<8x1xf32> -> vector<8x1xf32>
    %1312 = vector.broadcast %1311 : vector<8x1xf32> to vector<8x8xf32>
    %1313 = arith.mulf %1308, %1312 : vector<8x8xf32>
    %1314 = arith.truncf %1313 : vector<8x8xf32> to vector<8x8xbf16>
    %1315 = vector.extract_strided_slice %1262 {offsets = [0, 16], sizes = [8, 8], strides = [1, 1]} : vector<8x32xbf16> to vector<8x8xbf16>
    %cst_481 = arith.constant dense<0.000000e+00> : vector<8x8xf32>
    %1316 = tpu.matmul %1314, %1315, %cst_481 {dimension_numbers = #tpu.dot_dimension_numbers<[1], [0], [0], [1], [0, 0, 1, 1], [], []>} : vector<8x8xbf16>, vector<8x8xbf16>, vector<8x8xf32> -> vector<8x8xf32>
    %1317 = vector.extract_strided_slice %1259 {offsets = [0, 24], sizes = [8, 8], strides = [1, 1]} : vector<8x32xf32> to vector<8x8xf32>
    %1318 = arith.truncf %1317 : vector<8x8xf32> to vector<8x8xbf16>
    %1319 = vector.extract_strided_slice %1260 {offsets = [0, 24], sizes = [8, 8], strides = [1, 1]} : vector<8x32xf32> to vector<8x8xf32>
    %1320 = arith.truncf %1319 : vector<8x8xf32> to vector<8x8xbf16>
    %cst_482 = arith.constant dense<0.000000e+00> : vector<8x8xf32>
    %1321 = tpu.matmul %1318, %1320, %cst_482 {dimension_numbers = #tpu.dot_dimension_numbers<[1], [1], [0], [0], [0, 0, 1, 0], [], []>} : vector<8x8xbf16>, vector<8x8xbf16>, vector<8x8xf32> -> vector<8x8xf32>
    %cst_483 = arith.constant dense<0xFF800000> : vector<8xf32>
    %1322 = vector.multi_reduction <maximumf>, %1321, %cst_483 [1] : vector<8x8xf32> to vector<8xf32>
    %1323 = vector.shape_cast %1322 : vector<8xf32> to vector<8x1xf32>
    %1324 = vector.broadcast %1323 : vector<8x1xf32> to vector<8x8xf32>
    %1325 = arith.subf %1321, %1324 : vector<8x8xf32>
    %1326 = math.exp %1325 : vector<8x8xf32>
    %cst_484 = arith.constant dense<0.000000e+00> : vector<8xf32>
    %1327 = vector.multi_reduction <add>, %1326, %cst_484 [1] : vector<8x8xf32> to vector<8xf32>
    %1328 = vector.shape_cast %1327 : vector<8xf32> to vector<8x1xf32>
    %1329 = tpu.reciprocal %1328 {approx = true} : vector<8x1xf32> -> vector<8x1xf32>
    %1330 = vector.broadcast %1329 : vector<8x1xf32> to vector<8x8xf32>
    %1331 = arith.mulf %1326, %1330 : vector<8x8xf32>
    %1332 = arith.truncf %1331 : vector<8x8xf32> to vector<8x8xbf16>
    %1333 = vector.extract_strided_slice %1262 {offsets = [0, 24], sizes = [8, 8], strides = [1, 1]} : vector<8x32xbf16> to vector<8x8xbf16>
    %cst_485 = arith.constant dense<0.000000e+00> : vector<8x8xf32>
    %1334 = tpu.matmul %1332, %1333, %cst_485 {dimension_numbers = #tpu.dot_dimension_numbers<[1], [0], [0], [1], [0, 0, 1, 1], [], []>} : vector<8x8xbf16>, vector<8x8xbf16>, vector<8x8xf32> -> vector<8x8xf32>
    %1335 = tpu.concatenate %1280, %1298, %1316, %1334 in 1 : vector<8x8xf32>, vector<8x8xf32>, vector<8x8xf32>, vector<8x8xf32> -> vector<8x32xf32>
    %1336 = vector.extract_strided_slice %1250 {offsets = [8, 0], sizes = [8, 32], strides = [1, 1]} : vector<16x32xf32> to vector<8x32xf32>
    %1337 = vector.extract_strided_slice %1254 {offsets = [8, 0], sizes = [8, 32], strides = [1, 1]} : vector<16x32xf32> to vector<8x32xf32>
    %1338 = vector.extract_strided_slice %1258 {offsets = [8, 0], sizes = [8, 32], strides = [1, 1]} : vector<16x32xf32> to vector<8x32xf32>
    %1339 = arith.truncf %1338 : vector<8x32xf32> to vector<8x32xbf16>
    %1340 = vector.extract_strided_slice %1336 {offsets = [0, 0], sizes = [8, 8], strides = [1, 1]} : vector<8x32xf32> to vector<8x8xf32>
    %1341 = arith.truncf %1340 : vector<8x8xf32> to vector<8x8xbf16>
    %1342 = vector.extract_strided_slice %1337 {offsets = [0, 0], sizes = [8, 8], strides = [1, 1]} : vector<8x32xf32> to vector<8x8xf32>
    %1343 = arith.truncf %1342 : vector<8x8xf32> to vector<8x8xbf16>
    %cst_486 = arith.constant dense<0.000000e+00> : vector<8x8xf32>
    %1344 = tpu.matmul %1341, %1343, %cst_486 {dimension_numbers = #tpu.dot_dimension_numbers<[1], [1], [0], [0], [0, 0, 1, 0], [], []>} : vector<8x8xbf16>, vector<8x8xbf16>, vector<8x8xf32> -> vector<8x8xf32>
    %cst_487 = arith.constant dense<0xFF800000> : vector<8xf32>
    %1345 = vector.multi_reduction <maximumf>, %1344, %cst_487 [1] : vector<8x8xf32> to vector<8xf32>
    %1346 = vector.shape_cast %1345 : vector<8xf32> to vector<8x1xf32>
    %1347 = vector.broadcast %1346 : vector<8x1xf32> to vector<8x8xf32>
    %1348 = arith.subf %1344, %1347 : vector<8x8xf32>
    %1349 = math.exp %1348 : vector<8x8xf32>
    %cst_488 = arith.constant dense<0.000000e+00> : vector<8xf32>
    %1350 = vector.multi_reduction <add>, %1349, %cst_488 [1] : vector<8x8xf32> to vector<8xf32>
    %1351 = vector.shape_cast %1350 : vector<8xf32> to vector<8x1xf32>
    %1352 = tpu.reciprocal %1351 {approx = true} : vector<8x1xf32> -> vector<8x1xf32>
    %1353 = vector.broadcast %1352 : vector<8x1xf32> to vector<8x8xf32>
    %1354 = arith.mulf %1349, %1353 : vector<8x8xf32>
    %1355 = arith.truncf %1354 : vector<8x8xf32> to vector<8x8xbf16>
    %1356 = vector.extract_strided_slice %1339 {offsets = [0, 0], sizes = [8, 8], strides = [1, 1]} : vector<8x32xbf16> to vector<8x8xbf16>
    %cst_489 = arith.constant dense<0.000000e+00> : vector<8x8xf32>
    %1357 = tpu.matmul %1355, %1356, %cst_489 {dimension_numbers = #tpu.dot_dimension_numbers<[1], [0], [0], [1], [0, 0, 1, 1], [], []>} : vector<8x8xbf16>, vector<8x8xbf16>, vector<8x8xf32> -> vector<8x8xf32>
    %1358 = vector.extract_strided_slice %1336 {offsets = [0, 8], sizes = [8, 8], strides = [1, 1]} : vector<8x32xf32> to vector<8x8xf32>
    %1359 = arith.truncf %1358 : vector<8x8xf32> to vector<8x8xbf16>
    %1360 = vector.extract_strided_slice %1337 {offsets = [0, 8], sizes = [8, 8], strides = [1, 1]} : vector<8x32xf32> to vector<8x8xf32>
    %1361 = arith.truncf %1360 : vector<8x8xf32> to vector<8x8xbf16>
    %cst_490 = arith.constant dense<0.000000e+00> : vector<8x8xf32>
    %1362 = tpu.matmul %1359, %1361, %cst_490 {dimension_numbers = #tpu.dot_dimension_numbers<[1], [1], [0], [0], [0, 0, 1, 0], [], []>} : vector<8x8xbf16>, vector<8x8xbf16>, vector<8x8xf32> -> vector<8x8xf32>
    %cst_491 = arith.constant dense<0xFF800000> : vector<8xf32>
    %1363 = vector.multi_reduction <maximumf>, %1362, %cst_491 [1] : vector<8x8xf32> to vector<8xf32>
    %1364 = vector.shape_cast %1363 : vector<8xf32> to vector<8x1xf32>
    %1365 = vector.broadcast %1364 : vector<8x1xf32> to vector<8x8xf32>
    %1366 = arith.subf %1362, %1365 : vector<8x8xf32>
    %1367 = math.exp %1366 : vector<8x8xf32>
    %cst_492 = arith.constant dense<0.000000e+00> : vector<8xf32>
    %1368 = vector.multi_reduction <add>, %1367, %cst_492 [1] : vector<8x8xf32> to vector<8xf32>
    %1369 = vector.shape_cast %1368 : vector<8xf32> to vector<8x1xf32>
    %1370 = tpu.reciprocal %1369 {approx = true} : vector<8x1xf32> -> vector<8x1xf32>
    %1371 = vector.broadcast %1370 : vector<8x1xf32> to vector<8x8xf32>
    %1372 = arith.mulf %1367, %1371 : vector<8x8xf32>
    %1373 = arith.truncf %1372 : vector<8x8xf32> to vector<8x8xbf16>
    %1374 = vector.extract_strided_slice %1339 {offsets = [0, 8], sizes = [8, 8], strides = [1, 1]} : vector<8x32xbf16> to vector<8x8xbf16>
    %cst_493 = arith.constant dense<0.000000e+00> : vector<8x8xf32>
    %1375 = tpu.matmul %1373, %1374, %cst_493 {dimension_numbers = #tpu.dot_dimension_numbers<[1], [0], [0], [1], [0, 0, 1, 1], [], []>} : vector<8x8xbf16>, vector<8x8xbf16>, vector<8x8xf32> -> vector<8x8xf32>
    %1376 = vector.extract_strided_slice %1336 {offsets = [0, 16], sizes = [8, 8], strides = [1, 1]} : vector<8x32xf32> to vector<8x8xf32>
    %1377 = arith.truncf %1376 : vector<8x8xf32> to vector<8x8xbf16>
    %1378 = vector.extract_strided_slice %1337 {offsets = [0, 16], sizes = [8, 8], strides = [1, 1]} : vector<8x32xf32> to vector<8x8xf32>
    %1379 = arith.truncf %1378 : vector<8x8xf32> to vector<8x8xbf16>
    %cst_494 = arith.constant dense<0.000000e+00> : vector<8x8xf32>
    %1380 = tpu.matmul %1377, %1379, %cst_494 {dimension_numbers = #tpu.dot_dimension_numbers<[1], [1], [0], [0], [0, 0, 1, 0], [], []>} : vector<8x8xbf16>, vector<8x8xbf16>, vector<8x8xf32> -> vector<8x8xf32>
    %cst_495 = arith.constant dense<0xFF800000> : vector<8xf32>
    %1381 = vector.multi_reduction <maximumf>, %1380, %cst_495 [1] : vector<8x8xf32> to vector<8xf32>
    %1382 = vector.shape_cast %1381 : vector<8xf32> to vector<8x1xf32>
    %1383 = vector.broadcast %1382 : vector<8x1xf32> to vector<8x8xf32>
    %1384 = arith.subf %1380, %1383 : vector<8x8xf32>
    %1385 = math.exp %1384 : vector<8x8xf32>
    %cst_496 = arith.constant dense<0.000000e+00> : vector<8xf32>
    %1386 = vector.multi_reduction <add>, %1385, %cst_496 [1] : vector<8x8xf32> to vector<8xf32>
    %1387 = vector.shape_cast %1386 : vector<8xf32> to vector<8x1xf32>
    %1388 = tpu.reciprocal %1387 {approx = true} : vector<8x1xf32> -> vector<8x1xf32>
    %1389 = vector.broadcast %1388 : vector<8x1xf32> to vector<8x8xf32>
    %1390 = arith.mulf %1385, %1389 : vector<8x8xf32>
    %1391 = arith.truncf %1390 : vector<8x8xf32> to vector<8x8xbf16>
    %1392 = vector.extract_strided_slice %1339 {offsets = [0, 16], sizes = [8, 8], strides = [1, 1]} : vector<8x32xbf16> to vector<8x8xbf16>
    %cst_497 = arith.constant dense<0.000000e+00> : vector<8x8xf32>
    %1393 = tpu.matmul %1391, %1392, %cst_497 {dimension_numbers = #tpu.dot_dimension_numbers<[1], [0], [0], [1], [0, 0, 1, 1], [], []>} : vector<8x8xbf16>, vector<8x8xbf16>, vector<8x8xf32> -> vector<8x8xf32>
    %1394 = vector.extract_strided_slice %1336 {offsets = [0, 24], sizes = [8, 8], strides = [1, 1]} : vector<8x32xf32> to vector<8x8xf32>
    %1395 = arith.truncf %1394 : vector<8x8xf32> to vector<8x8xbf16>
    %1396 = vector.extract_strided_slice %1337 {offsets = [0, 24], sizes = [8, 8], strides = [1, 1]} : vector<8x32xf32> to vector<8x8xf32>
    %1397 = arith.truncf %1396 : vector<8x8xf32> to vector<8x8xbf16>
    %cst_498 = arith.constant dense<0.000000e+00> : vector<8x8xf32>
    %1398 = tpu.matmul %1395, %1397, %cst_498 {dimension_numbers = #tpu.dot_dimension_numbers<[1], [1], [0], [0], [0, 0, 1, 0], [], []>} : vector<8x8xbf16>, vector<8x8xbf16>, vector<8x8xf32> -> vector<8x8xf32>
    %cst_499 = arith.constant dense<0xFF800000> : vector<8xf32>
    %1399 = vector.multi_reduction <maximumf>, %1398, %cst_499 [1] : vector<8x8xf32> to vector<8xf32>
    %1400 = vector.shape_cast %1399 : vector<8xf32> to vector<8x1xf32>
    %1401 = vector.broadcast %1400 : vector<8x1xf32> to vector<8x8xf32>
    %1402 = arith.subf %1398, %1401 : vector<8x8xf32>
    %1403 = math.exp %1402 : vector<8x8xf32>
    %cst_500 = arith.constant dense<0.000000e+00> : vector<8xf32>
    %1404 = vector.multi_reduction <add>, %1403, %cst_500 [1] : vector<8x8xf32> to vector<8xf32>
    %1405 = vector.shape_cast %1404 : vector<8xf32> to vector<8x1xf32>
    %1406 = tpu.reciprocal %1405 {approx = true} : vector<8x1xf32> -> vector<8x1xf32>
    %1407 = vector.broadcast %1406 : vector<8x1xf32> to vector<8x8xf32>
    %1408 = arith.mulf %1403, %1407 : vector<8x8xf32>
    %1409 = arith.truncf %1408 : vector<8x8xf32> to vector<8x8xbf16>
    %1410 = vector.extract_strided_slice %1339 {offsets = [0, 24], sizes = [8, 8], strides = [1, 1]} : vector<8x32xbf16> to vector<8x8xbf16>
    %cst_501 = arith.constant dense<0.000000e+00> : vector<8x8xf32>
    %1411 = tpu.matmul %1409, %1410, %cst_501 {dimension_numbers = #tpu.dot_dimension_numbers<[1], [0], [0], [1], [0, 0, 1, 1], [], []>} : vector<8x8xbf16>, vector<8x8xbf16>, vector<8x8xf32> -> vector<8x8xf32>
    %1412 = tpu.concatenate %1357, %1375, %1393, %1411 in 1 : vector<8x8xf32>, vector<8x8xf32>, vector<8x8xf32>, vector<8x8xf32> -> vector<8x32xf32>
    %1413 = tpu.concatenate %1335, %1412 in 0 : vector<8x32xf32>, vector<8x32xf32> -> vector<16x32xf32>
    %1414 = arith.truncf %1413 : vector<16x32xf32> to vector<16x32xbf16>
    %cst_502 = arith.constant dense<0.000000e+00> : vector<16x32xf32>
    %1415 = tpu.matmul %1414, %1244, %cst_502 {dimension_numbers = #tpu.dot_dimension_numbers<[1], [0], [0], [1], [0, 0, 1, 1], [], []>} : vector<16x32xbf16>, vector<32x32xbf16>, vector<16x32xf32> -> vector<16x32xf32>
    %1416 = vector.broadcast %1246 : vector<1x32xf32> to vector<16x32xf32>
    %1417 = arith.addf %1415, %1416 : vector<16x32xf32>
    %c1_503 = arith.constant 1 : index
    %c0_504 = arith.constant 0 : index
    %c0_505 = arith.constant 0 : index
    %1418 = vector.load %arg36[%c1_503, %c0_504, %c0_505] : memref<2x1x32xf32, #tpu.memory_space<vmem>>, vector<1x1x32xf32>
    %1419 = vector.shape_cast %1418 : vector<1x1x32xf32> to vector<1x32xf32>
    %c1_506 = arith.constant 1 : index
    %c0_507 = arith.constant 0 : index
    %c0_508 = arith.constant 0 : index
    %1420 = vector.load %arg37[%c1_506, %c0_507, %c0_508] : memref<2x1x32xf32, #tpu.memory_space<vmem>>, vector<1x1x32xf32>
    %1421 = vector.shape_cast %1420 : vector<1x1x32xf32> to vector<1x32xf32>
    %1422 = arith.addf %1230, %1417 : vector<16x32xf32>
    %cst_509 = arith.constant dense<0.000000e+00> : vector<16xf32>
    %1423 = vector.multi_reduction <add>, %1422, %cst_509 [1] : vector<16x32xf32> to vector<16xf32>
    %1424 = vector.shape_cast %1423 : vector<16xf32> to vector<16x1xf32>
    %cst_510 = arith.constant 3.200000e+01 : f32
    %1425 = vector.broadcast %cst_510 : f32 to vector<16x1xf32>
    %1426 = arith.divf %1424, %1425 : vector<16x1xf32>
    %1427 = arith.mulf %1422, %1422 : vector<16x32xf32>
    %cst_511 = arith.constant dense<0.000000e+00> : vector<16xf32>
    %1428 = vector.multi_reduction <add>, %1427, %cst_511 [1] : vector<16x32xf32> to vector<16xf32>
    %1429 = vector.shape_cast %1428 : vector<16xf32> to vector<16x1xf32>
    %cst_512 = arith.constant 3.200000e+01 : f32
    %1430 = vector.broadcast %cst_512 : f32 to vector<16x1xf32>
    %1431 = arith.divf %1429, %1430 : vector<16x1xf32>
    %1432 = arith.mulf %1426, %1426 : vector<16x1xf32>
    %1433 = arith.subf %1431, %1432 : vector<16x1xf32>
    %cst_513 = arith.constant 9.99999974E-6 : f32
    %1434 = vector.broadcast %cst_513 : f32 to vector<16x1xf32>
    %1435 = arith.addf %1433, %1434 : vector<16x1xf32>
    %1436 = math.rsqrt %1435 : vector<16x1xf32>
    %1437 = vector.broadcast %1426 : vector<16x1xf32> to vector<16x32xf32>
    %1438 = arith.subf %1422, %1437 : vector<16x32xf32>
    %1439 = vector.broadcast %1436 : vector<16x1xf32> to vector<16x32xf32>
    %1440 = arith.mulf %1438, %1439 : vector<16x32xf32>
    %1441 = vector.broadcast %1419 : vector<1x32xf32> to vector<16x32xf32>
    %1442 = arith.mulf %1440, %1441 : vector<16x32xf32>
    %1443 = vector.broadcast %1421 : vector<1x32xf32> to vector<16x32xf32>
    %1444 = arith.addf %1442, %1443 : vector<16x32xf32>
    %c1_514 = arith.constant 1 : index
    %c0_515 = arith.constant 0 : index
    %c0_516 = arith.constant 0 : index
    %1445 = vector.load %arg38[%c1_514, %c0_515, %c0_516] : memref<2x32x64xbf16, #tpu.memory_space<vmem>>, vector<1x32x64xbf16>
    %1446 = vector.shape_cast %1445 : vector<1x32x64xbf16> to vector<32x64xbf16>
    %c1_517 = arith.constant 1 : index
    %c0_518 = arith.constant 0 : index
    %c0_519 = arith.constant 0 : index
    %1447 = vector.load %arg39[%c1_517, %c0_518, %c0_519] : memref<2x1x64xf32, #tpu.memory_space<vmem>>, vector<1x1x64xf32>
    %1448 = vector.shape_cast %1447 : vector<1x1x64xf32> to vector<1x64xf32>
    %c1_520 = arith.constant 1 : index
    %c0_521 = arith.constant 0 : index
    %c0_522 = arith.constant 0 : index
    %1449 = vector.load %arg40[%c1_520, %c0_521, %c0_522] : memref<2x64x32xbf16, #tpu.memory_space<vmem>>, vector<1x64x32xbf16>
    %1450 = vector.shape_cast %1449 : vector<1x64x32xbf16> to vector<64x32xbf16>
    %c1_523 = arith.constant 1 : index
    %c0_524 = arith.constant 0 : index
    %c0_525 = arith.constant 0 : index
    %1451 = vector.load %arg41[%c1_523, %c0_524, %c0_525] : memref<2x1x32xf32, #tpu.memory_space<vmem>>, vector<1x1x32xf32>
    %1452 = vector.shape_cast %1451 : vector<1x1x32xf32> to vector<1x32xf32>
    %1453 = arith.truncf %1444 : vector<16x32xf32> to vector<16x32xbf16>
    %cst_526 = arith.constant dense<0.000000e+00> : vector<16x64xf32>
    %1454 = tpu.matmul %1453, %1446, %cst_526 {dimension_numbers = #tpu.dot_dimension_numbers<[1], [0], [0], [1], [0, 0, 1, 1], [], []>} : vector<16x32xbf16>, vector<32x64xbf16>, vector<16x64xf32> -> vector<16x64xf32>
    %1455 = vector.broadcast %1448 : vector<1x64xf32> to vector<16x64xf32>
    %1456 = arith.addf %1454, %1455 : vector<16x64xf32>
    %cst_527 = arith.constant 0.000000e+00 : f32
    %1457 = vector.broadcast %cst_527 : f32 to vector<16x64xf32>
    %1458 = arith.maximumf %1456, %1457 : vector<16x64xf32>
    %1459 = arith.truncf %1458 : vector<16x64xf32> to vector<16x64xbf16>
    %cst_528 = arith.constant dense<0.000000e+00> : vector<16x32xf32>
    %1460 = tpu.matmul %1459, %1450, %cst_528 {dimension_numbers = #tpu.dot_dimension_numbers<[1], [0], [0], [1], [0, 0, 1, 1], [], []>} : vector<16x64xbf16>, vector<64x32xbf16>, vector<16x32xf32> -> vector<16x32xf32>
    %1461 = vector.broadcast %1452 : vector<1x32xf32> to vector<16x32xf32>
    %1462 = arith.addf %1460, %1461 : vector<16x32xf32>
    %c1_529 = arith.constant 1 : index
    %c0_530 = arith.constant 0 : index
    %c0_531 = arith.constant 0 : index
    %1463 = vector.load %arg42[%c1_529, %c0_530, %c0_531] : memref<2x1x32xf32, #tpu.memory_space<vmem>>, vector<1x1x32xf32>
    %1464 = vector.shape_cast %1463 : vector<1x1x32xf32> to vector<1x32xf32>
    %c1_532 = arith.constant 1 : index
    %c0_533 = arith.constant 0 : index
    %c0_534 = arith.constant 0 : index
    %1465 = vector.load %arg43[%c1_532, %c0_533, %c0_534] : memref<2x1x32xf32, #tpu.memory_space<vmem>>, vector<1x1x32xf32>
    %1466 = vector.shape_cast %1465 : vector<1x1x32xf32> to vector<1x32xf32>
    %1467 = arith.addf %1444, %1462 : vector<16x32xf32>
    %cst_535 = arith.constant dense<0.000000e+00> : vector<16xf32>
    %1468 = vector.multi_reduction <add>, %1467, %cst_535 [1] : vector<16x32xf32> to vector<16xf32>
    %1469 = vector.shape_cast %1468 : vector<16xf32> to vector<16x1xf32>
    %cst_536 = arith.constant 3.200000e+01 : f32
    %1470 = vector.broadcast %cst_536 : f32 to vector<16x1xf32>
    %1471 = arith.divf %1469, %1470 : vector<16x1xf32>
    %1472 = arith.mulf %1467, %1467 : vector<16x32xf32>
    %cst_537 = arith.constant dense<0.000000e+00> : vector<16xf32>
    %1473 = vector.multi_reduction <add>, %1472, %cst_537 [1] : vector<16x32xf32> to vector<16xf32>
    %1474 = vector.shape_cast %1473 : vector<16xf32> to vector<16x1xf32>
    %cst_538 = arith.constant 3.200000e+01 : f32
    %1475 = vector.broadcast %cst_538 : f32 to vector<16x1xf32>
    %1476 = arith.divf %1474, %1475 : vector<16x1xf32>
    %1477 = arith.mulf %1471, %1471 : vector<16x1xf32>
    %1478 = arith.subf %1476, %1477 : vector<16x1xf32>
    %cst_539 = arith.constant 9.99999974E-6 : f32
    %1479 = vector.broadcast %cst_539 : f32 to vector<16x1xf32>
    %1480 = arith.addf %1478, %1479 : vector<16x1xf32>
    %1481 = math.rsqrt %1480 : vector<16x1xf32>
    %1482 = vector.broadcast %1471 : vector<16x1xf32> to vector<16x32xf32>
    %1483 = arith.subf %1467, %1482 : vector<16x32xf32>
    %1484 = vector.broadcast %1481 : vector<16x1xf32> to vector<16x32xf32>
    %1485 = arith.mulf %1483, %1484 : vector<16x32xf32>
    %1486 = vector.broadcast %1464 : vector<1x32xf32> to vector<16x32xf32>
    %1487 = arith.mulf %1485, %1486 : vector<16x32xf32>
    %1488 = vector.broadcast %1466 : vector<1x32xf32> to vector<16x32xf32>
    %1489 = arith.addf %1487, %1488 : vector<16x32xf32>
    %c0_540 = arith.constant 0 : index
    %c0_541 = arith.constant 0 : index
    %1490 = vector.load %arg46[%c0_540, %c0_541] : memref<1x32xf32, #tpu.memory_space<vmem>>, vector<1x32xf32>
    %c0_542 = arith.constant 0 : index
    %c0_543 = arith.constant 0 : index
    %1491 = vector.load %arg47[%c0_542, %c0_543] : memref<1x32xf32, #tpu.memory_space<vmem>>, vector<1x32xf32>
    %cst_544 = arith.constant dense<0.000000e+00> : vector<16xf32>
    %1492 = vector.multi_reduction <add>, %1489, %cst_544 [1] : vector<16x32xf32> to vector<16xf32>
    %1493 = vector.shape_cast %1492 : vector<16xf32> to vector<16x1xf32>
    %cst_545 = arith.constant 3.200000e+01 : f32
    %1494 = vector.broadcast %cst_545 : f32 to vector<16x1xf32>
    %1495 = arith.divf %1493, %1494 : vector<16x1xf32>
    %1496 = arith.mulf %1489, %1489 : vector<16x32xf32>
    %cst_546 = arith.constant dense<0.000000e+00> : vector<16xf32>
    %1497 = vector.multi_reduction <add>, %1496, %cst_546 [1] : vector<16x32xf32> to vector<16xf32>
    %1498 = vector.shape_cast %1497 : vector<16xf32> to vector<16x1xf32>
    %cst_547 = arith.constant 3.200000e+01 : f32
    %1499 = vector.broadcast %cst_547 : f32 to vector<16x1xf32>
    %1500 = arith.divf %1498, %1499 : vector<16x1xf32>
    %1501 = arith.mulf %1495, %1495 : vector<16x1xf32>
    %1502 = arith.subf %1500, %1501 : vector<16x1xf32>
    %cst_548 = arith.constant 9.99999974E-6 : f32
    %1503 = vector.broadcast %cst_548 : f32 to vector<16x1xf32>
    %1504 = arith.addf %1502, %1503 : vector<16x1xf32>
    %1505 = math.rsqrt %1504 : vector<16x1xf32>
    %1506 = vector.broadcast %1495 : vector<16x1xf32> to vector<16x32xf32>
    %1507 = arith.subf %1489, %1506 : vector<16x32xf32>
    %1508 = vector.broadcast %1505 : vector<16x1xf32> to vector<16x32xf32>
    %1509 = arith.mulf %1507, %1508 : vector<16x32xf32>
    %1510 = vector.broadcast %1490 : vector<1x32xf32> to vector<16x32xf32>
    %1511 = arith.mulf %1509, %1510 : vector<16x32xf32>
    %1512 = vector.broadcast %1491 : vector<1x32xf32> to vector<16x32xf32>
    %1513 = arith.addf %1511, %1512 : vector<16x32xf32>
    %c0_549 = arith.constant 0 : index
    %c0_550 = arith.constant 0 : index
    %1514 = vector.load %arg48[%c0_549, %c0_550] : memref<16x32xf32, #tpu.memory_space<vmem>>, vector<16x32xf32>
    tpu.vector_store %arg48[%c0_549, %c0_550], %1513 {strides = array<i32>} : memref<16x32xf32, #tpu.memory_space<vmem>>, vector<16x32xf32>,
    return
  }
}

</mosaic_0001>

<bundles_post_ra>
// kernel: transformer_forward.1
= control target key start
LH: loop header
LB: loop body
LE: loop exit
PB: predicated region body
PF: predicated region fallthrough
CT: control target
= control target key end

     0   :  { %s7303_s6 = smov 1   ;;  %s7304_s10 = smov 2   ;;  %s8885_s0 = inlined_call_operand.smem [shape: u32[49], index: -1, kind: input, shape index: {}] }
   0x1   :  { %s7396_s5 = sld [smem:[%s8885_s0]]   ;;  %s7305_s14 = smov 3  }
   0x2   :  { %s7401_s9 = sld [smem:[%s8885_s0 + %s7303_s6]]   ;;  %s7306_s18 = smov 4  }
   0x3   :  { %s7406_s13 = sld [smem:[%s8885_s0 + %s7304_s10]]   ;;  %s7307_s22 = smov 5  }
   0x4   :  { %s7411_s17 = sld [smem:[%s8885_s0 + %s7305_s14]]   ;;  %s7308_s26 = smov 6  }
   0x5   :  { %s7416_s21 = sld [smem:[%s8885_s0 + %s7306_s18]]   ;;  %s7309_s30 = smov 7  }
   0x6   :  { %s7421_s25 = sld [smem:[%s8885_s0 + %s7307_s22]]   ;;  %s7310_s4 = smov 8  }
   0x7   :  { %8916 = sst [smem:[#allocation57_spill]] %s7396_s5  ;;  %s7311_s10 = smov 9  }
   0x8   :  { %8917 = sst [smem:[#allocation58_spill]] %s7401_s9  ;;  %s7312_s15 = smov 10  }
   0x9   :  { %8918 = sst [smem:[#allocation59_spill]] %s7406_s13  ;;  %s7313_s20 = smov 11  }
   0xa   :  { %8919 = sst [smem:[#allocation60_spill]] %s7411_s17  ;;  %s7315_s1 = smov 13  }
   0xb   :  { %8920 = sst [smem:[#allocation61_spill]] %s7416_s21  ;;  %s7316_s7 = smov 14  }
   0xc   :  { %8921 = sst [smem:[#allocation62_spill]] %s7421_s25  ;;  %s7318_s22 = smov 16  }
   0xd   :  { %s7426_s29 = sld [smem:[%s8885_s0 + %s7308_s26]]   ;;  %s7314_s26 = smov 12  }
   0xe   :  { %s7431_s3 = sld [smem:[%s8885_s0 + %s7309_s30]]   ;;  %s7319_s28 = smov 17  }
   0xf   :  { %s7436_s8 = sld [smem:[%s8885_s0 + %s7310_s4]]  }
  0x10   :  { %s7441_s14 = sld [smem:[%s8885_s0 + %s7311_s10]]  }
  0x11   :  { %s7446_s19 = sld [smem:[%s8885_s0 + %s7312_s15]]   ;;  %s7317_s15 = smov 15  }
  0x12   :  { %s7451_s24 = sld [smem:[%s8885_s0 + %s7313_s20]]  }
  0x13   :  { %8922 = sst [smem:[#allocation63_spill]] %s7426_s29 }
  0x14   :  { %8923 = sst [smem:[#allocation64_spill]] %s7431_s3 }
  0x15   :  { %8924 = sst [smem:[#allocation65_spill]] %s7436_s8 }
  0x16   :  { %8925 = sst [smem:[#allocation66_spill]] %s7441_s14 }
  0x17   :  { %8926 = sst [smem:[#allocation67_spill]] %s7446_s19 }
  0x18   :  { %8927 = sst [smem:[#allocation68_spill]] %s7451_s24 }
  0x19   :  { %s7456_s30 = sld [smem:[%s8885_s0 + %s7314_s26]]  }
  0x1a   :  { %s7461_s6 = sld [smem:[%s8885_s0 + %s7315_s1]]  }
  0x1b   :  { %s7466_s12 = sld [smem:[%s8885_s0 + %s7316_s7]]   ;;  %s7320_s7 = smov 18  }
  0x1c   :  { %s7471_s20 = sld [smem:[%s8885_s0 + %s7317_s15]]   ;;  %s7321_s15 = smov 19  }
  0x1d   :  { %s7476_s27 = sld [smem:[%s8885_s0 + %s7318_s22]]   ;;  %s7322_s22 = smov 20  }
  0x1e   :  { %s7481_s4 = sld [smem:[%s8885_s0 + %s7319_s28]]   ;;  %s7323_s28 = smov 21  }
  0x1f   :  { %8928 = sst [smem:[#allocation69_spill]] %s7456_s30 }
  0x20   :  { %8929 = sst [smem:[#allocation70_spill]] %s7461_s6 }
  0x21   :  { %8930 = sst [smem:[#allocation71_spill]] %s7466_s12 }
  0x22   :  { %s7486_s9 = sld [smem:[%s8885_s0 + %s7320_s7]]   ;;  %s7324_s7 = smov 22  }
  0x23   :  { %8931 = sst [smem:[#allocation72_spill]] %s7476_s27 }
  0x24   :  { %8932 = sst [smem:[#allocation73_spill]] %s7481_s4 }
  0x25   :  { %s7491_s6 = sld [smem:[%s8885_s0 + %s7321_s15]]   ;;  %s7325_s15 = smov 23  }
  0x26   :  { %s7496_s27 = sld [smem:[%s8885_s0 + %s7322_s22]]   ;;  %s7326_s22 = smov 24  }
  0x27   :  { %s7501_s4 = sld [smem:[%s8885_s0 + %s7323_s28]]   ;;  %s7327_s28 = smov 25  }
  0x28   :  { %8933 = sst [smem:[#allocation74_spill]] %s7486_s9 }
  0x29   :  { %s7506_s9 = sld [smem:[%s8885_s0 + %s7324_s7]]   ;;  %s7328_s7 = smov 26  }
  0x2a   :  { %s7511_s12 = sld [smem:[%s8885_s0 + %s7325_s15]]   ;;  %s7329_s15 = smov 27  }
  0x2b   :  { %s7516_s24 = sld [smem:[%s8885_s0 + %s7326_s22]]   ;;  %s7330_s22 = smov 28  }
  0x2c   :  { %s7521_s19 = sld [smem:[%s8885_s0 + %s7327_s28]]   ;;  %s7331_s28 = smov 29  }
  0x2d   :  { %s7526_s30 = sld [smem:[%s8885_s0 + %s7328_s7]]   ;;  %s7332_s7 = smov 30  }
  0x2e   :  { %s7531_s14 = sld [smem:[%s8885_s0 + %s7329_s15]]   ;;  %s7333_s15 = smov 31  }
  0x2f   :  { %8934 = sst [smem:[#allocation75_spill]] %s7506_s9 }
  0x30   :  { %s7536_s8 = sld [smem:[%s8885_s0 + %s7330_s22]]   ;;  %s7334_s22 = smov 32  }
  0x31   :  { %8935 = sst [smem:[#allocation76_spill]] %s7516_s24 }
  0x32   :  { %s7541_s3 = sld [smem:[%s8885_s0 + %s7331_s28]]   ;;  %s7335_s28 = smov 33  }
  0x33   :  { %8936 = sst [smem:[#allocation77_spill]] %s7526_s30 }
  0x34   :  { %s7546_s29 = sld [smem:[%s8885_s0 + %s7332_s7]]   ;;  %s7336_s7 = smov 34  }
  0x35   :  { %s7551_s25 = sld [smem:[%s8885_s0 + %s7333_s15]]   ;;  %s7337_s15 = smov 35  }
  0x36   :  { %8937 = sst [smem:[#allocation78_spill]] %s7536_s8 }
  0x37   :  { %s7556_s17 = sld [smem:[%s8885_s0 + %s7334_s22]]   ;;  %s7338_s22 = smov 36  }
  0x38   :  { %s7561_s5 = sld [smem:[%s8885_s0 + %s7335_s28]]   ;;  %s7339_s28 = smov 37  }
  0x39   :  { %s7566_s21 = sld [smem:[%s8885_s0 + %s7336_s7]]   ;;  %s7340_s7 = smov 38  }
  0x3a   :  { %8938 = sst [smem:[#allocation79_spill]] %s7546_s29 }
  0x3b   :  { %s7571_s13 = sld [smem:[%s8885_s0 + %s7337_s15]]   ;;  %s7341_s15 = smov 39  }
  0x3c   :  { %s7581_s29 = sld [smem:[%s8885_s0 + %s7339_s28]]   ;;  %s7343_s28 = smov 41  }
  0x3d   :  { %8939 = sst [smem:[#allocation80_spill]] %s7556_s17 }
  0x3e   :  { %s7576_s17 = sld [smem:[%s8885_s0 + %s7338_s22]]   ;;  %s7342_s22 = smov 40  }
  0x3f   :  { %8940 = sst [smem:[#allocation81_spill]] %s7566_s21 }
  0x40   :  { %s7586_s21 = sld [smem:[%s8885_s0 + %s7340_s7]]   ;;  %s7344_s7 = smov 42  }
  0x41   :  { %s7591_s8 = sld [smem:[%s8885_s0 + %s7341_s15]]   ;;  %s7345_s15 = smov 43  }
  0x42   :  { %s7601_s30 = sld [smem:[%s8885_s0 + %s7343_s28]]   ;;  %s7347_s28 = smov 45  }
  0x43   :  { %s7611_s24 = sld [smem:[%s8885_s0 + %s7345_s15]]   ;;  %s7349_s15 = smov 47  }
  0x44   :  { %8941 = sst [smem:[#allocation82_spill]] %s7576_s17 }
  0x45   :  { %s7596_s17 = sld [smem:[%s8885_s0 + %s7342_s22]]   ;;  %s7346_s22 = smov 44  }
  0x46   :  { %8942 = sst [smem:[#allocation83_spill]] %s7586_s21 }
  0x47   :  { %s7606_s21 = sld [smem:[%s8885_s0 + %s7344_s7]]   ;;  %s7348_s7 = smov 46  }
  0x48   :  { %8944 = sst [smem:[#allocation85_spill]] %s7601_s30 }
  0x49   :  { %8945 = sst [smem:[#allocation86_spill]] %s7611_s24 }
  0x4a   :  { %s7621_s30 = sld [smem:[%s8885_s0 + %s7347_s28]]  }
  0x4b   :  { %8943 = sst [smem:[#allocation84_spill]] %s7596_s17 }
  0x4c   :  { %s7616_s17 = sld [smem:[%s8885_s0 + %s7346_s22]]   ;;  %s7350_s22 = smov 48  }
  0x4d   :  { %s7626_s9 = sld [smem:[%s8885_s0 + %s7348_s7]]  }
  0x4e   :  { %s7631_s24 = sld [smem:[%s8885_s0 + %s7349_s15]]  }
  0x52   :  { %8946 = sst [smem:[#allocation87_spill]] %s7616_s17 }
  0x53   :  { %s7636_s17 = sld [smem:[%s8885_s0 + %s7350_s22]]  }
  0x54   :  { %102 = vsyncpa [#allocation3], 0 }
  0x55   :  { %103 = vsyncpa [#allocation5], 0 }
  0x56   :  { %104 = vsyncpa [#allocation8], 0 }
  0x57   :  { %105 = vsyncpa [#allocation11], 0 }
  0x58   :  { %106 = vsyncpa [#allocation14], 0 }
  0x59   :  { %107 = vsyncpa [#allocation17], 0 }
  0x5a   :  { %108 = vsyncpa [#allocation20], 0 }
  0x5b   :  { %109 = vsyncpa [#allocation23], 0 }
  0x5c   :  { %110 = vsyncpa [#allocation26], 0 }
  0x5d   :  { %111 = vsyncpa [#allocation29], 0 }
  0x5e   :  { %112 = vsyncpa [#allocation32], 0 }
  0x5f   :  { %113 = vsyncpa [#allocation35], 0 }
  0x60   :  { %114 = vsyncpa [#allocation38], 0 }
  0x61   :  { %115 = vsyncpa [#allocation41], 0  ;;  %s169_s0 = sshll.u32 %s7491_s6, 4  ;;  %s7351_s28 = smov [#allocation4]   ;;  %s170_s0 = int_to_ptr.hbm [resolvable:$true] %s169_s0 }
  0x62   :  { %s171_s1 = sshll.u32 %s7351_s28, 4  ;;  %s195_s2 = sshll.u32 %s7501_s4, 4  ;;  %s172_s1 = int_to_ptr.vmem [resolvable:$true] %s171_s1  ;;  %s196_s2 = int_to_ptr.hbm [resolvable:$true] %s195_s2 }
  0x63   :  { %s6627_s7 = sshra.s32 %s170_s0, 4  ;;  %s6631_s11 = scalar_lea.hbm %s7491_s6, 2  ;;  %s6628_s7 = int_to_ptr.hbm [resolvable:$true] %s6627_s7 }
  0x64   :  { %s6629_s10 = scalar_lea.hbm %s6628_s7, 2  ;;  %p6632_p1 = scmp.lt.s32.totalorder %s6628_s7, %s7491_s6 }
  0x65   :  { %p6630_p0 = scmp.ne.s32.totalorder %s6628_s7, %s6629_s10  ;;  %p6633_p2 = scmp.lt.s32.totalorder %s6631_s11, %s6629_s10 }
  0x67   :  { %p6634_p3 = por %p6633_p2, %p6632_p1 }
  0x69   :  { %p6635_p4 = pnand %p6634_p3, %p6630_p0 }
  0x6b   :  { %6638 = shalt.err (!%p6635_p4)
}
  0x6c   :  { %s7352_s15 = smov 16   ;;  %s7353_s16 = smov 1  }
  0x6d   :  { %177 = dma.hbm_to_vmem [thread:$0]  %s170_s0, 32, %s172_s1, [#allocation5], %s7352_s15, %s7352_s15, %s7353_s16  }
  0x6e   :  { %s7354_s18 = smov [#allocation7]   ;;  %s221_s23 = sshll.u32 %s7511_s12, 4  ;;  %s7646_s23 = int_to_ptr.hbm [resolvable:$true] %s221_s23 }
  0x6f   :  { %s197_s22 = sshll.u32 %s7354_s18, 4  ;;  %s6651_s6 = sshra.s32 %s196_s2, 4  ;;  %s198_s22 = int_to_ptr.vmem [resolvable:$true] %s197_s22  ;;  %s6652_s6 = int_to_ptr.hbm [resolvable:$true] %s6651_s6 }
  0x70   :  { %s6653_s26 = scalar_lea.hbm %s6652_s6, 2  ;;  %s6655_s28 = scalar_lea.hbm %s7501_s4, 2 }
  0x71   :  { %p6654_p5 = scmp.ne.s32.totalorder %s6652_s6, %s6653_s26  ;;  %p6656_p6 = scmp.lt.s32.totalorder %s6652_s6, %s7501_s4 }
  0x72   :  { %p6657_p7 = scmp.lt.s32.totalorder %s6655_s28, %s6653_s26 }
  0x74   :  { %p6658_p8 = por %p6657_p7, %p6656_p6 }
  0x76   :  { %p6659_p9 = pnand %p6658_p8, %p6654_p5 }
  0x78   :  { %6662 = shalt.err (!%p6659_p9)
}
  0x79   :  { %203 = dma.hbm_to_vmem [thread:$0]  %s196_s2, 32, %s198_s22, [#allocation8], %s7352_s15, %s7352_s15, %s7353_s16  }
  0x7a   :  { %s247_s0 = sshll.u32 %s7521_s19, 4  ;;  %s7355_s1 = smov [#allocation10]   ;;  %s7654_s0 = int_to_ptr.hbm [resolvable:$true] %s247_s0 }
  0x7b   :  { %s223_s7 = sshll.u32 %s7355_s1, 4  ;;  %s6675_s10 = sshra.s32 %s7646_s23, 4  ;;  %s224_s7 = int_to_ptr.vmem [resolvable:$true] %s223_s7  ;;  %s6676_s10 = int_to_ptr.hbm [resolvable:$true] %s6675_s10 }
  0x7c   :  { %s6677_s4 = scalar_lea.hbm %s6676_s10, 2  ;;  %s6679_s11 = scalar_lea.hbm %s7511_s12, 2 }
  0x7d   :  { %p6678_p10 = scmp.ne.s32.totalorder %s6676_s10, %s6677_s4  ;;  %p6680_p11 = scmp.lt.s32.totalorder %s6676_s10, %s7511_s12 }
  0x7e   :  { %p6681_p12 = scmp.lt.s32.totalorder %s6679_s11, %s6677_s4 }
  0x80   :  { %p6682_p13 = por %p6681_p12, %p6680_p11 }
  0x82   :  { %p6683_p0 = pnand %p6682_p13, %p6678_p10 }
  0x84   :  { %6686 = shalt.err (!%p6683_p0)
}
  0x85   :  { %229 = dma.hbm_to_vmem [thread:$0]  %s7646_s23, 32, %s224_s7, [#allocation11], %s7352_s15, %s7352_s15, %s7353_s16  }
  0x86   :  { %s7356_s2 = smov [#allocation13]   ;;  %s273_s22 = sshll.u32 %s7531_s14, 4  ;;  %s7664_s22 = int_to_ptr.hbm [resolvable:$true] %s273_s22 }
  0x87   :  { %s249_s18 = sshll.u32 %s7356_s2, 4  ;;  %s6699_s12 = sshra.s32 %s7654_s0, 4  ;;  %s250_s18 = int_to_ptr.vmem [resolvable:$true] %s249_s18  ;;  %s6700_s12 = int_to_ptr.hbm [resolvable:$true] %s6699_s12 }
  0x88   :  { %s6701_s6 = scalar_lea.hbm %s6700_s12, 2  ;;  %s6703_s26 = scalar_lea.hbm %s7521_s19, 2 }
  0x89   :  { %p6702_p1 = scmp.ne.s32.totalorder %s6700_s12, %s6701_s6  ;;  %p6704_p2 = scmp.lt.s32.totalorder %s6700_s12, %s7521_s19 }
  0x8a   :  { %p6705_p3 = scmp.lt.s32.totalorder %s6703_s26, %s6701_s6 }
  0x8c   :  { %p6706_p4 = por %p6705_p3, %p6704_p2 }
  0x8e   :  { %p6707_p5 = pnand %p6706_p4, %p6702_p1 }
  0x90   :  { %6710 = shalt.err (!%p6707_p5)
}
  0x91   :  { %255 = dma.hbm_to_vmem [thread:$0]  %s7654_s0, 32, %s250_s18, [#allocation14], %s7352_s15, %s7352_s15, %s7353_s16  }
  0x92   :  { %s299_s23 = sshll.u32 %s7541_s3, 4  ;;  %s7357_s28 = smov [#allocation16]   ;;  %s7674_s23 = int_to_ptr.hbm [resolvable:$true] %s299_s23 }
  0x93   :  { %s275_s1 = sshll.u32 %s7357_s28, 4  ;;  %s6723_s19 = sshra.s32 %s7664_s22, 4  ;;  %s276_s1 = int_to_ptr.vmem [resolvable:$true] %s275_s1  ;;  %s6724_s19 = int_to_ptr.hbm [resolvable:$true] %s6723_s19 }
  0x94   :  { %s6725_s7 = scalar_lea.hbm %s6724_s19, 2  ;;  %s6727_s10 = scalar_lea.hbm %s7531_s14, 2 }
  0x95   :  { %p6726_p6 = scmp.ne.s32.totalorder %s6724_s19, %s6725_s7  ;;  %p6728_p7 = scmp.lt.s32.totalorder %s6724_s19, %s7531_s14 }
  0x96   :  { %p6729_p8 = scmp.lt.s32.totalorder %s6727_s10, %s6725_s7 }
  0x98   :  { %p6730_p9 = por %p6729_p8, %p6728_p7 }
  0x9a   :  { %p6731_p10 = pnand %p6730_p9, %p6726_p6 }
  0x9c   :  { %6734 = shalt.err (!%p6731_p10)
}
  0x9d   :  { %281 = dma.hbm_to_vmem [thread:$0]  %s7664_s22, 32, %s276_s1, [#allocation17], %s7352_s15, %s7352_s15, %s7353_s16  }
  0x9e   :  { %s7358_s0 = smov [#allocation19]   ;;  %s325_s11 = sshll.u32 %s7551_s25, 4  ;;  %s7684_s11 = int_to_ptr.hbm [resolvable:$true] %s325_s11 }
  0x9f   :  { %s301_s4 = sshll.u32 %s7358_s0, 4  ;;  %s6747_s14 = sshra.s32 %s7674_s23, 4  ;;  %s302_s4 = int_to_ptr.vmem [resolvable:$true] %s301_s4  ;;  %s6748_s14 = int_to_ptr.hbm [resolvable:$true] %s6747_s14 }
  0xa0   :  { %s6749_s2 = scalar_lea.hbm %s6748_s14, 2  ;;  %s6751_s18 = scalar_lea.hbm %s7541_s3, 2 }
  0xa1   :  { %p6750_p11 = scmp.ne.s32.totalorder %s6748_s14, %s6749_s2  ;;  %p6752_p12 = scmp.lt.s32.totalorder %s6748_s14, %s7541_s3 }
  0xa2   :  { %p6753_p13 = scmp.lt.s32.totalorder %s6751_s18, %s6749_s2 }
  0xa4   :  { %p6754_p0 = por %p6753_p13, %p6752_p12 }
  0xa6   :  { %p6755_p1 = pnand %p6754_p0, %p6750_p11 }
  0xa8   :  { %6758 = shalt.err (!%p6755_p1)
}
  0xa9   :  { %307 = dma.hbm_to_vmem [thread:$0]  %s7674_s23, 32, %s302_s4, [#allocation20], %s7352_s15, %s7352_s15, %s7353_s16  }
  0xaa   :  { %s351_s22 = sshll.u32 %s7561_s5, 4  ;;  %s7359_s12 = smov [#allocation22]   ;;  %s7694_s22 = int_to_ptr.hbm [resolvable:$true] %s351_s22 }
  0xab   :  { %s327_s6 = sshll.u32 %s7359_s12, 4  ;;  %s6771_s3 = sshra.s32 %s7684_s11, 4  ;;  %s328_s6 = int_to_ptr.vmem [resolvable:$true] %s327_s6  ;;  %s6772_s3 = int_to_ptr.hbm [resolvable:$true] %s6771_s3 }
  0xac   :  { %s6773_s26 = scalar_lea.hbm %s6772_s3, 2  ;;  %s6775_s28 = scalar_lea.hbm %s7551_s25, 2 }
  0xad   :  { %p6774_p2 = scmp.ne.s32.totalorder %s6772_s3, %s6773_s26  ;;  %p6776_p3 = scmp.lt.s32.totalorder %s6772_s3, %s7551_s25 }
  0xae   :  { %p6777_p4 = scmp.lt.s32.totalorder %s6775_s28, %s6773_s26 }
  0xb0   :  { %p6778_p5 = por %p6777_p4, %p6776_p3 }
  0xb2   :  { %p6779_p6 = pnand %p6778_p5, %p6774_p2 }
  0xb4   :  { %6782 = shalt.err (!%p6779_p6)
}
  0xb5   :  { %333 = dma.hbm_to_vmem [thread:$0]  %s7684_s11, 32, %s328_s6, [#allocation23], %s7352_s15, %s7352_s15, %s7353_s16  }
  0xb6   :  { %s7360_s23 = smov [#allocation25]   ;;  %s377_s19 = sshll.u32 %s7571_s13, 4  ;;  %s7704_s19 = int_to_ptr.hbm [resolvable:$true] %s377_s19 }
  0xb7   :  { %s353_s1 = sshll.u32 %s7360_s23, 4  ;;  %s6795_s25 = sshra.s32 %s7694_s22, 4  ;;  %s354_s1 = int_to_ptr.vmem [resolvable:$true] %s353_s1  ;;  %s6796_s25 = int_to_ptr.hbm [resolvable:$true] %s6795_s25 }
  0xb8   :  { %s6797_s7 = scalar_lea.hbm %s6796_s25, 2  ;;  %s6799_s10 = scalar_lea.hbm %s7561_s5, 2 }
  0xb9   :  { %p6798_p7 = scmp.ne.s32.totalorder %s6796_s25, %s6797_s7  ;;  %p6800_p8 = scmp.lt.s32.totalorder %s6796_s25, %s7561_s5 }
  0xba   :  { %p6801_p9 = scmp.lt.s32.totalorder %s6799_s10, %s6797_s7 }
  0xbc   :  { %p6802_p10 = por %p6801_p9, %p6800_p8 }
  0xbe   :  { %p6803_p11 = pnand %p6802_p10, %p6798_p7 }
  0xc0   :  { %6806 = shalt.err (!%p6803_p11)
}
  0xc1   :  { %359 = dma.hbm_to_vmem [thread:$0]  %s7694_s22, 32, %s354_s1, [#allocation26], %s7352_s15, %s7352_s15, %s7353_s16  }
  0xc2   :  { %s403_s0 = sshll.u32 %s7581_s29, 4  ;;  %s7361_s4 = smov [#allocation28]   ;;  %s7714_s0 = int_to_ptr.hbm [resolvable:$true] %s403_s0 }
  0xc3   :  { %s379_s11 = sshll.u32 %s7361_s4, 4  ;;  %s6819_s5 = sshra.s32 %s7704_s19, 4  ;;  %s380_s11 = int_to_ptr.vmem [resolvable:$true] %s379_s11  ;;  %s6820_s5 = int_to_ptr.hbm [resolvable:$true] %s6819_s5 }
  0xc4   :  { %s6821_s14 = scalar_lea.hbm %s6820_s5, 2  ;;  %s6823_s2 = scalar_lea.hbm %s7571_s13, 2 }
  0xc5   :  { %p6822_p12 = scmp.ne.s32.totalorder %s6820_s5, %s6821_s14  ;;  %p6824_p13 = scmp.lt.s32.totalorder %s6820_s5, %s7571_s13 }
  0xc6   :  { %p6825_p0 = scmp.lt.s32.totalorder %s6823_s2, %s6821_s14 }
  0xc8   :  { %p6826_p1 = por %p6825_p0, %p6824_p13 }
  0xca   :  { %p6827_p2 = pnand %p6826_p1, %p6822_p12 }
  0xcc   :  { %6830 = shalt.err (!%p6827_p2)
}
  0xcd   :  { %385 = dma.hbm_to_vmem [thread:$0]  %s7704_s19, 32, %s380_s11, [#allocation29], %s7352_s15, %s7352_s15, %s7353_s16  }
  0xce   :  { %s7362_s18 = smov [#allocation31]   ;;  %s429_s12 = sshll.u32 %s7591_s8, 4  ;;  %s7724_s12 = int_to_ptr.hbm [resolvable:$true] %s429_s12 }
  0xcf   :  { %s405_s22 = sshll.u32 %s7362_s18, 4  ;;  %s6843_s13 = sshra.s32 %s7714_s0, 4  ;;  %s406_s22 = int_to_ptr.vmem [resolvable:$true] %s405_s22  ;;  %s6844_s13 = int_to_ptr.hbm [resolvable:$true] %s6843_s13 }
  0xd0   :  { %s6845_s6 = scalar_lea.hbm %s6844_s13, 2  ;;  %s6847_s3 = scalar_lea.hbm %s7581_s29, 2 }
  0xd1   :  { %p6846_p3 = scmp.ne.s32.totalorder %s6844_s13, %s6845_s6  ;;  %p6848_p4 = scmp.lt.s32.totalorder %s6844_s13, %s7581_s29 }
  0xd2   :  { %p6849_p5 = scmp.lt.s32.totalorder %s6847_s3, %s6845_s6 }
  0xd4   :  { %p6850_p6 = por %p6849_p5, %p6848_p4 }
  0xd6   :  { %p6851_p7 = pnand %p6850_p6, %p6846_p3 }
  0xd8   :  { %6854 = shalt.err (!%p6851_p7)
}
  0xd9   :  { %411 = dma.hbm_to_vmem [thread:$0]  %s7714_s0, 32, %s406_s22, [#allocation32], %s7352_s15, %s7352_s15, %s7353_s16  }
  0xda   :  { %s457_s26 = sshll.u32 %s7606_s21, 4  ;;  %s7363_s28 = smov [#allocation34]   ;;  %s7734_s26 = int_to_ptr.hbm [resolvable:$true] %s457_s26 }
  0xdb   :  { %s431_s23 = sshll.u32 %s7363_s28, 4  ;;  %s6867_s29 = sshra.s32 %s7724_s12, 4  ;;  %s432_s23 = int_to_ptr.vmem [resolvable:$true] %s431_s23  ;;  %s6868_s29 = int_to_ptr.hbm [resolvable:$true] %s6867_s29 }
  0xdc   :  { %s6869_s1 = scalar_lea.hbm %s6868_s29, 2  ;;  %s6871_s19 = scalar_lea.hbm %s7591_s8, 2 }
  0xdd   :  { %p6870_p8 = scmp.ne.s32.totalorder %s6868_s29, %s6869_s1  ;;  %p6872_p9 = scmp.lt.s32.totalorder %s6868_s29, %s7591_s8 }
  0xde   :  { %p6873_p10 = scmp.lt.s32.totalorder %s6871_s19, %s6869_s1 }
  0xe0   :  { %p6874_p11 = por %p6873_p10, %p6872_p9 }
  0xe2   :  { %p6875_p12 = pnand %p6874_p11, %p6870_p8 }
  0xe4   :  { %6878 = shalt.err (!%p6875_p12)
}
  0xe5   :  { %437 = dma.hbm_to_vmem [thread:$0]  %s7724_s12, 32, %s432_s23, [#allocation35], %s7352_s15, %s7352_s15, %s7353_s16  }
  0xe6   :  { %s7364_s25 = smov [#allocation37]   ;;  %s488_s10 = sshll.u32 %s7626_s9, 4  ;;  %s489_s10 = int_to_ptr.hbm [resolvable:$true] %s488_s10 }
  0xe7   :  { %s459_s7 = sshll.u32 %s7364_s25, 4  ;;  %s6891_s0 = sshra.s32 %s7734_s26, 4  ;;  %s460_s7 = int_to_ptr.vmem [resolvable:$true] %s459_s7  ;;  %s6892_s0 = int_to_ptr.hbm [resolvable:$true] %s6891_s0 }
  0xe8   :  { %s6893_s8 = scalar_lea.hbm %s6892_s0, 2  ;;  %s6895_s4 = scalar_lea.hbm %s7606_s21, 2 }
  0xe9   :  { %p6894_p13 = scmp.ne.s32.totalorder %s6892_s0, %s6893_s8  ;;  %p6896_p0 = scmp.lt.s32.totalorder %s6892_s0, %s7606_s21 }
  0xea   :  { %p6897_p1 = scmp.lt.s32.totalorder %s6895_s4, %s6893_s8 }
  0xec   :  { %p6898_p2 = por %p6897_p1, %p6896_p0 }
  0xee   :  { %p6899_p3 = pnand %p6898_p2, %p6894_p13 }
  0xf0   :  { %6902 = shalt.err (!%p6899_p3)
}
  0xf1   :  { %465 = dma.hbm_to_vmem [thread:$0]  %s7734_s26, 32, %s460_s7, [#allocation38], %s7352_s15, %s7352_s15, %s7353_s16  }
  0xf2   :  { %s150_s11 = sshll.u32 %s7471_s20, 4  ;;  %s7365_s5 = smov [#allocation40]   ;;  %s7752_s11 = int_to_ptr.hbm [resolvable:$true] %s150_s11 }
  0xf3   :  { %s490_s14 = sshll.u32 %s7365_s5, 4  ;;  %s6915_s2 = sshra.s32 %s489_s10, 4  ;;  %s491_s14 = int_to_ptr.vmem [resolvable:$true] %s490_s14  ;;  %s6916_s2 = int_to_ptr.hbm [resolvable:$true] %s6915_s2 }
  0xf4   :  { %s6917_s21 = scalar_lea.hbm %s6916_s2, 1  ;;  %s6919_s18 = scalar_lea.hbm %s7626_s9, 1 }
  0xf5   :  { %p6918_p4 = scmp.ne.s32.totalorder %s6916_s2, %s6917_s21  ;;  %p6920_p5 = scmp.lt.s32.totalorder %s6916_s2, %s7626_s9 }
  0xf6   :  { %p6921_p6 = scmp.lt.s32.totalorder %s6919_s18, %s6917_s21 }
  0xf8   :  { %p6922_p7 = por %p6921_p6, %p6920_p5 }
  0xfa   :  { %p6923_p8 = pnand %p6922_p7, %p6918_p4 }
  0xfc   :  { %6926 = shalt.err (!%p6923_p8)
}
  0xfd   :  { %493 = dma.hbm_to_vmem [thread:$0]  %s489_s10, 16, %s491_s14, [#allocation41]  }
  0xfe   :  { %s7366_s22 = smov [#allocation2]   ;;  %s182_s13 = sshll.u32 %s7496_s27, 4  ;;  %s7757_s13 = int_to_ptr.hbm [resolvable:$true] %s182_s13 }
  0xff   :  { %s152_s12 = sshll.u32 %s7366_s22, 4  ;;  %s6939_s6 = sshra.s32 %s7752_s11, 4  ;;  %s153_s12 = int_to_ptr.vmem [resolvable:$true] %s152_s12  ;;  %s6940_s6 = int_to_ptr.hbm [resolvable:$true] %s6939_s6 }
 0x100   :  { %s6941_s3 = scalar_lea.hbm %s6940_s6, 2  ;;  %s6943_s9 = scalar_lea.hbm %s7471_s20, 2 }
 0x101   :  { %p6942_p9 = scmp.ne.s32.totalorder %s6940_s6, %s6941_s3  ;;  %p6944_p10 = scmp.lt.s32.totalorder %s6940_s6, %s7471_s20 }
 0x102   :  { %p6945_p11 = scmp.lt.s32.totalorder %s6943_s9, %s6941_s3 }
 0x104   :  { %p6946_p12 = por %p6945_p11, %p6944_p10 }
 0x106   :  { %p6947_p13 = pnand %p6946_p12, %p6942_p9 }
 0x108   :  { %6950 = shalt.err (!%p6947_p13)
}
 0x109   :  { %s8947_s26 = sld [smem:[#allocation75_spill]]  ;;  %s7367_s28 = smov [#allocation6]  }
 0x10a   :  { %158 = dma.hbm_to_vmem [thread:$0]  %s7752_s11, 32, %s153_s12, [#allocation3], %s7352_s15, %s7352_s15, %s7353_s16  }
 0x10b   :  { %s184_s23 = sshll.u32 %s7367_s28, 4  ;;  %s6963_s1 = sshra.s32 %s7757_s13, 4  ;;  %s185_s23 = int_to_ptr.vmem [resolvable:$true] %s184_s23  ;;  %s6964_s1 = int_to_ptr.hbm [resolvable:$true] %s6963_s1 }
 0x10c   :  { %s6965_s20 = scalar_lea.hbm %s6964_s1, 32  ;;  %s6967_s19 = scalar_lea.hbm %s7496_s27, 32 }
 0x10d   :  { %p6966_p0 = scmp.ne.s32.totalorder %s6964_s1, %s6965_s20  ;;  %p6968_p1 = scmp.lt.s32.totalorder %s6964_s1, %s7496_s27 }
 0x10e   :  { %p6969_p2 = scmp.lt.s32.totalorder %s6967_s19, %s6965_s20 }
 0x10f   :  { %s208_s29 = sshll.u32 %s8947_s26, 4  ;;  %s209_s29 = int_to_ptr.hbm [resolvable:$true] %s208_s29 }
 0x110   :  { %p6970_p3 = por %p6969_p2, %p6968_p1 }
 0x112   :  { %p6971_p4 = pnand %p6970_p3, %p6966_p0 }
 0x114   :  { %6974 = shalt.err (!%p6971_p4)
}
 0x115   :  { %s7368_s25 = smov 64   ;;  %s8948_s7 = sld [smem:[#allocation76_spill]] }
 0x116   :  { %s7369_s10 = smov 4   ;;  %s7370_s0 = smov [#allocation9]  }
 0x117   :  { %190 = dma.hbm_to_vmem [thread:$0]  %s7757_s13, 512, %s185_s23, [#allocation5], %s7368_s25, %s7368_s25, %s7369_s10  }
 0x118   :  { %s210_s8 = sshll.u32 %s7370_s0, 4  ;;  %s6987_s27 = sshra.s32 %s209_s29, 4  ;;  %s211_s8 = int_to_ptr.vmem [resolvable:$true] %s210_s8  ;;  %s6988_s27 = int_to_ptr.hbm [resolvable:$true] %s6987_s27 }
 0x119   :  { %s6989_s11 = scalar_lea.hbm %s6988_s27, 32  ;;  %s6991_s5 = scalar_lea.hbm %s8947_s26, 32 }
 0x11a   :  { %p6990_p5 = scmp.ne.s32.totalorder %s6988_s27, %s6989_s11  ;;  %p6992_p6 = scmp.lt.s32.totalorder %s6988_s27, %s8947_s26 }
 0x11b   :  { %s234_s4 = sshll.u32 %s8948_s7, 4  ;;  %p6993_p7 = scmp.lt.s32.totalorder %s6991_s5, %s6989_s11  ;;  %s7775_s4 = int_to_ptr.hbm [resolvable:$true] %s234_s4 }
 0x11d   :  { %p6994_p8 = por %p6993_p7, %p6992_p6 }
 0x11f   :  { %p6995_p9 = pnand %p6994_p8, %p6990_p5 }
 0x121   :  { %6998 = shalt.err (!%p6995_p9)
}
 0x122   :  { %s8949_s14 = sld [smem:[#allocation77_spill]]  ;;  %s7371_s21 = smov [#allocation12]  }
 0x123   :  { %216 = dma.hbm_to_vmem [thread:$0]  %s209_s29, 512, %s211_s8, [#allocation8], %s7368_s25, %s7368_s25, %s7369_s10  }
 0x124   :  { %s236_s18 = sshll.u32 %s7371_s21, 4  ;;  %s7011_s22 = sshra.s32 %s7775_s4, 4  ;;  %s237_s18 = int_to_ptr.vmem [resolvable:$true] %s236_s18  ;;  %s7012_s22 = int_to_ptr.hbm [resolvable:$true] %s7011_s22 }
 0x125   :  { %s7013_s12 = scalar_lea.hbm %s7012_s22, 32  ;;  %s7015_s13 = scalar_lea.hbm %s8948_s7, 32 }
 0x126   :  { %p7014_p10 = scmp.ne.s32.totalorder %s7012_s22, %s7013_s12  ;;  %p7016_p11 = scmp.lt.s32.totalorder %s7012_s22, %s8948_s7 }
 0x127   :  { %p7017_p12 = scmp.lt.s32.totalorder %s7015_s13, %s7013_s12 }
 0x128   :  { %s260_s2 = sshll.u32 %s8949_s14, 4  ;;  %s7783_s2 = int_to_ptr.hbm [resolvable:$true] %s260_s2 }
 0x129   :  { %p7018_p13 = por %p7017_p12, %p7016_p11 }
 0x12b   :  { %p7019_p0 = pnand %p7018_p13, %p7014_p10 }
 0x12d   :  { %7022 = shalt.err (!%p7019_p0)
}
 0x12e   :  { %s8950_s6 = sld [smem:[#allocation78_spill]]  ;;  %s7372_s3 = smov [#allocation15]  }
 0x12f   :  { %242 = dma.hbm_to_vmem [thread:$0]  %s7775_s4, 512, %s237_s18, [#allocation11], %s7368_s25, %s7368_s25, %s7369_s10  }
 0x130   :  { %s262_s9 = sshll.u32 %s7372_s3, 4  ;;  %s7035_s28 = sshra.s32 %s7783_s2, 4  ;;  %s263_s9 = int_to_ptr.vmem [resolvable:$true] %s262_s9  ;;  %s7036_s28 = int_to_ptr.hbm [resolvable:$true] %s7035_s28 }
 0x131   :  { %s7037_s23 = scalar_lea.hbm %s7036_s28, 2  ;;  %s7039_s29 = scalar_lea.hbm %s8949_s14, 2 }
 0x132   :  { %p7038_p1 = scmp.ne.s32.totalorder %s7036_s28, %s7037_s23  ;;  %p7040_p2 = scmp.lt.s32.totalorder %s7036_s28, %s8949_s14 }
 0x133   :  { %p7041_p3 = scmp.lt.s32.totalorder %s7039_s29, %s7037_s23 }
 0x134   :  { %s286_s26 = sshll.u32 %s8950_s6, 4  ;;  %s7793_s26 = int_to_ptr.hbm [resolvable:$true] %s286_s26 }
 0x135   :  { %p7042_p4 = por %p7041_p3, %p7040_p2 }
 0x137   :  { %p7043_p5 = pnand %p7042_p4, %p7038_p1 }
 0x139   :  { %7046 = shalt.err (!%p7043_p5)
}
 0x13a   :  { %s8951_s1 = sld [smem:[#allocation79_spill]]  ;;  %s7373_s19 = smov [#allocation18]  }
 0x13b   :  { %268 = dma.hbm_to_vmem [thread:$0]  %s7783_s2, 32, %s263_s9, [#allocation14], %s7352_s15, %s7352_s15, %s7353_s16  }
 0x13c   :  { %s288_s7 = sshll.u32 %s7373_s19, 4  ;;  %s7059_s0 = sshra.s32 %s7793_s26, 4  ;;  %s289_s7 = int_to_ptr.vmem [resolvable:$true] %s288_s7  ;;  %s7060_s0 = int_to_ptr.hbm [resolvable:$true] %s7059_s0 }
 0x13d   :  { %s7061_s8 = scalar_lea.hbm %s7060_s0, 32  ;;  %s7063_s4 = scalar_lea.hbm %s8950_s6, 32 }
 0x13e   :  { %p7062_p6 = scmp.ne.s32.totalorder %s7060_s0, %s7061_s8  ;;  %p7064_p7 = scmp.lt.s32.totalorder %s7060_s0, %s8950_s6 }
 0x13f   :  { %p7065_p8 = scmp.lt.s32.totalorder %s7063_s4, %s7061_s8 }
 0x140   :  { %s312_s20 = sshll.u32 %s8951_s1, 4  ;;  %s7803_s20 = int_to_ptr.hbm [resolvable:$true] %s312_s20 }
 0x141   :  { %p7066_p9 = por %p7065_p8, %p7064_p7 }
 0x143   :  { %p7067_p10 = pnand %p7066_p9, %p7062_p6 }
 0x145   :  { %7070 = shalt.err (!%p7067_p10)
}
 0x146   :  { %s8952_s27 = sld [smem:[#allocation80_spill]]  ;;  %s7374_s11 = smov [#allocation21]  }
 0x147   :  { %294 = dma.hbm_to_vmem [thread:$0]  %s7793_s26, 512, %s289_s7, [#allocation17], %s7368_s25, %s7368_s25, %s7369_s10  }
 0x148   :  { %s314_s5 = sshll.u32 %s7374_s11, 4  ;;  %s7083_s2 = sshra.s32 %s7803_s20, 4  ;;  %s315_s5 = int_to_ptr.vmem [resolvable:$true] %s314_s5  ;;  %s7084_s2 = int_to_ptr.hbm [resolvable:$true] %s7083_s2 }
 0x149   :  { %s7085_s21 = scalar_lea.hbm %s7084_s2, 32  ;;  %s7087_s18 = scalar_lea.hbm %s8951_s1, 32 }
 0x14a   :  { %p7086_p11 = scmp.ne.s32.totalorder %s7084_s2, %s7085_s21  ;;  %p7088_p12 = scmp.lt.s32.totalorder %s7084_s2, %s8951_s1 }
 0x14b   :  { %p7089_p13 = scmp.lt.s32.totalorder %s7087_s18, %s7085_s21 }
 0x14c   :  { %s338_s14 = sshll.u32 %s8952_s27, 4  ;;  %s7813_s14 = int_to_ptr.hbm [resolvable:$true] %s338_s14 }
 0x14d   :  { %p7090_p0 = por %p7089_p13, %p7088_p12 }
 0x14f   :  { %p7091_p1 = pnand %p7090_p0, %p7086_p11 }
 0x151   :  { %7094 = shalt.err (!%p7091_p1)
}
 0x152   :  { %s8953_s22 = sld [smem:[#allocation81_spill]]  ;;  %s7375_s13 = smov [#allocation24]  }
 0x153   :  { %320 = dma.hbm_to_vmem [thread:$0]  %s7803_s20, 512, %s315_s5, [#allocation20], %s7368_s25, %s7368_s25, %s7369_s10  }
 0x154   :  { %s340_s6 = sshll.u32 %s7375_s13, 4  ;;  %s7107_s3 = sshra.s32 %s7813_s14, 4  ;;  %s341_s6 = int_to_ptr.vmem [resolvable:$true] %s340_s6  ;;  %s7108_s3 = int_to_ptr.hbm [resolvable:$true] %s7107_s3 }
 0x155   :  { %s7109_s9 = scalar_lea.hbm %s7108_s3, 32  ;;  %s7111_s26 = scalar_lea.hbm %s8952_s27, 32 }
 0x156   :  { %p7110_p2 = scmp.ne.s32.totalorder %s7108_s3, %s7109_s9  ;;  %p7112_p3 = scmp.lt.s32.totalorder %s7108_s3, %s8952_s27 }
 0x157   :  { %p7113_p4 = scmp.lt.s32.totalorder %s7111_s26, %s7109_s9 }
 0x158   :  { %s364_s12 = sshll.u32 %s8953_s22, 4  ;;  %s7823_s12 = int_to_ptr.hbm [resolvable:$true] %s364_s12 }
 0x159   :  { %p7114_p5 = por %p7113_p4, %p7112_p3 }
 0x15b   :  { %p7115_p6 = pnand %p7114_p5, %p7110_p2 }
 0x15d   :  { %7118 = shalt.err (!%p7115_p6)
}
 0x15e   :  { %s8954_s28 = sld [smem:[#allocation82_spill]]  ;;  %s7376_s23 = smov [#allocation27]  }
 0x15f   :  { %346 = dma.hbm_to_vmem [thread:$0]  %s7813_s14, 512, %s341_s6, [#allocation23], %s7368_s25, %s7368_s25, %s7369_s10  }
 0x160   :  { %s366_s29 = sshll.u32 %s7376_s23, 4  ;;  %s7131_s20 = sshra.s32 %s7823_s12, 4  ;;  %s367_s29 = int_to_ptr.vmem [resolvable:$true] %s366_s29  ;;  %s7132_s20 = int_to_ptr.hbm [resolvable:$true] %s7131_s20 }
 0x161   :  { %s7133_s19 = scalar_lea.hbm %s7132_s20, 32  ;;  %s7135_s7 = scalar_lea.hbm %s8953_s22, 32 }
 0x162   :  { %p7134_p7 = scmp.ne.s32.totalorder %s7132_s20, %s7133_s19  ;;  %p7136_p8 = scmp.lt.s32.totalorder %s7132_s20, %s8953_s22 }
 0x163   :  { %p7137_p9 = scmp.lt.s32.totalorder %s7135_s7, %s7133_s19 }
 0x164   :  { %s390_s1 = sshll.u32 %s8954_s28, 4  ;;  %s7833_s1 = int_to_ptr.hbm [resolvable:$true] %s390_s1 }
 0x165   :  { %p7138_p10 = por %p7137_p9, %p7136_p8 }
 0x167   :  { %p7139_p11 = pnand %p7138_p10, %p7134_p7 }
 0x169   :  { %7142 = shalt.err (!%p7139_p11)
}
 0x16a   :  { %s8955_s0 = sld [smem:[#allocation83_spill]]  ;;  %s7377_s4 = smov [#allocation30]  }
 0x16b   :  { %372 = dma.hbm_to_vmem [thread:$0]  %s7823_s12, 512, %s367_s29, [#allocation26], %s7368_s25, %s7368_s25, %s7369_s10  }
 0x16c   :  { %s392_s27 = sshll.u32 %s7377_s4, 4  ;;  %s7155_s11 = sshra.s32 %s7833_s1, 4  ;;  %s393_s27 = int_to_ptr.vmem [resolvable:$true] %s392_s27  ;;  %s7156_s11 = int_to_ptr.hbm [resolvable:$true] %s7155_s11 }
 0x16d   :  { %s7157_s5 = scalar_lea.hbm %s7156_s11, 2  ;;  %s7159_s14 = scalar_lea.hbm %s8954_s28, 2 }
 0x16e   :  { %p7158_p12 = scmp.ne.s32.totalorder %s7156_s11, %s7157_s5  ;;  %p7160_p13 = scmp.lt.s32.totalorder %s7156_s11, %s8954_s28 }
 0x16f   :  { %p7161_p0 = scmp.lt.s32.totalorder %s7159_s14, %s7157_s5 }
 0x170   :  { %s416_s8 = sshll.u32 %s8955_s0, 4  ;;  %s7843_s8 = int_to_ptr.hbm [resolvable:$true] %s416_s8 }
 0x171   :  { %p7162_p1 = por %p7161_p0, %p7160_p13 }
 0x173   :  { %p7163_p2 = pnand %p7162_p1, %p7158_p12 }
 0x175   :  { %7166 = shalt.err (!%p7163_p2)
}
 0x176   :  { %s8956_s2 = sld [smem:[#allocation85_spill]]  ;;  %s7378_s21 = smov [#allocation33]  }
 0x177   :  { %398 = dma.hbm_to_vmem [thread:$0]  %s7833_s1, 32, %s393_s27, [#allocation29], %s7352_s15, %s7352_s15, %s7353_s16  }
 0x178   :  { %s418_s18 = sshll.u32 %s7378_s21, 4  ;;  %s7179_s12 = sshra.s32 %s7843_s8, 4  ;;  %s419_s18 = int_to_ptr.vmem [resolvable:$true] %s418_s18  ;;  %s7180_s12 = int_to_ptr.hbm [resolvable:$true] %s7179_s12 }
 0x179   :  { %s7181_s13 = scalar_lea.hbm %s7180_s12, 32  ;;  %s7183_s6 = scalar_lea.hbm %s8955_s0, 32 }
 0x17a   :  { %p7182_p3 = scmp.ne.s32.totalorder %s7180_s12, %s7181_s13  ;;  %p7184_p4 = scmp.lt.s32.totalorder %s7180_s12, %s8955_s0 }
 0x17b   :  { %p7185_p5 = scmp.lt.s32.totalorder %s7183_s6, %s7181_s13 }
 0x17c   :  { %s444_s22 = sshll.u32 %s8956_s2, 4  ;;  %s7853_s22 = int_to_ptr.hbm [resolvable:$true] %s444_s22 }
 0x17d   :  { %p7186_p6 = por %p7185_p5, %p7184_p4 }
 0x17f   :  { %p7187_p7 = pnand %p7186_p6, %p7182_p3 }
 0x181   :  { %7190 = shalt.err (!%p7187_p7)
}
 0x182   :  { %s8957_s3 = sld [smem:[#allocation86_spill]]  ;;  %s7379_s26 = smov [#allocation36]  }
 0x183   :  { %424 = dma.hbm_to_vmem [thread:$0]  %s7843_s8, 512, %s419_s18, [#allocation32], %s7368_s25, %s7368_s25, %s7369_s10  }
 0x184   :  { %s446_s28 = sshll.u32 %s7379_s26, 4  ;;  %s7203_s23 = sshra.s32 %s7853_s22, 4  ;;  %s447_s28 = int_to_ptr.vmem [resolvable:$true] %s446_s28  ;;  %s7204_s23 = int_to_ptr.hbm [resolvable:$true] %s7203_s23 }
 0x185   :  { %s7205_s29 = scalar_lea.hbm %s7204_s23, 2  ;;  %s7207_s1 = scalar_lea.hbm %s8956_s2, 2 }
 0x186   :  { %p7206_p8 = scmp.ne.s32.totalorder %s7204_s23, %s7205_s29  ;;  %p7208_p9 = scmp.lt.s32.totalorder %s7204_s23, %s8956_s2 }
 0x187   :  { %p7209_p10 = scmp.lt.s32.totalorder %s7207_s1, %s7205_s29 }
 0x188   :  { %s470_s9 = sshll.u32 %s8957_s3, 4  ;;  %s7863_s9 = int_to_ptr.hbm [resolvable:$true] %s470_s9 }
 0x189   :  { %p7210_p11 = por %p7209_p10, %p7208_p9 }
 0x18b   :  { %p7211_p12 = pnand %p7210_p11, %p7206_p8 }
 0x18d   :  { %7214 = shalt.err (!%p7211_p12)
}
 0x18e   :  { %452 = dma.hbm_to_vmem [thread:$0]  %s7853_s22, 32, %s447_s28, [#allocation35], %s7352_s15, %s7352_s15, %s7353_s16  }
 0x18f   :  { %s7380_s25 = smov [#allocation39]   ;;  %s499_s20 = sshll.u32 %s7631_s24, 4  ;;  %s500_s20 = int_to_ptr.hbm [resolvable:$true] %s499_s20 }
 0x190   :  { %s472_s10 = sshll.u32 %s7380_s25, 4  ;;  %s7227_s19 = sshra.s32 %s7863_s9, 4  ;;  %s473_s10 = int_to_ptr.vmem [resolvable:$true] %s472_s10  ;;  %s7228_s19 = int_to_ptr.hbm [resolvable:$true] %s7227_s19 }
 0x191   :  { %s7229_s7 = scalar_lea.hbm %s7228_s19, 2  ;;  %s7231_s0 = scalar_lea.hbm %s8957_s3, 2 }
 0x192   :  { %p7230_p13 = scmp.ne.s32.totalorder %s7228_s19, %s7229_s7  ;;  %p7232_p0 = scmp.lt.s32.totalorder %s7228_s19, %s8957_s3 }
 0x193   :  { %p7233_p1 = scmp.lt.s32.totalorder %s7231_s0, %s7229_s7 }
 0x195   :  { %p7234_p2 = por %p7233_p1, %p7232_p0 }
 0x197   :  { %p7235_p3 = pnand %p7234_p2, %p7230_p13 }
 0x199   :  { %7238 = shalt.err (!%p7235_p3)
}
 0x19a   :  { %478 = dma.hbm_to_vmem [thread:$0]  %s7863_s9, 32, %s473_s10, [#allocation38], %s7352_s15, %s7352_s15, %s7353_s16  }
 0x19b   :  { %s7381_s8 = smov [#allocation42]   ;;  %s7251_s27 = sshra.s32 %s500_s20, 4  ;;  %s7252_s27 = int_to_ptr.hbm [resolvable:$true] %s7251_s27 }
 0x19c   :  { %s501_s4 = sshll.u32 %s7381_s8, 4  ;;  %s7253_s11 = scalar_lea.hbm %s7252_s27, 1  ;;  %s502_s4 = int_to_ptr.vmem [resolvable:$true] %s501_s4 }
 0x19d   :  { %p7254_p4 = scmp.ne.s32.totalorder %s7252_s27, %s7253_s11  ;;  %s7255_s5 = scalar_lea.hbm %s7631_s24, 1 }
 0x19e   :  { %p7256_p5 = scmp.lt.s32.totalorder %s7252_s27, %s7631_s24  ;;  %p7257_p6 = scmp.lt.s32.totalorder %s7255_s5, %s7253_s11 }
 0x1a0   :  { %p7258_p7 = por %p7257_p6, %p7256_p5 }
 0x1a2   :  { %p7259_p8 = pnand %p7258_p7, %p7254_p4 }
 0x1a4   :  { %7262 = shalt.err (!%p7259_p8)
}
 0x1a5   :  { %504 = dma.hbm_to_vmem [thread:$0]  %s500_s20, 16, %s502_s4, [#allocation41]  }
 0x1a6   :  { %7275 = dma.done.wait [#allocation3], 32  }
 0x1a7   :  { %7276 = vsyncadd [#allocation3], 4294967264 }
 0x1a8   :  { %7277 = dma.done.wait [#allocation5], 544  }
 0x1a9   :  { %7278 = vsyncadd [#allocation5], 4294966752 }
 0x1aa   :  { %7279 = dma.done.wait [#allocation8], 544  }
 0x1ab   :  { %7280 = vsyncadd [#allocation8], 4294966752 }
 0x1ac   :  { %7281 = dma.done.wait [#allocation11], 544  }
 0x1ad   :  { %7282 = vsyncadd [#allocation11], 4294966752 }
 0x1ae   :  { %7283 = dma.done.wait [#allocation14], 64  }
 0x1af   :  { %7284 = vsyncadd [#allocation14], 4294967232 }
 0x1b0   :  { %7285 = dma.done.wait [#allocation17], 544  }
 0x1b1   :  { %7286 = vsyncadd [#allocation17], 4294966752 }
 0x1b2   :  { %7287 = dma.done.wait [#allocation20], 544  }
 0x1b3   :  { %7288 = vsyncadd [#allocation20], 4294966752 }
 0x1b4   :  { %7289 = dma.done.wait [#allocation23], 544  }
 0x1b5   :  { %7290 = vsyncadd [#allocation23], 4294966752 }
 0x1b6   :  { %7291 = dma.done.wait [#allocation26], 544  }
 0x1b7   :  { %7292 = vsyncadd [#allocation26], 4294966752 }
 0x1b8   :  { %7293 = dma.done.wait [#allocation29], 64  }
 0x1b9   :  { %7294 = vsyncadd [#allocation29], 4294967232 }
 0x1ba   :  { %7295 = dma.done.wait [#allocation32], 544  }
 0x1bb   :  { %7296 = vsyncadd [#allocation32], 4294966752 }
 0x1bc   :  { %7297 = dma.done.wait [#allocation35], 64  }
 0x1bd   :  { %7298 = vsyncadd [#allocation35], 4294967232 }
 0x1be   :  { %7299 = dma.done.wait [#allocation38], 64  }
 0x1bf   :  { %7300 = vsyncadd [#allocation38], 4294967232 }
 0x1c0   :  { %7301 = dma.done.wait [#allocation41], 32  }
 0x1c1   :  { %7302 = vsyncadd [#allocation41], 4294967264  ;;  %s8958_s24 = sld [smem:[#allocation59_spill]]  ;;  %vm652_vm0 = vcmask 261120   ;;  %vm731_vm1 = vcmask 64512   ;;  %s7382_s18 = smov 112  }
 0x1c2   :  { %s8959_s16 = sld [smem:[#allocation61_spill]]  ;;  %s7383_s22 = smov 120   ;;  %vm766_vm2 = vcmask 1043456   ;;  %vm969_vm3 = vcmask 130048   ;;  %vm971_vm4 = vcmask 195584   ;;  %vm1393_vm12 = vcmask 523264  }
 0x1c3   :  { %s8960_s14 = sld [smem:[#allocation57_spill]]  ;;  %s7384_s12 = smov 104  }
 0x1c4   :  { %s8961_s2 = sld [smem:[#allocation60_spill]]  ;;  %s7385_s9 = smov 8  }
 0x1c5   :  { %s8962_s21 = sld [smem:[#allocation62_spill]]  ;;  %s7386_s26 = smov 24  }
 0x1c6   :  { %s8963_s13 = sld [smem:[#allocation63_spill]] }
 0x1c7   :  { %v6083_v0 = vld [vmem:[%s8958_s24 + $0x8] sm:$0xff]  ;;  %v6082_v2 = vld [vmem:[%s8958_s24] sm:$0xff]  ;;  %s8964_s6 = sld [smem:[#allocation64_spill]] }
 0x1c8   :  { %v6085_v1 = vld [vmem:[%s8959_s16 + $0x8] sm:$0xff]  ;;  %v6084_v3 = vld [vmem:[%s8959_s16] sm:$0xff]  ;;  %662 = vmatpush.bf16.msra.mxu0 %v6083_v0  ;;  %s8965_s3 = sld [smem:[#allocation65_spill]] }
 0x1c9   :  { %v7887_v4 = vld [vmem:[%s8960_s14] sm:$0xff]  ;;  %691 = vmatpush.bf16.msra.mxu1 %v6085_v1  ;;  %v7890_v5 = vld [vmem:[%s8960_s14 + $0x8] sm:$0xff]  ;;  %s8966_s28 = sld [smem:[#allocation66_spill]] }
 0x1ca   :  { %v636_v6 = vpack.c.bf16 %v7890_v5, %v7887_v4  ;;  %v6329_v7 = vld [vmem:[%s8961_s2] ss:$0 sm:$0xff]  ;;  %s8967_s23 = sld [smem:[#allocation69_spill]] }
 0x1cb   :  { %v6330_v8 = vld [vmem:[%s8962_s21] ss:$0 sm:$0xff]  ;;  %s8968_s29 = sld [smem:[#allocation67_spill]] }
 0x1cc   :  { %663 = vmatpush.bf16.msra.mxu0 %v6082_v2  ;;  %v6087_v24 = vld [vmem:[%s8963_s13 + $0x8] sm:$0xff]  ;;  %v6086_v25 = vld [vmem:[%s8963_s13] sm:$0xff]  ;;  %s8969_s1 = sld [smem:[#allocation68_spill]] }
 0x1cd   :  { %692 = vmatpush.bf16.msra.mxu1 %v6084_v3  ;;  %720 = vmatpush.bf16.msra.mxu2 %v6087_v24  ;;  %v7932_v48 = vld [vmem:[%s8964_s6] ss:$0 sm:$0xff]  ;;  %s8970_s25 = sld [smem:[#allocation71_spill]] }
 0x1ce   :  { %s8971_s10 = sld [smem:[#allocation70_spill]] }
 0x1cf   :  { %5625 = vmatmul.msk.bf16.vlgmr.msra.gmra.mxu0 %vm652_vm0, %v636_v6  ;;  %s8972_s20 = sld [smem:[#allocation72_spill]] }
 0x1d0   :  { %5634 = vmatmul.msk.bf16.vlgmr.msra.gmra.mxu1 %vm652_vm0, %v636_v6  ;;  %s8973_s19 = sld [smem:[#allocation73_spill]] }
 0x1d1   :  { %721 = vmatpush.bf16.msra.mxu2 %v6086_v25  ;;  %s8974_s7 = sld [smem:[#allocation74_spill]] }
 0x1d2   :  { %s8975_s0 = sld [smem:[#allocation58_spill]] }
 0x1d3   :  { %s8976_s8 = sld [smem:[#allocation87_spill]] }
 0x1d4   :  { %5643 = vmatmul.msk.bf16.vlgmr.msra.gmra.mxu2 %vm652_vm0, %v636_v6 }
 0x24c   :  { %v665_v9 = vpop.f32.mrf.mxu0 }
 0x24d   :  { %v694_v10 = vpop.f32.mrf.mxu1  ;;  %v666_v11 = vadd.f32 %v6329_v7, %v665_v9 }
 0x24e   :  { %v695_v12 = vadd.f32 %v6330_v8, %v694_v10 }
 0x24f   :  { %v729_v13 = vpack.c.bf16 %v666_v11, %v666_v11 }
 0x250   :  { %v730_v14 = vpack.c.bf16 %v695_v12, %v695_v12 }
 0x251   :  { %844 = vrot.lane.b32.xlu2 %v729_v13, %s7382_s18 }
 0x252   :  { %846 = vrot.lane.b32.xlu1 %v730_v14, %s7382_s18  ;;  %787 = vrot.lane.b32.xlu0 %v730_v14, %s7383_s22  ;;  %v736_v15 = vsel %vm731_vm1, %v730_v14, 0 }
 0x253   :  { %745 = vmatpush.bf16.xpose.msra.mxu3 %v736_v15 }
 0x254   :  { %v667_v16 = vpop.f32.mrf.mxu0 }
 0x255   :  { %v696_v17 = vpop.f32.mrf.mxu1  ;;  %v668_v18 = vadd.f32 %v6329_v7, %v667_v16 }
 0x256   :  { %v697_v19 = vadd.f32 %v6330_v8, %v696_v17 }
 0x257   :  { %v974_v20 = vpack.c.bf16 %v668_v18, %v668_v18  ;;  %v723_v50 = vpop.f32.mrf.mxu2 }
 0x258   :  { %v975_v21 = vpack.c.bf16 %v697_v19, %v697_v19  ;;  %v724_v52 = vadd.f32 %v7932_v48, %v723_v50 }
 0x259   :  { %900 = vrot.lane.b32.xlu2 %v729_v13, %s7384_s12 }
 0x25a   :  { %902 = vrot.lane.b32.xlu1 %v730_v14, %s7384_s12  ;;  %784 = vrot.lane.b32.xlu0 %v729_v13, %s7383_s22  ;;  %v980_v30 = vsel %vm731_vm1, %v975_v21, 0  ;;  %v728_v56 = vpack.c.bf16 %v724_v52, %v724_v52 }
 0x25b   :  { %5644 = vmatmul.msk.bf16.vlgmr.msra.gmra.mxu3 %vm731_vm1, %v729_v13 }
 0x25c   :  { %v768_v59 = vsel %vm766_vm2, %v728_v56, 0  ;;  %v821_v11 = vunpack.c.l.b16 %v728_v56 }
 0x25d   :  { %777 = vmatpush.bf16.msrb.mxu0 %v768_v59 }
 0x25e   :  { %v822_v12 = vpack.c.b16 %v821_v11, %v821_v11 }
 0x261   :  { %1089 = vrot.lane.b32.xlu2 %v975_v21, %s7382_s18 }
 0x262   :  { %1027 = vrot.lane.b32.xlu1 %v974_v20, %s7383_s22  ;;  %1030 = vrot.lane.b32.xlu0 %v975_v21, %s7383_s22 }
 0x269   :  { %1143 = vrot.lane.b32.xlu2 %v974_v20, %s7384_s12 }
 0x26a   :  { %1087 = vrot.lane.b32.xlu1 %v974_v20, %s7382_s18  ;;  %1145 = vrot.lane.b32.xlu0 %v975_v21, %s7384_s12 }
 0x2ab   :  { %v845_v22 = vpop.permute.xlu2 %844 }
 0x2b3   :  { %v901_v23 = vpop.permute.xlu2 %900 }
 0x2bb   :  { %v1090_v31 = vpop.permute.xlu2 %1089 }
 0x2bc   :  { %v1095_v34 = vsel %vm731_vm1, %v1090_v31, 0 }
 0x2c3   :  { %v1144_v45 = vpop.permute.xlu2 %1143 }
 0x2c4   :  { %v847_v26 = vpop.permute.xlu1 %846  ;;  %v788_v27 = vpop.permute.xlu0 %787 }
 0x2c5   :  { %v793_v28 = vsel %vm731_vm1, %v788_v27, 0  ;;  %v852_v29 = vsel %vm731_vm1, %v847_v26, 0 }
 0x2c6   :  { %802 = vmatpush.bf16.xpose.msrb.mxu1 %v793_v28  ;;  %861 = vmatpush.bf16.xpose.msrb.mxu3 %v852_v29 }
 0x2cc   :  { %v903_v32 = vpop.permute.xlu1 %902  ;;  %v785_v33 = vpop.permute.xlu0 %784 }
 0x2cd   :  { %v908_v35 = vsel %vm731_vm1, %v903_v32, 0  ;;  %5646 = vmatmul.msk.bf16.vlgmr.msrb.gmra.mxu1 %vm731_vm1, %v785_v33  ;;  %5648 = vmatmul.msk.bf16.vlgmr.msrb.gmra.mxu3 %vm731_vm1, %v845_v22  ;;  %v725_v33 = vpop.f32.mrf.mxu2 }
 0x2ce   :  { %989 = vmatpush.bf16.xpose.msra.mxu3 %v980_v30  ;;  %917 = vmatpush.bf16.xpose.msra.mxu1 %v908_v35 }
 0x2d4   :  { %v1031_v36 = vpop.permute.xlu0 %1030  ;;  %v1028_v42 = vpop.permute.xlu1 %1027 }
 0x2d5   :  { %v1036_v37 = vsel %vm731_vm1, %v1031_v36, 0  ;;  %v726_v36 = vadd.f32 %v7932_v48, %v725_v33 }
 0x2d6   :  { %1104 = vmatpush.bf16.xpose.msrb.mxu3 %v1095_v34  ;;  %1045 = vmatpush.bf16.xpose.msrb.mxu1 %v1036_v37 }
 0x2dc   :  { %v1146_v38 = vpop.permute.xlu0 %1145  ;;  %v1088_v44 = vpop.permute.xlu1 %1087 }
 0x2dd   :  { %v1151_v39 = vsel %vm731_vm1, %v1146_v38, 0  ;;  %5650 = vmatmul.msk.bf16.vlgmr.msra.gmra.mxu1 %vm731_vm1, %v901_v23  ;;  %5652 = vmatmul.msk.bf16.vlgmr.msra.gmra.mxu3 %vm731_vm1, %v974_v20 }
 0x2de   :  { %v747_v40 = vpop.f32.mrf.mxu3  ;;  %1160 = vmatpush.bf16.xpose.msra.mxu1 %v1151_v39  ;;  %v973_v39 = vpack.c.bf16 %v726_v36, %v726_v36 }
 0x2df   :  { %v751_v41 = vsel %vm731_vm1, %v747_v40, -inf }
 0x2e0   :  { %752 = vmax.xlane.f32.xlu1 %v751_v41  ;;  %v1011_v48 = vsel %vm766_vm2, %v973_v39, 0  ;;  %v1064_v50 = vunpack.c.l.b16 %v973_v39 }
 0x2e6   :  { %v749_v43 = vpop.f32.mrf.mxu3 }
 0x2ed   :  { %5654 = vmatmul.msk.bf16.vlgmr.msrb.gmra.mxu1 %vm731_vm1, %v1028_v42  ;;  %5656 = vmatmul.msk.bf16.vlgmr.msrb.gmra.mxu3 %vm731_vm1, %v1088_v44 }
 0x2fd   :  { %5658 = vmatmul.msk.bf16.vlgmr.msra.gmra.mxu1 %vm731_vm1, %v1144_v45 }
 0x34a   :  { %v804_v46 = vpop.f32.mrf.mxu1 }
 0x34b   :  { %v808_v47 = vsel %vm731_vm1, %v804_v46, -inf }
 0x34c   :  { %809 = vmax.xlane.f32.xlu0 %v808_v47 }
 0x350   :  { %v863_v49 = vpop.f32.mrf.mxu3 }
 0x351   :  { %v867_v51 = vsel %vm731_vm1, %v863_v49, -inf }
 0x352   :  { %v806_v53 = vpop.f32.mrf.mxu1  ;;  %868 = vmax.xlane.f32.xlu2 %v867_v51 }
 0x353   :  { %v753_v54 = vpop.xlane.xlu1 %752 }
 0x354   :  { %v754_v55 = vsub.f32 %v747_v40, %v753_v54  ;;  %v1065_v54 = vpack.c.b16 %v1064_v50, %v1064_v50 }
 0x356   :  { %v755_v57 = vmul.f32 1.442695, %v754_v55 }
 0x358   :  { %v865_v58 = vpop.f32.mrf.mxu3  ;;  %6385 = vpow2.f32 %v755_v57 }
 0x35a   :  { %v919_v60 = vpop.f32.mrf.mxu1 }
 0x35b   :  { %v923_v61 = vsel %vm731_vm1, %v919_v60, -inf }
 0x35c   :  { %924 = vmax.xlane.f32.xlu2 %v923_v61 }
 0x35e   :  { %v6386_v62 = vpop.eup %6385 }
 0x35f   :  { %v757_v2 = vsel %vm731_vm1, %v6386_v62, 0.0 }
 0x360   :  { %v991_v63 = vpop.f32.mrf.mxu3 }
 0x361   :  { %v995_v0 = vsel %vm731_vm1, %v991_v63, -inf }
 0x362   :  { %v921_v1 = vpop.f32.mrf.mxu1  ;;  %996 = vmax.xlane.f32.xlu1 %v995_v0 }
 0x364   :  { %758 = vadd.xlane.f32.xlu2 %v757_v2 }
 0x368   :  { %v993_v3 = vpop.f32.mrf.mxu3 }
 0x36a   :  { %v1047_v6 = vpop.f32.mrf.mxu1 }
 0x36b   :  { %v1051_v7 = vsel %vm731_vm1, %v1047_v6, -inf }
 0x36c   :  { %1052 = vmax.xlane.f32.xlu0 %v1051_v7 }
 0x370   :  { %v7941_v8 = vpop.f32.mrf.mxu3 }
 0x371   :  { %v1110_v9 = vsel %vm731_vm1, %v7941_v8, -inf }
 0x372   :  { %v1049_v10 = vpop.f32.mrf.mxu1  ;;  %1111 = vmax.xlane.f32.xlu1 %v1110_v9 }
 0x378   :  { %v1108_v13 = vpop.f32.mrf.mxu3 }
 0x37a   :  { %v7945_v14 = vpop.f32.mrf.mxu1 }
 0x37b   :  { %v1166_v16 = vsel %vm731_vm1, %v7945_v14, -inf }
 0x37c   :  { %879 = vrot.lane.b32.xlu2 %v822_v12, %s7382_s18 }
 0x380   :  { %823 = vrot.lane.b32.xlu0 %v822_v12, %s7383_s22 }
 0x382   :  { %v1164_v15 = vpop.f32.mrf.mxu1 }
 0x38b   :  { %935 = vrot.lane.b32.xlu1 %v822_v12, %s7384_s12 }
 0x3a5   :  { %1167 = vmax.xlane.f32.xlu2 %v1166_v16 }
 0x3bf   :  { %v810_v17 = vpop.xlane.xlu0 %809 }
 0x3c0   :  { %v811_v18 = vsub.f32 %v804_v46, %v810_v17 }
 0x3c2   :  { %v812_v19 = vmul.f32 1.442695, %v811_v18 }
 0x3c4   :  { %6387 = vpow2.f32 %v812_v19 }
 0x3c5   :  { %v869_v20 = vpop.xlane.xlu2 %868 }
 0x3c6   :  { %v870_v21 = vsub.f32 %v863_v49, %v869_v20 }
 0x3c8   :  { %v871_v22 = vmul.f32 1.442695, %v870_v21 }
 0x3ca   :  { %v7952_v23 = vpop.eup %6387  ;;  %6389 = vpow2.f32 %v871_v22 }
 0x3cb   :  { %v814_v24 = vsel %vm731_vm1, %v7952_v23, 0.0 }
 0x3cc   :  { %815 = vadd.xlane.f32.xlu0 %v814_v24 }
 0x3cf   :  { %v925_v25 = vpop.xlane.xlu2 %924 }
 0x3d0   :  { %v7956_v26 = vpop.eup %6389  ;;  %v926_v27 = vsub.f32 %v919_v60, %v925_v25 }
 0x3d1   :  { %v873_v28 = vsel %vm731_vm1, %v7956_v26, 0.0 }
 0x3d2   :  { %v927_v29 = vmul.f32 1.442695, %v926_v27  ;;  %874 = vadd.xlane.f32.xlu2 %v873_v28 }
 0x3d4   :  { %6391 = vpow2.f32 %v927_v29 }
 0x3d5   :  { %v997_v30 = vpop.xlane.xlu1 %996 }
 0x3d6   :  { %v998_v31 = vsub.f32 %v991_v63, %v997_v30 }
 0x3d7   :  { %v759_v32 = vpop.xlane.xlu2 %758 }
 0x3d8   :  { %v999_v34 = vmul.f32 1.442695, %v998_v31  ;;  %6393 = vrcp.f32 %v759_v32 }
 0x3da   :  { %v7960_v35 = vpop.eup %6391  ;;  %6395 = vpow2.f32 %v999_v34 }
 0x3db   :  { %v929_v37 = vsel %vm731_vm1, %v7960_v35, 0.0 }
 0x3dc   :  { %930 = vadd.xlane.f32.xlu1 %v929_v37 }
 0x3de   :  { %v6394_v38 = vpop.eup %6393 }
 0x3df   :  { %v1053_v40 = vpop.xlane.xlu0 %1052  ;;  %v880_v41 = vpop.permute.xlu2 %879  ;;  %v761_v42 = vmul.f32 %v6394_v38, %v6386_v62 }
 0x3e0   :  { %v7965_v43 = vpop.eup %6395  ;;  %v1054_v44 = vsub.f32 %v1047_v6, %v1053_v40  ;;  %v885_v45 = vsel %vm766_vm2, %v880_v41, 0 }
 0x3e1   :  { %894 = vmatpush.bf16.msra.mxu0 %v885_v45  ;;  %v762_v46 = vpack.c.bf16 %v761_v42, %v761_v42  ;;  %v1001_v49 = vsel %vm731_vm1, %v7965_v43, 0.0 }
 0x3e2   :  { %v1055_v47 = vmul.f32 1.442695, %v1054_v44 }
 0x3e3   :  { %5645 = vmatmul.msk.bf16.vlgmr.msrb.gmra.mxu0 %vm731_vm1, %v762_v46 }
 0x3e4   :  { %6397 = vpow2.f32 %v1055_v47  ;;  %1002 = vadd.xlane.f32.xlu1 %v1001_v49 }
 0x3e5   :  { %1020 = vmatpush.bf16.msrb.mxu0 %v1011_v48  ;;  %v1112_v51 = vpop.xlane.xlu1 %1111 }
 0x3e6   :  { %v1113_v52 = vsub.f32 %v7941_v8, %v1112_v51 }
 0x3e8   :  { %v1114_v53 = vmul.f32 1.442695, %v1113_v52 }
 0x3ea   :  { %v6398_v55 = vpop.eup %6397  ;;  %6399 = vpow2.f32 %v1114_v53  ;;  %1066 = vrot.lane.b32.xlu2 %v1065_v54, %s7383_s22 }
 0x3eb   :  { %v1057_v56 = vsel %vm731_vm1, %v6398_v55, 0.0 }
 0x3ec   :  { %1058 = vadd.xlane.f32.xlu0 %v1057_v56 }
 0x3f0   :  { %v6400_v57 = vpop.eup %6399 }
 0x3f1   :  { %v1116_v60 = vsel %vm731_vm1, %v6400_v57, 0.0 }
 0x3f2   :  { %v824_v58 = vpop.permute.xlu0 %823 }
 0x3f3   :  { %v829_v59 = vsel %vm766_vm2, %v824_v58, 0 }
 0x3f4   :  { %838 = vmatpush.bf16.msrb.mxu2 %v829_v59  ;;  %1117 = vadd.xlane.f32.xlu0 %v1116_v60  ;;  %v6089_v59 = vld [vmem:[%s8965_s3 + $0x8] sm:$0xff]  ;;  %v6088_v60 = vld [vmem:[%s8965_s3] sm:$0xff] }
 0x3f5   :  { %1239 = vmatpush.bf16.msra.mxu3 %v6089_v59 }
 0x3f9   :  { %1240 = vmatpush.bf16.msra.mxu3 %v6088_v60 }
 0x3fd   :  { %1122 = vrot.lane.b32.xlu1 %v1065_v54, %s7382_s18  ;;  %v936_v61 = vpop.permute.xlu1 %935 }
 0x3fe   :  { %v941_v62 = vsel %vm766_vm2, %v936_v61, 0 }
 0x3ff   :  { %950 = vmatpush.bf16.msra.mxu2 %v941_v62 }
 0x408   :  { %1178 = vrot.lane.b32.xlu0 %v1065_v54, %s7384_s12 }
 0x418   :  { %v1168_v63 = vpop.xlane.xlu2 %1167 }
 0x419   :  { %v1169_v0 = vsub.f32 %v7945_v14, %v1168_v63 }
 0x41b   :  { %v1170_v1 = vmul.f32 1.442695, %v1169_v0 }
 0x41d   :  { %6401 = vpow2.f32 %v1170_v1 }
 0x423   :  { %v6402_v2 = vpop.eup %6401 }
 0x424   :  { %v1172_v3 = vsel %vm731_vm1, %v6402_v2, 0.0 }
 0x425   :  { %1173 = vadd.xlane.f32.xlu2 %v1172_v3 }
 0x43f   :  { %v816_v6 = vpop.xlane.xlu0 %815 }
 0x440   :  { %6403 = vrcp.f32 %v816_v6 }
 0x445   :  { %v875_v7 = vpop.xlane.xlu2 %874 }
 0x446   :  { %v6404_v8 = vpop.eup %6403  ;;  %6405 = vrcp.f32 %v875_v7 }
 0x447   :  { %v818_v9 = vmul.f32 %v6404_v8, %v7952_v23 }
 0x449   :  { %v819_v10 = vpack.c.bf16 %v818_v9, %v818_v9 }
 0x44b   :  { %5647 = vmatmul.msk.bf16.vlgmr.msrb.gmra.mxu2 %vm731_vm1, %v819_v10 }
 0x44c   :  { %v6406_v11 = vpop.eup %6405 }
 0x44d   :  { %v877_v12 = vmul.f32 %v6406_v11, %v7956_v26  ;;  %v1067_v13 = vpop.permute.xlu2 %1066 }
 0x44e   :  { %v1072_v14 = vsel %vm766_vm2, %v1067_v13, 0 }
 0x44f   :  { %v878_v15 = vpack.c.bf16 %v877_v12, %v877_v12  ;;  %1081 = vmatpush.bf16.msrb.mxu2 %v1072_v14  ;;  %v931_v16 = vpop.xlane.xlu1 %930 }
 0x450   :  { %6407 = vrcp.f32 %v931_v16 }
 0x451   :  { %5649 = vmatmul.msk.bf16.vlgmr.msra.gmra.mxu0 %vm731_vm1, %v878_v15  ;;  %v6332_v15 = vld [vmem:[%s8966_s28] ss:$0 sm:$0xff] }
 0x456   :  { %v6408_v17 = vpop.eup %6407 }
 0x457   :  { %v933_v18 = vmul.f32 %v6408_v17, %v7960_v35  ;;  %v1003_v19 = vpop.xlane.xlu1 %1002 }
 0x458   :  { %6409 = vrcp.f32 %v1003_v19 }
 0x459   :  { %v934_v20 = vpack.c.bf16 %v933_v18, %v933_v18 }
 0x45b   :  { %5651 = vmatmul.msk.bf16.vlgmr.msra.gmra.mxu2 %vm731_vm1, %v934_v20 }
 0x45e   :  { %v6410_v21 = vpop.eup %6409 }
 0x45f   :  { %v1005_v22 = vmul.f32 %v6410_v21, %v7965_v43  ;;  %v1059_v23 = vpop.xlane.xlu0 %1058 }
 0x460   :  { %6411 = vrcp.f32 %v1059_v23  ;;  %v779_v24 = vpop.f32.mrf.mxu0 }
 0x461   :  { %v1006_v25 = vpack.c.bf16 %v1005_v22, %v1005_v22 }
 0x463   :  { %5653 = vmatmul.msk.bf16.vlgmr.msrb.gmra.mxu0 %vm731_vm1, %v1006_v25 }
 0x466   :  { %v6412_v26 = vpop.eup %6411 }
 0x467   :  { %v1061_v27 = vmul.f32 %v6412_v26, %v6398_v55  ;;  %v1118_v28 = vpop.xlane.xlu0 %1117 }
 0x468   :  { %6413 = vrcp.f32 %v1118_v28  ;;  %v781_v29 = vpop.f32.mrf.mxu0 }
 0x469   :  { %v1062_v30 = vpack.c.bf16 %v1061_v27, %v1061_v27 }
 0x46b   :  { %5655 = vmatmul.msk.bf16.vlgmr.msrb.gmra.mxu2 %vm731_vm1, %v1062_v30 }
 0x46e   :  { %v6414_v31 = vpop.eup %6413 }
 0x46f   :  { %v1120_v32 = vmul.f32 %v6414_v31, %v6400_v57  ;;  %v1123_v33 = vpop.permute.xlu1 %1122 }
 0x470   :  { %v1128_v34 = vsel %vm766_vm2, %v1123_v33, 0 }
 0x471   :  { %v1121_v35 = vpack.c.bf16 %v1120_v32, %v1120_v32  ;;  %1137 = vmatpush.bf16.msra.mxu0 %v1128_v34 }
 0x474   :  { %5657 = vmatmul.msk.bf16.vlgmr.msra.gmra.mxu0 %vm731_vm1, %v1121_v35 }
 0x47a   :  { %v1179_v36 = vpop.permute.xlu0 %1178 }
 0x47b   :  { %v1184_v37 = vsel %vm766_vm2, %v1179_v36, 0 }
 0x47c   :  { %1193 = vmatpush.bf16.msra.mxu2 %v1184_v37 }
 0x498   :  { %v1174_v38 = vpop.xlane.xlu2 %1173 }
 0x499   :  { %6415 = vrcp.f32 %v1174_v38  ;;  %v6091_v38 = vld [vmem:[%s8967_s23 + $0x8] sm:$0xff] }
 0x49a   :  { %1355 = vmatpush.bf16.msrb.mxu0 %v6091_v38 }
 0x49f   :  { %v6416_v39 = vpop.eup %6415 }
 0x4a0   :  { %v1176_v40 = vmul.f32 %v6416_v39, %v6402_v2 }
 0x4a2   :  { %v1177_v41 = vpack.c.bf16 %v1176_v40, %v1176_v40  ;;  %v6090_v40 = vld [vmem:[%s8967_s23] sm:$0xff] }
 0x4a3   :  { %1356 = vmatpush.bf16.msrb.mxu0 %v6090_v40 }
 0x4a4   :  { %5659 = vmatmul.msk.bf16.vlgmr.msra.gmra.mxu2 %vm731_vm1, %v1177_v41 }
 0x4ce   :  { %v840_v42 = vpop.f32.mrf.mxu2  ;;  %v896_v43 = vpop.f32.mrf.mxu0 }
 0x4d6   :  { %v842_v44 = vpop.f32.mrf.mxu2  ;;  %v898_v45 = vpop.f32.mrf.mxu0 }
 0x4de   :  { %v952_v46 = vpop.f32.mrf.mxu2 }
 0x4e0   :  { %v1022_v47 = vpop.f32.mrf.mxu0 }
 0x4e6   :  { %v954_v48 = vpop.f32.mrf.mxu2 }
 0x4e8   :  { %v1024_v49 = vpop.f32.mrf.mxu0 }
 0x4ee   :  { %v1083_v50 = vpop.f32.mrf.mxu2 }
 0x4ef   :  { %v6239_v51 = vpack.i.bf16 %v1083_v50, %v840_v42 }
 0x4f1   :  { %6240 = vrot.lane.b32.xlu2 %v6239_v51, %s7385_s9  ;;  %v1139_v52 = vpop.f32.mrf.mxu0 }
 0x4f2   :  { %v6244_v53 = vpack.i.bf16 %v1139_v52, %v896_v43 }
 0x4f4   :  { %6245 = vrot.lane.b32.xlu0 %v6244_v53, %s7352_s15 }
 0x4f6   :  { %v1085_v54 = vpop.f32.mrf.mxu2 }
 0x4f9   :  { %v1141_v55 = vpop.f32.mrf.mxu0 }
 0x527   :  { %v1195_v56 = vpop.f32.mrf.mxu2 }
 0x528   :  { %v6249_v57 = vpack.i.bf16 %v1195_v56, %v952_v46 }
 0x52a   :  { %6250 = vrot.lane.b32.xlu0 %v6249_v57, %s7386_s26 }
 0x52f   :  { %v1197_v58 = vpop.f32.mrf.mxu2 }
 0x54b   :  { %v6241_v62 = vpop.permute.xlu2 %6240 }
 0x54c   :  { %v6243_v63 = vunpack.i.h.bf16 %v6241_v62  ;;  %v6242_v0 = vunpack.i.l.bf16 %v6241_v62  ;;  %v6333_v62 = vld [vmem:[%s8968_s29] ss:$0 sm:$0xff] }
 0x54e   :  { %v968_v6 = vsel %vm731_vm1, %v779_v24, %v6242_v0  ;;  %v1211_v7 = vsel %vm731_vm1, %v1022_v47, %v6243_v63 }
 0x566   :  { %v6246_v61 = vpop.permute.xlu0 %6245 }
 0x567   :  { %v6248_v1 = vunpack.i.h.bf16 %v6246_v61  ;;  %v6247_v2 = vunpack.i.l.bf16 %v6246_v61 }
 0x569   :  { %v1212_v10 = vsel %vm969_vm3, %v1211_v7, %v6248_v1  ;;  %v970_v11 = vsel %vm969_vm3, %v968_v6, %v6247_v2  ;;  %v6334_v7 = vld [vmem:[%s8969_s1] ss:$0 sm:$0xff] }
 0x59c   :  { %v6251_v3 = vpop.permute.xlu0 %6250 }
 0x59d   :  { %v6253_v8 = vunpack.i.h.bf16 %v6251_v3  ;;  %v6252_v9 = vunpack.i.l.bf16 %v6251_v3 }
 0x59f   :  { %v972_v12 = vsel %vm971_vm4, %v970_v11, %v6252_v9  ;;  %v1213_v13 = vsel %vm971_vm4, %v1212_v10, %v6253_v8 }
 0x5a0   :  { %v1214_v14 = vpack.c.bf16 %v1213_v13, %v972_v12  ;;  %v6095_v12 = vld [vmem:[%s8970_s25 + $0x18] sm:$0xff]  ;;  %v6094_v13 = vld [vmem:[%s8970_s25 + $0x10] sm:$0xff] }
 0x5a1   :  { %1401 = vmatpush.bf16.msrb.mxu1 %v6095_v12 }
 0x5a2   :  { %5668 = vmatmul.msk.bf16.vlgmr.msra.gmra.mxu3 %vm652_vm0, %v1214_v14  ;;  %v6093_v14 = vld [vmem:[%s8970_s25 + $0x8] sm:$0xff] }
 0x5a5   :  { %1402 = vmatpush.bf16.msrb.mxu1 %v6094_v13 }
 0x5a9   :  { %1403 = vmatpush.bf16.msrb.mxu1 %v6093_v14  ;;  %v6338_v14 = vld [vmem:[%s8973_s19] ss:$0 sm:$0xff] }
 0x625   :  { %v1242_v16 = vpop.f32.mrf.mxu3 }
 0x626   :  { %v1243_v17 = vadd.f32 %v6332_v15, %v1242_v16 }
 0x628   :  { %v1249_v18 = vadd.f32 %v1243_v17, %v7887_v4  ;;  %v7387_v4 = vmov 32.0   ;;  %v6335_v17 = vld [vmem:[%s8971_s10] ss:$0 sm:$0xff] }
 0x629   :  { %6417 = vrcp.f32 %v7387_v4 }
 0x62a   :  { %v1251_v19 = vsel %vm652_vm0, %v1249_v18, 0.0  ;;  %v1266_v20 = vmul.f32 %v1249_v18, %v1249_v18 }
 0x62b   :  { %1252 = vadd.xlane.f32.xlu1 %v1251_v19 }
 0x62c   :  { %v1268_v21 = vsel %vm652_vm0, %v1266_v20, 0.0 }
 0x62d   :  { %v1244_v22 = vpop.f32.mrf.mxu3  ;;  %1269 = vadd.xlane.f32.xlu2 %v1268_v21 }
 0x62e   :  { %v1245_v23 = vadd.f32 %v6332_v15, %v1244_v22  ;;  %v6092_v15 = vld [vmem:[%s8970_s25] sm:$0xff] }
 0x62f   :  { %v6418_v28 = vpop.eup %6417  ;;  %1404 = vmatpush.bf16.msrb.mxu1 %v6092_v15 }
 0x630   :  { %v1250_v24 = vadd.f32 %v1245_v23, %v7890_v5  ;;  %v1258_v29 = vmul.f32 32.0, %v6418_v28  ;;  %vm1262_vm5 = vweird.f32 %v6418_v28 }
 0x632   :  { %v1254_v25 = vsel %vm652_vm0, %v1250_v24, 0.0  ;;  %v1267_v26 = vmul.f32 %v1250_v24, %v1250_v24  ;;  %v1259_v30 = vsub.f32 1.0, %v1258_v29 }
 0x633   :  { %1255 = vadd.xlane.f32.xlu0 %v1254_v25 }
 0x634   :  { %v1271_v27 = vsel %vm652_vm0, %v1267_v26, 0.0  ;;  %v1260_v31 = vmul.f32 %v6418_v28, %v1259_v30 }
 0x635   :  { %1272 = vadd.xlane.f32.xlu1 %v1271_v27 }
 0x636   :  { %v1261_v32 = vadd.f32 %v6418_v28, %v1260_v31 }
 0x638   :  { %v8015_v33 = vsel %vm1262_vm5, %v6418_v28, %v1261_v32 }
 0x69e   :  { %v1253_v5 = vpop.xlane.xlu1 %1252 }
 0x69f   :  { %v1264_v34 = vmul.f32 %v8015_v33, %v1253_v5 }
 0x6a0   :  { %v1270_v35 = vpop.xlane.xlu2 %1269 }
 0x6a1   :  { %v1276_v36 = vmul.f32 %v1264_v34, %v1264_v34  ;;  %v1274_v37 = vmul.f32 %v1270_v35, %v8015_v33  ;;  %v1302_v60 = vsub.f32 %v1249_v18, %v1264_v34 }
 0x6a3   :  { %v1278_v39 = vsub.f32 %v1274_v37, %v1276_v36 }
 0x6a5   :  { %v1280_v41 = vadd.f32 1e-05, %v1278_v39 }
 0x6a6   :  { %v1256_v42 = vpop.xlane.xlu0 %1255 }
 0x6a7   :  { %6419 = vrsqrt.f32 %v1280_v41  ;;  %v1265_v43 = vmul.f32 %v8015_v33, %v1256_v42  ;;  %vm1288_vm7 = vweird.f32 %v1280_v41  ;;  %v6099_v42 = vld [vmem:[%s8959_s16 + $0x18] sm:$0xff] }
 0x6a8   :  { %v1273_v44 = vpop.xlane.xlu1 %1272  ;;  %1555 = vmatpush.bf16.msrb.mxu3 %v6099_v42 }
 0x6a9   :  { %v1277_v45 = vmul.f32 %v1265_v43, %v1265_v43  ;;  %v1275_v46 = vmul.f32 %v1273_v44, %v8015_v33  ;;  %v1303_v1 = vsub.f32 %v1250_v24, %v1265_v43  ;;  %v6336_v24 = vld [vmem:[#allocation2] ss:$0 sm:$0xff]  ;;  %v6101_v43 = vld [vmem:[%s8963_s13 + $0x18] sm:$0xff] }
 0x6aa   :  { %1584 = vmatpush.bf16.msra.mxu0 %v6101_v43 }
 0x6ab   :  { %v1279_v47 = vsub.f32 %v1275_v46, %v1277_v45  ;;  %v6096_v45 = vld [vmem:[%s8958_s24 + $0x10] sm:$0xff] }
 0x6ac   :  { %v6098_v46 = vld [vmem:[%s8959_s16 + $0x10] sm:$0xff] }
 0x6ad   :  { %v6420_v48 = vpop.eup %6419  ;;  %v1281_v49 = vadd.f32 1e-05, %v1279_v47  ;;  %v6100_v47 = vld [vmem:[%s8963_s13 + $0x10] sm:$0xff]  ;;  %1556 = vmatpush.bf16.msrb.mxu3 %v6098_v46 }
 0x6ae   :  { %v1283_v50 = vmul.f32 %v6420_v48, %v1280_v41  ;;  %vm1289_vm6 = vweird.f32 %v6420_v48  ;;  %v6097_v41 = vld [vmem:[%s8958_s24 + $0x18] sm:$0xff]  ;;  %1585 = vmatpush.bf16.msra.mxu0 %v6100_v47 }
 0x6af   :  { %6421 = vrsqrt.f32 %v1281_v49  ;;  %vm1290_vm8 = vmor %vm1288_vm7, %vm1289_vm6  ;;  %vm1298_vm10 = vweird.f32 %v1281_v49  ;;  %1526 = vmatpush.bf16.msrb.mxu2 %v6097_v41 }
 0x6b0   :  { %v1284_v51 = vmul.f32 %v6420_v48, %v1283_v50 }
 0x6b2   :  { %v1285_v52 = vmul.f32 0.5, %v1284_v51 }
 0x6b3   :  { %1527 = vmatpush.bf16.msrb.mxu2 %v6096_v45 }
 0x6b4   :  { %v1286_v53 = vsub.f32 1.5, %v1285_v52 }
 0x6b5   :  { %v6422_v54 = vpop.eup %6421 }
 0x6b6   :  { %v1287_v55 = vmul.f32 %v6420_v48, %v1286_v53  ;;  %v1293_v56 = vmul.f32 %v6422_v54, %v1281_v49  ;;  %vm1299_vm9 = vweird.f32 %v6422_v54 }
 0x6b7   :  { %vm1300_vm11 = vmor %vm1298_vm10, %vm1299_vm9 }
 0x6b8   :  { %v1294_v57 = vmul.f32 %v6422_v54, %v1293_v56  ;;  %v1291_v58 = vsel %vm1290_vm8, %v6420_v48, %v1287_v55 }
 0x6b9   :  { %v1304_v63 = vmul.f32 %v1302_v60, %v1291_v58 }
 0x6ba   :  { %v1295_v59 = vmul.f32 0.5, %v1294_v57 }
 0x6bb   :  { %v1309_v3 = vmul.f32 %v6333_v62, %v1304_v63 }
 0x6bc   :  { %v1296_v61 = vsub.f32 1.5, %v1295_v59 }
 0x6bd   :  { %v1314_v9 = vadd.f32 %v6334_v7, %v1309_v3 }
 0x6be   :  { %v1297_v0 = vmul.f32 %v6422_v54, %v1296_v61 }
 0x6c0   :  { %v1301_v2 = vsel %vm1300_vm11, %v6422_v54, %v1297_v0 }
 0x6c1   :  { %v1305_v6 = vmul.f32 %v1303_v1, %v1301_v2 }
 0x6c3   :  { %v1310_v8 = vmul.f32 %v6333_v62, %v1305_v6 }
 0x6c5   :  { %v1315_v10 = vadd.f32 %v6334_v7, %v1310_v8  ;;  %v6337_v7 = vld [vmem:[%s8972_s20] ss:$0 sm:$0xff] }
 0x6c7   :  { %v1330_v11 = vpack.c.bf16 %v1315_v10, %v1314_v9 }
 0x6c9   :  { %5677 = vmatmul.msk.bf16.vlgmr.msrb.gmra.mxu0 %vm652_vm0, %v1330_v11 }
 0x746   :  { %v1358_v16 = vpop.f32.mrf.mxu0 }
 0x747   :  { %v1359_v18 = vadd.f32 %v6335_v17, %v1358_v16 }
 0x749   :  { %v1363_v21 = vmax.f32 %v1359_v18, 0.0 }
 0x74e   :  { %v1360_v19 = vpop.f32.mrf.mxu0 }
 0x74f   :  { %v1361_v20 = vadd.f32 %v6335_v17, %v1360_v19  ;;  %v8058_v19 = vld [vmem:[%s8964_s6 + $0x1] ss:$0 sm:$0xff] }
 0x751   :  { %v1364_v22 = vmax.f32 %v1361_v20, 0.0 }
 0x753   :  { %v1365_v23 = vpack.c.bf16 %v1364_v22, %v1363_v21  ;;  %v6340_v22 = vld [vmem:[%s8961_s2 + $0x1] ss:$0 sm:$0xff] }
 0x755   :  { %5694 = vmatmul.msk.bf16.vlgmr.msrb.gmra.mxu1 %vm1393_vm12, %v1365_v23  ;;  %v6341_v23 = vld [vmem:[%s8962_s21 + $0x1] ss:$0 sm:$0xff] }
 0x7d2   :  { %v1406_v25 = vpop.f32.mrf.mxu1 }
 0x7d3   :  { %v1407_v26 = vadd.f32 %v6336_v24, %v1406_v25 }
 0x7d5   :  { %v1413_v27 = vadd.f32 %v1407_v26, %v1314_v9 }
 0x7d7   :  { %v1415_v4 = vsel %vm652_vm0, %v1413_v27, 0.0  ;;  %v1423_v28 = vmul.f32 %v1413_v27, %v1413_v27 }
 0x7d8   :  { %1416 = vadd.xlane.f32.xlu0 %v1415_v4 }
 0x7d9   :  { %v1425_v29 = vsel %vm652_vm0, %v1423_v28, 0.0 }
 0x7da   :  { %v1408_v30 = vpop.f32.mrf.mxu1  ;;  %1426 = vadd.xlane.f32.xlu2 %v1425_v29 }
 0x7db   :  { %v1409_v31 = vadd.f32 %v6336_v24, %v1408_v30 }
 0x7dd   :  { %v1414_v32 = vadd.f32 %v1409_v31, %v1315_v10 }
 0x7df   :  { %v1418_v5 = vsel %vm652_vm0, %v1414_v32, 0.0  ;;  %v1424_v34 = vmul.f32 %v1414_v32, %v1414_v32 }
 0x7e0   :  { %1419 = vadd.xlane.f32.xlu1 %v1418_v5 }
 0x7e1   :  { %v1428_v35 = vsel %vm652_vm0, %v1424_v34, 0.0 }
 0x7e2   :  { %1429 = vadd.xlane.f32.xlu0 %v1428_v35 }
 0x84b   :  { %v1417_v36 = vpop.xlane.xlu0 %1416 }
 0x84c   :  { %v1421_v37 = vmul.f32 %v1417_v36, %v8015_v33 }
 0x84d   :  { %v1427_v38 = vpop.xlane.xlu2 %1426 }
 0x84e   :  { %v1433_v39 = vmul.f32 %v1421_v37, %v1421_v37  ;;  %v1431_v40 = vmul.f32 %v1427_v38, %v8015_v33  ;;  %v1459_v3 = vsub.f32 %v1413_v27, %v1421_v37 }
 0x850   :  { %v1435_v44 = vsub.f32 %v1431_v40, %v1433_v39 }
 0x852   :  { %v1437_v48 = vadd.f32 1e-05, %v1435_v44 }
 0x853   :  { %v1420_v49 = vpop.xlane.xlu1 %1419 }
 0x854   :  { %6423 = vrsqrt.f32 %v1437_v48  ;;  %v1422_v50 = vmul.f32 %v1420_v49, %v8015_v33  ;;  %vm1445_vm14 = vweird.f32 %v1437_v48 }
 0x855   :  { %v1430_v51 = vpop.xlane.xlu0 %1429 }
 0x856   :  { %v1434_v52 = vmul.f32 %v1422_v50, %v1422_v50  ;;  %v1432_v53 = vmul.f32 %v1430_v51, %v8015_v33  ;;  %v1460_v10 = vsub.f32 %v1414_v32, %v1422_v50 }
 0x858   :  { %v1436_v54 = vsub.f32 %v1432_v53, %v1434_v52 }
 0x85a   :  { %v6424_v55 = vpop.eup %6423  ;;  %v1438_v56 = vadd.f32 1e-05, %v1436_v54 }
 0x85b   :  { %v1440_v57 = vmul.f32 %v6424_v55, %v1437_v48  ;;  %vm1446_vm13 = vweird.f32 %v6424_v55 }
 0x85c   :  { %6425 = vrsqrt.f32 %v1438_v56  ;;  %vm1447_vm15 = vmor %vm1445_vm14, %vm1446_vm13  ;;  %vm1455_vm6 = vweird.f32 %v1438_v56 }
 0x85d   :  { %v1441_v58 = vmul.f32 %v6424_v55, %v1440_v57 }
 0x85f   :  { %v1442_v59 = vmul.f32 0.5, %v1441_v58 }
 0x861   :  { %v1443_v60 = vsub.f32 1.5, %v1442_v59 }
 0x862   :  { %v6426_v61 = vpop.eup %6425 }
 0x863   :  { %v1444_v62 = vmul.f32 %v6424_v55, %v1443_v60  ;;  %v1450_v63 = vmul.f32 %v6426_v61, %v1438_v56  ;;  %vm1456_vm5 = vweird.f32 %v6426_v61 }
 0x864   :  { %vm1457_vm7 = vmor %vm1455_vm6, %vm1456_vm5 }
 0x865   :  { %v1451_v0 = vmul.f32 %v6426_v61, %v1450_v63  ;;  %v1448_v1 = vsel %vm1447_vm15, %v6424_v55, %v1444_v62 }
 0x866   :  { %v1461_v8 = vmul.f32 %v1459_v3, %v1448_v1 }
 0x867   :  { %v1452_v2 = vmul.f32 0.5, %v1451_v0 }
 0x868   :  { %v1466_v12 = vmul.f32 %v6337_v7, %v1461_v8 }
 0x869   :  { %v1453_v6 = vsub.f32 1.5, %v1452_v2 }
 0x86a   :  { %v8048_v16 = vadd.f32 %v6338_v14, %v1466_v12 }
 0x86b   :  { %v1454_v9 = vmul.f32 %v6426_v61, %v1453_v6 }
 0x86d   :  { %v1458_v11 = vsel %vm1457_vm7, %v6426_v61, %v1454_v9 }
 0x86e   :  { %v1462_v13 = vmul.f32 %v1460_v10, %v1458_v11 }
 0x870   :  { %v1467_v15 = vmul.f32 %v6337_v7, %v1462_v13 }
 0x872   :  { %v8050_v17 = vadd.f32 %v6338_v14, %v1467_v15 }
 0x874   :  { %v1501_v18 = vpack.c.bf16 %v8050_v17, %v8048_v16 }
 0x876   :  { %5723 = vmatmul.msk.bf16.vlgmr.msrb.gmra.mxu2 %vm652_vm0, %v1501_v18  ;;  %5732 = vmatmul.msk.bf16.vlgmr.msrb.gmra.mxu3 %vm652_vm0, %v1501_v18 }
 0x877   :  { %5741 = vmatmul.msk.bf16.vlgmr.msra.gmra.mxu0 %vm652_vm0, %v1501_v18 }
 0x8f4   :  { %v1587_v20 = vpop.f32.mrf.mxu0 }
 0x8f5   :  { %v1588_v21 = vadd.f32 %v8058_v19, %v1587_v20 }
 0x8f7   :  { %v8063_v24 = vpack.c.bf16 %v1588_v21, %v1588_v21 }
 0x8f9   :  { %v1630_v25 = vsel %vm766_vm2, %v8063_v24, 0  ;;  %v1529_v26 = vpop.f32.mrf.mxu2  ;;  %v1558_v27 = vpop.f32.mrf.mxu3  ;;  %v1683_v20 = vunpack.c.l.b16 %v8063_v24 }
 0x8fa   :  { %v1530_v4 = vadd.f32 %v6340_v22, %v1529_v26  ;;  %v1559_v28 = vadd.f32 %v6341_v23, %v1558_v27  ;;  %1639 = vmatpush.bf16.msra.mxu2 %v1630_v25 }
 0x8fb   :  { %v1684_v25 = vpack.c.b16 %v1683_v20, %v1683_v20 }
 0x8fc   :  { %v1593_v29 = vpack.c.bf16 %v1530_v4, %v1530_v4  ;;  %v1594_v30 = vpack.c.bf16 %v1559_v28, %v1559_v28 }
 0x8fe   :  { %1708 = vrot.lane.b32.xlu0 %v1594_v30, %s7382_s18  ;;  %1649 = vrot.lane.b32.xlu1 %v1594_v30, %s7383_s22  ;;  %v1599_v31 = vsel %vm731_vm1, %v1594_v30, 0 }
 0x8ff   :  { %1646 = vrot.lane.b32.xlu2 %v1593_v29, %s7383_s22  ;;  %1608 = vmatpush.bf16.xpose.msra.mxu1 %v1599_v31 }
 0x901   :  { %v1531_v32 = vpop.f32.mrf.mxu2  ;;  %v1560_v5 = vpop.f32.mrf.mxu3 }
 0x902   :  { %v1532_v34 = vadd.f32 %v6340_v22, %v1531_v32  ;;  %v1561_v35 = vadd.f32 %v6341_v23, %v1560_v5 }
 0x904   :  { %v1834_v36 = vpack.c.bf16 %v1532_v34, %v1532_v34  ;;  %v1835_v37 = vpack.c.bf16 %v1561_v35, %v1561_v35 }
 0x906   :  { %1764 = vrot.lane.b32.xlu1 %v1594_v30, %s7384_s12  ;;  %1706 = vrot.lane.b32.xlu0 %v1593_v29, %s7382_s18  ;;  %v1840_v44 = vsel %vm731_vm1, %v1835_v37, 0 }
 0x907   :  { %1762 = vrot.lane.b32.xlu2 %v1593_v29, %s7384_s12  ;;  %5742 = vmatmul.msk.bf16.vlgmr.msra.gmra.mxu1 %vm731_vm1, %v1593_v29 }
 0x90e   :  { %1890 = vrot.lane.b32.xlu1 %v1835_v37, %s7383_s22  ;;  %1887 = vrot.lane.b32.xlu0 %v1834_v36, %s7383_s22 }
 0x90f   :  { %1949 = vrot.lane.b32.xlu2 %v1835_v37, %s7382_s18 }
 0x916   :  { %2005 = vrot.lane.b32.xlu1 %v1835_v37, %s7384_s12  ;;  %1947 = vrot.lane.b32.xlu0 %v1834_v36, %s7382_s18 }
 0x917   :  { %2003 = vrot.lane.b32.xlu2 %v1834_v36, %s7384_s12 }
 0x959   :  { %v1647_v38 = vpop.permute.xlu2 %1646 }
 0x961   :  { %v1763_v39 = vpop.permute.xlu2 %1762 }
 0x969   :  { %v1950_v45 = vpop.permute.xlu2 %1949 }
 0x96a   :  { %v1955_v48 = vsel %vm731_vm1, %v1950_v45, 0 }
 0x970   :  { %v1709_v40 = vpop.permute.xlu0 %1708  ;;  %v1650_v41 = vpop.permute.xlu1 %1649 }
 0x971   :  { %v1714_v42 = vsel %vm731_vm1, %v1709_v40, 0  ;;  %v1655_v43 = vsel %vm731_vm1, %v1650_v41, 0  ;;  %v2004_v59 = vpop.permute.xlu2 %2003 }
 0x972   :  { %1664 = vmatpush.bf16.xpose.msra.mxu3 %v1655_v43  ;;  %1723 = vmatpush.bf16.xpose.msrb.mxu1 %v1714_v42 }
 0x978   :  { %v1765_v46 = vpop.permute.xlu1 %1764  ;;  %v1707_v47 = vpop.permute.xlu0 %1706 }
 0x979   :  { %v1770_v49 = vsel %vm731_vm1, %v1765_v46, 0  ;;  %5744 = vmatmul.msk.bf16.vlgmr.msra.gmra.mxu3 %vm731_vm1, %v1647_v38  ;;  %5746 = vmatmul.msk.bf16.vlgmr.msrb.gmra.mxu1 %vm731_vm1, %v1707_v47 }
 0x97a   :  { %1849 = vmatpush.bf16.xpose.msra.mxu1 %v1840_v44  ;;  %1779 = vmatpush.bf16.xpose.msrb.mxu3 %v1770_v49 }
 0x980   :  { %v1891_v50 = vpop.permute.xlu1 %1890  ;;  %v1888_v57 = vpop.permute.xlu0 %1887 }
 0x981   :  { %v1896_v51 = vsel %vm731_vm1, %v1891_v50, 0 }
 0x982   :  { %1964 = vmatpush.bf16.xpose.msrb.mxu1 %v1955_v48  ;;  %1905 = vmatpush.bf16.xpose.msra.mxu3 %v1896_v51 }
 0x984   :  { %v1610_v52 = vpop.f32.mrf.mxu1 }
 0x985   :  { %v1614_v53 = vsel %vm731_vm1, %v1610_v52, -inf }
 0x986   :  { %1615 = vmax.xlane.f32.xlu1 %v1614_v53 }
 0x988   :  { %v2006_v54 = vpop.permute.xlu1 %2005  ;;  %v1948_v58 = vpop.permute.xlu0 %1947 }
 0x989   :  { %v2011_v55 = vsel %vm731_vm1, %v2006_v54, 0  ;;  %5748 = vmatmul.msk.bf16.vlgmr.msrb.gmra.mxu3 %vm731_vm1, %v1763_v39  ;;  %5750 = vmatmul.msk.bf16.vlgmr.msra.gmra.mxu1 %vm731_vm1, %v1834_v36 }
 0x98a   :  { %2020 = vmatpush.bf16.xpose.msrb.mxu3 %v2011_v55 }
 0x98c   :  { %v1612_v56 = vpop.f32.mrf.mxu1 }
 0x999   :  { %5752 = vmatmul.msk.bf16.vlgmr.msra.gmra.mxu3 %vm731_vm1, %v1888_v57  ;;  %5754 = vmatmul.msk.bf16.vlgmr.msrb.gmra.mxu1 %vm731_vm1, %v1948_v58  ;;  %v1589_v57 = vpop.f32.mrf.mxu0 }
 0x99a   :  { %v1590_v58 = vadd.f32 %v8058_v19, %v1589_v57 }
 0x9a9   :  { %5756 = vmatmul.msk.bf16.vlgmr.msrb.gmra.mxu3 %vm731_vm1, %v2004_v59 }
 0x9f6   :  { %v1725_v60 = vpop.f32.mrf.mxu1 }
 0x9f7   :  { %v1729_v61 = vsel %vm731_vm1, %v1725_v60, -inf }
 0x9f8   :  { %1730 = vmax.xlane.f32.xlu2 %v1729_v61  ;;  %v1833_v61 = vpack.c.bf16 %v1590_v58, %v1590_v58 }
 0x9f9   :  { %v1616_v62 = vpop.xlane.xlu1 %1615 }
 0x9fa   :  { %v1617_v63 = vsub.f32 %v1610_v52, %v1616_v62 }
 0x9fc   :  { %v1618_v0 = vmul.f32 1.442695, %v1617_v63  ;;  %v1666_v1 = vpop.f32.mrf.mxu3  ;;  %v1924_v63 = vunpack.c.l.b16 %v1833_v61 }
 0x9fd   :  { %v1670_v2 = vsel %vm731_vm1, %v1666_v1, -inf }
 0x9fe   :  { %6427 = vpow2.f32 %v1618_v0  ;;  %1671 = vmax.xlane.f32.xlu0 %v1670_v2  ;;  %v1727_v3 = vpop.f32.mrf.mxu1 }
 0xa04   :  { %v6428_v6 = vpop.eup %6427  ;;  %v1668_v7 = vpop.f32.mrf.mxu3 }
 0xa05   :  { %v1620_v8 = vsel %vm731_vm1, %v6428_v6, 0.0  ;;  %v1925_v7 = vpack.c.b16 %v1924_v63, %v1924_v63 }
 0xa06   :  { %1621 = vadd.xlane.f32.xlu0 %v1620_v8  ;;  %v1851_v9 = vpop.f32.mrf.mxu1 }
 0xa07   :  { %v1855_v12 = vsel %vm731_vm1, %v1851_v9, -inf }
 0xa0c   :  { %v1781_v10 = vpop.f32.mrf.mxu3 }
 0xa0d   :  { %v1785_v11 = vsel %vm731_vm1, %v1781_v10, -inf }
 0xa0e   :  { %1786 = vmax.xlane.f32.xlu1 %v1785_v11  ;;  %1856 = vmax.xlane.f32.xlu0 %v1855_v12  ;;  %v1853_v13 = vpop.f32.mrf.mxu1 }
 0xa14   :  { %v1783_v14 = vpop.f32.mrf.mxu3 }
 0xa16   :  { %v8101_v15 = vpop.f32.mrf.mxu1 }
 0xa17   :  { %v1970_v18 = vsel %vm731_vm1, %v8101_v15, -inf }
 0xa18   :  { %1971 = vmax.xlane.f32.xlu1 %v1970_v18 }
 0xa1c   :  { %v1907_v21 = vpop.f32.mrf.mxu3 }
 0xa1d   :  { %v1911_v22 = vsel %vm731_vm1, %v1907_v21, -inf }
 0xa1e   :  { %1912 = vmax.xlane.f32.xlu2 %v1911_v22  ;;  %v1968_v23 = vpop.f32.mrf.mxu1 }
 0xa22   :  { %1685 = vrot.lane.b32.xlu0 %v1684_v25, %s7383_s22 }
 0xa24   :  { %v1909_v26 = vpop.f32.mrf.mxu3 }
 0xa2c   :  { %v2022_v27 = vpop.f32.mrf.mxu3 }
 0xa2d   :  { %v2026_v4 = vsel %vm731_vm1, %v2022_v27, -inf }
 0xa2e   :  { %2027 = vmax.xlane.f32.xlu2 %v2026_v4 }
 0xa31   :  { %1797 = vrot.lane.b32.xlu1 %v1684_v25, %s7384_s12 }
 0xa34   :  { %v2024_v28 = vpop.f32.mrf.mxu3 }
 0xa46   :  { %1741 = vrot.lane.b32.xlu2 %v1684_v25, %s7382_s18 }
 0xa6b   :  { %v1731_v29 = vpop.xlane.xlu2 %1730 }
 0xa6c   :  { %v1732_v24 = vsub.f32 %v1725_v60, %v1731_v29 }
 0xa6e   :  { %v1733_v30 = vmul.f32 1.442695, %v1732_v24 }
 0xa70   :  { %6429 = vpow2.f32 %v1733_v30 }
 0xa71   :  { %v1672_v31 = vpop.xlane.xlu0 %1671 }
 0xa72   :  { %v1673_v32 = vsub.f32 %v1666_v1, %v1672_v31 }
 0xa74   :  { %v1674_v5 = vmul.f32 1.442695, %v1673_v32 }
 0xa76   :  { %v8111_v34 = vpop.eup %6429  ;;  %6431 = vpow2.f32 %v1674_v5 }
 0xa77   :  { %v1735_v35 = vsel %vm731_vm1, %v8111_v34, 0.0 }
 0xa78   :  { %1736 = vadd.xlane.f32.xlu2 %v1735_v35 }
 0xa79   :  { %v1622_v36 = vpop.xlane.xlu0 %1621 }
 0xa7a   :  { %6433 = vrcp.f32 %v1622_v36 }
 0xa7c   :  { %v8115_v37 = vpop.eup %6431 }
 0xa7d   :  { %v1676_v38 = vsel %vm731_vm1, %v8115_v37, 0.0 }
 0xa7e   :  { %1677 = vadd.xlane.f32.xlu1 %v1676_v38 }
 0xa80   :  { %v6434_v39 = vpop.eup %6433 }
 0xa81   :  { %v1624_v40 = vmul.f32 %v6434_v39, %v6428_v6  ;;  %v1787_v41 = vpop.xlane.xlu1 %1786  ;;  %v1857_v42 = vpop.xlane.xlu0 %1856 }
 0xa82   :  { %v1788_v43 = vsub.f32 %v1781_v10, %v1787_v41  ;;  %v1858_v44 = vsub.f32 %v1851_v9, %v1857_v42  ;;  %v1871_v9 = vsel %vm766_vm2, %v1833_v61, 0 }
 0xa83   :  { %v1625_v45 = vpack.c.bf16 %v1624_v40, %v1624_v40 }
 0xa84   :  { %v1789_v46 = vmul.f32 1.442695, %v1788_v43  ;;  %v1859_v47 = vmul.f32 1.442695, %v1858_v44 }
 0xa85   :  { %5743 = vmatmul.msk.bf16.vlgmr.msra.gmra.mxu2 %vm731_vm1, %v1625_v45 }
 0xa86   :  { %6435 = vpow2.f32 %v1789_v46 }
 0xa87   :  { %6437 = vpow2.f32 %v1859_v47 }
 0xa8b   :  { %v1972_v59 = vpop.xlane.xlu1 %1971 }
 0xa8c   :  { %v8120_v48 = vpop.eup %6435  ;;  %v1973_v12 = vsub.f32 %v8101_v15, %v1972_v59 }
 0xa8d   :  { %v8122_v49 = vpop.eup %6437  ;;  %v1791_v50 = vsel %vm731_vm1, %v8120_v48, 0.0 }
 0xa8e   :  { %v1861_v51 = vsel %vm731_vm1, %v8122_v49, 0.0  ;;  %1792 = vadd.xlane.f32.xlu1 %v1791_v50  ;;  %v1974_v13 = vmul.f32 1.442695, %v1973_v12  ;;  %v6110_v12 = vld [vmem:[%s8974_s7] sm:$0xff] }
 0xa8f   :  { %1862 = vadd.xlane.f32.xlu0 %v1861_v51 }
 0xa91   :  { %v1913_v52 = vpop.xlane.xlu2 %1912 }
 0xa92   :  { %v1914_v53 = vsub.f32 %v1907_v21, %v1913_v52 }
 0xa94   :  { %v1915_v54 = vmul.f32 1.442695, %v1914_v53  ;;  %v1686_v55 = vpop.permute.xlu0 %1685 }
 0xa95   :  { %v1691_v56 = vsel %vm766_vm2, %v1686_v55, 0 }
 0xa96   :  { %6439 = vpow2.f32 %v1915_v54  ;;  %1700 = vmatpush.bf16.msrb.mxu0 %v1691_v56 }
 0xa9c   :  { %v6440_v60 = vpop.eup %6439 }
 0xa9d   :  { %v1917_v62 = vsel %vm731_vm1, %v6440_v60, 0.0 }
 0xa9e   :  { %1918 = vadd.xlane.f32.xlu2 %v1917_v62 }
 0xaa1   :  { %v2028_v0 = vpop.xlane.xlu2 %2027 }
 0xaa2   :  { %v2029_v1 = vsub.f32 %v2022_v27, %v2028_v0 }
 0xaa3   :  { %v1798_v2 = vpop.permute.xlu1 %1797 }
 0xaa4   :  { %v2030_v3 = vmul.f32 1.442695, %v2029_v1  ;;  %v1803_v6 = vsel %vm766_vm2, %v1798_v2, 0 }
 0xaa5   :  { %1812 = vmatpush.bf16.msra.mxu0 %v1803_v6 }
 0xaa6   :  { %6441 = vpow2.f32 %v2030_v3 }
 0xaa7   :  { %1926 = vrot.lane.b32.xlu1 %v1925_v7, %s7383_s22  ;;  %6443 = vpow2.f32 %v1974_v13  ;;  %v8164_v13 = vld [vmem:[%s8975_s0] sm:$0xff] }
 0xaa9   :  { %v1742_v8 = vpop.permute.xlu2 %1741 }
 0xaaa   :  { %v1747_v19 = vsel %vm766_vm2, %v1742_v8, 0 }
 0xaab   :  { %1756 = vmatpush.bf16.msrb.mxu2 %v1747_v19  ;;  %v6103_v19 = vld [vmem:[%s8965_s3 + $0x18] sm:$0xff] }
 0xaac   :  { %v6442_v10 = vpop.eup %6441  ;;  %2099 = vmatpush.bf16.msra.mxu1 %v6103_v19 }
 0xaad   :  { %v2032_v11 = vsel %vm731_vm1, %v6442_v10, 0.0  ;;  %v6444_v14 = vpop.eup %6443 }
 0xaae   :  { %2033 = vadd.xlane.f32.xlu0 %v2032_v11  ;;  %v1976_v18 = vsel %vm731_vm1, %v6444_v14, 0.0  ;;  %v6113_v11 = vld [vmem:[#allocation6 + $0x8] sm:$0xff] }
 0xaaf   :  { %1880 = vmatpush.bf16.msra.mxu2 %v1871_v9  ;;  %v6102_v9 = vld [vmem:[%s8965_s3 + $0x10] sm:$0xff] }
 0xab0   :  { %2100 = vmatpush.bf16.msra.mxu1 %v6102_v9 }
 0xab4   :  { %2469 = vmatpush.bf16.msrb.mxu1 %v6113_v11 }
 0xab6   :  { %2038 = vrot.lane.b32.xlu2 %v1925_v7, %s7384_s12 }
 0xac2   :  { %1982 = vrot.lane.b32.xlu0 %v1925_v7, %s7382_s18 }
 0xad1   :  { %1977 = vadd.xlane.f32.xlu1 %v1976_v18  ;;  %v6112_v18 = vld [vmem:[#allocation6] sm:$0xff] }
 0xad2   :  { %2470 = vmatpush.bf16.msrb.mxu1 %v6112_v18 }
 0xaeb   :  { %v1737_v20 = vpop.xlane.xlu2 %1736 }
 0xaec   :  { %6445 = vrcp.f32 %v1737_v20 }
 0xaf1   :  { %v1678_v21 = vpop.xlane.xlu1 %1677 }
 0xaf2   :  { %v6446_v22 = vpop.eup %6445  ;;  %6447 = vrcp.f32 %v1678_v21 }
 0xaf3   :  { %v1739_v23 = vmul.f32 %v6446_v22, %v8111_v34 }
 0xaf5   :  { %v1740_v25 = vpack.c.bf16 %v1739_v23, %v1739_v23 }
 0xaf7   :  { %5747 = vmatmul.msk.bf16.vlgmr.msrb.gmra.mxu2 %vm731_vm1, %v1740_v25 }
 0xaf8   :  { %v6448_v26 = vpop.eup %6447 }
 0xaf9   :  { %v1680_v15 = vmul.f32 %v6448_v26, %v8115_v37 }
 0xafb   :  { %v1681_v27 = vpack.c.bf16 %v1680_v15, %v1680_v15 }
 0xafd   :  { %5745 = vmatmul.msk.bf16.vlgmr.msrb.gmra.mxu0 %vm731_vm1, %v1681_v27 }
 0xb01   :  { %v1793_v4 = vpop.xlane.xlu1 %1792 }
 0xb02   :  { %v1863_v28 = vpop.xlane.xlu0 %1862  ;;  %6449 = vrcp.f32 %v1793_v4 }
 0xb03   :  { %6451 = vrcp.f32 %v1863_v28 }
 0xb08   :  { %v6450_v29 = vpop.eup %6449  ;;  %v8144_v24 = vpop.f32.mrf.mxu2 }
 0xb09   :  { %v6452_v30 = vpop.eup %6451  ;;  %v1795_v31 = vmul.f32 %v6450_v29, %v8120_v48 }
 0xb0a   :  { %v1865_v32 = vmul.f32 %v6452_v30, %v8122_v49 }
 0xb0b   :  { %v1796_v5 = vpack.c.bf16 %v1795_v31, %v1795_v31 }
 0xb0c   :  { %v1866_v34 = vpack.c.bf16 %v1865_v32, %v1865_v32 }
 0xb0d   :  { %5749 = vmatmul.msk.bf16.vlgmr.msra.gmra.mxu0 %vm731_vm1, %v1796_v5 }
 0xb0e   :  { %5751 = vmatmul.msk.bf16.vlgmr.msra.gmra.mxu2 %vm731_vm1, %v1866_v34 }
 0xb10   :  { %v1643_v35 = vpop.f32.mrf.mxu2 }
 0xb11   :  { %v1919_v36 = vpop.xlane.xlu2 %1918 }
 0xb12   :  { %6453 = vrcp.f32 %v1919_v36  ;;  %v6342_v36 = vld [vmem:[%s8966_s28 + $0x1] ss:$0 sm:$0xff] }
 0xb18   :  { %v6454_v37 = vpop.eup %6453 }
 0xb19   :  { %v1921_v38 = vmul.f32 %v6454_v37, %v6440_v60  ;;  %v2039_v39 = vpop.permute.xlu2 %2038  ;;  %v1927_v40 = vpop.permute.xlu1 %1926 }
 0xb1a   :  { %v2044_v41 = vsel %vm766_vm2, %v2039_v39, 0  ;;  %v1932_v42 = vsel %vm766_vm2, %v1927_v40, 0 }
 0xb1b   :  { %v1922_v43 = vpack.c.bf16 %v1921_v38, %v1921_v38  ;;  %1941 = vmatpush.bf16.msrb.mxu0 %v1932_v42 }
 0xb1e   :  { %5753 = vmatmul.msk.bf16.vlgmr.msrb.gmra.mxu0 %vm731_vm1, %v1922_v43 }
 0xb1f   :  { %2053 = vmatpush.bf16.msra.mxu0 %v2044_v41 }
 0xb21   :  { %v2034_v44 = vpop.xlane.xlu0 %2033 }
 0xb22   :  { %6455 = vrcp.f32 %v2034_v44 }
 0xb28   :  { %v6456_v45 = vpop.eup %6455 }
 0xb29   :  { %v2036_v46 = vmul.f32 %v6456_v45, %v6442_v10  ;;  %v6111_v10 = vld [vmem:[%s8974_s7 + $0x8] sm:$0xff] }
 0xb2a   :  { %2440 = vmatpush.bf16.msrb.mxu0 %v6111_v10  ;;  %v6104_v10 = vld [vmem:[%s8967_s23 + $0x10] sm:$0xff] }
 0xb2b   :  { %v2037_v47 = vpack.c.bf16 %v2036_v46, %v2036_v46 }
 0xb2e   :  { %5757 = vmatmul.msk.bf16.vlgmr.msra.gmra.mxu0 %vm731_vm1, %v2037_v47 }
 0xb2f   :  { %2441 = vmatpush.bf16.msrb.mxu0 %v6110_v12 }
 0xb34   :  { %v1983_v48 = vpop.permute.xlu0 %1982 }
 0xb35   :  { %v1988_v49 = vsel %vm766_vm2, %v1983_v48, 0  ;;  %v6344_v48 = vld [vmem:[#allocation7] ss:$0 sm:$0xff] }
 0xb36   :  { %1997 = vmatpush.bf16.msrb.mxu2 %v1988_v49  ;;  %v6343_v49 = vld [vmem:[#allocation4] ss:$0 sm:$0xff] }
 0xb44   :  { %v1978_v50 = vpop.xlane.xlu1 %1977 }
 0xb45   :  { %6457 = vrcp.f32 %v1978_v50 }
 0xb4b   :  { %v6458_v51 = vpop.eup %6457 }
 0xb4c   :  { %v1980_v52 = vmul.f32 %v6458_v51, %v6444_v14  ;;  %v8167_v14 = vld [vmem:[%s8975_s0 + $0x8] sm:$0xff] }
 0xb4d   :  { %v8171_v20 = vpack.c.bf16 %v8167_v14, %v8164_v13 }
 0xb4e   :  { %v1981_v53 = vpack.c.bf16 %v1980_v52, %v1980_v52 }
 0xb4f   :  { %5818 = vmatmul.msk.bf16.vlgmr.msrb.gmra.mxu0 %vm652_vm0, %v8171_v20 }
 0xb50   :  { %5755 = vmatmul.msk.bf16.vlgmr.msrb.gmra.mxu2 %vm731_vm1, %v1981_v53 }
 0xb7a   :  { %v1702_v54 = vpop.f32.mrf.mxu0  ;;  %v1758_v55 = vpop.f32.mrf.mxu2 }
 0xb82   :  { %v1704_v56 = vpop.f32.mrf.mxu0  ;;  %v1760_v57 = vpop.f32.mrf.mxu2 }
 0xb83   :  { %v6109_v56 = vld [vmem:[%s8970_s25 + $0x38] sm:$0xff] }
 0xb84   :  { %2259 = vmatpush.bf16.msra.mxu3 %v6109_v56 }
 0xb8a   :  { %v1814_v58 = vpop.f32.mrf.mxu0 }
 0xb91   :  { %v1882_v59 = vpop.f32.mrf.mxu2 }
 0xb92   :  { %v1816_v60 = vpop.f32.mrf.mxu0 }
 0xb99   :  { %v1884_v61 = vpop.f32.mrf.mxu2 }
 0xb9a   :  { %v6106_v61 = vld [vmem:[%s8970_s25 + $0x20] sm:$0xff] }
 0xb9b   :  { %v1943_v62 = vpop.f32.mrf.mxu0 }
 0xb9c   :  { %v6254_v63 = vpack.i.bf16 %v1943_v62, %v1702_v54 }
 0xb9e   :  { %6255 = vrot.lane.b32.xlu0 %v6254_v63, %s7385_s9 }
 0xba3   :  { %v1945_v0 = vpop.f32.mrf.mxu0 }
 0xbab   :  { %v2055_v1 = vpop.f32.mrf.mxu0 }
 0xbac   :  { %v6264_v2 = vpack.i.bf16 %v2055_v1, %v1814_v58  ;;  %v6108_v58 = vld [vmem:[%s8970_s25 + $0x30] sm:$0xff] }
 0xbad   :  { %2260 = vmatpush.bf16.msra.mxu3 %v6108_v58 }
 0xbae   :  { %6265 = vrot.lane.b32.xlu2 %v6264_v2, %s7386_s26 }
 0xbb3   :  { %v2057_v3 = vpop.f32.mrf.mxu0 }
 0xbcc   :  { %v2443_v47 = vpop.f32.mrf.mxu0 }
 0xbd3   :  { %v1999_v6 = vpop.f32.mrf.mxu2 }
 0xbd4   :  { %v6259_v7 = vpack.i.bf16 %v1999_v6, %v1758_v55  ;;  %v2445_v52 = vpop.f32.mrf.mxu0 }
 0xbd5   :  { %v2446_v55 = vadd.f32 %v6343_v49, %v2445_v52 }
 0xbd6   :  { %6260 = vrot.lane.b32.xlu1 %v6259_v7, %s7352_s15 }
 0xbd7   :  { %v8208_v57 = vpack.c.bf16 %v2446_v55, %v2446_v55 }
 0xbdb   :  { %v2001_v8 = vpop.f32.mrf.mxu2 }
 0xbdc   :  { %v6105_v8 = vld [vmem:[%s8967_s23 + $0x18] sm:$0xff] }
 0xbdd   :  { %2214 = vmatpush.bf16.msra.mxu2 %v6105_v8  ;;  %v6115_v8 = vld [vmem:[#allocation9 + $0x8] sm:$0xff] }
 0xbe1   :  { %2215 = vmatpush.bf16.msra.mxu2 %v6104_v10  ;;  %v6114_v10 = vld [vmem:[#allocation9] sm:$0xff] }
 0xbe5   :  { %2498 = vmatpush.bf16.msrb.mxu2 %v6115_v8 }
 0xbe9   :  { %2499 = vmatpush.bf16.msrb.mxu2 %v6114_v10 }
 0xc08   :  { %v6266_v25 = vpop.permute.xlu2 %6265 }
 0xc09   :  { %v6268_v4 = vunpack.i.h.bf16 %v6266_v25  ;;  %v6267_v28 = vunpack.i.l.bf16 %v6266_v25 }
 0xc10   :  { %v6256_v21 = vpop.permute.xlu0 %6255 }
 0xc11   :  { %v6258_v22 = vunpack.i.h.bf16 %v6256_v21  ;;  %v6257_v23 = vunpack.i.l.bf16 %v6256_v21 }
 0xc13   :  { %v2071_v29 = vsel %vm731_vm1, %v1882_v59, %v6258_v22  ;;  %v1830_v30 = vsel %vm731_vm1, %v8144_v24, %v6257_v23  ;;  %v6107_v59 = vld [vmem:[%s8970_s25 + $0x28] sm:$0xff] }
 0xc14   :  { %2261 = vmatpush.bf16.msra.mxu3 %v6107_v59 }
 0xc18   :  { %2262 = vmatpush.bf16.msra.mxu3 %v6106_v61 }
 0xc48   :  { %v6261_v26 = vpop.permute.xlu1 %6260 }
 0xc49   :  { %v6263_v15 = vunpack.i.h.bf16 %v6261_v26  ;;  %v6262_v27 = vunpack.i.l.bf16 %v6261_v26 }
 0xc4b   :  { %v2072_v31 = vsel %vm969_vm3, %v2071_v29, %v6263_v15  ;;  %v1831_v32 = vsel %vm969_vm3, %v1830_v30, %v6262_v27 }
 0xc4c   :  { %v2073_v5 = vsel %vm971_vm4, %v2072_v31, %v6268_v4  ;;  %v1832_v34 = vsel %vm971_vm4, %v1831_v32, %v6267_v28 }
 0xc4d   :  { %v2074_v35 = vpack.c.bf16 %v2073_v5, %v1832_v34 }
 0xc4f   :  { %5766 = vmatmul.msk.bf16.vlgmr.msra.gmra.mxu1 %vm652_vm0, %v2074_v35 }
 0xc5f   :  { %5827 = vmatmul.msk.bf16.vlgmr.msrb.gmra.mxu1 %vm652_vm0, %v8171_v20 }
 0xccc   :  { %v2102_v37 = vpop.f32.mrf.mxu1 }
 0xccd   :  { %v2103_v38 = vadd.f32 %v6342_v36, %v2102_v37 }
 0xccf   :  { %v8187_v39 = vadd.f32 %v2103_v38, %v8048_v16 }
 0xcd1   :  { %v2113_v24 = vsel %vm652_vm0, %v8187_v39, 0.0  ;;  %v2121_v40 = vmul.f32 %v8187_v39, %v8187_v39 }
 0xcd2   :  { %2114 = vadd.xlane.f32.xlu0 %v2113_v24 }
 0xcd3   :  { %v2123_v41 = vsel %vm652_vm0, %v2121_v40, 0.0 }
 0xcd4   :  { %v2104_v42 = vpop.f32.mrf.mxu1  ;;  %2124 = vadd.xlane.f32.xlu1 %v2123_v41  ;;  %v6345_v41 = vld [vmem:[%s8968_s29 + $0x1] ss:$0 sm:$0xff] }
 0xcd5   :  { %v2105_v43 = vadd.f32 %v6342_v36, %v2104_v42 }
 0xcd7   :  { %v8195_v44 = vadd.f32 %v2105_v43, %v8050_v17  ;;  %v2444_v17 = vadd.f32 %v6343_v49, %v2443_v47  ;;  %v6346_v49 = vld [vmem:[%s8969_s1 + $0x1] ss:$0 sm:$0xff] }
 0xcd9   :  { %v2116_v45 = vsel %vm652_vm0, %v8195_v44, 0.0  ;;  %v2122_v16 = vmul.f32 %v8195_v44, %v8195_v44  ;;  %v8202_v54 = vpack.c.bf16 %v2444_v17, %v2444_v17 }
 0xcda   :  { %2117 = vadd.xlane.f32.xlu2 %v2116_v45 }
 0xcdb   :  { %v2126_v46 = vsel %vm652_vm0, %v2122_v16, 0.0 }
 0xcdc   :  { %2127 = vadd.xlane.f32.xlu0 %v2126_v46  ;;  %v2472_v50 = vpop.f32.mrf.mxu1 }
 0xcdd   :  { %v2473_v51 = vadd.f32 %v6344_v48, %v2472_v50 }
 0xcdf   :  { %v2508_v53 = vpack.c.bf16 %v2473_v51, %v2473_v51 }
 0xce1   :  { %v2513_v63 = vsel %vm731_vm1, %v2508_v53, 0 }
 0xce2   :  { %2522 = vmatpush.bf16.xpose.msrb.mxu3 %v2513_v63 }
 0xce4   :  { %v2474_v60 = vpop.f32.mrf.mxu1 }
 0xce5   :  { %v2475_v62 = vadd.f32 %v6344_v48, %v2474_v60 }
 0xce7   :  { %v8224_v0 = vpack.c.bf16 %v2475_v62, %v2475_v62 }
 0xced   :  { %2622 = vrot.lane.b32.xlu1 %v2508_v53, %s7382_s18 }
 0xcf0   :  { %2560 = vrot.lane.b32.xlu0 %v8202_v54, %s7383_s22 }
 0xcf2   :  { %2563 = vrot.lane.b32.xlu2 %v2508_v53, %s7383_s22 }
 0xcf5   :  { %2801 = vrot.lane.b32.xlu1 %v8208_v57, %s7383_s22 }
 0xcf8   :  { %2678 = vrot.lane.b32.xlu0 %v2508_v53, %s7384_s12 }
 0xcfa   :  { %2620 = vrot.lane.b32.xlu2 %v8202_v54, %s7382_s18 }
 0xcfd   :  { %2861 = vrot.lane.b32.xlu1 %v8208_v57, %s7382_s18 }
 0xd00   :  { %2676 = vrot.lane.b32.xlu0 %v8202_v54, %s7384_s12 }
 0xd02   :  { %2804 = vrot.lane.b32.xlu2 %v8224_v0, %s7383_s22 }
 0xd08   :  { %2863 = vrot.lane.b32.xlu0 %v8224_v0, %s7382_s18 }
 0xd0a   :  { %2919 = vrot.lane.b32.xlu2 %v8224_v0, %s7384_s12 }
 0xd10   :  { %2917 = vrot.lane.b32.xlu0 %v8208_v57, %s7384_s12 }
 0xd45   :  { %v2115_v1 = vpop.xlane.xlu0 %2114 }
 0xd46   :  { %v2119_v2 = vmul.f32 %v2115_v1, %v8015_v33 }
 0xd47   :  { %v2125_v3 = vpop.xlane.xlu1 %2124 }
 0xd48   :  { %v2131_v6 = vmul.f32 %v2119_v2, %v2119_v2  ;;  %v2129_v7 = vmul.f32 %v2125_v3, %v8015_v33  ;;  %v2157_v38 = vsub.f32 %v8187_v39, %v2119_v2 }
 0xd4a   :  { %v2133_v19 = vsub.f32 %v2129_v7, %v2131_v6 }
 0xd4c   :  { %v2135_v9 = vadd.f32 1e-05, %v2133_v19  ;;  %v6347_v19 = vld [vmem:[%s8971_s10 + $0x1] ss:$0 sm:$0xff] }
 0xd4d   :  { %v2118_v11 = vpop.xlane.xlu2 %2117 }
 0xd4e   :  { %6459 = vrsqrt.f32 %v2135_v9  ;;  %v2120_v12 = vmul.f32 %v2118_v11, %v8015_v33  ;;  %vm2143_vm9 = vweird.f32 %v2135_v9 }
 0xd4f   :  { %v2128_v18 = vpop.xlane.xlu0 %2127 }
 0xd50   :  { %v2132_v21 = vmul.f32 %v2120_v12, %v2120_v12  ;;  %v2130_v22 = vmul.f32 %v2128_v18, %v8015_v33  ;;  %v2158_v45 = vsub.f32 %v8195_v44, %v2120_v12 }
 0xd52   :  { %v2134_v23 = vsub.f32 %v2130_v22, %v2132_v21 }
 0xd54   :  { %v6460_v25 = vpop.eup %6459  ;;  %v2136_v26 = vadd.f32 1e-05, %v2134_v23 }
 0xd55   :  { %v2138_v15 = vmul.f32 %v6460_v25, %v2135_v9  ;;  %v2564_v27 = vpop.permute.xlu2 %2563  ;;  %vm2144_vm8 = vweird.f32 %v6460_v25 }
 0xd56   :  { %6461 = vrsqrt.f32 %v2136_v26  ;;  %v2569_v4 = vsel %vm731_vm1, %v2564_v27, 0  ;;  %vm2145_vm10 = vmor %vm2143_vm9, %vm2144_vm8  ;;  %vm2153_vm13 = vweird.f32 %v2136_v26 }
 0xd57   :  { %v2139_v28 = vmul.f32 %v6460_v25, %v2138_v15  ;;  %2578 = vmatpush.bf16.xpose.msra.mxu1 %v2569_v4 }
 0xd59   :  { %v2140_v29 = vmul.f32 0.5, %v2139_v28  ;;  %v2754_v28 = vsel %vm731_vm1, %v8224_v0, 0 }
 0xd5b   :  { %v2141_v30 = vsub.f32 1.5, %v2140_v29 }
 0xd5c   :  { %v6462_v31 = vpop.eup %6461 }
 0xd5d   :  { %v2142_v32 = vmul.f32 %v6460_v25, %v2141_v30  ;;  %v2148_v5 = vmul.f32 %v6462_v31, %v2136_v26  ;;  %v8241_v34 = vpop.permute.xlu2 %2620  ;;  %vm2154_vm11 = vweird.f32 %v6462_v31 }
 0xd5e   :  { %vm2155_vm14 = vmor %vm2153_vm13, %vm2154_vm11 }
 0xd5f   :  { %v2149_v35 = vmul.f32 %v6462_v31, %v2148_v5  ;;  %v2146_v36 = vsel %vm2145_vm10, %v6460_v25, %v2142_v32  ;;  %v2623_v59 = vpop.permute.xlu1 %2622 }
 0xd60   :  { %v2159_v42 = vmul.f32 %v2157_v38, %v2146_v36  ;;  %v2628_v15 = vsel %vm731_vm1, %v2623_v59, 0 }
 0xd61   :  { %v2150_v37 = vmul.f32 0.5, %v2149_v35 }
 0xd62   :  { %v2561_v24 = vpop.permute.xlu0 %2560  ;;  %v2164_v47 = vmul.f32 %v6345_v41, %v2159_v42 }
 0xd63   :  { %v2151_v40 = vsub.f32 1.5, %v2150_v37  ;;  %5839 = vmatmul.msk.bf16.vlgmr.msra.gmra.mxu1 %vm731_vm1, %v2561_v24 }
 0xd64   :  { %v8250_v52 = vadd.f32 %v6346_v49, %v2164_v47 }
 0xd65   :  { %v2152_v43 = vmul.f32 %v6462_v31, %v2151_v40  ;;  %v2805_v16 = vpop.permute.xlu2 %2804  ;;  %v8293_v40 = vld [vmem:[#allocation10] ss:$0 sm:$0xff] }
 0xd66   :  { %v2810_v39 = vsel %vm731_vm1, %v2805_v16, 0 }
 0xd67   :  { %v2156_v46 = vsel %vm2155_vm14, %v6462_v31, %v2152_v43  ;;  %v2802_v60 = vpop.permute.xlu1 %2801 }
 0xd68   :  { %v2160_v48 = vmul.f32 %v2158_v45, %v2156_v46 }
 0xd6a   :  { %v2165_v50 = vmul.f32 %v6345_v41, %v2160_v48  ;;  %v2679_v51 = vpop.permute.xlu0 %2678 }
 0xd6b   :  { %v2684_v17 = vsel %vm731_vm1, %v2679_v51, 0 }
 0xd6c   :  { %2693 = vmatpush.bf16.xpose.msrb.mxu1 %v2684_v17  ;;  %v8252_v53 = vadd.f32 %v6346_v49, %v2165_v50 }
 0xd6d   :  { %v2920_v55 = vpop.permute.xlu2 %2919 }
 0xd6e   :  { %v2189_v44 = vpack.c.bf16 %v8252_v53, %v8250_v52  ;;  %v2925_v56 = vsel %vm731_vm1, %v2920_v55, 0 }
 0xd6f   :  { %v2862_v31 = vpop.permute.xlu1 %2861 }
 0xd70   :  { %5790 = vmatmul.msk.bf16.vlgmr.msra.gmra.mxu2 %vm652_vm0, %v2189_v44 }
 0xd72   :  { %v2677_v58 = vpop.permute.xlu0 %2676 }
 0xd73   :  { %5843 = vmatmul.msk.bf16.vlgmr.msrb.gmra.mxu1 %vm731_vm1, %v2677_v58 }
 0xd74   :  { %2819 = vmatpush.bf16.xpose.msra.mxu1 %v2810_v39 }
 0xd7a   :  { %v2864_v61 = vpop.permute.xlu0 %2863 }
 0xd7b   :  { %v2869_v30 = vsel %vm731_vm1, %v2864_v61, 0 }
 0xd7c   :  { %2934 = vmatpush.bf16.xpose.msrb.mxu1 %v2925_v56 }
 0xd80   :  { %5836 = vmatmul.msk.bf16.vlgmr.msrb.gmra.mxu2 %vm652_vm0, %v8171_v20 }
 0xd82   :  { %v2918_v62 = vpop.permute.xlu0 %2917 }
 0xd83   :  { %5847 = vmatmul.msk.bf16.vlgmr.msra.gmra.mxu1 %vm731_vm1, %v2802_v60 }
 0xd93   :  { %5851 = vmatmul.msk.bf16.vlgmr.msrb.gmra.mxu1 %vm731_vm1, %v2918_v62 }
 0xde0   :  { %v2580_v63 = vpop.f32.mrf.mxu1 }
 0xde1   :  { %v2584_v1 = vsel %vm731_vm1, %v2580_v63, -inf }
 0xde2   :  { %2585 = vmax.xlane.f32.xlu2 %v2584_v1 }
 0xde8   :  { %v2582_v2 = vpop.f32.mrf.mxu1 }
 0xdf0   :  { %v2695_v3 = vpop.f32.mrf.mxu1 }
 0xdf1   :  { %v2699_v6 = vsel %vm731_vm1, %v2695_v3, -inf }
 0xdf2   :  { %2700 = vmax.xlane.f32.xlu0 %v2699_v6 }
 0xdf3   :  { %v2217_v7 = vpop.f32.mrf.mxu2 }
 0xdf4   :  { %v2218_v11 = vadd.f32 %v6347_v19, %v2217_v7 }
 0xdf6   :  { %v2222_v21 = vmax.f32 %v2218_v11, 0.0 }
 0xdf8   :  { %v2697_v9 = vpop.f32.mrf.mxu1 }
 0xdfb   :  { %v2219_v12 = vpop.f32.mrf.mxu2 }
 0xdfc   :  { %v2220_v18 = vadd.f32 %v6347_v19, %v2219_v12 }
 0xdfe   :  { %v2223_v22 = vmax.f32 %v2220_v18, 0.0 }
 0xe00   :  { %v2224_v23 = vpack.c.bf16 %v2223_v22, %v2222_v21  ;;  %v8266_v25 = vpop.f32.mrf.mxu1 }
 0xe01   :  { %v2825_v26 = vsel %vm731_vm1, %v8266_v25, -inf }
 0xe02   :  { %5807 = vmatmul.msk.bf16.vlgmr.msra.gmra.mxu3 %vm1393_vm12, %v2224_v23  ;;  %2826 = vmax.xlane.f32.xlu1 %v2825_v26 }
 0xe03   :  { %2637 = vmatpush.bf16.xpose.msra.mxu3 %v2628_v15  ;;  %v2501_v41 = vpop.f32.mrf.mxu2 }
 0xe04   :  { %v2502_v42 = vadd.f32 %v8293_v40, %v2501_v41 }
 0xe06   :  { %v2506_v43 = vpack.c.bf16 %v2502_v42, %v2502_v42 }
 0xe08   :  { %v2823_v27 = vpop.f32.mrf.mxu1  ;;  %v2544_v45 = vsel %vm766_vm2, %v2506_v43, 0  ;;  %v2597_v51 = vunpack.c.l.b16 %v2506_v43 }
 0xe09   :  { %2553 = vmatpush.bf16.msra.mxu0 %v2544_v45 }
 0xe0a   :  { %v2598_v39 = vpack.c.b16 %v2597_v51, %v2597_v51 }
 0xe10   :  { %v8272_v4 = vpop.f32.mrf.mxu1 }
 0xe11   :  { %v2940_v20 = vsel %vm731_vm1, %v8272_v4, -inf }
 0xe12   :  { %5837 = vmatmul.msk.bf16.vlgmr.msrb.gmra.mxu3 %vm731_vm1, %v8202_v54  ;;  %2941 = vmax.xlane.f32.xlu2 %v2940_v20 }
 0xe13   :  { %2763 = vmatpush.bf16.xpose.msrb.mxu3 %v2754_v28 }
 0xe18   :  { %v2938_v29 = vpop.f32.mrf.mxu1 }
 0xe22   :  { %5841 = vmatmul.msk.bf16.vlgmr.msra.gmra.mxu3 %vm731_vm1, %v8241_v34 }
 0xe23   :  { %2878 = vmatpush.bf16.xpose.msra.mxu3 %v2869_v30 }
 0xe32   :  { %5845 = vmatmul.msk.bf16.vlgmr.msrb.gmra.mxu3 %vm731_vm1, %v8208_v57 }
 0xe42   :  { %5849 = vmatmul.msk.bf16.vlgmr.msra.gmra.mxu3 %vm731_vm1, %v2862_v31  ;;  %v2503_v31 = vpop.f32.mrf.mxu2 }
 0xe55   :  { %v2586_v32 = vpop.xlane.xlu2 %2585 }
 0xe56   :  { %v2587_v54 = vsub.f32 %v2580_v63, %v2586_v32  ;;  %v2504_v32 = vadd.f32 %v8293_v40, %v2503_v31 }
 0xe58   :  { %v2588_v5 = vmul.f32 1.442695, %v2587_v54 }
 0xe5a   :  { %6463 = vpow2.f32 %v2588_v5 }
 0xe60   :  { %v6464_v0 = vpop.eup %6463 }
 0xe61   :  { %v2590_v35 = vsel %vm731_vm1, %v6464_v0, 0.0 }
 0xe62   :  { %2591 = vadd.xlane.f32.xlu1 %v2590_v35  ;;  %v2747_v35 = vpack.c.bf16 %v2504_v32, %v2504_v32 }
 0xe65   :  { %v2701_v36 = vpop.xlane.xlu0 %2700 }
 0xe66   :  { %v2702_v37 = vsub.f32 %v2695_v3, %v2701_v36 }
 0xe68   :  { %v2703_v38 = vmul.f32 1.442695, %v2702_v37  ;;  %v2838_v37 = vunpack.c.l.b16 %v2747_v35 }
 0xe6a   :  { %6465 = vpow2.f32 %v2703_v38  ;;  %v2839_v42 = vpack.c.b16 %v2838_v37, %v2838_v37 }
 0xe70   :  { %v8287_v34 = vpop.eup %6465 }
 0xe71   :  { %v2705_v57 = vsel %vm731_vm1, %v8287_v34, 0.0 }
 0xe72   :  { %2706 = vadd.xlane.f32.xlu0 %v2705_v57 }
 0xe75   :  { %v2827_v58 = vpop.xlane.xlu1 %2826 }
 0xe76   :  { %v2828_v61 = vsub.f32 %v8266_v25, %v2827_v58 }
 0xe78   :  { %v2829_v62 = vmul.f32 1.442695, %v2828_v61 }
 0xe7a   :  { %6467 = vpow2.f32 %v2829_v62 }
 0xe80   :  { %v8306_v1 = vpop.eup %6467 }
 0xe81   :  { %v2831_v2 = vsel %vm731_vm1, %v8306_v1, 0.0 }
 0xe85   :  { %v8291_v24 = vpop.f32.mrf.mxu3  ;;  %v2942_v19 = vpop.xlane.xlu2 %2941 }
 0xe8d   :  { %v8297_v16 = vpop.f32.mrf.mxu3 }
 0xe95   :  { %v2524_v46 = vpop.f32.mrf.mxu3 }
 0xe96   :  { %v2528_v47 = vsel %vm731_vm1, %v2524_v46, -inf }
 0xe97   :  { %2529 = vmax.xlane.f32.xlu1 %v2528_v47 }
 0xe9d   :  { %v2526_v48 = vpop.f32.mrf.mxu3 }
 0xea5   :  { %v2639_v49 = vpop.f32.mrf.mxu3 }
 0xea6   :  { %v2643_v50 = vsel %vm731_vm1, %v2639_v49, -inf }
 0xea7   :  { %2644 = vmax.xlane.f32.xlu2 %v2643_v50  ;;  %v2943_v50 = vsub.f32 %v8272_v4, %v2942_v19 }
 0xea9   :  { %v2944_v51 = vmul.f32 1.442695, %v2943_v50 }
 0xead   :  { %v2641_v17 = vpop.f32.mrf.mxu3 }
 0xeb0   :  { %2599 = vrot.lane.b32.xlu1 %v2598_v39, %s7383_s22 }
 0xeb5   :  { %v2765_v44 = vpop.f32.mrf.mxu3 }
 0xeb6   :  { %v2769_v55 = vsel %vm731_vm1, %v2765_v44, -inf }
 0xeb7   :  { %2770 = vmax.xlane.f32.xlu0 %v2769_v55 }
 0xebd   :  { %v2767_v56 = vpop.f32.mrf.mxu3 }
 0xebf   :  { %2655 = vrot.lane.b32.xlu2 %v2598_v39, %s7382_s18 }
 0xec5   :  { %v2880_v59 = vpop.f32.mrf.mxu3 }
 0xec6   :  { %v2884_v60 = vsel %vm731_vm1, %v2880_v59, -inf }
 0xec7   :  { %2885 = vmax.xlane.f32.xlu0 %v2884_v60 }
 0xecd   :  { %v2882_v63 = vpop.f32.mrf.mxu3 }
 0xed5   :  { %v2592_v3 = vpop.xlane.xlu1 %2591 }
 0xeda   :  { %2832 = vadd.xlane.f32.xlu1 %v2831_v2 }
 0xedb   :  { %2711 = vrot.lane.b32.xlu0 %v2598_v39, %s7384_s12 }
 0xee5   :  { %v2707_v23 = vpop.xlane.xlu0 %2706 }
 0xf0a   :  { %v2530_v6 = vpop.xlane.xlu1 %2529 }
 0xf0b   :  { %v2531_v7 = vsub.f32 %v2524_v46, %v2530_v6 }
 0xf0d   :  { %v2532_v8 = vmul.f32 1.442695, %v2531_v7 }
 0xf0f   :  { %6469 = vpow2.f32 %v2532_v8 }
 0xf10   :  { %6471 = vrcp.f32 %v2592_v3 }
 0xf15   :  { %v8311_v9 = vpop.eup %6469 }
 0xf16   :  { %v2534_v10 = vsel %vm731_vm1, %v8311_v9, 0.0  ;;  %v6472_v21 = vpop.eup %6471 }
 0xf17   :  { %2535 = vadd.xlane.f32.xlu2 %v2534_v10  ;;  %v2594_v22 = vmul.f32 %v6472_v21, %v6464_v0 }
 0xf19   :  { %v2595_v27 = vpack.c.bf16 %v2594_v22, %v2594_v22 }
 0xf1a   :  { %v2645_v11 = vpop.xlane.xlu2 %2644 }
 0xf1b   :  { %v2646_v12 = vsub.f32 %v2639_v49, %v2645_v11 }
 0xf1d   :  { %v2647_v18 = vmul.f32 1.442695, %v2646_v12 }
 0xf1f   :  { %6473 = vpow2.f32 %v2647_v18 }
 0xf22   :  { %v2600_v25 = vpop.permute.xlu1 %2599  ;;  %v2656_v54 = vpop.permute.xlu2 %2655 }
 0xf23   :  { %v2605_v26 = vsel %vm766_vm2, %v2600_v25, 0  ;;  %v2661_v5 = vsel %vm766_vm2, %v2656_v54, 0 }
 0xf24   :  { %2614 = vmatpush.bf16.msra.mxu2 %v2605_v26  ;;  %2670 = vmatpush.bf16.msrb.mxu0 %v2661_v5 }
 0xf25   :  { %v8316_v15 = vpop.eup %6473 }
 0xf26   :  { %v2649_v20 = vsel %vm731_vm1, %v8316_v15, 0.0 }
 0xf27   :  { %5840 = vmatmul.msk.bf16.vlgmr.msra.gmra.mxu2 %vm731_vm1, %v2595_v27  ;;  %2650 = vadd.xlane.f32.xlu2 %v2649_v20 }
 0xf2a   :  { %v2771_v28 = vpop.xlane.xlu0 %2770 }
 0xf2b   :  { %v2772_v29 = vsub.f32 %v2765_v44, %v2771_v28  ;;  %v6348_v44 = vld [vmem:[#allocation2 + $0x1] ss:$0 sm:$0xff] }
 0xf2c   :  { %v2267_v56 = vadd.f32 %v6348_v44, %v8297_v16 }
 0xf2d   :  { %v2773_v30 = vmul.f32 1.442695, %v2772_v29 }
 0xf2e   :  { %v8345_v58 = vadd.f32 %v2267_v56, %v8252_v53  ;;  %v2785_v53 = vsel %vm766_vm2, %v2747_v35, 0  ;;  %v6116_v56 = vld [vmem:[#allocation12] sm:$0xff] }
 0xf2f   :  { %6475 = vpow2.f32 %v2773_v30 }
 0xf30   :  { %v2284_v60 = vmul.f32 %v8345_v58, %v8345_v58 }
 0xf35   :  { %v8323_v0 = vpop.eup %6475 }
 0xf36   :  { %v2775_v36 = vsel %vm731_vm1, %v8323_v0, 0.0 }
 0xf37   :  { %2776 = vadd.xlane.f32.xlu0 %v2775_v36 }
 0xf3a   :  { %v2886_v38 = vpop.xlane.xlu0 %2885 }
 0xf3b   :  { %v2887_v57 = vsub.f32 %v2880_v59, %v2886_v38 }
 0xf3d   :  { %v2888_v41 = vmul.f32 1.442695, %v2887_v57 }
 0xf3f   :  { %6477 = vpow2.f32 %v2888_v41  ;;  %2840 = vrot.lane.b32.xlu2 %v2839_v42, %s7383_s22 }
 0xf40   :  { %6479 = vrcp.f32 %v2707_v23 }
 0xf41   :  { %6481 = vpow2.f32 %v2944_v51 }
 0xf45   :  { %v8328_v40 = vpop.eup %6477 }
 0xf46   :  { %v2890_v43 = vsel %vm731_vm1, %v8328_v40, 0.0  ;;  %v6480_v45 = vpop.eup %6479 }
 0xf47   :  { %2891 = vadd.xlane.f32.xlu1 %v2890_v43  ;;  %v2709_v46 = vmul.f32 %v6480_v45, %v8287_v34  ;;  %v6482_v39 = vpop.eup %6481  ;;  %v2265_v34 = vadd.f32 %v6348_v44, %v8291_v24  ;;  %v2288_v24 = vsel %vm652_vm0, %v2284_v60, 0.0  ;;  %v6117_v44 = vld [vmem:[#allocation12 + $0x8] sm:$0xff] }
 0xf48   :  { %v2946_v17 = vsel %vm731_vm1, %v6482_v39, 0.0  ;;  %3013 = vmatpush.bf16.msrb.mxu3 %v6117_v44 }
 0xf49   :  { %v2710_v49 = vpack.c.bf16 %v2709_v46, %v2709_v46  ;;  %v8341_v55 = vadd.f32 %v2265_v34, %v8250_v52 }
 0xf4b   :  { %2952 = vrot.lane.b32.xlu0 %v2839_v42, %s7384_s12  ;;  %v2275_v4 = vsel %vm652_vm0, %v8341_v55, 0.0  ;;  %v2283_v45 = vmul.f32 %v8341_v55, %v8341_v55 }
 0xf4c   :  { %3014 = vmatpush.bf16.msrb.mxu3 %v6116_v56  ;;  %v6354_v56 = vld [vmem:[#allocation13] ss:$0 sm:$0xff] }
 0xf4d   :  { %v2712_v47 = vpop.permute.xlu0 %2711  ;;  %v2833_v16 = vpop.xlane.xlu1 %2832 }
 0xf4e   :  { %v2717_v48 = vsel %vm766_vm2, %v2712_v47, 0 }
 0xf4f   :  { %2726 = vmatpush.bf16.msrb.mxu2 %v2717_v48  ;;  %v2285_v48 = vsel %vm652_vm0, %v2283_v45, 0.0 }
 0xf52   :  { %5844 = vmatmul.msk.bf16.vlgmr.msrb.gmra.mxu2 %vm731_vm1, %v2710_v49 }
 0xf60   :  { %2896 = vrot.lane.b32.xlu1 %v2839_v42, %s7382_s18 }
 0xf68   :  { %2947 = vadd.xlane.f32.xlu2 %v2946_v17  ;;  %v2278_v17 = vsel %vm652_vm0, %v8345_v58, 0.0 }
 0xf8a   :  { %v2536_v59 = vpop.xlane.xlu2 %2535  ;;  %2276 = vadd.xlane.f32.xlu1 %v2275_v4 }
 0xf8b   :  { %6483 = vrcp.f32 %v2536_v59 }
 0xf8c   :  { %6485 = vrcp.f32 %v2833_v16 }
 0xf91   :  { %v6484_v61 = vpop.eup %6483 }
 0xf92   :  { %v2538_v52 = vmul.f32 %v6484_v61, %v8311_v9  ;;  %2289 = vadd.xlane.f32.xlu1 %v2288_v24  ;;  %v6486_v2 = vpop.eup %6485 }
 0xf93   :  { %v2835_v6 = vmul.f32 %v6486_v2, %v8306_v1 }
 0xf94   :  { %v2539_v62 = vpack.c.bf16 %v2538_v52, %v2538_v52 }
 0xf95   :  { %v2836_v10 = vpack.c.bf16 %v2835_v6, %v2835_v6 }
 0xf96   :  { %5838 = vmatmul.msk.bf16.vlgmr.msra.gmra.mxu0 %vm731_vm1, %v2539_v62 }
 0xf97   :  { %2794 = vmatpush.bf16.msra.mxu0 %v2785_v53 }
 0xf9a   :  { %v2651_v63 = vpop.xlane.xlu2 %2650 }
 0xf9b   :  { %6487 = vrcp.f32 %v2651_v63 }
 0xfa1   :  { %v6488_v3 = vpop.eup %6487 }
 0xfa2   :  { %v2653_v7 = vmul.f32 %v6488_v3, %v8316_v15  ;;  %v2841_v8 = vpop.permute.xlu2 %2840 }
 0xfa3   :  { %v2846_v19 = vsel %vm766_vm2, %v2841_v8, 0 }
 0xfa4   :  { %v2654_v9 = vpack.c.bf16 %v2653_v7, %v2653_v7  ;;  %2855 = vmatpush.bf16.msra.mxu2 %v2846_v19 }
 0xfa6   :  { %5842 = vmatmul.msk.bf16.vlgmr.msrb.gmra.mxu0 %vm731_vm1, %v2654_v9 }
 0xfa7   :  { %5848 = vmatmul.msk.bf16.vlgmr.msra.gmra.mxu2 %vm731_vm1, %v2836_v10 }
 0xfaa   :  { %v2616_v11 = vpop.f32.mrf.mxu2  ;;  %v2777_v12 = vpop.xlane.xlu0 %2776 }
 0xfab   :  { %6489 = vrcp.f32 %v2777_v12 }
 0xfb1   :  { %v6490_v18 = vpop.eup %6489 }
 0xfb2   :  { %v2779_v21 = vmul.f32 %v6490_v18, %v8323_v0  ;;  %v2618_v22 = vpop.f32.mrf.mxu2 }
 0xfb4   :  { %v2780_v1 = vpack.c.bf16 %v2779_v21, %v2779_v21 }
 0xfb6   :  { %5846 = vmatmul.msk.bf16.vlgmr.msra.gmra.mxu0 %vm731_vm1, %v2780_v1 }
 0xfba   :  { %v2892_v26 = vpop.xlane.xlu1 %2891 }
 0xfbb   :  { %6491 = vrcp.f32 %v2892_v26 }
 0xfbd   :  { %v2953_v23 = vpop.permute.xlu0 %2952 }
 0xfbe   :  { %v2958_v25 = vsel %vm766_vm2, %v2953_v23, 0  ;;  %v6350_v23 = vld [vmem:[%s8972_s20 + $0x1] ss:$0 sm:$0xff] }
 0xfbf   :  { %2967 = vmatpush.bf16.msrb.mxu2 %v2958_v25 }
 0xfc1   :  { %v6492_v15 = vpop.eup %6491 }
 0xfc2   :  { %v2894_v27 = vmul.f32 %v6492_v15, %v8328_v40 }
 0xfc4   :  { %v2895_v29 = vpack.c.bf16 %v2894_v27, %v2894_v27 }
 0xfd2   :  { %v2897_v20 = vpop.permute.xlu1 %2896 }
 0xfd3   :  { %v2902_v28 = vsel %vm766_vm2, %v2897_v20, 0 }
 0xfd4   :  { %2911 = vmatpush.bf16.msrb.mxu0 %v2902_v28  ;;  %v6351_v28 = vld [vmem:[%s8973_s19 + $0x1] ss:$0 sm:$0xff] }
 0xfd5   :  { %v2728_v30 = vpop.f32.mrf.mxu2 }
 0xfd7   :  { %5850 = vmatmul.msk.bf16.vlgmr.msrb.gmra.mxu0 %vm731_vm1, %v2895_v29 }
 0xfdb   :  { %v2948_v31 = vpop.xlane.xlu2 %2947 }
 0xfdc   :  { %6493 = vrcp.f32 %v2948_v31 }
 0xfdd   :  { %v2730_v32 = vpop.f32.mrf.mxu2 }
 0xfe2   :  { %v6494_v54 = vpop.eup %6493 }
 0xfe3   :  { %v2950_v5 = vmul.f32 %v6494_v54, %v6482_v39 }
 0xfe5   :  { %v2951_v0 = vpack.c.bf16 %v2950_v5, %v2950_v5 }
 0xfe7   :  { %5852 = vmatmul.msk.bf16.vlgmr.msrb.gmra.mxu2 %vm731_vm1, %v2951_v0 }
 0xffd   :  { %v2277_v4 = vpop.xlane.xlu1 %2276 }
 0xffe   :  { %v2281_v59 = vmul.f32 %v2277_v4, %v8015_v33 }
0x1000   :  { %v2293_v61 = vmul.f32 %v2281_v59, %v2281_v59  ;;  %v2319_v10 = vsub.f32 %v8341_v55, %v2281_v59 }
0x1005   :  { %v2290_v0 = vpop.xlane.xlu1 %2289 }
0x1013   :  { %v2555_v35 = vpop.f32.mrf.mxu0 }
0x101b   :  { %v2557_v36 = vpop.f32.mrf.mxu0 }
0x1023   :  { %v2672_v37 = vpop.f32.mrf.mxu0 }
0x102a   :  { %v2857_v38 = vpop.f32.mrf.mxu2 }
0x102b   :  { %v6269_v57 = vpack.i.bf16 %v2857_v38, %v2616_v11  ;;  %v2674_v41 = vpop.f32.mrf.mxu0 }
0x102d   :  { %6270 = vrot.lane.b32.xlu2 %v6269_v57, %s7385_s9 }
0x1032   :  { %v2859_v42 = vpop.f32.mrf.mxu2 }
0x1033   :  { %v2796_v40 = vpop.f32.mrf.mxu0 }
0x103b   :  { %v2798_v43 = vpop.f32.mrf.mxu0 }
0x1054   :  { %v2913_v46 = vpop.f32.mrf.mxu0 }
0x1055   :  { %v6274_v47 = vpack.i.bf16 %v2913_v46, %v2672_v37  ;;  %v2292_v37 = vmul.f32 %v2290_v0, %v8015_v33 }
0x1056   :  { %2286 = vadd.xlane.f32.xlu2 %v2285_v48 }
0x1057   :  { %6275 = vrot.lane.b32.xlu0 %v6274_v47, %s7352_s15 }
0x105c   :  { %v2915_v49 = vpop.f32.mrf.mxu0 }
0x106a   :  { %v2969_v50 = vpop.f32.mrf.mxu2 }
0x106b   :  { %v6279_v51 = vpack.i.bf16 %v2969_v50, %v2728_v30 }
0x106d   :  { %6280 = vrot.lane.b32.xlu0 %v6279_v51, %s7386_s26 }
0x1072   :  { %v2971_v39 = vpop.f32.mrf.mxu2 }
0x1087   :  { %v6271_v34 = vpop.permute.xlu2 %6270 }
0x1088   :  { %v6273_v6 = vunpack.i.h.bf16 %v6271_v34  ;;  %v6272_v7 = vunpack.i.l.bf16 %v6271_v34 }
0x108a   :  { %v2744_v18 = vsel %vm731_vm1, %v2555_v35, %v6272_v7  ;;  %v2985_v21 = vsel %vm731_vm1, %v2796_v40, %v6273_v6 }
0x1097   :  { %2279 = vadd.xlane.f32.xlu0 %v2278_v17 }
0x10c9   :  { %v2287_v60 = vpop.xlane.xlu2 %2286  ;;  %v6276_v63 = vpop.permute.xlu0 %6275 }
0x10ca   :  { %v2291_v24 = vmul.f32 %v2287_v60, %v8015_v33  ;;  %v6278_v19 = vunpack.i.h.bf16 %v6276_v63  ;;  %v6277_v9 = vunpack.i.l.bf16 %v6276_v63 }
0x10cc   :  { %v2295_v52 = vsub.f32 %v2291_v24, %v2293_v61  ;;  %v2986_v25 = vsel %vm969_vm3, %v2985_v21, %v6278_v19  ;;  %v2745_v26 = vsel %vm969_vm3, %v2744_v18, %v6277_v9  ;;  %v6121_v9 = vld [vmem:[#allocation21 + $0x8] sm:$0xff] }
0x10cd   :  { %3161 = vmatpush.bf16.msra.mxu1 %v6121_v9  ;;  %v6122_v18 = vld [vmem:[#allocation24] sm:$0xff] }
0x10ce   :  { %v2297_v62 = vadd.f32 1e-05, %v2295_v52 }
0x10d0   :  { %6495 = vrsqrt.f32 %v2297_v62  ;;  %vm2305_vm5 = vweird.f32 %v2297_v62 }
0x10d6   :  { %v6496_v16 = vpop.eup %6495 }
0x10d7   :  { %v2300_v53 = vmul.f32 %v6496_v16, %v2297_v62  ;;  %vm2306_vm15 = vweird.f32 %v6496_v16 }
0x10d8   :  { %vm2307_vm6 = vmor %vm2305_vm5, %vm2306_vm15 }
0x10d9   :  { %v2301_v2 = vmul.f32 %v6496_v16, %v2300_v53 }
0x10db   :  { %v2302_v3 = vmul.f32 0.5, %v2301_v2 }
0x10dd   :  { %v2303_v8 = vsub.f32 1.5, %v2302_v3 }
0x10df   :  { %v2304_v11 = vmul.f32 %v6496_v16, %v2303_v8  ;;  %v6281_v12 = vpop.permute.xlu0 %6280 }
0x10e0   :  { %v6283_v22 = vunpack.i.h.bf16 %v6281_v12  ;;  %v6282_v1 = vunpack.i.l.bf16 %v6281_v12  ;;  %v6120_v12 = vld [vmem:[#allocation21] sm:$0xff] }
0x10e1   :  { %v2308_v15 = vsel %vm2307_vm6, %v6496_v16, %v2304_v11  ;;  %3162 = vmatpush.bf16.msra.mxu1 %v6120_v12 }
0x10e2   :  { %v2746_v27 = vsel %vm971_vm4, %v2745_v26, %v6282_v1  ;;  %v2987_v55 = vsel %vm971_vm4, %v2986_v25, %v6283_v22  ;;  %v2321_v20 = vmul.f32 %v2319_v10, %v2308_v15  ;;  %v6123_v10 = vld [vmem:[#allocation24 + $0x8] sm:$0xff] }
0x10e3   :  { %v2988_v29 = vpack.c.bf16 %v2987_v55, %v2746_v27  ;;  %3190 = vmatpush.bf16.msra.mxu2 %v6123_v10 }
0x10e4   :  { %v2326_v30 = vmul.f32 %v6350_v23, %v2321_v20 }
0x10e5   :  { %5861 = vmatmul.msk.bf16.vlgmr.msrb.gmra.mxu3 %vm652_vm0, %v2988_v29 }
0x10e6   :  { %v8387_v31 = vadd.f32 %v6351_v28, %v2326_v30 }
0x10e7   :  { %3191 = vmatpush.bf16.msra.mxu2 %v6122_v18  ;;  %v6355_v18 = vld [vmem:[#allocation15] ss:$0 sm:$0xff] }
0x10e8   :  { %v2335_v32 = vsel %vm652_vm0, %v8387_v31, 0.0  ;;  %v2343_v54 = vmul.f32 %v8387_v31, %v8387_v31 }
0x10e9   :  { %2336 = vadd.xlane.f32.xlu2 %v2335_v32 }
0x10ea   :  { %v2345_v5 = vsel %vm652_vm0, %v2343_v54, 0.0 }
0x10eb   :  { %2346 = vadd.xlane.f32.xlu1 %v2345_v5 }
0x110a   :  { %v2280_v35 = vpop.xlane.xlu0 %2279 }
0x110b   :  { %v2282_v36 = vmul.f32 %v2280_v35, %v8015_v33 }
0x110d   :  { %v2294_v38 = vmul.f32 %v2282_v36, %v2282_v36  ;;  %v2320_v48 = vsub.f32 %v8345_v58, %v2282_v36 }
0x110f   :  { %v2296_v57 = vsub.f32 %v2292_v37, %v2294_v38  ;;  %v6352_v37 = vld [vmem:[%s8976_s8] ss:$0 sm:$0xff] }
0x1111   :  { %v2298_v41 = vadd.f32 1e-05, %v2296_v57 }
0x1113   :  { %6497 = vrsqrt.f32 %v2298_v41  ;;  %vm2315_vm8 = vweird.f32 %v2298_v41 }
0x1119   :  { %v6498_v42 = vpop.eup %6497 }
0x111a   :  { %v2310_v40 = vmul.f32 %v6498_v42, %v2298_v41  ;;  %vm2316_vm7 = vweird.f32 %v6498_v42 }
0x111b   :  { %vm2317_vm9 = vmor %vm2315_vm8, %vm2316_vm7 }
0x111c   :  { %v2311_v43 = vmul.f32 %v6498_v42, %v2310_v40  ;;  %v6353_v40 = vld [vmem:[%s7621_s30] ss:$0 sm:$0xff]  ;;  %s8977_s30 = sld [smem:[#allocation84_spill]] }
0x111e   :  { %v2312_v45 = vmul.f32 0.5, %v2311_v43 }
0x1120   :  { %v2313_v46 = vsub.f32 1.5, %v2312_v45 }
0x1122   :  { %v2314_v47 = vmul.f32 %v6498_v42, %v2313_v46 }
0x1124   :  { %v2318_v49 = vsel %vm2317_vm9, %v6498_v42, %v2314_v47 }
0x1125   :  { %v2322_v50 = vmul.f32 %v2320_v48, %v2318_v49 }
0x1127   :  { %v2327_v51 = vmul.f32 %v6350_v23, %v2322_v50 }
0x1129   :  { %v8397_v39 = vadd.f32 %v6351_v28, %v2327_v51 }
0x112b   :  { %v2338_v17 = vsel %vm652_vm0, %v8397_v39, 0.0  ;;  %v2344_v44 = vmul.f32 %v8397_v39, %v8397_v39 }
0x112c   :  { %2339 = vadd.xlane.f32.xlu0 %v2338_v17 }
0x112d   :  { %v2348_v34 = vsel %vm652_vm0, %v2344_v44, 0.0  ;;  %v6119_v44 = vld [vmem:[#allocation18 + $0x8] sm:$0xff] }
0x112e   :  { %2349 = vadd.xlane.f32.xlu2 %v2348_v34  ;;  %3128 = vmatpush.bf16.msra.mxu0 %v6119_v44 }
0x115c   :  { %v2337_v2 = vpop.xlane.xlu2 %2336 }
0x115d   :  { %v2341_v3 = vmul.f32 %v2337_v2, %v8015_v33 }
0x115e   :  { %v2347_v6 = vpop.xlane.xlu1 %2346 }
0x115f   :  { %v2353_v7 = vmul.f32 %v2341_v3, %v2341_v3  ;;  %v2351_v8 = vmul.f32 %v2347_v6, %v8015_v33  ;;  %v2379_v35 = vsub.f32 %v8387_v31, %v2341_v3 }
0x1161   :  { %v2355_v19 = vsub.f32 %v2351_v8, %v2353_v7 }
0x1168   :  { %v3016_v4 = vpop.f32.mrf.mxu3 }
0x1169   :  { %v3017_v59 = vadd.f32 %v6354_v56, %v3016_v4  ;;  %v6118_v4 = vld [vmem:[#allocation18] sm:$0xff] }
0x116a   :  { %3129 = vmatpush.bf16.msra.mxu0 %v6118_v4 }
0x116b   :  { %v8405_v58 = vadd.f32 %v3017_v59, %v8164_v13 }
0x116d   :  { %v3025_v60 = vsel %vm652_vm0, %v8405_v58, 0.0  ;;  %v3033_v61 = vmul.f32 %v8405_v58, %v8405_v58 }
0x116e   :  { %3026 = vadd.xlane.f32.xlu0 %v3025_v60 }
0x116f   :  { %v3035_v24 = vsel %vm652_vm0, %v3033_v61, 0.0 }
0x1170   :  { %v3018_v52 = vpop.f32.mrf.mxu3  ;;  %3036 = vadd.xlane.f32.xlu2 %v3035_v24 }
0x1171   :  { %v3019_v62 = vadd.f32 %v6354_v56, %v3018_v52 }
0x1173   :  { %v8413_v16 = vadd.f32 %v3019_v62, %v8167_v14  ;;  %v2357_v14 = vadd.f32 1e-05, %v2355_v19 }
0x1175   :  { %v3028_v53 = vsel %vm652_vm0, %v8413_v16, 0.0  ;;  %v3034_v13 = vmul.f32 %v8413_v16, %v8413_v16  ;;  %6499 = vrsqrt.f32 %v2357_v14  ;;  %vm2365_vm11 = vweird.f32 %v2357_v14 }
0x1176   :  { %3029 = vadd.xlane.f32.xlu1 %v3028_v53 }
0x1177   :  { %v3038_v63 = vsel %vm652_vm0, %v3034_v13, 0.0 }
0x1178   :  { %3039 = vadd.xlane.f32.xlu0 %v3038_v63 }
0x117b   :  { %v6500_v11 = vpop.eup %6499 }
0x117c   :  { %v2360_v21 = vmul.f32 %v6500_v11, %v2357_v14  ;;  %vm2366_vm10 = vweird.f32 %v6500_v11 }
0x117d   :  { %vm2367_vm13 = vmor %vm2365_vm11, %vm2366_vm10 }
0x117e   :  { %v2361_v15 = vmul.f32 %v6500_v11, %v2360_v21 }
0x1180   :  { %v2362_v20 = vmul.f32 0.5, %v2361_v15 }
0x1182   :  { %v2363_v28 = vsub.f32 1.5, %v2362_v20 }
0x1184   :  { %v2364_v30 = vmul.f32 %v6500_v11, %v2363_v28  ;;  %v6357_v28 = vld [vmem:[#allocation22] ss:$0 sm:$0xff] }
0x1186   :  { %v2368_v5 = vsel %vm2367_vm13, %v6500_v11, %v2364_v30 }
0x1187   :  { %v2381_v38 = vmul.f32 %v2379_v35, %v2368_v5 }
0x1189   :  { %v2386_v43 = vmul.f32 %v6352_v37, %v2381_v38 }
0x118b   :  { %v2391_v47 = vadd.f32 %v6353_v40, %v2386_v43 }
0x119f   :  { %v2340_v22 = vpop.xlane.xlu0 %2339 }
0x11a0   :  { %v2342_v1 = vmul.f32 %v2340_v22, %v8015_v33 }
0x11a1   :  { %v2350_v23 = vpop.xlane.xlu2 %2349 }
0x11a2   :  { %v2354_v25 = vmul.f32 %v2342_v1, %v2342_v1  ;;  %v2352_v26 = vmul.f32 %v2350_v23, %v8015_v33  ;;  %v2380_v41 = vsub.f32 %v8397_v39, %v2342_v1 }
0x11a4   :  { %v2356_v27 = vsub.f32 %v2352_v26, %v2354_v25  ;;  %v6356_v25 = vld [vmem:[#allocation16] ss:$0 sm:$0xff] }
0x11a6   :  { %v2358_v55 = vadd.f32 1e-05, %v2356_v27 }
0x11a8   :  { %6501 = vrsqrt.f32 %v2358_v55  ;;  %vm2375_vm15 = vweird.f32 %v2358_v55 }
0x11ae   :  { %v6502_v29 = vpop.eup %6501 }
0x11af   :  { %v2370_v32 = vmul.f32 %v6502_v29, %v2358_v55  ;;  %vm2376_vm14 = vweird.f32 %v6502_v29 }
0x11b0   :  { %vm2377_vm5 = vmor %vm2375_vm15, %vm2376_vm14 }
0x11b1   :  { %v2371_v54 = vmul.f32 %v6502_v29, %v2370_v32 }
0x11b3   :  { %v2372_v0 = vmul.f32 0.5, %v2371_v54 }
0x11b5   :  { %v2373_v36 = vsub.f32 1.5, %v2372_v0 }
0x11b7   :  { %v2374_v57 = vmul.f32 %v6502_v29, %v2373_v36 }
0x11b9   :  { %v2378_v42 = vsel %vm2377_vm5, %v6502_v29, %v2374_v57 }
0x11ba   :  { %v2382_v45 = vmul.f32 %v2380_v41, %v2378_v42  ;;  %v6359_v41 = vld [vmem:[#allocation19] ss:$0 sm:$0xff] }
0x11bc   :  { %v2387_v46 = vmul.f32 %v6352_v37, %v2382_v45 }
0x11be   :  { %v2392_v48 = vadd.f32 %v6353_v40, %v2387_v46 }
0x11c0   :  { %v8428_v49 = vpack.c.bf16 %v2392_v48, %v2391_v47 }
0x11c2   :  { %5879 = vmatmul.msk.bf16.vlgmr.msra.gmra.mxu1 %vm652_vm0, %v8428_v49  ;;  %5888 = vmatmul.msk.bf16.vlgmr.msra.gmra.mxu2 %vm652_vm0, %v8428_v49 }
0x11e1   :  { %v3027_v31 = vpop.xlane.xlu0 %3026 }
0x11e2   :  { %v3031_v50 = vmul.f32 %v3027_v31, %v8015_v33 }
0x11e3   :  { %v3037_v51 = vpop.xlane.xlu2 %3036 }
0x11e4   :  { %v3043_v39 = vmul.f32 %v3031_v50, %v3031_v50  ;;  %v3041_v17 = vmul.f32 %v3037_v51, %v8015_v33  ;;  %v3069_v11 = vsub.f32 %v8405_v58, %v3031_v50 }
0x11e6   :  { %v3045_v34 = vsub.f32 %v3041_v17, %v3043_v39 }
0x11e8   :  { %v3047_v56 = vadd.f32 1e-05, %v3045_v34 }
0x11e9   :  { %v3030_v59 = vpop.xlane.xlu1 %3029 }
0x11ea   :  { %6503 = vrsqrt.f32 %v3047_v56  ;;  %v3032_v60 = vmul.f32 %v3030_v59, %v8015_v33  ;;  %vm3055_vm7 = vweird.f32 %v3047_v56 }
0x11eb   :  { %v3040_v61 = vpop.xlane.xlu0 %3039 }
0x11ec   :  { %v3044_v24 = vmul.f32 %v3032_v60, %v3032_v60  ;;  %v3042_v52 = vmul.f32 %v3040_v61, %v8015_v33  ;;  %v3070_v1 = vsub.f32 %v8413_v16, %v3032_v60  ;;  %v8447_v16 = vld [vmem:[#allocation25] ss:$0 sm:$0xff] }
0x11ee   :  { %v3046_v62 = vsub.f32 %v3042_v52, %v3044_v24 }
0x11f0   :  { %v6504_v53 = vpop.eup %6503  ;;  %v3048_v13 = vadd.f32 1e-05, %v3046_v62 }
0x11f1   :  { %v3050_v63 = vmul.f32 %v6504_v53, %v3047_v56  ;;  %vm3056_vm6 = vweird.f32 %v6504_v53 }
0x11f2   :  { %6505 = vrsqrt.f32 %v3048_v13  ;;  %vm3057_vm8 = vmor %vm3055_vm7, %vm3056_vm6  ;;  %vm3065_vm10 = vweird.f32 %v3048_v13 }
0x11f3   :  { %v3051_v2 = vmul.f32 %v6504_v53, %v3050_v63 }
0x11f5   :  { %v3052_v3 = vmul.f32 0.5, %v3051_v2 }
0x11f7   :  { %v3053_v6 = vsub.f32 1.5, %v3052_v3 }
0x11f8   :  { %v6506_v7 = vpop.eup %6505 }
0x11f9   :  { %v3054_v8 = vmul.f32 %v6504_v53, %v3053_v6  ;;  %v3060_v19 = vmul.f32 %v6506_v7, %v3048_v13  ;;  %vm3066_vm9 = vweird.f32 %v6506_v7 }
0x11fa   :  { %vm3067_vm11 = vmor %vm3065_vm10, %vm3066_vm9 }
0x11fb   :  { %v3061_v14 = vmul.f32 %v6506_v7, %v3060_v19  ;;  %v3058_v9 = vsel %vm3057_vm8, %v6504_v53, %v3054_v8 }
0x11fc   :  { %v3071_v21 = vmul.f32 %v3069_v11, %v3058_v9 }
0x11fd   :  { %v3062_v10 = vmul.f32 0.5, %v3061_v14 }
0x11fe   :  { %v3076_v26 = vmul.f32 %v6355_v18, %v3071_v21 }
0x11ff   :  { %v3063_v12 = vsub.f32 1.5, %v3062_v10 }
0x1200   :  { %v8440_v55 = vadd.f32 %v6356_v25, %v3076_v26 }
0x1201   :  { %v3064_v22 = vmul.f32 %v6506_v7, %v3063_v12 }
0x1203   :  { %v3068_v23 = vsel %vm3067_vm11, %v6506_v7, %v3064_v22 }
0x1204   :  { %v3072_v15 = vmul.f32 %v3070_v1, %v3068_v23 }
0x1206   :  { %v3077_v27 = vmul.f32 %v6355_v18, %v3072_v15 }
0x1208   :  { %v8442_v20 = vadd.f32 %v6356_v25, %v3077_v27 }
0x120a   :  { %v3103_v58 = vpack.c.bf16 %v8442_v20, %v8440_v55 }
0x120c   :  { %5870 = vmatmul.msk.bf16.vlgmr.msra.gmra.mxu0 %vm652_vm0, %v3103_v58 }
0x123f   :  { %v3164_v29 = vpop.f32.mrf.mxu1 }
0x1240   :  { %v3165_v30 = vadd.f32 %v6357_v28, %v3164_v29 }
0x1242   :  { %v3200_v32 = vpack.c.bf16 %v3165_v30, %v3165_v30 }
0x1244   :  { %3255 = vrot.lane.b32.xlu1 %v3200_v32, %s7383_s22  ;;  %3314 = vrot.lane.b32.xlu0 %v3200_v32, %s7382_s18  ;;  %v3205_v54 = vsel %vm731_vm1, %v3200_v32, 0 }
0x1245   :  { %v3193_v5 = vpop.f32.mrf.mxu2  ;;  %3214 = vmatpush.bf16.xpose.msra.mxu3 %v3205_v54 }
0x1246   :  { %v3194_v0 = vadd.f32 %v8447_v16, %v3193_v5 }
0x1247   :  { %v3166_v37 = vpop.f32.mrf.mxu1 }
0x1248   :  { %v8453_v35 = vpack.c.bf16 %v3194_v0, %v3194_v0  ;;  %v3167_v38 = vadd.f32 %v6357_v28, %v3166_v37 }
0x124a   :  { %v3236_v36 = vsel %vm766_vm2, %v8453_v35, 0  ;;  %v3441_v57 = vpack.c.bf16 %v3167_v38, %v3167_v38  ;;  %v3289_v29 = vunpack.c.l.b16 %v8453_v35 }
0x124b   :  { %3245 = vmatpush.bf16.msrb.mxu0 %v3236_v36 }
0x124c   :  { %3370 = vrot.lane.b32.xlu1 %v3200_v32, %s7384_s12  ;;  %v3446_v39 = vsel %vm731_vm1, %v3441_v57, 0  ;;  %v3290_v32 = vpack.c.b16 %v3289_v29, %v3289_v29 }
0x1254   :  { %3496 = vrot.lane.b32.xlu1 %v3441_v57, %s7383_s22 }
0x125c   :  { %3611 = vrot.lane.b32.xlu1 %v3441_v57, %s7384_s12 }
0x1289   :  { %v3131_v42 = vpop.f32.mrf.mxu0 }
0x128a   :  { %v3132_v40 = vadd.f32 %v6359_v41, %v3131_v42 }
0x128c   :  { %v3199_v43 = vpack.c.bf16 %v3132_v40, %v3132_v40 }
0x128e   :  { %3312 = vrot.lane.b32.xlu0 %v3199_v43, %s7382_s18  ;;  %3252 = vrot.lane.b32.xlu2 %v3199_v43, %s7383_s22 }
0x128f   :  { %5889 = vmatmul.msk.bf16.vlgmr.msra.gmra.mxu3 %vm731_vm1, %v3199_v43 }
0x1291   :  { %v3133_v45 = vpop.f32.mrf.mxu0 }
0x1292   :  { %v3134_v46 = vadd.f32 %v6359_v41, %v3133_v45 }
0x1294   :  { %v3440_v47 = vpack.c.bf16 %v3134_v46, %v3134_v46 }
0x1296   :  { %3493 = vrot.lane.b32.xlu0 %v3440_v47, %s7383_s22  ;;  %3368 = vrot.lane.b32.xlu2 %v3199_v43, %s7384_s12 }
0x129e   :  { %3553 = vrot.lane.b32.xlu0 %v3440_v47, %s7382_s18  ;;  %3555 = vrot.lane.b32.xlu2 %v3441_v57, %s7382_s18 }
0x12a6   :  { %3609 = vrot.lane.b32.xlu2 %v3440_v47, %s7384_s12 }
0x12b6   :  { %v3256_v48 = vpop.permute.xlu1 %3255  ;;  %v3315_v31 = vpop.permute.xlu0 %3314 }
0x12b7   :  { %v3261_v50 = vsel %vm731_vm1, %v3256_v48, 0  ;;  %v3320_v51 = vsel %vm731_vm1, %v3315_v31, 0 }
0x12b8   :  { %3270 = vmatpush.bf16.xpose.msrb.mxu1 %v3261_v50  ;;  %3329 = vmatpush.bf16.xpose.msrb.mxu3 %v3320_v51 }
0x12be   :  { %v3371_v17 = vpop.permute.xlu1 %3370 }
0x12bf   :  { %v3376_v44 = vsel %vm731_vm1, %v3371_v17, 0 }
0x12c0   :  { %3455 = vmatpush.bf16.xpose.msra.mxu3 %v3446_v39  ;;  %3385 = vmatpush.bf16.xpose.msra.mxu1 %v3376_v44 }
0x12c6   :  { %v3497_v34 = vpop.permute.xlu1 %3496 }
0x12c7   :  { %v3502_v4 = vsel %vm731_vm1, %v3497_v34, 0 }
0x12ce   :  { %v3612_v60 = vpop.permute.xlu1 %3611 }
0x12cf   :  { %v3617_v61 = vsel %vm731_vm1, %v3612_v60, 0 }
0x12e8   :  { %v3253_v56 = vpop.permute.xlu2 %3252 }
0x12e9   :  { %5891 = vmatmul.msk.bf16.vlgmr.msrb.gmra.mxu1 %vm731_vm1, %v3253_v56 }
0x12ea   :  { %3511 = vmatpush.bf16.xpose.msrb.mxu1 %v3502_v4 }
0x12f0   :  { %v3369_v59 = vpop.permute.xlu2 %3368 }
0x12f8   :  { %v3556_v24 = vpop.permute.xlu2 %3555 }
0x12f9   :  { %5895 = vmatmul.msk.bf16.vlgmr.msra.gmra.mxu1 %vm731_vm1, %v3369_v59  ;;  %v3561_v62 = vsel %vm731_vm1, %v3556_v24, 0 }
0x12fa   :  { %3626 = vmatpush.bf16.xpose.msra.mxu1 %v3617_v61 }
0x1300   :  { %v3313_v52 = vpop.permute.xlu0 %3312  ;;  %v3610_v2 = vpop.permute.xlu2 %3609 }
0x1301   :  { %5893 = vmatmul.msk.bf16.vlgmr.msrb.gmra.mxu3 %vm731_vm1, %v3313_v52 }
0x1302   :  { %3570 = vmatpush.bf16.xpose.msrb.mxu3 %v3561_v62 }
0x1308   :  { %v3494_v53 = vpop.permute.xlu0 %3493 }
0x1309   :  { %5899 = vmatmul.msk.bf16.vlgmr.msrb.gmra.mxu1 %vm731_vm1, %v3494_v53  ;;  %v3195_v53 = vpop.f32.mrf.mxu2 }
0x1310   :  { %v3554_v6 = vpop.permute.xlu0 %3553 }
0x1311   :  { %5897 = vmatmul.msk.bf16.vlgmr.msra.gmra.mxu3 %vm731_vm1, %v3440_v47 }
0x1312   :  { %v3216_v13 = vpop.f32.mrf.mxu3 }
0x1313   :  { %v3220_v63 = vsel %vm731_vm1, %v3216_v13, -inf }
0x1314   :  { %3221 = vmax.xlane.f32.xlu0 %v3220_v63 }
0x1319   :  { %5903 = vmatmul.msk.bf16.vlgmr.msra.gmra.mxu1 %vm731_vm1, %v3610_v2 }
0x131a   :  { %v3218_v3 = vpop.f32.mrf.mxu3 }
0x131b   :  { %v3196_v3 = vadd.f32 %v8447_v16, %v3195_v53 }
0x1321   :  { %5901 = vmatmul.msk.bf16.vlgmr.msrb.gmra.mxu3 %vm731_vm1, %v3554_v6 }
0x1366   :  { %v3272_v7 = vpop.f32.mrf.mxu1 }
0x1367   :  { %v3276_v8 = vsel %vm731_vm1, %v3272_v7, -inf }
0x1368   :  { %3277 = vmax.xlane.f32.xlu1 %v3276_v8  ;;  %v3439_v8 = vpack.c.bf16 %v3196_v3, %v3196_v3 }
0x136e   :  { %v3274_v19 = vpop.f32.mrf.mxu1 }
0x1376   :  { %v3387_v14 = vpop.f32.mrf.mxu1 }
0x1377   :  { %v3391_v9 = vsel %vm731_vm1, %v3387_v14, -inf }
0x1378   :  { %3392 = vmax.xlane.f32.xlu2 %v3391_v9 }
0x137e   :  { %v3389_v10 = vpop.f32.mrf.mxu1 }
0x1384   :  { %v3331_v11 = vpop.f32.mrf.mxu3 }
0x1385   :  { %v3335_v12 = vsel %vm731_vm1, %v3331_v11, -inf }
0x1386   :  { %3336 = vmax.xlane.f32.xlu1 %v3335_v12  ;;  %v3513_v18 = vpop.f32.mrf.mxu1 }
0x1387   :  { %v3222_v21 = vpop.xlane.xlu0 %3221  ;;  %v3517_v22 = vsel %vm731_vm1, %v3513_v18, -inf }
0x1388   :  { %v3223_v1 = vsub.f32 %v3216_v13, %v3222_v21  ;;  %3518 = vmax.xlane.f32.xlu0 %v3517_v22  ;;  %v3477_v22 = vsel %vm766_vm2, %v3439_v8, 0 }
0x138a   :  { %v3224_v23 = vmul.f32 1.442695, %v3223_v1 }
0x138c   :  { %6507 = vpow2.f32 %v3224_v23  ;;  %v3333_v25 = vpop.f32.mrf.mxu3 }
0x138e   :  { %v3515_v26 = vpop.f32.mrf.mxu1 }
0x1392   :  { %v6508_v15 = vpop.eup %6507 }
0x1393   :  { %v3226_v27 = vsel %vm731_vm1, %v6508_v15, 0.0 }
0x1394   :  { %3227 = vadd.xlane.f32.xlu1 %v3226_v27  ;;  %v3457_v58 = vpop.f32.mrf.mxu3 }
0x1395   :  { %v3461_v28 = vsel %vm731_vm1, %v3457_v58, -inf }
0x1396   :  { %3462 = vmax.xlane.f32.xlu2 %v3461_v28  ;;  %v8490_v30 = vpop.f32.mrf.mxu1 }
0x1397   :  { %v3632_v35 = vsel %vm731_vm1, %v8490_v30, -inf }
0x139c   :  { %v3459_v54 = vpop.f32.mrf.mxu3  ;;  %3291 = vrot.lane.b32.xlu0 %v3290_v32, %s7383_s22 }
0x139e   :  { %v3630_v5 = vpop.f32.mrf.mxu1 }
0x13a4   :  { %v3572_v0 = vpop.f32.mrf.mxu3 }
0x13a5   :  { %v3576_v36 = vsel %vm731_vm1, %v3572_v0, -inf }
0x13a6   :  { %3577 = vmax.xlane.f32.xlu2 %v3576_v36 }
0x13ac   :  { %v3574_v37 = vpop.f32.mrf.mxu3 }
0x13ad   :  { %3347 = vrot.lane.b32.xlu1 %v3290_v32, %s7382_s18 }
0x13be   :  { %3403 = vrot.lane.b32.xlu2 %v3290_v32, %s7384_s12 }
0x13d7   :  { %3633 = vmax.xlane.f32.xlu1 %v3632_v35 }
0x13db   :  { %v3278_v38 = vpop.xlane.xlu1 %3277 }
0x13dc   :  { %v3279_v57 = vsub.f32 %v3272_v7, %v3278_v38 }
0x13de   :  { %v3280_v41 = vmul.f32 1.442695, %v3279_v57 }
0x13e0   :  { %6509 = vpow2.f32 %v3280_v41 }
0x13e6   :  { %v8498_v42 = vpop.eup %6509 }
0x13e7   :  { %v3282_v40 = vsel %vm731_vm1, %v8498_v42, 0.0 }
0x13e8   :  { %3283 = vadd.xlane.f32.xlu0 %v3282_v40 }
0x13eb   :  { %v3393_v43 = vpop.xlane.xlu2 %3392 }
0x13ec   :  { %v3394_v45 = vsub.f32 %v3387_v14, %v3393_v43  ;;  %v3530_v14 = vunpack.c.l.b16 %v3439_v8 }
0x13ee   :  { %v3395_v46 = vmul.f32 1.442695, %v3394_v45  ;;  %v3531_v12 = vpack.c.b16 %v3530_v14, %v3530_v14 }
0x13f0   :  { %6511 = vpow2.f32 %v3395_v46 }
0x13f6   :  { %v8502_v47 = vpop.eup %6511 }
0x13f7   :  { %v3397_v48 = vsel %vm731_vm1, %v8502_v47, 0.0 }
0x13f8   :  { %3398 = vadd.xlane.f32.xlu2 %v3397_v48 }
0x13f9   :  { %v3337_v31 = vpop.xlane.xlu1 %3336 }
0x13fa   :  { %v3338_v50 = vsub.f32 %v3331_v11, %v3337_v31 }
0x13fb   :  { %v3519_v51 = vpop.xlane.xlu0 %3518 }
0x13fc   :  { %v3339_v39 = vmul.f32 1.442695, %v3338_v50  ;;  %v3520_v17 = vsub.f32 %v3513_v18, %v3519_v51 }
0x13fe   :  { %6513 = vpow2.f32 %v3339_v39  ;;  %v3521_v44 = vmul.f32 1.442695, %v3520_v17 }
0x1400   :  { %6515 = vpow2.f32 %v3521_v44 }
0x1404   :  { %v8506_v34 = vpop.eup %6513 }
0x1405   :  { %v3341_v56 = vsel %vm731_vm1, %v8506_v34, 0.0 }
0x1406   :  { %v8510_v4 = vpop.eup %6515  ;;  %3342 = vadd.xlane.f32.xlu1 %v3341_v56 }
0x1407   :  { %v3228_v59 = vpop.xlane.xlu1 %3227  ;;  %v3523_v60 = vsel %vm731_vm1, %v8510_v4, 0.0 }
0x1408   :  { %6517 = vrcp.f32 %v3228_v59  ;;  %3524 = vadd.xlane.f32.xlu0 %v3523_v60 }
0x1409   :  { %v3463_v61 = vpop.xlane.xlu2 %3462 }
0x140a   :  { %v3464_v24 = vsub.f32 %v3457_v58, %v3463_v61 }
0x140c   :  { %v3465_v52 = vmul.f32 1.442695, %v3464_v24 }
0x140e   :  { %v6518_v62 = vpop.eup %6517  ;;  %6519 = vpow2.f32 %v3465_v52  ;;  %v3292_v13 = vpop.permute.xlu0 %3291 }
0x140f   :  { %v3230_v63 = vmul.f32 %v6518_v62, %v6508_v15  ;;  %v3297_v2 = vsel %vm766_vm2, %v3292_v13, 0 }
0x1410   :  { %3306 = vmatpush.bf16.msrb.mxu2 %v3297_v2 }
0x1411   :  { %v3231_v6 = vpack.c.bf16 %v3230_v63, %v3230_v63 }
0x1413   :  { %5890 = vmatmul.msk.bf16.vlgmr.msrb.gmra.mxu0 %vm731_vm1, %v3231_v6 }
0x1414   :  { %v6520_v7 = vpop.eup %6519 }
0x1415   :  { %v3467_v19 = vsel %vm731_vm1, %v6520_v7, 0.0 }
0x1416   :  { %3468 = vadd.xlane.f32.xlu2 %v3467_v19 }
0x1419   :  { %v3578_v9 = vpop.xlane.xlu2 %3577 }
0x141a   :  { %v3579_v10 = vsub.f32 %v3572_v0, %v3578_v9 }
0x141c   :  { %v3580_v11 = vmul.f32 1.442695, %v3579_v10 }
0x141e   :  { %6521 = vpow2.f32 %v3580_v11 }
0x141f   :  { %v3348_v18 = vpop.permute.xlu1 %3347  ;;  %3532 = vrot.lane.b32.xlu1 %v3531_v12, %s7383_s22 }
0x1420   :  { %v3353_v21 = vsel %vm766_vm2, %v3348_v18, 0 }
0x1421   :  { %3362 = vmatpush.bf16.msra.mxu0 %v3353_v21  ;;  %v3404_v16 = vpop.permute.xlu2 %3403 }
0x1422   :  { %v3409_v1 = vsel %vm766_vm2, %v3404_v16, 0 }
0x1423   :  { %3418 = vmatpush.bf16.msra.mxu2 %v3409_v1 }
0x1424   :  { %v6522_v23 = vpop.eup %6521 }
0x1425   :  { %3486 = vmatpush.bf16.msrb.mxu0 %v3477_v22  ;;  %v3582_v25 = vsel %vm731_vm1, %v6522_v23, 0.0 }
0x1426   :  { %3583 = vadd.xlane.f32.xlu0 %v3582_v25  ;;  %v6124_v25 = vld [vmem:[#allocation27] sm:$0xff] }
0x142e   :  { %3588 = vrot.lane.b32.xlu2 %v3531_v12, %s7382_s18 }
0x143a   :  { %3644 = vrot.lane.b32.xlu0 %v3531_v12, %s7384_s12 }
0x144a   :  { %v3634_v26 = vpop.xlane.xlu1 %3633 }
0x144b   :  { %v3635_v15 = vsub.f32 %v8490_v30, %v3634_v26 }
0x144d   :  { %v3636_v27 = vmul.f32 1.442695, %v3635_v15 }
0x144f   :  { %6523 = vpow2.f32 %v3636_v27 }
0x1455   :  { %v6524_v58 = vpop.eup %6523 }
0x1456   :  { %v3638_v28 = vsel %vm731_vm1, %v6524_v58, 0.0 }
0x1457   :  { %3639 = vadd.xlane.f32.xlu1 %v3638_v28 }
0x145b   :  { %v3284_v29 = vpop.xlane.xlu0 %3283 }
0x145c   :  { %6525 = vrcp.f32 %v3284_v29 }
0x1462   :  { %v6526_v32 = vpop.eup %6525 }
0x1463   :  { %v3286_v54 = vmul.f32 %v6526_v32, %v8498_v42 }
0x1465   :  { %v3287_v5 = vpack.c.bf16 %v3286_v54, %v3286_v54 }
0x1467   :  { %5892 = vmatmul.msk.bf16.vlgmr.msrb.gmra.mxu2 %vm731_vm1, %v3287_v5 }
0x146b   :  { %v3399_v0 = vpop.xlane.xlu2 %3398 }
0x146c   :  { %6527 = vrcp.f32 %v3399_v0 }
0x1472   :  { %v6528_v36 = vpop.eup %6527 }
0x1473   :  { %v3401_v37 = vmul.f32 %v6528_v36, %v8502_v47 }
0x1475   :  { %v3402_v30 = vpack.c.bf16 %v3401_v37, %v3401_v37 }
0x1477   :  { %5896 = vmatmul.msk.bf16.vlgmr.msra.gmra.mxu2 %vm731_vm1, %v3402_v30 }
0x1479   :  { %v3343_v35 = vpop.xlane.xlu1 %3342 }
0x147a   :  { %6529 = vrcp.f32 %v3343_v35 }
0x147b   :  { %v3525_v40 = vpop.xlane.xlu0 %3524 }
0x147c   :  { %6531 = vrcp.f32 %v3525_v40 }
0x1480   :  { %v6530_v38 = vpop.eup %6529 }
0x1481   :  { %v3345_v57 = vmul.f32 %v6530_v38, %v8506_v34 }
0x1482   :  { %v6532_v43 = vpop.eup %6531 }
0x1483   :  { %v3346_v41 = vpack.c.bf16 %v3345_v57, %v3345_v57  ;;  %v3527_v46 = vmul.f32 %v6532_v43, %v8510_v4 }
0x1485   :  { %5894 = vmatmul.msk.bf16.vlgmr.msra.gmra.mxu0 %vm731_vm1, %v3346_v41  ;;  %v3528_v44 = vpack.c.bf16 %v3527_v46, %v3527_v46  ;;  %v6360_v41 = vld [vmem:[#allocation28] ss:$0 sm:$0xff] }
0x1489   :  { %v3469_v42 = vpop.xlane.xlu2 %3468 }
0x148a   :  { %6533 = vrcp.f32 %v3469_v42 }
0x1490   :  { %v6534_v45 = vpop.eup %6533  ;;  %v3247_v47 = vpop.f32.mrf.mxu0 }
0x1491   :  { %v3471_v48 = vmul.f32 %v6534_v45, %v6520_v7  ;;  %v3589_v31 = vpop.permute.xlu2 %3588  ;;  %v3533_v50 = vpop.permute.xlu1 %3532 }
0x1492   :  { %v3594_v51 = vsel %vm766_vm2, %v3589_v31, 0  ;;  %v3538_v39 = vsel %vm766_vm2, %v3533_v50, 0 }
0x1493   :  { %v3472_v17 = vpack.c.bf16 %v3471_v48, %v3471_v48  ;;  %3547 = vmatpush.bf16.msrb.mxu2 %v3538_v39  ;;  %3603 = vmatpush.bf16.msra.mxu0 %v3594_v51 }
0x1495   :  { %5898 = vmatmul.msk.bf16.vlgmr.msrb.gmra.mxu0 %vm731_vm1, %v3472_v17 }
0x1496   :  { %5900 = vmatmul.msk.bf16.vlgmr.msrb.gmra.mxu2 %vm731_vm1, %v3528_v44 }
0x1498   :  { %v3249_v34 = vpop.f32.mrf.mxu0 }
0x1499   :  { %v3584_v56 = vpop.xlane.xlu0 %3583 }
0x149a   :  { %6535 = vrcp.f32 %v3584_v56  ;;  %v6127_v56 = vld [vmem:[#allocation33 + $0x8] sm:$0xff] }
0x149b   :  { %3814 = vmatpush.bf16.msrb.mxu0 %v6127_v56 }
0x14a0   :  { %v6536_v4 = vpop.eup %6535 }
0x14a1   :  { %v3586_v59 = vmul.f32 %v6536_v4, %v6522_v23  ;;  %v6125_v23 = vld [vmem:[#allocation27 + $0x8] sm:$0xff] }
0x14a2   :  { %3705 = vmatpush.bf16.msra.mxu3 %v6125_v23 }
0x14a3   :  { %v3587_v60 = vpack.c.bf16 %v3586_v59, %v3586_v59 }
0x14a5   :  { %5902 = vmatmul.msk.bf16.vlgmr.msra.gmra.mxu0 %vm731_vm1, %v3587_v60 }
0x14a6   :  { %3706 = vmatpush.bf16.msra.mxu3 %v6124_v25 }
0x14ac   :  { %v3645_v61 = vpop.permute.xlu0 %3644 }
0x14ad   :  { %v3650_v24 = vsel %vm766_vm2, %v3645_v61, 0  ;;  %v6126_v61 = vld [vmem:[#allocation33] sm:$0xff] }
0x14ae   :  { %3659 = vmatpush.bf16.msra.mxu2 %v3650_v24  ;;  %3815 = vmatpush.bf16.msrb.mxu0 %v6126_v61  ;;  %v6133_v61 = vld [vmem:[%s8974_s7 + $0x18] sm:$0xff] }
0x14b2   :  { %3984 = vmatpush.bf16.msrb.mxu2 %v6133_v61 }
0x14ca   :  { %v3640_v52 = vpop.xlane.xlu1 %3639 }
0x14cb   :  { %6537 = vrcp.f32 %v3640_v52 }
0x14d1   :  { %v6538_v62 = vpop.eup %6537 }
0x14d2   :  { %v3642_v53 = vmul.f32 %v6538_v62, %v6524_v58 }
0x14d4   :  { %v3643_v13 = vpack.c.bf16 %v3642_v53, %v3642_v53 }
0x14d6   :  { %5904 = vmatmul.msk.bf16.vlgmr.msra.gmra.mxu2 %vm731_vm1, %v3643_v13 }
0x14ea   :  { %v3308_v63 = vpop.f32.mrf.mxu2 }
0x14f2   :  { %v3310_v2 = vpop.f32.mrf.mxu2 }
0x14fa   :  { %v3420_v3 = vpop.f32.mrf.mxu2 }
0x1502   :  { %v3364_v6 = vpop.f32.mrf.mxu0  ;;  %v3422_v7 = vpop.f32.mrf.mxu2 }
0x150a   :  { %v3366_v8 = vpop.f32.mrf.mxu0 }
0x1512   :  { %v3488_v19 = vpop.f32.mrf.mxu0 }
0x1519   :  { %v3549_v14 = vpop.f32.mrf.mxu2 }
0x151a   :  { %v6284_v9 = vpack.i.bf16 %v3549_v14, %v3308_v63  ;;  %v3490_v10 = vpop.f32.mrf.mxu0 }
0x151c   :  { %6285 = vrot.lane.b32.xlu1 %v6284_v9, %s7385_s9 }
0x1521   :  { %v3551_v11 = vpop.f32.mrf.mxu2 }
0x1522   :  { %v3605_v12 = vpop.f32.mrf.mxu0 }
0x1523   :  { %v6289_v18 = vpack.i.bf16 %v3605_v12, %v3364_v6 }
0x1525   :  { %6290 = vrot.lane.b32.xlu0 %v6289_v18, %s7352_s15 }
0x152a   :  { %v3607_v21 = vpop.f32.mrf.mxu0 }
0x1559   :  { %v3661_v16 = vpop.f32.mrf.mxu2 }
0x155a   :  { %v6294_v22 = vpack.i.bf16 %v3661_v16, %v3420_v3 }
0x155c   :  { %6295 = vrot.lane.b32.xlu0 %v6294_v22, %s7386_s26  ;;  %v6361_v22 = vld [vmem:[#allocation30] ss:$0 sm:$0xff] }
0x1561   :  { %v3663_v1 = vpop.f32.mrf.mxu2 }
0x158e   :  { %v6286_v15 = vpop.permute.xlu1 %6285 }
0x158f   :  { %v6288_v27 = vunpack.i.h.bf16 %v6286_v15  ;;  %v6287_v58 = vunpack.i.l.bf16 %v6286_v15  ;;  %v6362_v15 = vld [vmem:[#allocation31] ss:$0 sm:$0xff] }
0x1591   :  { %v3677_v54 = vsel %vm731_vm1, %v3488_v19, %v6288_v27  ;;  %v3436_v5 = vsel %vm731_vm1, %v3247_v47, %v6287_v58 }
0x1597   :  { %v6291_v26 = vpop.permute.xlu0 %6290 }
0x1598   :  { %v6293_v28 = vunpack.i.h.bf16 %v6291_v26  ;;  %v6292_v29 = vunpack.i.l.bf16 %v6291_v26 }
0x159a   :  { %v3678_v37 = vsel %vm969_vm3, %v3677_v54, %v6293_v28  ;;  %v3437_v30 = vsel %vm969_vm3, %v3436_v5, %v6292_v29  ;;  %v6131_v5 = vld [vmem:[%s8977_s30 + $0x18] sm:$0xff] }
0x159b   :  { %3859 = vmatpush.bf16.msrb.mxu1 %v6131_v5 }
0x15ce   :  { %v6296_v32 = vpop.permute.xlu0 %6295 }
0x15cf   :  { %v6298_v0 = vunpack.i.h.bf16 %v6296_v32  ;;  %v6297_v36 = vunpack.i.l.bf16 %v6296_v32 }
0x15d1   :  { %v3438_v35 = vsel %vm971_vm4, %v3437_v30, %v6297_v36  ;;  %v3679_v38 = vsel %vm971_vm4, %v3678_v37, %v6298_v0  ;;  %v6130_v0 = vld [vmem:[%s8977_s30 + $0x10] sm:$0xff]  ;;  %v6129_v36 = vld [vmem:[%s8977_s30 + $0x8] sm:$0xff]  ;;  %v6128_v37 = vld [vmem:[%s8977_s30] sm:$0xff] }
0x15d2   :  { %v3680_v57 = vpack.c.bf16 %v3679_v38, %v3438_v35  ;;  %3860 = vmatpush.bf16.msrb.mxu1 %v6130_v0  ;;  %v6363_v35 = vld [vmem:[#allocation34] ss:$0 sm:$0xff]  ;;  %v6366_v0 = vld [vmem:[#allocation39] ss:$0 sm:$0xff] }
0x15d4   :  { %5913 = vmatmul.msk.bf16.vlgmr.msra.gmra.mxu3 %vm652_vm0, %v3680_v57 }
0x15d6   :  { %3861 = vmatpush.bf16.msrb.mxu1 %v6129_v36 }
0x15da   :  { %3862 = vmatpush.bf16.msrb.mxu1 %v6128_v37 }
0x1657   :  { %v3708_v40 = vpop.f32.mrf.mxu3 }
0x1658   :  { %v3709_v42 = vadd.f32 %v6360_v41, %v3708_v40 }
0x165a   :  { %v3715_v43 = vadd.f32 %v3709_v42, %v8440_v55 }
0x165c   :  { %v3717_v45 = vsel %vm652_vm0, %v3715_v43, 0.0  ;;  %v3725_v46 = vmul.f32 %v3715_v43, %v3715_v43 }
0x165d   :  { %3718 = vadd.xlane.f32.xlu2 %v3717_v45  ;;  %v6364_v45 = vld [vmem:[#allocation36] ss:$0 sm:$0xff] }
0x165e   :  { %v3727_v47 = vsel %vm652_vm0, %v3725_v46, 0.0 }
0x165f   :  { %v3710_v48 = vpop.f32.mrf.mxu3  ;;  %3728 = vadd.xlane.f32.xlu1 %v3727_v47 }
0x1660   :  { %v3711_v31 = vadd.f32 %v6360_v41, %v3710_v48 }
0x1662   :  { %v3716_v50 = vadd.f32 %v3711_v31, %v8442_v20 }
0x1664   :  { %v3720_v51 = vsel %vm652_vm0, %v3716_v50, 0.0  ;;  %v3726_v39 = vmul.f32 %v3716_v50, %v3716_v50 }
0x1665   :  { %3721 = vadd.xlane.f32.xlu0 %v3720_v51 }
0x1666   :  { %v3730_v17 = vsel %vm652_vm0, %v3726_v39, 0.0 }
0x1667   :  { %3731 = vadd.xlane.f32.xlu2 %v3730_v17 }
0x16d0   :  { %v3719_v44 = vpop.xlane.xlu2 %3718 }
0x16d1   :  { %v3723_v55 = vmul.f32 %v3719_v44, %v8015_v33 }
0x16d2   :  { %v3729_v34 = vpop.xlane.xlu1 %3728 }
0x16d3   :  { %v3735_v4 = vmul.f32 %v3723_v55, %v3723_v55  ;;  %v3733_v59 = vmul.f32 %v3729_v34, %v8015_v33  ;;  %v3761_v21 = vsub.f32 %v3715_v43, %v3723_v55 }
0x16d5   :  { %v3737_v60 = vsub.f32 %v3733_v59, %v3735_v4 }
0x16d7   :  { %v3739_v24 = vadd.f32 1e-05, %v3737_v60 }
0x16d8   :  { %v3722_v20 = vpop.xlane.xlu0 %3721 }
0x16d9   :  { %6539 = vrsqrt.f32 %v3739_v24  ;;  %v3724_v52 = vmul.f32 %v3722_v20, %v8015_v33  ;;  %vm3747_vm14 = vweird.f32 %v3739_v24  ;;  %v6137_v20 = vld [vmem:[#allocation9 + $0x18] sm:$0xff] }
0x16da   :  { %v3732_v62 = vpop.xlane.xlu2 %3731  ;;  %4042 = vmatpush.bf16.msra.mxu0 %v6137_v20 }
0x16db   :  { %v3736_v53 = vmul.f32 %v3724_v52, %v3724_v52  ;;  %v3734_v13 = vmul.f32 %v3732_v62, %v8015_v33  ;;  %v3762_v25 = vsub.f32 %v3716_v50, %v3724_v52 }
0x16dd   :  { %v3738_v63 = vsub.f32 %v3734_v13, %v3736_v53  ;;  %v6132_v13 = vld [vmem:[%s8974_s7 + $0x10] sm:$0xff] }
0x16de   :  { %3985 = vmatpush.bf16.msrb.mxu2 %v6132_v13 }
0x16df   :  { %v6540_v2 = vpop.eup %6539  ;;  %v3740_v3 = vadd.f32 1e-05, %v3738_v63  ;;  %v6134_v63 = vld [vmem:[#allocation6 + $0x10] sm:$0xff] }
0x16e0   :  { %v3742_v6 = vmul.f32 %v6540_v2, %v3739_v24  ;;  %vm3748_vm13 = vweird.f32 %v6540_v2  ;;  %v6135_v24 = vld [vmem:[#allocation6 + $0x18] sm:$0xff] }
0x16e1   :  { %6541 = vrsqrt.f32 %v3740_v3  ;;  %vm3749_vm15 = vmor %vm3747_vm14, %vm3748_vm13  ;;  %vm3757_vm6 = vweird.f32 %v3740_v3  ;;  %4013 = vmatpush.bf16.msrb.mxu3 %v6135_v24 }
0x16e2   :  { %v3743_v7 = vmul.f32 %v6540_v2, %v3742_v6 }
0x16e4   :  { %v3744_v8 = vmul.f32 0.5, %v3743_v7 }
0x16e5   :  { %4014 = vmatpush.bf16.msrb.mxu3 %v6134_v63 }
0x16e6   :  { %v3745_v19 = vsub.f32 1.5, %v3744_v8 }
0x16e7   :  { %v6542_v14 = vpop.eup %6541 }
0x16e8   :  { %v3746_v9 = vmul.f32 %v6540_v2, %v3745_v19  ;;  %v3752_v10 = vmul.f32 %v6542_v14, %v3740_v3  ;;  %vm3758_vm5 = vweird.f32 %v6542_v14 }
0x16e9   :  { %vm3759_vm7 = vmor %vm3757_vm6, %vm3758_vm5 }
0x16ea   :  { %v3753_v11 = vmul.f32 %v6542_v14, %v3752_v10  ;;  %v3750_v12 = vsel %vm3749_vm15, %v6540_v2, %v3746_v9  ;;  %v6136_v2 = vld [vmem:[#allocation9 + $0x10] sm:$0xff] }
0x16eb   :  { %v3763_v1 = vmul.f32 %v3761_v21, %v3750_v12  ;;  %4043 = vmatpush.bf16.msra.mxu0 %v6136_v2 }
0x16ec   :  { %v3754_v18 = vmul.f32 0.5, %v3753_v11 }
0x16ed   :  { %v3768_v27 = vmul.f32 %v6361_v22, %v3763_v1 }
0x16ee   :  { %v3755_v16 = vsub.f32 1.5, %v3754_v18 }
0x16ef   :  { %v3773_v29 = vadd.f32 %v6362_v15, %v3768_v27 }
0x16f0   :  { %v3756_v23 = vmul.f32 %v6542_v14, %v3755_v16 }
0x16f2   :  { %v3760_v26 = vsel %vm3759_vm7, %v6542_v14, %v3756_v23 }
0x16f3   :  { %v3764_v58 = vmul.f32 %v3762_v25, %v3760_v26 }
0x16f5   :  { %v3769_v28 = vmul.f32 %v6361_v22, %v3764_v58 }
0x16f7   :  { %v3774_v32 = vadd.f32 %v6362_v15, %v3769_v28  ;;  %v6365_v28 = vld [vmem:[#allocation37] ss:$0 sm:$0xff] }
0x16f9   :  { %v3789_v54 = vpack.c.bf16 %v3774_v32, %v3773_v29 }
0x16fb   :  { %5922 = vmatmul.msk.bf16.vlgmr.msrb.gmra.mxu0 %vm652_vm0, %v3789_v54 }
0x1778   :  { %v3817_v30 = vpop.f32.mrf.mxu0 }
0x1779   :  { %v3818_v38 = vadd.f32 %v6363_v35, %v3817_v30 }
0x177b   :  { %v3822_v40 = vmax.f32 %v3818_v38, 0.0 }
0x1780   :  { %v3819_v57 = vpop.f32.mrf.mxu0 }
0x1781   :  { %v3820_v41 = vadd.f32 %v6363_v35, %v3819_v57 }
0x1783   :  { %v3823_v42 = vmax.f32 %v3820_v41, 0.0  ;;  %v8586_v41 = vld [vmem:[#allocation10 + $0x1] ss:$0 sm:$0xff] }
0x1785   :  { %v3824_v43 = vpack.c.bf16 %v3823_v42, %v3822_v40 }
0x1787   :  { %5939 = vmatmul.msk.bf16.vlgmr.msrb.gmra.mxu1 %vm1393_vm12, %v3824_v43  ;;  %v6368_v43 = vld [vmem:[#allocation4 + $0x1] ss:$0 sm:$0xff] }
0x1804   :  { %v3864_v46 = vpop.f32.mrf.mxu1 }
0x1805   :  { %v3865_v47 = vadd.f32 %v6364_v45, %v3864_v46 }
0x1807   :  { %v3871_v48 = vadd.f32 %v3865_v47, %v3773_v29 }
0x1809   :  { %v3873_v31 = vsel %vm652_vm0, %v3871_v48, 0.0  ;;  %v3881_v50 = vmul.f32 %v3871_v48, %v3871_v48 }
0x180a   :  { %3874 = vadd.xlane.f32.xlu0 %v3873_v31 }
0x180b   :  { %v3883_v51 = vsel %vm652_vm0, %v3881_v50, 0.0 }
0x180c   :  { %v3866_v39 = vpop.f32.mrf.mxu1  ;;  %3884 = vadd.xlane.f32.xlu1 %v3883_v51 }
0x180d   :  { %v3867_v17 = vadd.f32 %v6364_v45, %v3866_v39  ;;  %v6369_v45 = vld [vmem:[#allocation7 + $0x1] ss:$0 sm:$0xff] }
0x180f   :  { %v3872_v44 = vadd.f32 %v3867_v17, %v3774_v32 }
0x1811   :  { %v3876_v55 = vsel %vm652_vm0, %v3872_v44, 0.0  ;;  %v3882_v34 = vmul.f32 %v3872_v44, %v3872_v44 }
0x1812   :  { %3877 = vadd.xlane.f32.xlu2 %v3876_v55 }
0x1813   :  { %v3886_v56 = vsel %vm652_vm0, %v3882_v34, 0.0 }
0x1814   :  { %3887 = vadd.xlane.f32.xlu0 %v3886_v56 }
0x187d   :  { %v3875_v4 = vpop.xlane.xlu0 %3874 }
0x187e   :  { %v3879_v59 = vmul.f32 %v3875_v4, %v8015_v33 }
0x187f   :  { %v3885_v60 = vpop.xlane.xlu1 %3884 }
0x1880   :  { %v3891_v52 = vmul.f32 %v3879_v59, %v3879_v59  ;;  %v3889_v62 = vmul.f32 %v3885_v60, %v8015_v33  ;;  %v3917_v27 = vsub.f32 %v3871_v48, %v3879_v59 }
0x1882   :  { %v3893_v53 = vsub.f32 %v3889_v62, %v3891_v52 }
0x1884   :  { %v3895_v3 = vadd.f32 1e-05, %v3893_v53 }
0x1885   :  { %v3878_v6 = vpop.xlane.xlu2 %3877 }
0x1886   :  { %6543 = vrsqrt.f32 %v3895_v3  ;;  %v3880_v7 = vmul.f32 %v3878_v6, %v8015_v33  ;;  %vm3903_vm9 = vweird.f32 %v3895_v3 }
0x1887   :  { %v3888_v8 = vpop.xlane.xlu0 %3887 }
0x1888   :  { %v3892_v19 = vmul.f32 %v3880_v7, %v3880_v7  ;;  %v3890_v14 = vmul.f32 %v3888_v8, %v8015_v33  ;;  %v3918_v54 = vsub.f32 %v3872_v44, %v3880_v7 }
0x188a   :  { %v3894_v9 = vsub.f32 %v3890_v14, %v3892_v19 }
0x188c   :  { %v6544_v10 = vpop.eup %6543  ;;  %v3896_v11 = vadd.f32 1e-05, %v3894_v9 }
0x188d   :  { %v3898_v12 = vmul.f32 %v6544_v10, %v3895_v3  ;;  %vm3904_vm8 = vweird.f32 %v6544_v10 }
0x188e   :  { %6545 = vrsqrt.f32 %v3896_v11  ;;  %vm3905_vm10 = vmor %vm3903_vm9, %vm3904_vm8  ;;  %vm3913_vm13 = vweird.f32 %v3896_v11 }
0x188f   :  { %v3899_v18 = vmul.f32 %v6544_v10, %v3898_v12 }
0x1891   :  { %v3900_v21 = vmul.f32 0.5, %v3899_v18 }
0x1893   :  { %v3901_v16 = vsub.f32 1.5, %v3900_v21  ;;  %v6143_v21 = vld [vmem:[#allocation21 + $0x18] sm:$0xff] }
0x1894   :  { %v6546_v22 = vpop.eup %6545 }
0x1895   :  { %v3902_v1 = vmul.f32 %v6544_v10, %v3901_v16  ;;  %v3908_v23 = vmul.f32 %v6546_v22, %v3896_v11  ;;  %vm3914_vm11 = vweird.f32 %v6546_v22  ;;  %v6142_v16 = vld [vmem:[#allocation21 + $0x10] sm:$0xff] }
0x1896   :  { %vm3915_vm14 = vmor %vm3913_vm13, %vm3914_vm11 }
0x1897   :  { %v3909_v25 = vmul.f32 %v6546_v22, %v3908_v23  ;;  %v3906_v26 = vsel %vm3905_vm10, %v6544_v10, %v3902_v1 }
0x1898   :  { %v3919_v29 = vmul.f32 %v3917_v27, %v3906_v26 }
0x1899   :  { %v3910_v15 = vmul.f32 0.5, %v3909_v25 }
0x189a   :  { %v3924_v36 = vmul.f32 %v6365_v28, %v3919_v29 }
0x189b   :  { %v3911_v58 = vsub.f32 1.5, %v3910_v15 }
0x189c   :  { %v8577_v35 = vadd.f32 %v6366_v0, %v3924_v36 }
0x189d   :  { %v3912_v32 = vmul.f32 %v6546_v22, %v3911_v58 }
0x189f   :  { %v3916_v5 = vsel %vm3915_vm14, %v6546_v22, %v3912_v32 }
0x18a0   :  { %v3920_v37 = vmul.f32 %v3918_v54, %v3916_v5 }
0x18a2   :  { %v3925_v30 = vmul.f32 %v6365_v28, %v3920_v37 }
0x18a4   :  { %v8579_v38 = vadd.f32 %v6366_v0, %v3925_v30 }
0x18a6   :  { %v3959_v57 = vpack.c.bf16 %v8579_v38, %v8577_v35 }
0x18a8   :  { %5952 = vmatmul.msk.bf16.vlgmr.msrb.gmra.mxu2 %vm652_vm0, %v3959_v57  ;;  %5961 = vmatmul.msk.bf16.vlgmr.msrb.gmra.mxu3 %vm652_vm0, %v3959_v57 }
0x18a9   :  { %5970 = vmatmul.msk.bf16.vlgmr.msra.gmra.mxu0 %vm652_vm0, %v3959_v57 }
0x1926   :  { %v4045_v40 = vpop.f32.mrf.mxu0 }
0x1927   :  { %v4046_v42 = vadd.f32 %v8586_v41, %v4045_v40 }
0x1929   :  { %v8589_v46 = vpack.c.bf16 %v4046_v42, %v4046_v42 }
0x192b   :  { %v4088_v47 = vsel %vm766_vm2, %v8589_v46, 0  ;;  %v3987_v48 = vpop.f32.mrf.mxu2  ;;  %v4016_v31 = vpop.f32.mrf.mxu3 }
0x192c   :  { %v3988_v50 = vadd.f32 %v6368_v43, %v3987_v48  ;;  %v4017_v51 = vadd.f32 %v6369_v45, %v4016_v31  ;;  %4097 = vmatpush.bf16.msra.mxu2 %v4088_v47  ;;  %v6138_v31 = vld [vmem:[#allocation12 + $0x10] sm:$0xff] }
0x192e   :  { %v4051_v39 = vpack.c.bf16 %v3988_v50, %v3988_v50  ;;  %v4052_v17 = vpack.c.bf16 %v4017_v51, %v4017_v51  ;;  %v4141_v50 = vunpack.c.l.b16 %v8589_v46 }
0x1930   :  { %4166 = vrot.lane.b32.xlu0 %v4052_v17, %s7382_s18  ;;  %4107 = vrot.lane.b32.xlu2 %v4052_v17, %s7383_s22  ;;  %v4057_v44 = vsel %vm731_vm1, %v4052_v17, 0 }
0x1931   :  { %4104 = vrot.lane.b32.xlu1 %v4051_v39, %s7383_s22  ;;  %4066 = vmatpush.bf16.xpose.msra.mxu1 %v4057_v44 }
0x1933   :  { %v3989_v55 = vpop.f32.mrf.mxu2  ;;  %v4018_v34 = vpop.f32.mrf.mxu3 }
0x1934   :  { %v3990_v56 = vadd.f32 %v6368_v43, %v3989_v55  ;;  %v4019_v4 = vadd.f32 %v6369_v45, %v4018_v34  ;;  %v6139_v43 = vld [vmem:[#allocation12 + $0x18] sm:$0xff] }
0x1936   :  { %v4292_v59 = vpack.c.bf16 %v3990_v56, %v3990_v56  ;;  %v4293_v60 = vpack.c.bf16 %v4019_v4, %v4019_v4  ;;  %v8641_v56 = vld [vmem:[#allocation22 + $0x1] ss:$0 sm:$0xff] }
0x1938   :  { %4222 = vrot.lane.b32.xlu2 %v4052_v17, %s7384_s12  ;;  %4164 = vrot.lane.b32.xlu0 %v4051_v39, %s7382_s18  ;;  %v4298_v3 = vsel %vm731_vm1, %v4293_v60, 0  ;;  %v4142_v17 = vpack.c.b16 %v4141_v50, %v4141_v50 }
0x1939   :  { %4220 = vrot.lane.b32.xlu1 %v4051_v39, %s7384_s12  ;;  %5971 = vmatmul.msk.bf16.vlgmr.msra.gmra.mxu1 %vm731_vm1, %v4051_v39 }
0x1940   :  { %4348 = vrot.lane.b32.xlu2 %v4293_v60, %s7383_s22  ;;  %4345 = vrot.lane.b32.xlu0 %v4292_v59, %s7383_s22 }
0x1941   :  { %4407 = vrot.lane.b32.xlu1 %v4293_v60, %s7382_s18 }
0x1948   :  { %4463 = vrot.lane.b32.xlu2 %v4293_v60, %s7384_s12  ;;  %4405 = vrot.lane.b32.xlu0 %v4292_v59, %s7382_s18 }
0x1949   :  { %4461 = vrot.lane.b32.xlu1 %v4292_v59, %s7384_s12 }
0x198a   :  { %v4108_v61 = vpop.permute.xlu2 %4107 }
0x198b   :  { %v4113_v24 = vsel %vm731_vm1, %v4108_v61, 0 }
0x198c   :  { %4122 = vmatpush.bf16.xpose.msra.mxu3 %v4113_v24 }
0x1992   :  { %v4223_v20 = vpop.permute.xlu2 %4222 }
0x1993   :  { %v4228_v52 = vsel %vm731_vm1, %v4223_v20, 0 }
0x1994   :  { %4237 = vmatpush.bf16.xpose.msrb.mxu3 %v4228_v52 }
0x199a   :  { %v4349_v62 = vpop.permute.xlu2 %4348 }
0x199b   :  { %v4354_v2 = vsel %vm731_vm1, %v4349_v62, 0 }
0x19a2   :  { %v4167_v53 = vpop.permute.xlu0 %4166  ;;  %v4464_v8 = vpop.permute.xlu2 %4463 }
0x19a3   :  { %v4172_v13 = vsel %vm731_vm1, %v4167_v53, 0  ;;  %v4105_v63 = vpop.permute.xlu1 %4104  ;;  %v4469_v14 = vsel %vm731_vm1, %v4464_v8, 0 }
0x19a4   :  { %5973 = vmatmul.msk.bf16.vlgmr.msra.gmra.mxu3 %vm731_vm1, %v4105_v63  ;;  %4181 = vmatpush.bf16.xpose.msrb.mxu1 %v4172_v13 }
0x19a5   :  { %4363 = vmatpush.bf16.xpose.msra.mxu3 %v4354_v2 }
0x19aa   :  { %v4165_v6 = vpop.permute.xlu0 %4164 }
0x19ab   :  { %v4221_v7 = vpop.permute.xlu1 %4220  ;;  %5975 = vmatmul.msk.bf16.vlgmr.msrb.gmra.mxu1 %vm731_vm1, %v4165_v6 }
0x19ac   :  { %4307 = vmatpush.bf16.xpose.msra.mxu1 %v4298_v3 }
0x19b2   :  { %v4346_v18 = vpop.permute.xlu0 %4345 }
0x19b3   :  { %v4408_v19 = vpop.permute.xlu1 %4407 }
0x19b4   :  { %v4413_v9 = vsel %vm731_vm1, %v4408_v19, 0  ;;  %5977 = vmatmul.msk.bf16.vlgmr.msrb.gmra.mxu3 %vm731_vm1, %v4221_v7 }
0x19b5   :  { %4478 = vmatpush.bf16.xpose.msrb.mxu3 %v4469_v14  ;;  %4422 = vmatpush.bf16.xpose.msrb.mxu1 %v4413_v9 }
0x19b6   :  { %v4068_v10 = vpop.f32.mrf.mxu1 }
0x19b7   :  { %v4072_v11 = vsel %vm731_vm1, %v4068_v10, -inf }
0x19b8   :  { %4073 = vmax.xlane.f32.xlu2 %v4072_v11 }
0x19ba   :  { %v4406_v22 = vpop.permute.xlu0 %4405 }
0x19bb   :  { %5979 = vmatmul.msk.bf16.vlgmr.msra.gmra.mxu1 %vm731_vm1, %v4292_v59  ;;  %v4462_v1 = vpop.permute.xlu1 %4461 }
0x19bd   :  { %4557 = vmatpush.bf16.msra.mxu1 %v6139_v43 }
0x19be   :  { %v4070_v12 = vpop.f32.mrf.mxu1 }
0x19c1   :  { %4558 = vmatpush.bf16.msra.mxu1 %v6138_v31 }
0x19c4   :  { %5981 = vmatmul.msk.bf16.vlgmr.msra.gmra.mxu3 %vm731_vm1, %v4346_v18 }
0x19c5   :  { %4711 = vmatpush.bf16.msra.mxu3 %v6143_v21 }
0x19c9   :  { %4712 = vmatpush.bf16.msra.mxu3 %v6142_v16 }
0x19cb   :  { %5983 = vmatmul.msk.bf16.vlgmr.msrb.gmra.mxu1 %vm731_vm1, %v4406_v22 }
0x19d4   :  { %5985 = vmatmul.msk.bf16.vlgmr.msrb.gmra.mxu3 %vm731_vm1, %v4462_v1 }
0x19e4   :  { %6013 = vmatmul.msk.bf16.vlgmr.msra.gmra.mxu3 %vm652_vm0, %v8428_v49 }
0x1a27   :  { %v4124_v23 = vpop.f32.mrf.mxu3 }
0x1a28   :  { %v4128_v25 = vsel %vm731_vm1, %v4124_v23, -inf  ;;  %v4183_v26 = vpop.f32.mrf.mxu1 }
0x1a29   :  { %4129 = vmax.xlane.f32.xlu0 %v4128_v25  ;;  %v4187_v15 = vsel %vm731_vm1, %v4183_v26, -inf }
0x1a2a   :  { %4188 = vmax.xlane.f32.xlu1 %v4187_v15  ;;  %v4047_v15 = vpop.f32.mrf.mxu0 }
0x1a2b   :  { %v4074_v27 = vpop.xlane.xlu2 %4073 }
0x1a2c   :  { %v4075_v58 = vsub.f32 %v4068_v10, %v4074_v27  ;;  %v4048_v27 = vadd.f32 %v8586_v41, %v4047_v15 }
0x1a2e   :  { %v4076_v28 = vmul.f32 1.442695, %v4075_v58 }
0x1a2f   :  { %v4126_v29 = vpop.f32.mrf.mxu3 }
0x1a30   :  { %6547 = vpow2.f32 %v4076_v28  ;;  %v4185_v32 = vpop.f32.mrf.mxu1 }
0x1a31   :  { %v4291_v32 = vpack.c.bf16 %v4048_v27, %v4048_v27 }
0x1a33   :  { %v4329_v43 = vsel %vm766_vm2, %v4291_v32, 0 }
0x1a36   :  { %v6548_v54 = vpop.eup %6547 }
0x1a37   :  { %v4239_v5 = vpop.f32.mrf.mxu3  ;;  %v4078_v0 = vsel %vm731_vm1, %v6548_v54, 0.0 }
0x1a38   :  { %4079 = vadd.xlane.f32.xlu0 %v4078_v0  ;;  %v4243_v36 = vsel %vm731_vm1, %v4239_v5, -inf  ;;  %v4309_v37 = vpop.f32.mrf.mxu1 }
0x1a39   :  { %4244 = vmax.xlane.f32.xlu2 %v4243_v36  ;;  %v4313_v57 = vsel %vm731_vm1, %v4309_v37, -inf }
0x1a3f   :  { %v4241_v30 = vpop.f32.mrf.mxu3 }
0x1a40   :  { %4314 = vmax.xlane.f32.xlu0 %v4313_v57  ;;  %v4311_v40 = vpop.f32.mrf.mxu1 }
0x1a47   :  { %v4365_v42 = vpop.f32.mrf.mxu3 }
0x1a48   :  { %v4369_v45 = vsel %vm731_vm1, %v4365_v42, -inf  ;;  %v8630_v47 = vpop.f32.mrf.mxu1 }
0x1a49   :  { %4370 = vmax.xlane.f32.xlu2 %v4369_v45  ;;  %v4428_v48 = vsel %vm731_vm1, %v8630_v47, -inf }
0x1a4a   :  { %4429 = vmax.xlane.f32.xlu1 %v4428_v48 }
0x1a4f   :  { %v4367_v51 = vpop.f32.mrf.mxu3 }
0x1a50   :  { %v4426_v39 = vpop.f32.mrf.mxu1 }
0x1a54   :  { %4143 = vrot.lane.b32.xlu0 %v4142_v17, %s7383_s22 }
0x1a57   :  { %v8636_v44 = vpop.f32.mrf.mxu3 }
0x1a58   :  { %v4484_v55 = vsel %vm731_vm1, %v8636_v44, -inf }
0x1a59   :  { %4485 = vmax.xlane.f32.xlu2 %v4484_v55 }
0x1a5f   :  { %v4482_v34 = vpop.f32.mrf.mxu3 }
0x1a63   :  { %4255 = vrot.lane.b32.xlu1 %v4142_v17, %s7384_s12 }
0x1a67   :  { %v4714_v4 = vpop.f32.mrf.mxu3 }
0x1a68   :  { %v4715_v59 = vadd.f32 %v8641_v56, %v4714_v4 }
0x1a6a   :  { %v8644_v46 = vpack.c.bf16 %v4715_v59, %v4715_v59 }
0x1a6c   :  { %v4755_v60 = vsel %vm731_vm1, %v8644_v46, 0 }
0x1a6d   :  { %4764 = vmatpush.bf16.xpose.msrb.mxu1 %v4755_v60 }
0x1a71   :  { %4199 = vrot.lane.b32.xlu2 %v4142_v17, %s7382_s18 }
0x1a9c   :  { %v4130_v61 = vpop.xlane.xlu0 %4129 }
0x1a9d   :  { %v4131_v24 = vsub.f32 %v4124_v23, %v4130_v61  ;;  %v4189_v20 = vpop.xlane.xlu1 %4188 }
0x1a9e   :  { %v4190_v52 = vsub.f32 %v4183_v26, %v4189_v20 }
0x1a9f   :  { %v4132_v62 = vmul.f32 1.442695, %v4131_v24 }
0x1aa0   :  { %v4191_v53 = vmul.f32 1.442695, %v4190_v52 }
0x1aa1   :  { %6549 = vpow2.f32 %v4132_v62 }
0x1aa2   :  { %6551 = vpow2.f32 %v4191_v53 }
0x1aa7   :  { %v8649_v13 = vpop.eup %6549 }
0x1aa8   :  { %v8651_v63 = vpop.eup %6551  ;;  %v4134_v2 = vsel %vm731_vm1, %v8649_v13, 0.0 }
0x1aa9   :  { %4135 = vadd.xlane.f32.xlu1 %v4134_v2  ;;  %v4193_v3 = vsel %vm731_vm1, %v8651_v63, 0.0 }
0x1aaa   :  { %4194 = vadd.xlane.f32.xlu2 %v4193_v3 }
0x1aab   :  { %v4080_v6 = vpop.xlane.xlu0 %4079 }
0x1aac   :  { %6553 = vrcp.f32 %v4080_v6  ;;  %v4245_v7 = vpop.xlane.xlu2 %4244 }
0x1aad   :  { %v4246_v8 = vsub.f32 %v4239_v5, %v4245_v7  ;;  %v4382_v5 = vunpack.c.l.b16 %v4291_v32 }
0x1aaf   :  { %v4247_v19 = vmul.f32 1.442695, %v4246_v8  ;;  %v4383_v57 = vpack.c.b16 %v4382_v5, %v4382_v5 }
0x1ab1   :  { %6555 = vpow2.f32 %v4247_v19 }
0x1ab2   :  { %v6554_v14 = vpop.eup %6553 }
0x1ab3   :  { %v4082_v9 = vmul.f32 %v6554_v14, %v6548_v54  ;;  %v4315_v10 = vpop.xlane.xlu0 %4314 }
0x1ab4   :  { %v4316_v11 = vsub.f32 %v4309_v37, %v4315_v10 }
0x1ab5   :  { %v4083_v12 = vpack.c.bf16 %v4082_v9, %v4082_v9 }
0x1ab6   :  { %v4317_v18 = vmul.f32 1.442695, %v4316_v11 }
0x1ab7   :  { %v8657_v21 = vpop.eup %6555  ;;  %5972 = vmatmul.msk.bf16.vlgmr.msra.gmra.mxu2 %vm731_vm1, %v4083_v12 }
0x1ab8   :  { %6557 = vpow2.f32 %v4317_v18  ;;  %v4249_v16 = vsel %vm731_vm1, %v8657_v21, 0.0  ;;  %v6145_v18 = vld [vmem:[#allocation24 + $0x18] sm:$0xff] }
0x1ab9   :  { %4250 = vadd.xlane.f32.xlu1 %v4249_v16 }
0x1abc   :  { %v4371_v22 = vpop.xlane.xlu2 %4370 }
0x1abd   :  { %v4372_v1 = vsub.f32 %v4365_v42, %v4371_v22  ;;  %v4430_v36 = vpop.xlane.xlu1 %4429 }
0x1abe   :  { %v8662_v23 = vpop.eup %6557  ;;  %v4431_v50 = vsub.f32 %v8630_v47, %v4430_v36 }
0x1abf   :  { %v4373_v25 = vmul.f32 1.442695, %v4372_v1  ;;  %v4319_v26 = vsel %vm731_vm1, %v8662_v23, 0.0 }
0x1ac0   :  { %4320 = vadd.xlane.f32.xlu0 %v4319_v26  ;;  %v4432_v51 = vmul.f32 1.442695, %v4431_v50 }
0x1ac1   :  { %6559 = vpow2.f32 %v4373_v25 }
0x1ac6   :  { %v4144_v58 = vpop.permute.xlu0 %4143 }
0x1ac7   :  { %v6560_v28 = vpop.eup %6559  ;;  %v4149_v29 = vsel %vm766_vm2, %v4144_v58, 0 }
0x1ac8   :  { %4158 = vmatpush.bf16.msrb.mxu0 %v4149_v29  ;;  %v4375_v54 = vsel %vm731_vm1, %v6560_v28, 0.0 }
0x1ac9   :  { %4376 = vadd.xlane.f32.xlu2 %v4375_v54 }
0x1acc   :  { %v4486_v0 = vpop.xlane.xlu2 %4485 }
0x1acd   :  { %v4487_v37 = vsub.f32 %v8636_v44, %v4486_v0 }
0x1acf   :  { %v4488_v30 = vmul.f32 1.442695, %v4487_v37 }
0x1ad1   :  { %6561 = vpow2.f32 %v4488_v30 }
0x1ad2   :  { %4384 = vrot.lane.b32.xlu1 %v4383_v57, %s7383_s22  ;;  %6563 = vpow2.f32 %v4432_v51 }
0x1ad4   :  { %v4200_v41 = vpop.permute.xlu2 %4199 }
0x1ad5   :  { %v4205_v40 = vsel %vm766_vm2, %v4200_v41, 0  ;;  %v4256_v42 = vpop.permute.xlu1 %4255 }
0x1ad6   :  { %4214 = vmatpush.bf16.msrb.mxu2 %v4205_v40  ;;  %v4261_v45 = vsel %vm766_vm2, %v4256_v42, 0  ;;  %v6140_v40 = vld [vmem:[#allocation18 + $0x10] sm:$0xff] }
0x1ad7   :  { %v6562_v48 = vpop.eup %6561  ;;  %4270 = vmatpush.bf16.msra.mxu0 %v4261_v45 }
0x1ad8   :  { %v4490_v31 = vsel %vm731_vm1, %v6562_v48, 0.0  ;;  %v6564_v39 = vpop.eup %6563 }
0x1ad9   :  { %4491 = vadd.xlane.f32.xlu0 %v4490_v31  ;;  %v4434_v17 = vsel %vm731_vm1, %v6564_v39, 0.0 }
0x1ada   :  { %4338 = vmatpush.bf16.msra.mxu2 %v4329_v43 }
0x1ae1   :  { %4496 = vrot.lane.b32.xlu2 %v4383_v57, %s7384_s12 }
0x1aed   :  { %4440 = vrot.lane.b32.xlu0 %v4383_v57, %s7382_s18  ;;  %v6141_v57 = vld [vmem:[#allocation18 + $0x18] sm:$0xff] }
0x1afc   :  { %4435 = vadd.xlane.f32.xlu1 %v4434_v17 }
0x1b1c   :  { %v4136_v44 = vpop.xlane.xlu1 %4135 }
0x1b1d   :  { %6565 = vrcp.f32 %v4136_v44  ;;  %v4195_v55 = vpop.xlane.xlu2 %4194 }
0x1b1e   :  { %6567 = vrcp.f32 %v4195_v55 }
0x1b23   :  { %v6566_v34 = vpop.eup %6565 }
0x1b24   :  { %v6568_v4 = vpop.eup %6567  ;;  %v4138_v59 = vmul.f32 %v6566_v34, %v8649_v13 }
0x1b25   :  { %v4197_v60 = vmul.f32 %v6568_v4, %v8651_v63 }
0x1b26   :  { %v4139_v61 = vpack.c.bf16 %v4138_v59, %v4138_v59 }
0x1b27   :  { %v4198_v47 = vpack.c.bf16 %v4197_v60, %v4197_v60 }
0x1b28   :  { %5974 = vmatmul.msk.bf16.vlgmr.msrb.gmra.mxu0 %vm731_vm1, %v4139_v61 }
0x1b29   :  { %5976 = vmatmul.msk.bf16.vlgmr.msrb.gmra.mxu2 %vm731_vm1, %v4198_v47 }
0x1b2c   :  { %v4251_v24 = vpop.xlane.xlu1 %4250 }
0x1b2d   :  { %6569 = vrcp.f32 %v4251_v24 }
0x1b33   :  { %v6570_v20 = vpop.eup %6569  ;;  %v4321_v52 = vpop.xlane.xlu0 %4320 }
0x1b34   :  { %v4253_v62 = vmul.f32 %v6570_v20, %v8657_v21  ;;  %6571 = vrcp.f32 %v4321_v52  ;;  %v6144_v21 = vld [vmem:[#allocation24 + $0x10] sm:$0xff] }
0x1b36   :  { %v4254_v53 = vpack.c.bf16 %v4253_v62, %v4253_v62 }
0x1b38   :  { %5978 = vmatmul.msk.bf16.vlgmr.msra.gmra.mxu0 %vm731_vm1, %v4254_v53 }
0x1b3a   :  { %v6572_v2 = vpop.eup %6571  ;;  %v8685_v13 = vpop.f32.mrf.mxu2 }
0x1b3b   :  { %v4323_v63 = vmul.f32 %v6572_v2, %v8662_v23 }
0x1b3c   :  { %v4377_v3 = vpop.xlane.xlu2 %4376 }
0x1b3d   :  { %v4324_v6 = vpack.c.bf16 %v4323_v63, %v4323_v63  ;;  %6573 = vrcp.f32 %v4377_v3 }
0x1b3f   :  { %5980 = vmatmul.msk.bf16.vlgmr.msra.gmra.mxu2 %vm731_vm1, %v4324_v6 }
0x1b42   :  { %v4101_v7 = vpop.f32.mrf.mxu2 }
0x1b43   :  { %v6574_v8 = vpop.eup %6573 }
0x1b44   :  { %v4379_v19 = vmul.f32 %v6574_v8, %v6560_v28  ;;  %v4497_v14 = vpop.permute.xlu2 %4496  ;;  %v4385_v9 = vpop.permute.xlu1 %4384 }
0x1b45   :  { %v4502_v10 = vsel %vm766_vm2, %v4497_v14, 0  ;;  %v4390_v11 = vsel %vm766_vm2, %v4385_v9, 0 }
0x1b46   :  { %v4380_v12 = vpack.c.bf16 %v4379_v19, %v4379_v19  ;;  %4399 = vmatpush.bf16.msrb.mxu0 %v4390_v11  ;;  %v6372_v19 = vld [vmem:[#allocation13 + $0x1] ss:$0 sm:$0xff] }
0x1b49   :  { %5982 = vmatmul.msk.bf16.vlgmr.msrb.gmra.mxu0 %vm731_vm1, %v4380_v12 }
0x1b4a   :  { %4511 = vmatpush.bf16.msra.mxu0 %v4502_v10 }
0x1b4c   :  { %v4492_v16 = vpop.xlane.xlu0 %4491 }
0x1b4d   :  { %6575 = vrcp.f32 %v4492_v16 }
0x1b4e   :  { %4740 = vmatpush.bf16.msrb.mxu0 %v6145_v18 }
0x1b52   :  { %4741 = vmatpush.bf16.msrb.mxu0 %v6144_v21 }
0x1b53   :  { %v6576_v22 = vpop.eup %6575 }
0x1b54   :  { %v4494_v1 = vmul.f32 %v6576_v22, %v6562_v48  ;;  %v8698_v48 = vld [vmem:[#allocation25 + $0x1] ss:$0 sm:$0xff] }
0x1b56   :  { %v4495_v23 = vpack.c.bf16 %v4494_v1, %v4494_v1 }
0x1b59   :  { %5986 = vmatmul.msk.bf16.vlgmr.msra.gmra.mxu0 %vm731_vm1, %v4495_v23  ;;  %v4716_v23 = vpop.f32.mrf.mxu3 }
0x1b5f   :  { %v4441_v25 = vpop.permute.xlu0 %4440 }
0x1b60   :  { %v4446_v26 = vsel %vm766_vm2, %v4441_v25, 0 }
0x1b61   :  { %4455 = vmatpush.bf16.msrb.mxu2 %v4446_v26 }
0x1b65   :  { %4682 = vmatpush.bf16.msra.mxu2 %v6141_v57 }
0x1b69   :  { %6022 = vmatmul.msk.bf16.vlgmr.msrb.gmra.mxu0 %vm652_vm0, %v8428_v49  ;;  %4683 = vmatpush.bf16.msra.mxu2 %v6140_v40 }
0x1b6f   :  { %v4436_v15 = vpop.xlane.xlu1 %4435 }
0x1b70   :  { %6577 = vrcp.f32 %v4436_v15 }
0x1b76   :  { %v6578_v27 = vpop.eup %6577 }
0x1b77   :  { %v4438_v58 = vmul.f32 %v6578_v27, %v6564_v39 }
0x1b79   :  { %v4439_v28 = vpack.c.bf16 %v4438_v58, %v4438_v58 }
0x1b7b   :  { %5984 = vmatmul.msk.bf16.vlgmr.msrb.gmra.mxu2 %vm731_vm1, %v4439_v28 }
0x1ba5   :  { %v4160_v29 = vpop.f32.mrf.mxu0 }
0x1bac   :  { %v4216_v32 = vpop.f32.mrf.mxu2 }
0x1bad   :  { %v4162_v54 = vpop.f32.mrf.mxu0 }
0x1bb4   :  { %v4218_v5 = vpop.f32.mrf.mxu2 }
0x1bb5   :  { %v4272_v0 = vpop.f32.mrf.mxu0 }
0x1bbd   :  { %v4274_v36 = vpop.f32.mrf.mxu0 }
0x1bc2   :  { %v4340_v37 = vpop.f32.mrf.mxu2 }
0x1bc6   :  { %v4401_v30 = vpop.f32.mrf.mxu0 }
0x1bc7   :  { %v6299_v41 = vpack.i.bf16 %v4401_v30, %v4160_v29 }
0x1bc9   :  { %6300 = vrot.lane.b32.xlu1 %v6299_v41, %s7385_s9 }
0x1bca   :  { %v4342_v49 = vpop.f32.mrf.mxu2 }
0x1bce   :  { %v4403_v42 = vpop.f32.mrf.mxu0 }
0x1bd6   :  { %v4513_v43 = vpop.f32.mrf.mxu0 }
0x1bd7   :  { %v6309_v34 = vpack.i.bf16 %v4513_v43, %v4272_v0 }
0x1bde   :  { %v4515_v45 = vpop.f32.mrf.mxu0 }
0x1be6   :  { %v4743_v31 = vpop.f32.mrf.mxu0 }
0x1be7   :  { %v4744_v50 = vadd.f32 %v8698_v48, %v4743_v31 }
0x1be9   :  { %v8701_v51 = vpack.c.bf16 %v4744_v50, %v4744_v50 }
0x1beb   :  { %v4786_v39 = vsel %vm766_vm2, %v8701_v51, 0 }
0x1bec   :  { %4795 = vmatpush.bf16.msrb.mxu2 %v4786_v39 }
0x1bfe   :  { %v4457_v17 = vpop.f32.mrf.mxu2 }
0x1bff   :  { %v6304_v44 = vpack.i.bf16 %v4457_v17, %v4216_v32 }
0x1c01   :  { %6305 = vrot.lane.b32.xlu0 %v6304_v44, %s7352_s15 }
0x1c06   :  { %v4459_v55 = vpop.f32.mrf.mxu2 }
0x1c09   :  { %6310 = vrot.lane.b32.xlu0 %v6309_v34, %s7386_s26 }
0x1c3b   :  { %v6301_v59 = vpop.permute.xlu1 %6300 }
0x1c3c   :  { %v6303_v60 = vunpack.i.h.bf16 %v6301_v59  ;;  %v6302_v61 = vunpack.i.l.bf16 %v6301_v59 }
0x1c3e   :  { %v4529_v52 = vsel %vm731_vm1, %v4340_v37, %v6303_v60  ;;  %v4288_v62 = vsel %vm731_vm1, %v8685_v13, %v6302_v61  ;;  %v6373_v60 = vld [vmem:[#allocation15 + $0x1] ss:$0 sm:$0xff] }
0x1c73   :  { %v6306_v4 = vpop.permute.xlu0 %6305 }
0x1c74   :  { %v6308_v47 = vunpack.i.h.bf16 %v6306_v4  ;;  %v6307_v24 = vunpack.i.l.bf16 %v6306_v4 }
0x1c76   :  { %v4289_v63 = vsel %vm969_vm3, %v4288_v62, %v6307_v24  ;;  %v4530_v3 = vsel %vm969_vm3, %v4529_v52, %v6308_v47  ;;  %v6374_v52 = vld [vmem:[#allocation16 + $0x1] ss:$0 sm:$0xff] }
0x1c7b   :  { %v6311_v20 = vpop.permute.xlu0 %6310 }
0x1c7c   :  { %v6313_v53 = vunpack.i.h.bf16 %v6311_v20  ;;  %v6312_v2 = vunpack.i.l.bf16 %v6311_v20 }
0x1c7e   :  { %v4290_v6 = vsel %vm971_vm4, %v4289_v63, %v6312_v2  ;;  %v4531_v7 = vsel %vm971_vm4, %v4530_v3, %v6313_v53 }
0x1c7f   :  { %v4532_v8 = vpack.c.bf16 %v4531_v7, %v4290_v6 }
0x1c81   :  { %5995 = vmatmul.msk.bf16.vlgmr.msra.gmra.mxu1 %vm652_vm0, %v4532_v8 }
0x1cfe   :  { %v4560_v14 = vpop.f32.mrf.mxu1 }
0x1cff   :  { %v4561_v9 = vadd.f32 %v6372_v19, %v4560_v14 }
0x1d01   :  { %v8716_v10 = vadd.f32 %v4561_v9, %v8577_v35 }
0x1d03   :  { %v4571_v13 = vsel %vm652_vm0, %v8716_v10, 0.0  ;;  %v4579_v11 = vmul.f32 %v8716_v10, %v8716_v10 }
0x1d04   :  { %4572 = vadd.xlane.f32.xlu2 %v4571_v13 }
0x1d05   :  { %v4581_v12 = vsel %vm652_vm0, %v4579_v11, 0.0 }
0x1d06   :  { %v4562_v18 = vpop.f32.mrf.mxu1  ;;  %4582 = vadd.xlane.f32.xlu1 %v4581_v12 }
0x1d07   :  { %v4563_v21 = vadd.f32 %v6372_v19, %v4562_v18  ;;  %v6375_v19 = vld [vmem:[#allocation19 + $0x1] ss:$0 sm:$0xff] }
0x1d09   :  { %v8724_v16 = vadd.f32 %v4563_v21, %v8579_v38  ;;  %v4717_v38 = vadd.f32 %v8641_v56, %v4716_v23 }
0x1d0b   :  { %v4574_v22 = vsel %vm652_vm0, %v8724_v16, 0.0  ;;  %v4580_v35 = vmul.f32 %v8724_v16, %v8724_v16  ;;  %v8736_v25 = vpack.c.bf16 %v4717_v38, %v4717_v38 }
0x1d0c   :  { %4575 = vadd.xlane.f32.xlu0 %v4574_v22 }
0x1d0d   :  { %v4584_v1 = vsel %vm652_vm0, %v4580_v35, 0.0  ;;  %v4996_v13 = vsel %vm731_vm1, %v8736_v25, 0 }
0x1d0e   :  { %4585 = vadd.xlane.f32.xlu2 %v4584_v1 }
0x1d1f   :  { %4864 = vrot.lane.b32.xlu1 %v8644_v46, %s7382_s18 }
0x1d20   :  { %4805 = vrot.lane.b32.xlu0 %v8644_v46, %s7383_s22 }
0x1d27   :  { %5046 = vrot.lane.b32.xlu1 %v8736_v25, %s7383_s22 }
0x1d28   :  { %4920 = vrot.lane.b32.xlu0 %v8644_v46, %s7384_s12 }
0x1d2f   :  { %5161 = vrot.lane.b32.xlu1 %v8736_v25, %s7384_s12 }
0x1d77   :  { %v4573_v26 = vpop.xlane.xlu2 %4572 }
0x1d78   :  { %v4577_v15 = vmul.f32 %v4573_v26, %v8015_v33 }
0x1d79   :  { %v4583_v27 = vpop.xlane.xlu1 %4582 }
0x1d7a   :  { %v4589_v58 = vmul.f32 %v4577_v15, %v4577_v15  ;;  %v4587_v28 = vmul.f32 %v4583_v27, %v8015_v33  ;;  %v4615_v4 = vsub.f32 %v8716_v10, %v4577_v15 }
0x1d7c   :  { %v4591_v29 = vsub.f32 %v4587_v28, %v4589_v58 }
0x1d7e   :  { %v4593_v56 = vadd.f32 1e-05, %v4591_v29 }
0x1d7f   :  { %v4576_v32 = vpop.xlane.xlu0 %4575 }
0x1d80   :  { %6579 = vrsqrt.f32 %v4593_v56  ;;  %v4578_v54 = vmul.f32 %v4576_v32, %v8015_v33  ;;  %vm4601_vm5 = vweird.f32 %v4593_v56 }
0x1d81   :  { %v4586_v5 = vpop.xlane.xlu2 %4585 }
0x1d82   :  { %v4590_v0 = vmul.f32 %v4578_v54, %v4578_v54  ;;  %v4588_v46 = vmul.f32 %v4586_v5, %v8015_v33  ;;  %v4616_v24 = vsub.f32 %v8724_v16, %v4578_v54 }
0x1d84   :  { %v4592_v36 = vsub.f32 %v4588_v46, %v4590_v0 }
0x1d86   :  { %v6580_v37 = vpop.eup %6579  ;;  %v4594_v30 = vadd.f32 1e-05, %v4592_v36 }
0x1d87   :  { %v4596_v57 = vmul.f32 %v6580_v37, %v4593_v56  ;;  %vm4602_vm15 = vweird.f32 %v6580_v37 }
0x1d88   :  { %6581 = vrsqrt.f32 %v4594_v30  ;;  %vm4603_vm6 = vmor %vm4601_vm5, %vm4602_vm15  ;;  %vm4611_vm8 = vweird.f32 %v4594_v30 }
0x1d89   :  { %v4597_v41 = vmul.f32 %v6580_v37, %v4596_v57 }
0x1d8b   :  { %v4598_v49 = vmul.f32 0.5, %v4597_v41 }
0x1d8d   :  { %v4599_v40 = vsub.f32 1.5, %v4598_v49 }
0x1d8e   :  { %v6582_v42 = vpop.eup %6581 }
0x1d8f   :  { %v4600_v43 = vmul.f32 %v6580_v37, %v4599_v40  ;;  %v4606_v45 = vmul.f32 %v6582_v42, %v4594_v30  ;;  %vm4612_vm7 = vweird.f32 %v6582_v42 }
0x1d90   :  { %vm4613_vm9 = vmor %vm4611_vm8, %vm4612_vm7 }
0x1d91   :  { %v4607_v31 = vmul.f32 %v6582_v42, %v4606_v45  ;;  %v4865_v50 = vpop.permute.xlu1 %4864  ;;  %v4604_v44 = vsel %vm4603_vm6, %v6580_v37, %v4600_v43 }
0x1d92   :  { %v4870_v39 = vsel %vm731_vm1, %v4865_v50, 0  ;;  %v4806_v17 = vpop.permute.xlu0 %4805  ;;  %v4617_v61 = vmul.f32 %v4615_v4, %v4604_v44 }
0x1d93   :  { %v4608_v55 = vmul.f32 0.5, %v4607_v31  ;;  %v4811_v34 = vsel %vm731_vm1, %v4806_v17, 0  ;;  %4879 = vmatpush.bf16.xpose.msra.mxu1 %v4870_v39 }
0x1d94   :  { %4820 = vmatpush.bf16.xpose.msrb.mxu3 %v4811_v34  ;;  %v4622_v62 = vmul.f32 %v6373_v60, %v4617_v61 }
0x1d95   :  { %v4609_v59 = vsub.f32 1.5, %v4608_v55 }
0x1d96   :  { %v8753_v6 = vadd.f32 %v6374_v52, %v4622_v62 }
0x1d97   :  { %v4610_v47 = vmul.f32 %v6582_v42, %v4609_v59  ;;  %v4839_v59 = vunpack.c.l.b16 %v8701_v51 }
0x1d99   :  { %v4614_v20 = vsel %vm4613_vm9, %v6582_v42, %v4610_v47  ;;  %v5047_v21 = vpop.permute.xlu1 %5046  ;;  %v4840_v47 = vpack.c.b16 %v4839_v59, %v4839_v59 }
0x1d9a   :  { %v4618_v53 = vmul.f32 %v4616_v24, %v4614_v20  ;;  %v4921_v2 = vpop.permute.xlu0 %4920  ;;  %v5052_v22 = vsel %vm731_vm1, %v5047_v21, 0 }
0x1d9b   :  { %v4926_v63 = vsel %vm731_vm1, %v4921_v2, 0 }
0x1d9c   :  { %v4623_v3 = vmul.f32 %v6373_v60, %v4618_v53  ;;  %4935 = vmatpush.bf16.xpose.msra.mxu3 %v4926_v63 }
0x1d9e   :  { %v8755_v7 = vadd.f32 %v6374_v52, %v4623_v3 }
0x1da0   :  { %v4657_v8 = vpack.c.bf16 %v8755_v7, %v8753_v6 }
0x1da1   :  { %v5162_v1 = vpop.permute.xlu1 %5161 }
0x1da2   :  { %6004 = vmatmul.msk.bf16.vlgmr.msra.gmra.mxu2 %vm652_vm0, %v4657_v8  ;;  %v5167_v38 = vsel %vm731_vm1, %v5162_v1, 0 }
0x1e25   :  { %v4685_v14 = vpop.f32.mrf.mxu2 }
0x1e26   :  { %v4686_v9 = vadd.f32 %v6375_v19, %v4685_v14 }
0x1e28   :  { %v4749_v10 = vpack.c.bf16 %v4686_v9, %v4686_v9 }
0x1e2a   :  { %4918 = vrot.lane.b32.xlu0 %v4749_v10, %s7384_s12  ;;  %4802 = vrot.lane.b32.xlu2 %v4749_v10, %s7383_s22 }
0x1e2b   :  { %6023 = vmatmul.msk.bf16.vlgmr.msrb.gmra.mxu1 %vm731_vm1, %v4749_v10 }
0x1e2c   :  { %5005 = vmatpush.bf16.xpose.msrb.mxu1 %v4996_v13 }
0x1e2d   :  { %v4687_v11 = vpop.f32.mrf.mxu2 }
0x1e2e   :  { %v4688_v12 = vadd.f32 %v6375_v19, %v4687_v11 }
0x1e30   :  { %v4990_v18 = vpack.c.bf16 %v4688_v12, %v4688_v12 }
0x1e32   :  { %5105 = vrot.lane.b32.xlu0 %v8736_v25, %s7382_s18  ;;  %4862 = vrot.lane.b32.xlu2 %v4749_v10, %s7382_s18 }
0x1e3a   :  { %5159 = vrot.lane.b32.xlu0 %v4990_v18, %s7384_s12  ;;  %5043 = vrot.lane.b32.xlu2 %v4990_v18, %s7383_s22 }
0x1e42   :  { %5103 = vrot.lane.b32.xlu2 %v4990_v18, %s7382_s18 }
0x1e84   :  { %v4803_v16 = vpop.permute.xlu2 %4802 }
0x1e85   :  { %6025 = vmatmul.msk.bf16.vlgmr.msrb.gmra.mxu3 %vm731_vm1, %v4803_v16 }
0x1e86   :  { %5061 = vmatpush.bf16.xpose.msrb.mxu3 %v5052_v22 }
0x1e8c   :  { %v4863_v35 = vpop.permute.xlu2 %4862 }
0x1e8d   :  { %6027 = vmatmul.msk.bf16.vlgmr.msra.gmra.mxu1 %vm731_vm1, %v4863_v35 }
0x1e94   :  { %v5044_v25 = vpop.permute.xlu2 %5043 }
0x1e9c   :  { %v4919_v23 = vpop.permute.xlu0 %4918  ;;  %v5104_v28 = vpop.permute.xlu2 %5103 }
0x1e9d   :  { %6029 = vmatmul.msk.bf16.vlgmr.msra.gmra.mxu3 %vm731_vm1, %v4919_v23  ;;  %6031 = vmatmul.msk.bf16.vlgmr.msrb.gmra.mxu1 %vm731_vm1, %v4990_v18 }
0x1e9e   :  { %5176 = vmatpush.bf16.xpose.msra.mxu3 %v5167_v38 }
0x1ea4   :  { %v5106_v26 = vpop.permute.xlu0 %5105 }
0x1ea5   :  { %v5111_v15 = vsel %vm731_vm1, %v5106_v26, 0  ;;  %v4745_v26 = vpop.f32.mrf.mxu0 }
0x1ea6   :  { %5120 = vmatpush.bf16.xpose.msra.mxu1 %v5111_v15  ;;  %v4746_v15 = vadd.f32 %v8698_v48, %v4745_v26 }
0x1ea8   :  { %v4766_v27 = vpop.f32.mrf.mxu1 }
0x1ea9   :  { %v4770_v58 = vsel %vm731_vm1, %v4766_v27, -inf }
0x1eaa   :  { %4771 = vmax.xlane.f32.xlu1 %v4770_v58 }
0x1eac   :  { %v5160_v56 = vpop.permute.xlu0 %5159 }
0x1ead   :  { %6033 = vmatmul.msk.bf16.vlgmr.msrb.gmra.mxu3 %vm731_vm1, %v5044_v25  ;;  %6035 = vmatmul.msk.bf16.vlgmr.msra.gmra.mxu1 %vm731_vm1, %v5104_v28 }
0x1eb0   :  { %v4768_v29 = vpop.f32.mrf.mxu1 }
0x1ebd   :  { %6037 = vmatmul.msk.bf16.vlgmr.msra.gmra.mxu3 %vm731_vm1, %v5160_v56 }
0x1f08   :  { %v4822_v32 = vpop.f32.mrf.mxu3 }
0x1f09   :  { %v4826_v54 = vsel %vm731_vm1, %v4822_v32, -inf }
0x1f0a   :  { %4827 = vmax.xlane.f32.xlu2 %v4826_v54  ;;  %v4881_v5 = vpop.f32.mrf.mxu1 }
0x1f0b   :  { %v4885_v0 = vsel %vm731_vm1, %v4881_v5, -inf }
0x1f0c   :  { %4886 = vmax.xlane.f32.xlu0 %v4885_v0 }
0x1f10   :  { %v4824_v46 = vpop.f32.mrf.mxu3 }
0x1f12   :  { %v4883_v36 = vpop.f32.mrf.mxu1 }
0x1f1a   :  { %v5007_v37 = vpop.f32.mrf.mxu1 }
0x1f1b   :  { %v5011_v44 = vsel %vm731_vm1, %v5007_v37, -inf }
0x1f1d   :  { %v4772_v30 = vpop.xlane.xlu1 %4771 }
0x1f1e   :  { %v4773_v57 = vsub.f32 %v4766_v27, %v4772_v30 }
0x1f20   :  { %v4774_v41 = vmul.f32 1.442695, %v4773_v57  ;;  %v4937_v49 = vpop.f32.mrf.mxu3 }
0x1f21   :  { %v4941_v40 = vsel %vm731_vm1, %v4937_v49, -inf }
0x1f22   :  { %6583 = vpow2.f32 %v4774_v41  ;;  %4942 = vmax.xlane.f32.xlu1 %v4941_v40  ;;  %v5009_v42 = vpop.f32.mrf.mxu1 }
0x1f28   :  { %v6584_v43 = vpop.eup %6583  ;;  %v4939_v45 = vpop.f32.mrf.mxu3 }
0x1f29   :  { %v4776_v31 = vsel %vm731_vm1, %v6584_v43, 0.0 }
0x1f2a   :  { %4777 = vadd.xlane.f32.xlu2 %v4776_v31  ;;  %v8786_v50 = vpop.f32.mrf.mxu1 }
0x1f2b   :  { %v5126_v39 = vsel %vm731_vm1, %v8786_v50, -inf }
0x1f2c   :  { %5127 = vmax.xlane.f32.xlu1 %v5126_v39 }
0x1f30   :  { %v5063_v17 = vpop.f32.mrf.mxu3 }
0x1f31   :  { %v5067_v55 = vsel %vm731_vm1, %v5063_v17, -inf }
0x1f32   :  { %5012 = vmax.xlane.f32.xlu2 %v5011_v44  ;;  %5068 = vmax.xlane.f32.xlu0 %v5067_v55  ;;  %v5124_v34 = vpop.f32.mrf.mxu1 }
0x1f38   :  { %v5065_v4 = vpop.f32.mrf.mxu3 }
0x1f40   :  { %v5178_v60 = vpop.f32.mrf.mxu3 }
0x1f41   :  { %v5182_v61 = vsel %vm731_vm1, %v5178_v60, -inf }
0x1f42   :  { %5183 = vmax.xlane.f32.xlu0 %v5182_v61 }
0x1f45   :  { %4953 = vrot.lane.b32.xlu1 %v4840_v47, %s7384_s12 }
0x1f48   :  { %v5180_v24 = vpop.f32.mrf.mxu3 }
0x1f4a   :  { %4841 = vrot.lane.b32.xlu2 %v4840_v47, %s7383_s22 }
0x1f56   :  { %4897 = vrot.lane.b32.xlu0 %v4840_v47, %s7382_s18 }
0x1f7d   :  { %v4828_v20 = vpop.xlane.xlu2 %4827 }
0x1f7e   :  { %v4829_v52 = vsub.f32 %v4822_v32, %v4828_v20  ;;  %v4989_v32 = vpack.c.bf16 %v4746_v15, %v4746_v15 }
0x1f7f   :  { %v4887_v62 = vpop.xlane.xlu0 %4886 }
0x1f80   :  { %v4830_v53 = vmul.f32 1.442695, %v4829_v52  ;;  %v4888_v2 = vsub.f32 %v4881_v5, %v4887_v62  ;;  %v5080_v0 = vunpack.c.l.b16 %v4989_v32 }
0x1f82   :  { %6585 = vpow2.f32 %v4830_v53  ;;  %v4889_v63 = vmul.f32 1.442695, %v4888_v2  ;;  %v5081_v57 = vpack.c.b16 %v5080_v0, %v5080_v0 }
0x1f84   :  { %6587 = vpow2.f32 %v4889_v63 }
0x1f88   :  { %v8797_v51 = vpop.eup %6585 }
0x1f89   :  { %v4832_v3 = vsel %vm731_vm1, %v8797_v51, 0.0 }
0x1f8a   :  { %v8801_v8 = vpop.eup %6587  ;;  %4833 = vadd.xlane.f32.xlu1 %v4832_v3 }
0x1f8b   :  { %v4891_v19 = vsel %vm731_vm1, %v8801_v8, 0.0 }
0x1f8c   :  { %4892 = vadd.xlane.f32.xlu0 %v4891_v19 }
0x1f95   :  { %v4943_v14 = vpop.xlane.xlu1 %4942 }
0x1f96   :  { %v4944_v9 = vsub.f32 %v4937_v49, %v4943_v14 }
0x1f98   :  { %v4945_v10 = vmul.f32 1.442695, %v4944_v9 }
0x1f9a   :  { %6589 = vpow2.f32 %v4945_v10 }
0x1f9d   :  { %v4778_v13 = vpop.xlane.xlu2 %4777 }
0x1f9e   :  { %6591 = vrcp.f32 %v4778_v13 }
0x1f9f   :  { %v5128_v28 = vpop.xlane.xlu1 %5127 }
0x1fa0   :  { %v8805_v11 = vpop.eup %6589  ;;  %v5129_v45 = vsub.f32 %v8786_v50, %v5128_v28 }
0x1fa1   :  { %v4947_v12 = vsel %vm731_vm1, %v8805_v11, 0.0 }
0x1fa2   :  { %4948 = vadd.xlane.f32.xlu1 %v4947_v12  ;;  %v5130_v31 = vmul.f32 1.442695, %v5129_v45 }
0x1fa4   :  { %v6592_v18 = vpop.eup %6591 }
0x1fa5   :  { %v4780_v21 = vmul.f32 %v6592_v18, %v6584_v43  ;;  %v5013_v16 = vpop.xlane.xlu2 %5012  ;;  %v5069_v22 = vpop.xlane.xlu0 %5068  ;;  %v5027_v43 = vsel %vm766_vm2, %v4989_v32, 0 }
0x1fa6   :  { %v5014_v35 = vsub.f32 %v5007_v37, %v5013_v16  ;;  %v5070_v1 = vsub.f32 %v5063_v17, %v5069_v22 }
0x1fa7   :  { %v4781_v23 = vpack.c.bf16 %v4780_v21, %v4780_v21 }
0x1fa8   :  { %v5015_v38 = vmul.f32 1.442695, %v5014_v35  ;;  %v5071_v25 = vmul.f32 1.442695, %v5070_v1 }
0x1fa9   :  { %6024 = vmatmul.msk.bf16.vlgmr.msrb.gmra.mxu2 %vm731_vm1, %v4781_v23 }
0x1faa   :  { %6593 = vpow2.f32 %v5015_v38 }
0x1fab   :  { %6595 = vpow2.f32 %v5071_v25 }
0x1fad   :  { %v4842_v27 = vpop.permute.xlu2 %4841 }
0x1fae   :  { %v4847_v58 = vsel %vm766_vm2, %v4842_v27, 0 }
0x1faf   :  { %4856 = vmatpush.bf16.msra.mxu0 %v4847_v58 }
0x1fb0   :  { %v6594_v29 = vpop.eup %6593 }
0x1fb1   :  { %v6596_v56 = vpop.eup %6595  ;;  %v5017_v54 = vsel %vm731_vm1, %v6594_v29, 0.0 }
0x1fb2   :  { %5018 = vadd.xlane.f32.xlu2 %v5017_v54  ;;  %v5073_v5 = vsel %vm731_vm1, %v6596_v56, 0.0 }
0x1fb3   :  { %5074 = vadd.xlane.f32.xlu0 %v5073_v5 }
0x1fb5   :  { %v5184_v46 = vpop.xlane.xlu0 %5183 }
0x1fb6   :  { %v5185_v36 = vsub.f32 %v5178_v60, %v5184_v46 }
0x1fb7   :  { %v4954_v37 = vpop.permute.xlu1 %4953 }
0x1fb8   :  { %v5186_v30 = vmul.f32 1.442695, %v5185_v36  ;;  %v4959_v48 = vsel %vm766_vm2, %v4954_v37, 0 }
0x1fb9   :  { %4968 = vmatpush.bf16.msrb.mxu0 %v4959_v48 }
0x1fba   :  { %6597 = vpow2.f32 %v5186_v30 }
0x1fbb   :  { %5082 = vrot.lane.b32.xlu1 %v5081_v57, %s7383_s22  ;;  %6599 = vpow2.f32 %v5130_v31 }
0x1fc0   :  { %v6598_v41 = vpop.eup %6597 }
0x1fc1   :  { %v5188_v49 = vsel %vm731_vm1, %v6598_v41, 0.0  ;;  %v6600_v39 = vpop.eup %6599 }
0x1fc2   :  { %5189 = vadd.xlane.f32.xlu2 %v5188_v49  ;;  %v5132_v17 = vsel %vm731_vm1, %v6600_v39, 0.0  ;;  %v6147_v49 = vld [vmem:[#allocation27 + $0x18] sm:$0xff] }
0x1fc3   :  { %5255 = vmatpush.bf16.msrb.mxu1 %v6147_v49 }
0x1fc7   :  { %5194 = vrot.lane.b32.xlu0 %v5081_v57, %s7384_s12 }
0x1fc8   :  { %v4898_v40 = vpop.permute.xlu0 %4897 }
0x1fc9   :  { %v4903_v42 = vsel %vm766_vm2, %v4898_v40, 0  ;;  %v6146_v40 = vld [vmem:[#allocation27 + $0x10] sm:$0xff] }
0x1fca   :  { %4912 = vmatpush.bf16.msra.mxu2 %v4903_v42  ;;  %5256 = vmatpush.bf16.msrb.mxu1 %v6146_v40 }
0x1fce   :  { %5036 = vmatpush.bf16.msrb.mxu2 %v5027_v43 }
0x1fda   :  { %5138 = vrot.lane.b32.xlu2 %v5081_v57, %s7382_s18 }
0x1fe5   :  { %5133 = vadd.xlane.f32.xlu1 %v5132_v17 }
0x1ffd   :  { %v4834_v44 = vpop.xlane.xlu1 %4833 }
0x1ffe   :  { %6601 = vrcp.f32 %v4834_v44 }
0x1fff   :  { %v4893_v55 = vpop.xlane.xlu0 %4892 }
0x2000   :  { %6603 = vrcp.f32 %v4893_v55 }
0x2004   :  { %v6602_v34 = vpop.eup %6601 }
0x2005   :  { %v4836_v4 = vmul.f32 %v6602_v34, %v8797_v51 }
0x2006   :  { %v6604_v59 = vpop.eup %6603 }
0x2007   :  { %v4837_v60 = vpack.c.bf16 %v4836_v4, %v4836_v4  ;;  %v4895_v61 = vmul.f32 %v6604_v59, %v8801_v8 }
0x2009   :  { %v4896_v50 = vpack.c.bf16 %v4895_v61, %v4895_v61  ;;  %6026 = vmatmul.msk.bf16.vlgmr.msra.gmra.mxu0 %vm731_vm1, %v4837_v60 }
0x200b   :  { %6028 = vmatmul.msk.bf16.vlgmr.msra.gmra.mxu2 %vm731_vm1, %v4896_v50 }
0x2015   :  { %v4949_v47 = vpop.xlane.xlu1 %4948 }
0x2016   :  { %6605 = vrcp.f32 %v4949_v47 }
0x201c   :  { %v6606_v24 = vpop.eup %6605 }
0x201d   :  { %v4951_v20 = vmul.f32 %v6606_v24, %v8805_v11 }
0x201f   :  { %v4952_v52 = vpack.c.bf16 %v4951_v20, %v4951_v20  ;;  %v6376_v20 = vld [vmem:[#allocation28 + $0x1] ss:$0 sm:$0xff] }
0x2021   :  { %6030 = vmatmul.msk.bf16.vlgmr.msrb.gmra.mxu0 %vm731_vm1, %v4952_v52 }
0x2025   :  { %v5019_v62 = vpop.xlane.xlu2 %5018 }
0x2026   :  { %6607 = vrcp.f32 %v5019_v62  ;;  %v5075_v53 = vpop.xlane.xlu0 %5074 }
0x2027   :  { %6609 = vrcp.f32 %v5075_v53 }
0x202c   :  { %v6608_v2 = vpop.eup %6607  ;;  %v8829_v63 = vpop.f32.mrf.mxu2 }
0x202d   :  { %v6610_v51 = vpop.eup %6609  ;;  %v5021_v3 = vmul.f32 %v6608_v2, %v6594_v29  ;;  %v5083_v8 = vpop.permute.xlu1 %5082 }
0x202e   :  { %v5077_v19 = vmul.f32 %v6610_v51, %v6596_v56  ;;  %v5088_v14 = vsel %vm766_vm2, %v5083_v8, 0 }
0x202f   :  { %v5022_v9 = vpack.c.bf16 %v5021_v3, %v5021_v3  ;;  %5097 = vmatpush.bf16.msra.mxu0 %v5088_v14 }
0x2030   :  { %v5078_v10 = vpack.c.bf16 %v5077_v19, %v5077_v19 }
0x2031   :  { %6032 = vmatmul.msk.bf16.vlgmr.msrb.gmra.mxu2 %vm731_vm1, %v5022_v9 }
0x2032   :  { %6034 = vmatmul.msk.bf16.vlgmr.msra.gmra.mxu0 %vm731_vm1, %v5078_v10 }
0x2034   :  { %v4799_v13 = vpop.f32.mrf.mxu2 }
0x2035   :  { %v5190_v11 = vpop.xlane.xlu2 %5189 }
0x2036   :  { %6611 = vrcp.f32 %v5190_v11 }
0x2039   :  { %v5195_v12 = vpop.permute.xlu0 %5194 }
0x203a   :  { %v5200_v18 = vsel %vm766_vm2, %v5195_v12, 0 }
0x203b   :  { %5209 = vmatpush.bf16.msrb.mxu0 %v5200_v18 }
0x203c   :  { %v6612_v21 = vpop.eup %6611 }
0x203d   :  { %v5192_v16 = vmul.f32 %v6612_v21, %v6598_v41  ;;  %v5139_v22 = vpop.permute.xlu2 %5138  ;;  %v6149_v21 = vld [vmem:[#allocation33 + $0x18] sm:$0xff] }
0x203e   :  { %v5144_v35 = vsel %vm766_vm2, %v5139_v22, 0 }
0x203f   :  { %v5193_v1 = vpack.c.bf16 %v5192_v16, %v5192_v16  ;;  %5153 = vmatpush.bf16.msra.mxu2 %v5144_v35  ;;  %v6148_v35 = vld [vmem:[#allocation33 + $0x10] sm:$0xff] }
0x2042   :  { %6038 = vmatmul.msk.bf16.vlgmr.msrb.gmra.mxu0 %vm731_vm1, %v5193_v1 }
0x2043   :  { %5370 = vmatpush.bf16.msrb.mxu2 %v6149_v21 }
0x2047   :  { %5371 = vmatpush.bf16.msrb.mxu2 %v6148_v35 }
0x2058   :  { %v5134_v23 = vpop.xlane.xlu1 %5133 }
0x2059   :  { %6613 = vrcp.f32 %v5134_v23 }
0x205f   :  { %v6614_v38 = vpop.eup %6613 }
0x2060   :  { %v5136_v25 = vmul.f32 %v6614_v38, %v6600_v39 }
0x2062   :  { %v5137_v26 = vpack.c.bf16 %v5136_v25, %v5136_v25 }
0x2064   :  { %6036 = vmatmul.msk.bf16.vlgmr.msra.gmra.mxu2 %vm731_vm1, %v5137_v26 }
0x2086   :  { %v4858_v15 = vpop.f32.mrf.mxu0 }
0x208e   :  { %v4860_v27 = vpop.f32.mrf.mxu0  ;;  %v4914_v58 = vpop.f32.mrf.mxu2 }
0x2096   :  { %v4916_v28 = vpop.f32.mrf.mxu2 }
0x209e   :  { %v4970_v29 = vpop.f32.mrf.mxu0 }
0x20a6   :  { %v4972_v56 = vpop.f32.mrf.mxu0 }
0x20af   :  { %v5099_v32 = vpop.f32.mrf.mxu0 }
0x20b0   :  { %v6314_v54 = vpack.i.bf16 %v5099_v32, %v4858_v15 }
0x20b2   :  { %6315 = vrot.lane.b32.xlu1 %v6314_v54, %s7385_s9 }
0x20b4   :  { %v5038_v5 = vpop.f32.mrf.mxu2 }
0x20b7   :  { %v5101_v0 = vpop.f32.mrf.mxu0 }
0x20bc   :  { %v5040_v46 = vpop.f32.mrf.mxu2 }
0x20bf   :  { %v5211_v36 = vpop.f32.mrf.mxu0 }
0x20c0   :  { %v6324_v37 = vpack.i.bf16 %v5211_v36, %v4970_v29 }
0x20c2   :  { %6325 = vrot.lane.b32.xlu2 %v6324_v37, %s7386_s26 }
0x20c7   :  { %v5213_v30 = vpop.f32.mrf.mxu0 }
0x20e7   :  { %v5155_v48 = vpop.f32.mrf.mxu2 }
0x20e8   :  { %v6319_v57 = vpack.i.bf16 %v5155_v48, %v4914_v58  ;;  %v6377_v48 = vld [vmem:[#allocation30 + $0x1] ss:$0 sm:$0xff] }
0x20ea   :  { %6320 = vrot.lane.b32.xlu0 %v6319_v57, %s7352_s15 }
0x20ef   :  { %v5157_v41 = vpop.f32.mrf.mxu2 }
0x211c   :  { %v6326_v31 = vpop.permute.xlu2 %6325 }
0x211d   :  { %v6328_v55 = vunpack.i.h.bf16 %v6326_v31  ;;  %v6327_v34 = vunpack.i.l.bf16 %v6326_v31 }
0x2124   :  { %v6316_v42 = vpop.permute.xlu1 %6315 }
0x2125   :  { %v6318_v43 = vunpack.i.h.bf16 %v6316_v42  ;;  %v6317_v45 = vunpack.i.l.bf16 %v6316_v42  ;;  %v6378_v42 = vld [vmem:[#allocation31 + $0x1] ss:$0 sm:$0xff] }
0x2127   :  { %v5227_v4 = vsel %vm731_vm1, %v5038_v5, %v6318_v43  ;;  %v4986_v59 = vsel %vm731_vm1, %v8829_v63, %v6317_v45 }
0x215c   :  { %v6321_v39 = vpop.permute.xlu0 %6320 }
0x215d   :  { %v6323_v17 = vunpack.i.h.bf16 %v6321_v39  ;;  %v6322_v44 = vunpack.i.l.bf16 %v6321_v39 }
0x215f   :  { %v4987_v60 = vsel %vm969_vm3, %v4986_v59, %v6322_v44  ;;  %v5228_v61 = vsel %vm969_vm3, %v5227_v4, %v6323_v17  ;;  %v6151_v4 = vld [vmem:[%s8977_s30 + $0x28] sm:$0xff]  ;;  %v6150_v59 = vld [vmem:[%s8977_s30 + $0x20] sm:$0xff] }
0x2160   :  { %v4988_v50 = vsel %vm971_vm4, %v4987_v60, %v6327_v34  ;;  %v5229_v47 = vsel %vm971_vm4, %v5228_v61, %v6328_v55  ;;  %v6153_v55 = vld [vmem:[%s8977_s30 + $0x38] sm:$0xff]  ;;  %v6152_v34 = vld [vmem:[%s8977_s30 + $0x30] sm:$0xff] }
0x2161   :  { %v5230_v24 = vpack.c.bf16 %v5229_v47, %v4988_v50  ;;  %5415 = vmatpush.bf16.msrb.mxu3 %v6153_v55  ;;  %v6379_v61 = vld [vmem:[#allocation34 + $0x1] ss:$0 sm:$0xff] }
0x2163   :  { %6047 = vmatmul.msk.bf16.vlgmr.msrb.gmra.mxu1 %vm652_vm0, %v5230_v24 }
0x2165   :  { %5416 = vmatpush.bf16.msrb.mxu3 %v6152_v34 }
0x2169   :  { %5417 = vmatpush.bf16.msrb.mxu3 %v6151_v4 }
0x216d   :  { %5418 = vmatpush.bf16.msrb.mxu3 %v6150_v59 }
0x21e0   :  { %v5258_v52 = vpop.f32.mrf.mxu1 }
0x21e1   :  { %v5259_v62 = vadd.f32 %v6376_v20, %v5258_v52 }
0x21e3   :  { %v5267_v53 = vadd.f32 %v5259_v62, %v8753_v6 }
0x21e5   :  { %v5269_v2 = vsel %vm652_vm0, %v5267_v53, 0.0  ;;  %v5277_v51 = vmul.f32 %v5267_v53, %v5267_v53 }
0x21e6   :  { %5270 = vadd.xlane.f32.xlu0 %v5269_v2 }
0x21e7   :  { %v5279_v63 = vsel %vm652_vm0, %v5277_v51, 0.0 }
0x21e8   :  { %v5260_v3 = vpop.f32.mrf.mxu1  ;;  %5280 = vadd.xlane.f32.xlu1 %v5279_v63 }
0x21e9   :  { %v5261_v8 = vadd.f32 %v6376_v20, %v5260_v3 }
0x21eb   :  { %v5268_v19 = vadd.f32 %v5261_v8, %v8755_v7 }
0x21ed   :  { %v5272_v14 = vsel %vm652_vm0, %v5268_v19, 0.0  ;;  %v5278_v9 = vmul.f32 %v5268_v19, %v5268_v19 }
0x21ee   :  { %5273 = vadd.xlane.f32.xlu2 %v5272_v14 }
0x21ef   :  { %v5282_v10 = vsel %vm652_vm0, %v5278_v9, 0.0 }
0x21f0   :  { %5283 = vadd.xlane.f32.xlu0 %v5282_v10 }
0x2259   :  { %v5271_v13 = vpop.xlane.xlu0 %5270 }
0x225a   :  { %v5275_v6 = vmul.f32 %v5271_v13, %v8015_v33 }
0x225b   :  { %v5281_v11 = vpop.xlane.xlu1 %5280 }
0x225c   :  { %v5287_v12 = vmul.f32 %v5275_v6, %v5275_v6  ;;  %v5285_v18 = vmul.f32 %v5281_v11, %v8015_v33  ;;  %v5313_v37 = vsub.f32 %v5267_v53, %v5275_v6  ;;  %v6380_v53 = vld [vmem:[#allocation36 + $0x1] ss:$0 sm:$0xff] }
0x225e   :  { %v5289_v16 = vsub.f32 %v5285_v18, %v5287_v12 }
0x2260   :  { %v5291_v22 = vadd.f32 1e-05, %v5289_v16 }
0x2261   :  { %v5274_v7 = vpop.xlane.xlu2 %5273 }
0x2262   :  { %6615 = vrsqrt.f32 %v5291_v22  ;;  %v5276_v1 = vmul.f32 %v5274_v7, %v8015_v33  ;;  %vm5299_vm2 = vweird.f32 %v5291_v22 }
0x2263   :  { %v5284_v23 = vpop.xlane.xlu0 %5283 }
0x2264   :  { %v5288_v38 = vmul.f32 %v5276_v1, %v5276_v1  ;;  %v5286_v25 = vmul.f32 %v5284_v23, %v8015_v33  ;;  %v5314_v49 = vsub.f32 %v5268_v19, %v5276_v1 }
0x2266   :  { %v5290_v26 = vsub.f32 %v5286_v25, %v5288_v38 }
0x2268   :  { %v6616_v15 = vpop.eup %6615  ;;  %v5292_v27 = vadd.f32 1e-05, %v5290_v26 }
0x2269   :  { %v5294_v58 = vmul.f32 %v6616_v15, %v5291_v22  ;;  %vm5300_vm1 = vweird.f32 %v6616_v15 }
0x226a   :  { %6617 = vrsqrt.f32 %v5292_v27  ;;  %vm5301_vm3 = vmor %vm5299_vm2, %vm5300_vm1  ;;  %vm5309_vm10 = vweird.f32 %v5292_v27 }
0x226b   :  { %v5295_v28 = vmul.f32 %v6616_v15, %v5294_v58 }
0x226d   :  { %v5296_v29 = vmul.f32 0.5, %v5295_v28 }
0x226f   :  { %v5297_v56 = vsub.f32 1.5, %v5296_v29 }
0x2270   :  { %v6618_v32 = vpop.eup %6617 }
0x2271   :  { %v5298_v54 = vmul.f32 %v6616_v15, %v5297_v56  ;;  %v5304_v5 = vmul.f32 %v6618_v32, %v5292_v27  ;;  %vm5310_vm4 = vweird.f32 %v6618_v32 }
0x2272   :  { %vm5311_vm11 = vmor %vm5309_vm10, %vm5310_vm4 }
0x2273   :  { %v5305_v0 = vmul.f32 %v6618_v32, %v5304_v5  ;;  %v5302_v46 = vsel %vm5301_vm3, %v6616_v15, %v5298_v54 }
0x2274   :  { %v5315_v57 = vmul.f32 %v5313_v37, %v5302_v46 }
0x2275   :  { %v5306_v36 = vmul.f32 0.5, %v5305_v0 }
0x2276   :  { %v5320_v43 = vmul.f32 %v6377_v48, %v5315_v57 }
0x2277   :  { %v5307_v30 = vsub.f32 1.5, %v5306_v36 }
0x2278   :  { %v5325_v39 = vadd.f32 %v6378_v42, %v5320_v43 }
0x2279   :  { %v5308_v41 = vmul.f32 %v6618_v32, %v5307_v30 }
0x227b   :  { %v5312_v40 = vsel %vm5311_vm11, %v6618_v32, %v5308_v41 }
0x227c   :  { %v5316_v45 = vmul.f32 %v5314_v49, %v5312_v40 }
0x227e   :  { %v5321_v31 = vmul.f32 %v6377_v48, %v5316_v45  ;;  %v6381_v48 = vld [vmem:[#allocation37 + $0x1] ss:$0 sm:$0xff] }
0x2280   :  { %v5326_v17 = vadd.f32 %v6378_v42, %v5321_v31  ;;  %v6382_v42 = vld [vmem:[#allocation39 + $0x1] ss:$0 sm:$0xff] }
0x2282   :  { %v5345_v44 = vpack.c.bf16 %v5326_v17, %v5325_v39 }
0x2284   :  { %6064 = vmatmul.msk.bf16.vlgmr.msrb.gmra.mxu2 %vm652_vm0, %v5345_v44 }
0x2307   :  { %v5373_v60 = vpop.f32.mrf.mxu2 }
0x2308   :  { %v5374_v50 = vadd.f32 %v6379_v61, %v5373_v60 }
0x230a   :  { %v5378_v20 = vmax.f32 %v5374_v50, 0.0 }
0x230f   :  { %v5375_v47 = vpop.f32.mrf.mxu2 }
0x2310   :  { %v5376_v24 = vadd.f32 %v6379_v61, %v5375_v47 }
0x2312   :  { %v5379_v52 = vmax.f32 %v5376_v24, 0.0 }
0x2314   :  { %v5380_v62 = vpack.c.bf16 %v5379_v52, %v5378_v20 }
0x2316   :  { %6081 = vmatmul.msk.bf16.vlgmr.msrb.gmra.mxu3 %vm1393_vm12, %v5380_v62 }
0x2399   :  { %v5420_v2 = vpop.f32.mrf.mxu3 }
0x239a   :  { %v5421_v51 = vadd.f32 %v6380_v53, %v5420_v2 }
0x239c   :  { %v5429_v63 = vadd.f32 %v5421_v51, %v5325_v39 }
0x239e   :  { %v5431_v3 = vsel %vm652_vm0, %v5429_v63, 0.0  ;;  %v5439_v14 = vmul.f32 %v5429_v63, %v5429_v63 }
0x239f   :  { %5432 = vadd.xlane.f32.xlu2 %v5431_v3 }
0x23a0   :  { %v5441_v13 = vsel %vm652_vm0, %v5439_v14, 0.0 }
0x23a1   :  { %v5422_v8 = vpop.f32.mrf.mxu3 }
0x23a2   :  { %v5423_v19 = vadd.f32 %v6380_v53, %v5422_v8 }
0x23a4   :  { %v5430_v9 = vadd.f32 %v5423_v19, %v5326_v17 }
0x23a6   :  { %v5434_v10 = vsel %vm652_vm0, %v5430_v9, 0.0  ;;  %v5440_v6 = vmul.f32 %v5430_v9, %v5430_v9 }
0x23a7   :  { %5435 = vadd.xlane.f32.xlu0 %v5434_v10  ;;  %5442 = vadd.xlane.f32.xlu2 %v5441_v13 }
0x23a8   :  { %v5444_v11 = vsel %vm652_vm0, %v5440_v6, 0.0 }
0x23a9   :  { %5445 = vadd.xlane.f32.xlu1 %v5444_v11 }
0x2412   :  { %v5433_v12 = vpop.xlane.xlu2 %5432 }
0x2413   :  { %v5437_v18 = vmul.f32 %v5433_v12, %v8015_v33 }
0x2415   :  { %v5449_v22 = vmul.f32 %v5437_v18, %v5437_v18  ;;  %v5475_v30 = vsub.f32 %v5429_v63, %v5437_v18 }
0x241a   :  { %v5436_v21 = vpop.xlane.xlu0 %5435  ;;  %v5443_v16 = vpop.xlane.xlu2 %5442 }
0x241b   :  { %v5438_v35 = vmul.f32 %v5436_v21, %v8015_v33  ;;  %v5447_v7 = vmul.f32 %v5443_v16, %v8015_v33 }
0x241c   :  { %v5446_v1 = vpop.xlane.xlu1 %5445 }
0x241d   :  { %v5450_v23 = vmul.f32 %v5438_v35, %v5438_v35  ;;  %v5451_v38 = vsub.f32 %v5447_v7, %v5449_v22  ;;  %v5448_v25 = vmul.f32 %v5446_v1, %v8015_v33  ;;  %v5476_v49 = vsub.f32 %v5430_v9, %v5438_v35  ;;  %v6383_v35 = vld [vmem:[#allocation40] ss:$0 sm:$0xff]  ;;  %v6384_v1 = vld [vmem:[#allocation42] ss:$0 sm:$0xff] }
0x241f   :  { %v5453_v26 = vadd.f32 1e-05, %v5451_v38  ;;  %v5452_v15 = vsub.f32 %v5448_v25, %v5450_v23 }
0x2421   :  { %6619 = vrsqrt.f32 %v5453_v26  ;;  %v5454_v27 = vadd.f32 1e-05, %v5452_v15  ;;  %vm5461_vm13 = vweird.f32 %v5453_v26 }
0x2423   :  { %6621 = vrsqrt.f32 %v5454_v27  ;;  %vm5471_vm5 = vweird.f32 %v5454_v27 }
0x2427   :  { %v6620_v58 = vpop.eup %6619 }
0x2428   :  { %v5456_v28 = vmul.f32 %v6620_v58, %v5453_v26  ;;  %vm5462_vm12 = vweird.f32 %v6620_v58 }
0x2429   :  { %v6622_v29 = vpop.eup %6621  ;;  %vm5463_vm15 = vmor %vm5461_vm13, %vm5462_vm12 }
0x242a   :  { %v5457_v56 = vmul.f32 %v6620_v58, %v5456_v28  ;;  %v5466_v32 = vmul.f32 %v6622_v29, %v5454_v27  ;;  %vm5472_vm14 = vweird.f32 %v6622_v29 }
0x242b   :  { %vm5473_vm6 = vmor %vm5471_vm5, %vm5472_vm14 }
0x242c   :  { %v5458_v54 = vmul.f32 0.5, %v5457_v56  ;;  %v5467_v5 = vmul.f32 %v6622_v29, %v5466_v32 }
0x242e   :  { %v5459_v0 = vsub.f32 1.5, %v5458_v54  ;;  %v5468_v46 = vmul.f32 0.5, %v5467_v5 }
0x2430   :  { %v5460_v36 = vmul.f32 %v6620_v58, %v5459_v0  ;;  %v5469_v37 = vsub.f32 1.5, %v5468_v46 }
0x2432   :  { %v5464_v57 = vsel %vm5463_vm15, %v6620_v58, %v5460_v36  ;;  %v5470_v41 = vmul.f32 %v6622_v29, %v5469_v37 }
0x2433   :  { %v5477_v40 = vmul.f32 %v5475_v30, %v5464_v57 }
0x2434   :  { %v5474_v43 = vsel %vm5473_vm6, %v6622_v29, %v5470_v41 }
0x2435   :  { %v5482_v45 = vmul.f32 %v6381_v48, %v5477_v40  ;;  %v5478_v31 = vmul.f32 %v5476_v49, %v5474_v43 }
0x2437   :  { %v5487_v39 = vadd.f32 %v6382_v42, %v5482_v45  ;;  %v5483_v17 = vmul.f32 %v6381_v48, %v5478_v31 }
0x2439   :  { %v5491_v44 = vsel %vm652_vm0, %v5487_v39, 0.0  ;;  %v5488_v55 = vadd.f32 %v6382_v42, %v5483_v17  ;;  %v5499_v34 = vmul.f32 %v5487_v39, %v5487_v39 }
0x243a   :  { %5492 = vadd.xlane.f32.xlu0 %v5491_v44 }
0x243b   :  { %v5494_v4 = vsel %vm652_vm0, %v5488_v55, 0.0  ;;  %v5501_v59 = vsel %vm652_vm0, %v5499_v34, 0.0  ;;  %v5500_v60 = vmul.f32 %v5488_v55, %v5488_v55 }
0x243c   :  { %5495 = vadd.xlane.f32.xlu2 %v5494_v4  ;;  %5502 = vadd.xlane.f32.xlu1 %v5501_v59 }
0x243d   :  { %v5504_v61 = vsel %vm652_vm0, %v5500_v60, 0.0 }
0x2442   :  { %5505 = vadd.xlane.f32.xlu0 %v5504_v61 }
0x24ad   :  { %v5493_v50 = vpop.xlane.xlu0 %5492 }
0x24ae   :  { %v5497_v47 = vmul.f32 %v5493_v50, %v8015_v33 }
0x24af   :  { %v5503_v24 = vpop.xlane.xlu1 %5502  ;;  %v5496_v20 = vpop.xlane.xlu2 %5495 }
0x24b0   :  { %v5509_v52 = vmul.f32 %v5497_v47, %v5497_v47  ;;  %v5507_v62 = vmul.f32 %v5503_v24, %v8015_v33  ;;  %v5498_v2 = vmul.f32 %v5496_v20, %v8015_v33  ;;  %v5535_v22 = vsub.f32 %v5487_v39, %v5497_v47 }
0x24b2   :  { %v5511_v53 = vsub.f32 %v5507_v62, %v5509_v52  ;;  %v5510_v3 = vmul.f32 %v5498_v2, %v5498_v2  ;;  %v5536_v27 = vsub.f32 %v5488_v55, %v5498_v2 }
0x24b4   :  { %v5513_v51 = vadd.f32 1e-05, %v5511_v53 }
0x24b5   :  { %v5506_v63 = vpop.xlane.xlu0 %5505 }
0x24b6   :  { %6623 = vrsqrt.f32 %v5513_v51  ;;  %v5508_v8 = vmul.f32 %v5506_v63, %v8015_v33  ;;  %vm5521_vm8 = vweird.f32 %v5513_v51 }
0x24b8   :  { %v5512_v19 = vsub.f32 %v5508_v8, %v5510_v3 }
0x24ba   :  { %v5514_v14 = vadd.f32 1e-05, %v5512_v19 }
0x24bc   :  { %v6624_v9 = vpop.eup %6623  ;;  %6625 = vrsqrt.f32 %v5514_v14  ;;  %vm5531_vm2 = vweird.f32 %v5514_v14 }
0x24bd   :  { %v5516_v10 = vmul.f32 %v6624_v9, %v5513_v51  ;;  %vm5522_vm7 = vweird.f32 %v6624_v9 }
0x24be   :  { %vm5523_vm9 = vmor %vm5521_vm8, %vm5522_vm7 }
0x24bf   :  { %v5517_v13 = vmul.f32 %v6624_v9, %v5516_v10 }
0x24c1   :  { %v5518_v6 = vmul.f32 0.5, %v5517_v13 }
0x24c2   :  { %v6626_v11 = vpop.eup %6625 }
0x24c3   :  { %v5519_v12 = vsub.f32 1.5, %v5518_v6  ;;  %v5526_v18 = vmul.f32 %v6626_v11, %v5514_v14  ;;  %vm5532_vm1 = vweird.f32 %v6626_v11 }
0x24c4   :  { %vm5533_vm3 = vmor %vm5531_vm2, %vm5532_vm1 }
0x24c5   :  { %v5520_v21 = vmul.f32 %v6624_v9, %v5519_v12  ;;  %v5527_v16 = vmul.f32 %v6626_v11, %v5526_v18 }
0x24c7   :  { %v5524_v7 = vsel %vm5523_vm9, %v6624_v9, %v5520_v21  ;;  %v5528_v33 = vmul.f32 0.5, %v5527_v16 }
0x24c8   :  { %v5537_v23 = vmul.f32 %v5535_v22, %v5524_v7 }
0x24c9   :  { %v5529_v38 = vsub.f32 1.5, %v5528_v33 }
0x24ca   :  { %v5542_v25 = vmul.f32 %v6383_v35, %v5537_v23 }
0x24cb   :  { %v5530_v26 = vmul.f32 %v6626_v11, %v5529_v38 }
0x24cc   :  { %v5547_v15 = vadd.f32 %v6384_v1, %v5542_v25 }
0x24cd   :  { %v5534_v58 = vsel %vm5533_vm3, %v6626_v11, %v5530_v26 }
0x24ce   :  { %5549 = vst.msk [vmem:[%s7636_s17] sm:$0xff] %vm652_vm0, %v5547_v15  ;;  %v5538_v28 = vmul.f32 %v5536_v27, %v5534_v58 }
0x24d0   :  { %v5543_v29 = vmul.f32 %v6383_v35, %v5538_v28 }
0x24d2   :  { %v5548_v56 = vadd.f32 %v6384_v1, %v5543_v29 }
0x24d4   :  { %5550 = vst.msk [vmem:[%s7636_s17 + $0x8] sm:$0xff] %vm652_vm0, %v5548_v56 }
0x24d5   :  { %5555 = vsyncpa [#allocation3], 1 }
0x24d6   :  { %5556 = vsyncpa [#allocation5], 1 }
0x24d7   :  { %5557 = vsyncpa [#allocation8], 1 }
0x24d8   :  { %5558 = vsyncpa [#allocation11], 1 }
0x24d9   :  { %5559 = vsyncpa [#allocation14], 1 }
0x24da   :  { %5560 = vsyncpa [#allocation17], 1 }
0x24db   :  { %5561 = vsyncpa [#allocation20], 1 }
0x24dc   :  { %5562 = vsyncpa [#allocation23], 1 }
0x24dd   :  { %5563 = vsyncpa [#allocation26], 1 }
0x24de   :  { %5564 = vsyncpa [#allocation29], 1 }
0x24df   :  { %5565 = vsyncpa [#allocation32], 1 }
0x24e0   :  { %5566 = vsyncpa [#allocation35], 1 }
0x24e1   :  { %5567 = vsyncpa [#allocation38], 1 }
0x24e2   :  { %5568 = vsyncpa [#allocation41], 1 }

</bundles_post_ra>
